<compile_context>
chip_gen: v6e
topology: v6e:2x2x1
jax: 0.10.0
libtpu: 0.0.40
codegen_flags: <defaults>
</compile_context>

<pallas_src>
import functools

import jax
import jax.numpy as jnp
from jax.experimental import pallas as pl
from jax.experimental.pallas import tpu as pltpu

VIEWCONE_HEIGHT = 7
VIEWCONE_WIDTH = 5

HP = VIEWCONE_HEIGHT + 2          # 9  (padded grid rows)
WP = VIEWCONE_WIDTH + 2           # 7  (padded grid cols)
GRID = HP * WP                    # 63 padded grid positions
C1, C2, HID = 32, 64, 256
NA_PAD = 128                      # fc_output lanes padded to a full lane tile
BORDER_BOT = VIEWCONE_HEIGHT * WP + VIEWCONE_WIDTH + 1   # 55: first bottom-border pos


# ------------------------------- fused kernel --------------------------------
def _qnet_kernel(x_ref, flat_ref,
                 w1_ref, s1_ref, b1_ref,
                 w2_ref, s2_ref, b2_ref,
                 wf_ref, sf_ref, bf_ref,
                 wc3_ref, wcf_ref, sc_ref, bc_ref,
                 wo_ref, bo_ref,
                 o_ref,
                 h1_ref):
    bb = o_ref.shape[0]                       # batch lanes per grid step
    H, W = VIEWCONE_HEIGHT, VIEWCONE_WIDTH

    zero_slab = jnp.zeros(((WP + 1) * bb, C1), jnp.bfloat16)   # 8 grid positions
    zero_gap = jnp.zeros((2 * bb, C1), jnp.bfloat16)           # 2 grid positions

    # ---- conv1 -> bn1 -> relu, written into the zero-bordered padded grid ----
    # h1 row layout: row = padded_grid_pos * bb + batch_lane  (bf16 scratch).
    h1_ref[0:(WP + 1) * bb, :] = zero_slab              # top row + left border of row 1
    h1_ref[BORDER_BOT * bb:GRID * bb, :] = zero_slab    # right border of row 7 + bottom row
    for h in range(H):
        p0 = (h + 1) * WP + 1                 # first interior padded position of row h
        rows = W * bb
        lo_in = h * W * bb
        a1 = jnp.dot(x_ref[lo_in:lo_in + rows, :], w1_ref[...],
                     preferred_element_type=jnp.float32)
        a1 = jnp.maximum(a1 * s1_ref[...] + b1_ref[...], 0.0)
        h1_ref[p0 * bb:p0 * bb + rows, :] = a1.astype(jnp.bfloat16)
        if h < H - 1:
            gap = (p0 + W) * bb               # right border of row h + left border of row h+1
            h1_ref[gap:gap + 2 * bb, :] = zero_gap

    # ---- fc_flat1 -> bn_flat1 -> relu ----------------------------------------
    hf = jnp.dot(flat_ref[...].astype(jnp.bfloat16), wf_ref[...],
                 preferred_element_type=jnp.float32)
    hf = jnp.maximum(hf * sf_ref[...] + bf_ref[...], 0.0)

    # ---- fc_combined1 (flat contribution) -------------------------------------
    acc = jnp.dot(hf.astype(jnp.bfloat16), wcf_ref[...],
                  preferred_element_type=jnp.float32)            # (bb, HID) f32

    # ---- conv2 -> bn2 -> relu, fused into fc_combined1 ------------------------
    # Per unpadded grid row h: value-accumulate 9 shifted-tap matmuls over the
    # 5 interior positions (5*bb rows), then fold each position into acc via
    # the row-permuted fc_combined1 weight (absorbs the PyTorch NCHW flatten).
    deltas = [dh * WP + dw for dh in (-1, 0, 1) for dw in (-1, 0, 1)]
    for h in range(H):
        p0 = (h + 1) * WP + 1
        rows = W * bb
        lo0 = (p0 + deltas[0]) * bb
        chunk = jnp.dot(h1_ref[lo0:lo0 + rows, :], w2_ref[0],
                        preferred_element_type=jnp.float32)
        for t in range(1, 9):
            lo = (p0 + deltas[t]) * bb
            chunk = chunk + jnp.dot(h1_ref[lo:lo + rows, :], w2_ref[t],
                                    preferred_element_type=jnp.float32)
        chunk = jnp.maximum(chunk * s2_ref[...] + b2_ref[...], 0.0)
        chunk = chunk.astype(jnp.bfloat16)                        # cast once
        for w in range(W):
            acc = acc + jnp.dot(chunk[w * bb:(w + 1) * bb, :],
                                wc3_ref[h * W + w],
                                preferred_element_type=jnp.float32)

    # ---- bn_combined1 -> relu -> fc_output ------------------------------------
    h3 = jnp.maximum(acc * sc_ref[...] + bc_ref[...], 0.0)
    q = jnp.dot(h3.astype(jnp.bfloat16), wo_ref[...],
                preferred_element_type=jnp.float32) + bo_ref[...]
    o_ref[...] = q.astype(o_ref.dtype)


# ------------------------------ parameters -----------------------------------
def init_params(key, cnn_in_channels: int, flat_input_size: int, n_actions: int):
    ks = jax.random.split(key, 32)
    it = iter(range(32))

    def nrm(shape, s=0.1):
        return (jax.random.normal(ks[next(it)], shape) * s).astype(jnp.float32)

    def bn(n):
        return dict(
            gamma=(1.0 + nrm((n,))).astype(jnp.float32),
            beta=nrm((n,)),
            mean=nrm((n,)),
            var=(1.0 + jnp.abs(nrm((n,)))).astype(jnp.float32),
        )

    cnn_flat = C2 * VIEWCONE_HEIGHT * VIEWCONE_WIDTH  # 2240
    return {
        # conv weights stored HWIO (3, 3, Cin, Cout) == torch weight.permute(2,3,1,0)
        "conv1_w": nrm((3, 3, cnn_in_channels, C1)),
        "conv1_b": nrm((C1,)),
        "bn1": bn(C1),
        "conv2_w": nrm((3, 3, C1, C2)),
        "conv2_b": nrm((C2,)),
        "bn2": bn(C2),
        # linear weights stored (in, out) == torch weight.T
        "fc_flat1_w": nrm((flat_input_size, 64)),
        "fc_flat1_b": nrm((64,)),
        "bn_flat1": bn(64),
        "fc_comb1_w": nrm((cnn_flat + 64, HID)),
        "fc_comb1_b": nrm((HID,)),
        "bn_comb1": bn(HID),
        "fc_out_w": nrm((HID, n_actions)),
        "fc_out_b": nrm((n_actions,)),
    }


def prepare_params(p, n_actions: int):
    """One-time, input-independent prep: BN/bias folding, permutes, pads, bf16."""
    def fold(bn, layer_b):
        s = bn["gamma"] / jnp.sqrt(bn["var"] + 1e-5)
        b = bn["beta"] - bn["mean"] * s + s * layer_b
        return s.reshape(1, -1).astype(jnp.float32), b.reshape(1, -1).astype(jnp.float32)

    s1, b1 = fold(p["bn1"], p["conv1_b"])
    s2, b2 = fold(p["bn2"], p["conv2_b"])
    sf, bf = fold(p["bn_flat1"], p["fc_flat1_b"])
    sc, bc = fold(p["bn_comb1"], p["fc_comb1_b"])

    cin = p["conv1_w"].shape[2]
    hw = VIEWCONE_HEIGHT * VIEWCONE_WIDTH
    # conv1 as one matmul: rows enumerated (kh, kw, cin) row-major == im2col columns.
    w1 = p["conv1_w"].reshape(9 * cin, C1).astype(jnp.bfloat16)
    # conv2 taps: (kh,kw) row-major -> matches the kernel's delta order.
    w2 = p["conv2_w"].reshape(9, C1, C2).astype(jnp.bfloat16)
    wf = p["fc_flat1_w"].astype(jnp.bfloat16)

    wc = p["fc_comb1_w"]
    # PyTorch flatten index = c*35 + (h*5+w); permute rows so the kernel indexes
    # by spatial position: wc3[h*5+w, c, :] = fc_comb1_w[c*35 + h*5 + w, :]
    wc3 = wc[:C2 * hw].reshape(C2, hw, HID).transpose(1, 0, 2).astype(jnp.bfloat16)
    wcf = wc[C2 * hw:].astype(jnp.bfloat16)

    wo = jnp.zeros((HID, NA_PAD), jnp.float32).at[:, :n_actions].set(
        p["fc_out_w"]).astype(jnp.bfloat16)
    bo = jnp.zeros((1, NA_PAD), jnp.float32).at[0, :n_actions].set(p["fc_out_b"])

    return dict(w1=w1, s1=s1, b1=b1, w2=w2, s2=s2, b2=b2, wf=wf, sf=sf, bf=bf,
                wc3=wc3, wcf=wcf, sc=sc, bc=bc, wo=wo, bo=bo)


# ------------------------------ forward pass ----------------------------------
def _round_up(x, m):
    return ((x + m - 1) // m) * m


@functools.partial(jax.jit, static_argnums=(3,))
def qnetwork_forward(prep, cnn_x_nchw, flat_x, n_actions):
    B, C = cnn_x_nchw.shape[0], cnn_x_nchw.shape[1]
    H, W = VIEWCONE_HEIGHT, VIEWCONE_WIDTH
    F = flat_x.shape[1]
    KC = 9 * C

    # Batch block: multiple of 16 (bf16 sublane tile); ~B/2 so large batches get
    # >=2 grid steps for v7x's two TensorCores; capped at 64 to keep the conv2
    # chunk + fc accumulator comfortably inside the 64-vreg file.
    bb = min(64, max(16, _round_up(-(-B // 2), 16)))
    nb = -(-B // bb)
    Bt = nb * bb

    # Host-side im2col for conv1 (padding=1), bf16:
    #   xc[b, h, w, t*C + c] = x[b, c, h+kh-1, w+kw-1]   (t = kh*3+kw, zero padded)
    x = jnp.transpose(cnn_x_nchw, (0, 2, 3, 1)).astype(jnp.bfloat16)   # (B,H,W,C)
    x = jnp.pad(x, ((0, Bt - B), (1, 1), (1, 1), (0, 0)))              # (Bt,H+2,W+2,C)
    taps = [x[:, dh:dh + H, dw:dw + W, :] for dh in range(3) for dw in range(3)]
    xc = jnp.stack(taps, axis=3).reshape(Bt, H, W, KC)
    # Row layout for the kernel: row = (h*W + w)*bb + batch_lane.
    xc = xc.reshape(nb, bb, H * W, KC).transpose(0, 2, 1, 3).reshape(nb, H * W * bb, KC)

    xf = jnp.pad(flat_x.astype(jnp.float32), ((0, Bt - B), (0, 0))).reshape(nb, bb, F)

    out = pl.pallas_call(
        _qnet_kernel,
        out_shape=jax.ShapeDtypeStruct((nb, bb, NA_PAD), jnp.float32),
        grid=(nb,),
        in_specs=[
            pl.BlockSpec((None, H * W * bb, KC), lambda i: (i, 0, 0)),
            pl.BlockSpec((None, bb, F), lambda i: (i, 0, 0)),
            pl.BlockSpec((KC, C1), lambda i: (0, 0)),
            pl.BlockSpec((1, C1), lambda i: (0, 0)),
            pl.BlockSpec((1, C1), lambda i: (0, 0)),
            pl.BlockSpec((9, C1, C2), lambda i: (0, 0, 0)),
            pl.BlockSpec((1, C2), lambda i: (0, 0)),
            pl.BlockSpec((1, C2), lambda i: (0, 0)),
            pl.BlockSpec((F, 64), lambda i: (0, 0)),
            pl.BlockSpec((1, 64), lambda i: (0, 0)),
            pl.BlockSpec((1, 64), lambda i: (0, 0)),
            pl.BlockSpec((H * W, C2, HID), lambda i: (0, 0, 0)),
            pl.BlockSpec((64, HID), lambda i: (0, 0)),
            pl.BlockSpec((1, HID), lambda i: (0, 0)),
            pl.BlockSpec((1, HID), lambda i: (0, 0)),
            pl.BlockSpec((HID, NA_PAD), lambda i: (0, 0)),
            pl.BlockSpec((1, NA_PAD), lambda i: (0, 0)),
        ],
        out_specs=pl.BlockSpec((None, bb, NA_PAD), lambda i: (i, 0, 0)),
        scratch_shapes=[
            pltpu.VMEM((GRID * bb, C1), jnp.bfloat16),   # conv1 output on padded grid
        ],
        compiler_params=pltpu.CompilerParams(dimension_semantics=("parallel",)),
    )(xc, xf,
      prep["w1"], prep["s1"], prep["b1"],
      prep["w2"], prep["s2"], prep["b2"],
      prep["wf"], prep["sf"], prep["bf"],
      prep["wc3"], prep["wcf"], prep["sc"], prep["bc"],
      prep["wo"], prep["bo"])

    return out.reshape(Bt, NA_PAD)[:B, :n_actions]


# ---------------------------------- main --------------------------------------
if __name__ == "__main__":
    key = jax.random.PRNGKey(0)
    k_params, k_cnn, k_flat = jax.random.split(key, 3)

    batch = 2
    cnn_in_channels = 4
    flat_input_size = 8
    n_actions = 5

    params = init_params(k_params, cnn_in_channels, flat_input_size, n_actions)
    prep = prepare_params(params, n_actions)

    cnn_x = jax.random.normal(
        k_cnn, (batch, cnn_in_channels, VIEWCONE_HEIGHT, VIEWCONE_WIDTH),
        dtype=jnp.float32)
    flat_x = jax.random.normal(k_flat, (batch, flat_input_size), dtype=jnp.float32)

    q_values = qnetwork_forward(prep, cnn_x, flat_x, n_actions)
    q_values = jax.block_until_ready(q_values)
    assert q_values.shape == (batch, n_actions), q_values.shape
    print("KERNEL_OK")
</pallas_src>

<mosaic_0001>
module attributes {stable_mosaic.version = 11 : i64} {
  func.func @_qnet_kernel(%arg0: i32, %arg1: memref<1x560x36xbf16, #tpu.memory_space<vmem>>, %arg2: memref<1x16x8xf32, #tpu.memory_space<vmem>>, %arg3: memref<36x32xbf16, #tpu.memory_space<vmem>>, %arg4: memref<1x32xf32, #tpu.memory_space<vmem>>, %arg5: memref<1x32xf32, #tpu.memory_space<vmem>>, %arg6: memref<9x32x64xbf16, #tpu.memory_space<vmem>>, %arg7: memref<1x64xf32, #tpu.memory_space<vmem>>, %arg8: memref<1x64xf32, #tpu.memory_space<vmem>>, %arg9: memref<8x64xbf16, #tpu.memory_space<vmem>>, %arg10: memref<1x64xf32, #tpu.memory_space<vmem>>, %arg11: memref<1x64xf32, #tpu.memory_space<vmem>>, %arg12: memref<35x64x256xbf16, #tpu.memory_space<vmem>>, %arg13: memref<64x256xbf16, #tpu.memory_space<vmem>>, %arg14: memref<1x256xf32, #tpu.memory_space<vmem>>, %arg15: memref<1x256xf32, #tpu.memory_space<vmem>>, %arg16: memref<256x128xbf16, #tpu.memory_space<vmem>>, %arg17: memref<1x128xf32, #tpu.memory_space<vmem>>, %arg18: memref<1x16x128xf32, #tpu.memory_space<vmem>>, %arg19: memref<1008x32xbf16, #tpu.memory_space<vmem>>) attributes {dimension_semantics = [#tpu.dimension_semantics<parallel>], iteration_bounds = array<i64: 1>, scalar_prefetch = 0 : i64, scratch_operands = 1 : i64, tpu.core_type = #tpu.core_type<tc>, window_params = [{transform_indices = @transform_0, window_bounds = array<i64: 1, 560, 36>}, {transform_indices = @transform_1, window_bounds = array<i64: 1, 16, 8>}, {pipeline_mode = #tpu.pipeline_mode<synchronous>, transform_indices = @transform_2, window_bounds = array<i64: 36, 32>}, {pipeline_mode = #tpu.pipeline_mode<synchronous>, transform_indices = @transform_3, window_bounds = array<i64: 1, 32>}, {pipeline_mode = #tpu.pipeline_mode<synchronous>, transform_indices = @transform_4, window_bounds = array<i64: 1, 32>}, {pipeline_mode = #tpu.pipeline_mode<synchronous>, transform_indices = @transform_5, window_bounds = array<i64: 9, 32, 64>}, {pipeline_mode = #tpu.pipeline_mode<synchronous>, transform_indices = @transform_6, window_bounds = array<i64: 1, 64>}, {pipeline_mode = #tpu.pipeline_mode<synchronous>, transform_indices = @transform_7, window_bounds = array<i64: 1, 64>}, {pipeline_mode = #tpu.pipeline_mode<synchronous>, transform_indices = @transform_8, window_bounds = array<i64: 8, 64>}, {pipeline_mode = #tpu.pipeline_mode<synchronous>, transform_indices = @transform_9, window_bounds = array<i64: 1, 64>}, {pipeline_mode = #tpu.pipeline_mode<synchronous>, transform_indices = @transform_10, window_bounds = array<i64: 1, 64>}, {pipeline_mode = #tpu.pipeline_mode<synchronous>, transform_indices = @transform_11, window_bounds = array<i64: 35, 64, 256>}, {pipeline_mode = #tpu.pipeline_mode<synchronous>, transform_indices = @transform_12, window_bounds = array<i64: 64, 256>}, {pipeline_mode = #tpu.pipeline_mode<synchronous>, transform_indices = @transform_13, window_bounds = array<i64: 1, 256>}, {pipeline_mode = #tpu.pipeline_mode<synchronous>, transform_indices = @transform_14, window_bounds = array<i64: 1, 256>}, {pipeline_mode = #tpu.pipeline_mode<synchronous>, transform_indices = @transform_15, window_bounds = array<i64: 256, 128>}, {pipeline_mode = #tpu.pipeline_mode<synchronous>, transform_indices = @transform_16, window_bounds = array<i64: 1, 128>}, {transform_indices = @transform_17, window_bounds = array<i64: 1, 16, 128>}]} {
    %cst = arith.constant 0.000000e+00 : bf16
    %0 = vector.broadcast %cst : bf16 to vector<128x32xbf16>
    %cst_0 = arith.constant 0.000000e+00 : bf16
    %1 = vector.broadcast %cst_0 : bf16 to vector<32x32xbf16>
    %c0 = arith.constant 0 : index
    %c0_1 = arith.constant 0 : index
    %2 = vector.load %arg19[%c0, %c0_1] : memref<1008x32xbf16, #tpu.memory_space<vmem>>, vector<128x32xbf16>
    tpu.vector_store %arg19[%c0, %c0_1], %0 {strides = array<i32>} : memref<1008x32xbf16, #tpu.memory_space<vmem>>, vector<128x32xbf16>,
    %c880 = arith.constant 880 : index
    %c0_2 = arith.constant 0 : index
    %3 = vector.load %arg19[%c880, %c0_2] : memref<1008x32xbf16, #tpu.memory_space<vmem>>, vector<128x32xbf16>
    tpu.vector_store %arg19[%c880, %c0_2], %0 {strides = array<i32>} : memref<1008x32xbf16, #tpu.memory_space<vmem>>, vector<128x32xbf16>,
    %c0_3 = arith.constant 0 : index
    %c0_4 = arith.constant 0 : index
    %c0_5 = arith.constant 0 : index
    %4 = vector.load %arg1[%c0_3, %c0_4, %c0_5] : memref<1x560x36xbf16, #tpu.memory_space<vmem>>, vector<1x80x36xbf16>
    %5 = vector.shape_cast %4 : vector<1x80x36xbf16> to vector<80x36xbf16>
    %c0_6 = arith.constant 0 : index
    %c0_7 = arith.constant 0 : index
    %6 = vector.load %arg3[%c0_6, %c0_7] : memref<36x32xbf16, #tpu.memory_space<vmem>>, vector<36x32xbf16>
    %cst_8 = arith.constant dense<0.000000e+00> : vector<80x32xf32>
    %7 = tpu.matmul %5, %6, %cst_8 {dimension_numbers = #tpu.dot_dimension_numbers<[1], [0], [0], [1], [0, 0, 1, 1], [], []>} : vector<80x36xbf16>, vector<36x32xbf16>, vector<80x32xf32> -> vector<80x32xf32>
    %c0_9 = arith.constant 0 : index
    %c0_10 = arith.constant 0 : index
    %8 = vector.load %arg4[%c0_9, %c0_10] : memref<1x32xf32, #tpu.memory_space<vmem>>, vector<1x32xf32>
    %9 = vector.broadcast %8 : vector<1x32xf32> to vector<80x32xf32>
    %10 = arith.mulf %7, %9 : vector<80x32xf32>
    %c0_11 = arith.constant 0 : index
    %c0_12 = arith.constant 0 : index
    %11 = vector.load %arg5[%c0_11, %c0_12] : memref<1x32xf32, #tpu.memory_space<vmem>>, vector<1x32xf32>
    %12 = vector.broadcast %11 : vector<1x32xf32> to vector<80x32xf32>
    %13 = arith.addf %10, %12 : vector<80x32xf32>
    %cst_13 = arith.constant 0.000000e+00 : f32
    %14 = vector.broadcast %cst_13 : f32 to vector<80x32xf32>
    %15 = arith.maximumf %13, %14 : vector<80x32xf32>
    %16 = arith.truncf %15 : vector<80x32xf32> to vector<80x32xbf16>
    %c128 = arith.constant 128 : index
    %c0_14 = arith.constant 0 : index
    %17 = vector.load %arg19[%c128, %c0_14] : memref<1008x32xbf16, #tpu.memory_space<vmem>>, vector<80x32xbf16>
    tpu.vector_store %arg19[%c128, %c0_14], %16 {strides = array<i32>} : memref<1008x32xbf16, #tpu.memory_space<vmem>>, vector<80x32xbf16>,
    %c208 = arith.constant 208 : index
    %c0_15 = arith.constant 0 : index
    %18 = vector.load %arg19[%c208, %c0_15] : memref<1008x32xbf16, #tpu.memory_space<vmem>>, vector<32x32xbf16>
    tpu.vector_store %arg19[%c208, %c0_15], %1 {strides = array<i32>} : memref<1008x32xbf16, #tpu.memory_space<vmem>>, vector<32x32xbf16>,
    %c0_16 = arith.constant 0 : index
    %c80 = arith.constant 80 : index
    %c0_17 = arith.constant 0 : index
    %19 = vector.load %arg1[%c0_16, %c80, %c0_17] : memref<1x560x36xbf16, #tpu.memory_space<vmem>>, vector<1x80x36xbf16>
    %20 = vector.shape_cast %19 : vector<1x80x36xbf16> to vector<80x36xbf16>
    %c0_18 = arith.constant 0 : index
    %c0_19 = arith.constant 0 : index
    %21 = vector.load %arg3[%c0_18, %c0_19] : memref<36x32xbf16, #tpu.memory_space<vmem>>, vector<36x32xbf16>
    %cst_20 = arith.constant dense<0.000000e+00> : vector<80x32xf32>
    %22 = tpu.matmul %20, %21, %cst_20 {dimension_numbers = #tpu.dot_dimension_numbers<[1], [0], [0], [1], [0, 0, 1, 1], [], []>} : vector<80x36xbf16>, vector<36x32xbf16>, vector<80x32xf32> -> vector<80x32xf32>
    %c0_21 = arith.constant 0 : index
    %c0_22 = arith.constant 0 : index
    %23 = vector.load %arg4[%c0_21, %c0_22] : memref<1x32xf32, #tpu.memory_space<vmem>>, vector<1x32xf32>
    %24 = vector.broadcast %23 : vector<1x32xf32> to vector<80x32xf32>
    %25 = arith.mulf %22, %24 : vector<80x32xf32>
    %c0_23 = arith.constant 0 : index
    %c0_24 = arith.constant 0 : index
    %26 = vector.load %arg5[%c0_23, %c0_24] : memref<1x32xf32, #tpu.memory_space<vmem>>, vector<1x32xf32>
    %27 = vector.broadcast %26 : vector<1x32xf32> to vector<80x32xf32>
    %28 = arith.addf %25, %27 : vector<80x32xf32>
    %cst_25 = arith.constant 0.000000e+00 : f32
    %29 = vector.broadcast %cst_25 : f32 to vector<80x32xf32>
    %30 = arith.maximumf %28, %29 : vector<80x32xf32>
    %31 = arith.truncf %30 : vector<80x32xf32> to vector<80x32xbf16>
    %c240 = arith.constant 240 : index
    %c0_26 = arith.constant 0 : index
    %32 = vector.load %arg19[%c240, %c0_26] : memref<1008x32xbf16, #tpu.memory_space<vmem>>, vector<80x32xbf16>
    tpu.vector_store %arg19[%c240, %c0_26], %31 {strides = array<i32>} : memref<1008x32xbf16, #tpu.memory_space<vmem>>, vector<80x32xbf16>,
    %c320 = arith.constant 320 : index
    %c0_27 = arith.constant 0 : index
    %33 = vector.load %arg19[%c320, %c0_27] : memref<1008x32xbf16, #tpu.memory_space<vmem>>, vector<32x32xbf16>
    tpu.vector_store %arg19[%c320, %c0_27], %1 {strides = array<i32>} : memref<1008x32xbf16, #tpu.memory_space<vmem>>, vector<32x32xbf16>,
    %c0_28 = arith.constant 0 : index
    %c160 = arith.constant 160 : index
    %c0_29 = arith.constant 0 : index
    %34 = vector.load %arg1[%c0_28, %c160, %c0_29] : memref<1x560x36xbf16, #tpu.memory_space<vmem>>, vector<1x80x36xbf16>
    %35 = vector.shape_cast %34 : vector<1x80x36xbf16> to vector<80x36xbf16>
    %c0_30 = arith.constant 0 : index
    %c0_31 = arith.constant 0 : index
    %36 = vector.load %arg3[%c0_30, %c0_31] : memref<36x32xbf16, #tpu.memory_space<vmem>>, vector<36x32xbf16>
    %cst_32 = arith.constant dense<0.000000e+00> : vector<80x32xf32>
    %37 = tpu.matmul %35, %36, %cst_32 {dimension_numbers = #tpu.dot_dimension_numbers<[1], [0], [0], [1], [0, 0, 1, 1], [], []>} : vector<80x36xbf16>, vector<36x32xbf16>, vector<80x32xf32> -> vector<80x32xf32>
    %c0_33 = arith.constant 0 : index
    %c0_34 = arith.constant 0 : index
    %38 = vector.load %arg4[%c0_33, %c0_34] : memref<1x32xf32, #tpu.memory_space<vmem>>, vector<1x32xf32>
    %39 = vector.broadcast %38 : vector<1x32xf32> to vector<80x32xf32>
    %40 = arith.mulf %37, %39 : vector<80x32xf32>
    %c0_35 = arith.constant 0 : index
    %c0_36 = arith.constant 0 : index
    %41 = vector.load %arg5[%c0_35, %c0_36] : memref<1x32xf32, #tpu.memory_space<vmem>>, vector<1x32xf32>
    %42 = vector.broadcast %41 : vector<1x32xf32> to vector<80x32xf32>
    %43 = arith.addf %40, %42 : vector<80x32xf32>
    %cst_37 = arith.constant 0.000000e+00 : f32
    %44 = vector.broadcast %cst_37 : f32 to vector<80x32xf32>
    %45 = arith.maximumf %43, %44 : vector<80x32xf32>
    %46 = arith.truncf %45 : vector<80x32xf32> to vector<80x32xbf16>
    %c352 = arith.constant 352 : index
    %c0_38 = arith.constant 0 : index
    %47 = vector.load %arg19[%c352, %c0_38] : memref<1008x32xbf16, #tpu.memory_space<vmem>>, vector<80x32xbf16>
    tpu.vector_store %arg19[%c352, %c0_38], %46 {strides = array<i32>} : memref<1008x32xbf16, #tpu.memory_space<vmem>>, vector<80x32xbf16>,
    %c432 = arith.constant 432 : index
    %c0_39 = arith.constant 0 : index
    %48 = vector.load %arg19[%c432, %c0_39] : memref<1008x32xbf16, #tpu.memory_space<vmem>>, vector<32x32xbf16>
    tpu.vector_store %arg19[%c432, %c0_39], %1 {strides = array<i32>} : memref<1008x32xbf16, #tpu.memory_space<vmem>>, vector<32x32xbf16>,
    %c0_40 = arith.constant 0 : index
    %c240_41 = arith.constant 240 : index
    %c0_42 = arith.constant 0 : index
    %49 = vector.load %arg1[%c0_40, %c240_41, %c0_42] : memref<1x560x36xbf16, #tpu.memory_space<vmem>>, vector<1x80x36xbf16>
    %50 = vector.shape_cast %49 : vector<1x80x36xbf16> to vector<80x36xbf16>
    %c0_43 = arith.constant 0 : index
    %c0_44 = arith.constant 0 : index
    %51 = vector.load %arg3[%c0_43, %c0_44] : memref<36x32xbf16, #tpu.memory_space<vmem>>, vector<36x32xbf16>
    %cst_45 = arith.constant dense<0.000000e+00> : vector<80x32xf32>
    %52 = tpu.matmul %50, %51, %cst_45 {dimension_numbers = #tpu.dot_dimension_numbers<[1], [0], [0], [1], [0, 0, 1, 1], [], []>} : vector<80x36xbf16>, vector<36x32xbf16>, vector<80x32xf32> -> vector<80x32xf32>
    %c0_46 = arith.constant 0 : index
    %c0_47 = arith.constant 0 : index
    %53 = vector.load %arg4[%c0_46, %c0_47] : memref<1x32xf32, #tpu.memory_space<vmem>>, vector<1x32xf32>
    %54 = vector.broadcast %53 : vector<1x32xf32> to vector<80x32xf32>
    %55 = arith.mulf %52, %54 : vector<80x32xf32>
    %c0_48 = arith.constant 0 : index
    %c0_49 = arith.constant 0 : index
    %56 = vector.load %arg5[%c0_48, %c0_49] : memref<1x32xf32, #tpu.memory_space<vmem>>, vector<1x32xf32>
    %57 = vector.broadcast %56 : vector<1x32xf32> to vector<80x32xf32>
    %58 = arith.addf %55, %57 : vector<80x32xf32>
    %cst_50 = arith.constant 0.000000e+00 : f32
    %59 = vector.broadcast %cst_50 : f32 to vector<80x32xf32>
    %60 = arith.maximumf %58, %59 : vector<80x32xf32>
    %61 = arith.truncf %60 : vector<80x32xf32> to vector<80x32xbf16>
    %c464 = arith.constant 464 : index
    %c0_51 = arith.constant 0 : index
    %62 = vector.load %arg19[%c464, %c0_51] : memref<1008x32xbf16, #tpu.memory_space<vmem>>, vector<80x32xbf16>
    tpu.vector_store %arg19[%c464, %c0_51], %61 {strides = array<i32>} : memref<1008x32xbf16, #tpu.memory_space<vmem>>, vector<80x32xbf16>,
    %c544 = arith.constant 544 : index
    %c0_52 = arith.constant 0 : index
    %63 = vector.load %arg19[%c544, %c0_52] : memref<1008x32xbf16, #tpu.memory_space<vmem>>, vector<32x32xbf16>
    tpu.vector_store %arg19[%c544, %c0_52], %1 {strides = array<i32>} : memref<1008x32xbf16, #tpu.memory_space<vmem>>, vector<32x32xbf16>,
    %c0_53 = arith.constant 0 : index
    %c320_54 = arith.constant 320 : index
    %c0_55 = arith.constant 0 : index
    %64 = vector.load %arg1[%c0_53, %c320_54, %c0_55] : memref<1x560x36xbf16, #tpu.memory_space<vmem>>, vector<1x80x36xbf16>
    %65 = vector.shape_cast %64 : vector<1x80x36xbf16> to vector<80x36xbf16>
    %c0_56 = arith.constant 0 : index
    %c0_57 = arith.constant 0 : index
    %66 = vector.load %arg3[%c0_56, %c0_57] : memref<36x32xbf16, #tpu.memory_space<vmem>>, vector<36x32xbf16>
    %cst_58 = arith.constant dense<0.000000e+00> : vector<80x32xf32>
    %67 = tpu.matmul %65, %66, %cst_58 {dimension_numbers = #tpu.dot_dimension_numbers<[1], [0], [0], [1], [0, 0, 1, 1], [], []>} : vector<80x36xbf16>, vector<36x32xbf16>, vector<80x32xf32> -> vector<80x32xf32>
    %c0_59 = arith.constant 0 : index
    %c0_60 = arith.constant 0 : index
    %68 = vector.load %arg4[%c0_59, %c0_60] : memref<1x32xf32, #tpu.memory_space<vmem>>, vector<1x32xf32>
    %69 = vector.broadcast %68 : vector<1x32xf32> to vector<80x32xf32>
    %70 = arith.mulf %67, %69 : vector<80x32xf32>
    %c0_61 = arith.constant 0 : index
    %c0_62 = arith.constant 0 : index
    %71 = vector.load %arg5[%c0_61, %c0_62] : memref<1x32xf32, #tpu.memory_space<vmem>>, vector<1x32xf32>
    %72 = vector.broadcast %71 : vector<1x32xf32> to vector<80x32xf32>
    %73 = arith.addf %70, %72 : vector<80x32xf32>
    %cst_63 = arith.constant 0.000000e+00 : f32
    %74 = vector.broadcast %cst_63 : f32 to vector<80x32xf32>
    %75 = arith.maximumf %73, %74 : vector<80x32xf32>
    %76 = arith.truncf %75 : vector<80x32xf32> to vector<80x32xbf16>
    %c576 = arith.constant 576 : index
    %c0_64 = arith.constant 0 : index
    %77 = vector.load %arg19[%c576, %c0_64] : memref<1008x32xbf16, #tpu.memory_space<vmem>>, vector<80x32xbf16>
    tpu.vector_store %arg19[%c576, %c0_64], %76 {strides = array<i32>} : memref<1008x32xbf16, #tpu.memory_space<vmem>>, vector<80x32xbf16>,
    %c656 = arith.constant 656 : index
    %c0_65 = arith.constant 0 : index
    %78 = vector.load %arg19[%c656, %c0_65] : memref<1008x32xbf16, #tpu.memory_space<vmem>>, vector<32x32xbf16>
    tpu.vector_store %arg19[%c656, %c0_65], %1 {strides = array<i32>} : memref<1008x32xbf16, #tpu.memory_space<vmem>>, vector<32x32xbf16>,
    %c0_66 = arith.constant 0 : index
    %c400 = arith.constant 400 : index
    %c0_67 = arith.constant 0 : index
    %79 = vector.load %arg1[%c0_66, %c400, %c0_67] : memref<1x560x36xbf16, #tpu.memory_space<vmem>>, vector<1x80x36xbf16>
    %80 = vector.shape_cast %79 : vector<1x80x36xbf16> to vector<80x36xbf16>
    %c0_68 = arith.constant 0 : index
    %c0_69 = arith.constant 0 : index
    %81 = vector.load %arg3[%c0_68, %c0_69] : memref<36x32xbf16, #tpu.memory_space<vmem>>, vector<36x32xbf16>
    %cst_70 = arith.constant dense<0.000000e+00> : vector<80x32xf32>
    %82 = tpu.matmul %80, %81, %cst_70 {dimension_numbers = #tpu.dot_dimension_numbers<[1], [0], [0], [1], [0, 0, 1, 1], [], []>} : vector<80x36xbf16>, vector<36x32xbf16>, vector<80x32xf32> -> vector<80x32xf32>
    %c0_71 = arith.constant 0 : index
    %c0_72 = arith.constant 0 : index
    %83 = vector.load %arg4[%c0_71, %c0_72] : memref<1x32xf32, #tpu.memory_space<vmem>>, vector<1x32xf32>
    %84 = vector.broadcast %83 : vector<1x32xf32> to vector<80x32xf32>
    %85 = arith.mulf %82, %84 : vector<80x32xf32>
    %c0_73 = arith.constant 0 : index
    %c0_74 = arith.constant 0 : index
    %86 = vector.load %arg5[%c0_73, %c0_74] : memref<1x32xf32, #tpu.memory_space<vmem>>, vector<1x32xf32>
    %87 = vector.broadcast %86 : vector<1x32xf32> to vector<80x32xf32>
    %88 = arith.addf %85, %87 : vector<80x32xf32>
    %cst_75 = arith.constant 0.000000e+00 : f32
    %89 = vector.broadcast %cst_75 : f32 to vector<80x32xf32>
    %90 = arith.maximumf %88, %89 : vector<80x32xf32>
    %91 = arith.truncf %90 : vector<80x32xf32> to vector<80x32xbf16>
    %c688 = arith.constant 688 : index
    %c0_76 = arith.constant 0 : index
    %92 = vector.load %arg19[%c688, %c0_76] : memref<1008x32xbf16, #tpu.memory_space<vmem>>, vector<80x32xbf16>
    tpu.vector_store %arg19[%c688, %c0_76], %91 {strides = array<i32>} : memref<1008x32xbf16, #tpu.memory_space<vmem>>, vector<80x32xbf16>,
    %c768 = arith.constant 768 : index
    %c0_77 = arith.constant 0 : index
    %93 = vector.load %arg19[%c768, %c0_77] : memref<1008x32xbf16, #tpu.memory_space<vmem>>, vector<32x32xbf16>
    tpu.vector_store %arg19[%c768, %c0_77], %1 {strides = array<i32>} : memref<1008x32xbf16, #tpu.memory_space<vmem>>, vector<32x32xbf16>,
    %c0_78 = arith.constant 0 : index
    %c480 = arith.constant 480 : index
    %c0_79 = arith.constant 0 : index
    %94 = vector.load %arg1[%c0_78, %c480, %c0_79] : memref<1x560x36xbf16, #tpu.memory_space<vmem>>, vector<1x80x36xbf16>
    %95 = vector.shape_cast %94 : vector<1x80x36xbf16> to vector<80x36xbf16>
    %c0_80 = arith.constant 0 : index
    %c0_81 = arith.constant 0 : index
    %96 = vector.load %arg3[%c0_80, %c0_81] : memref<36x32xbf16, #tpu.memory_space<vmem>>, vector<36x32xbf16>
    %cst_82 = arith.constant dense<0.000000e+00> : vector<80x32xf32>
    %97 = tpu.matmul %95, %96, %cst_82 {dimension_numbers = #tpu.dot_dimension_numbers<[1], [0], [0], [1], [0, 0, 1, 1], [], []>} : vector<80x36xbf16>, vector<36x32xbf16>, vector<80x32xf32> -> vector<80x32xf32>
    %c0_83 = arith.constant 0 : index
    %c0_84 = arith.constant 0 : index
    %98 = vector.load %arg4[%c0_83, %c0_84] : memref<1x32xf32, #tpu.memory_space<vmem>>, vector<1x32xf32>
    %99 = vector.broadcast %98 : vector<1x32xf32> to vector<80x32xf32>
    %100 = arith.mulf %97, %99 : vector<80x32xf32>
    %c0_85 = arith.constant 0 : index
    %c0_86 = arith.constant 0 : index
    %101 = vector.load %arg5[%c0_85, %c0_86] : memref<1x32xf32, #tpu.memory_space<vmem>>, vector<1x32xf32>
    %102 = vector.broadcast %101 : vector<1x32xf32> to vector<80x32xf32>
    %103 = arith.addf %100, %102 : vector<80x32xf32>
    %cst_87 = arith.constant 0.000000e+00 : f32
    %104 = vector.broadcast %cst_87 : f32 to vector<80x32xf32>
    %105 = arith.maximumf %103, %104 : vector<80x32xf32>
    %106 = arith.truncf %105 : vector<80x32xf32> to vector<80x32xbf16>
    %c800 = arith.constant 800 : index
    %c0_88 = arith.constant 0 : index
    %107 = vector.load %arg19[%c800, %c0_88] : memref<1008x32xbf16, #tpu.memory_space<vmem>>, vector<80x32xbf16>
    tpu.vector_store %arg19[%c800, %c0_88], %106 {strides = array<i32>} : memref<1008x32xbf16, #tpu.memory_space<vmem>>, vector<80x32xbf16>,
    %c0_89 = arith.constant 0 : index
    %c0_90 = arith.constant 0 : index
    %c0_91 = arith.constant 0 : index
    %108 = vector.load %arg2[%c0_89, %c0_90, %c0_91] : memref<1x16x8xf32, #tpu.memory_space<vmem>>, vector<1x16x8xf32>
    %109 = vector.shape_cast %108 : vector<1x16x8xf32> to vector<16x8xf32>
    %110 = arith.truncf %109 : vector<16x8xf32> to vector<16x8xbf16>
    %c0_92 = arith.constant 0 : index
    %c0_93 = arith.constant 0 : index
    %111 = vector.load %arg9[%c0_92, %c0_93] : memref<8x64xbf16, #tpu.memory_space<vmem>>, vector<8x64xbf16>
    %cst_94 = arith.constant dense<0.000000e+00> : vector<16x64xf32>
    %112 = tpu.matmul %110, %111, %cst_94 {dimension_numbers = #tpu.dot_dimension_numbers<[1], [0], [0], [1], [0, 0, 1, 1], [], []>} : vector<16x8xbf16>, vector<8x64xbf16>, vector<16x64xf32> -> vector<16x64xf32>
    %c0_95 = arith.constant 0 : index
    %c0_96 = arith.constant 0 : index
    %113 = vector.load %arg10[%c0_95, %c0_96] : memref<1x64xf32, #tpu.memory_space<vmem>>, vector<1x64xf32>
    %114 = vector.broadcast %113 : vector<1x64xf32> to vector<16x64xf32>
    %115 = arith.mulf %112, %114 : vector<16x64xf32>
    %c0_97 = arith.constant 0 : index
    %c0_98 = arith.constant 0 : index
    %116 = vector.load %arg11[%c0_97, %c0_98] : memref<1x64xf32, #tpu.memory_space<vmem>>, vector<1x64xf32>
    %117 = vector.broadcast %116 : vector<1x64xf32> to vector<16x64xf32>
    %118 = arith.addf %115, %117 : vector<16x64xf32>
    %cst_99 = arith.constant 0.000000e+00 : f32
    %119 = vector.broadcast %cst_99 : f32 to vector<16x64xf32>
    %120 = arith.maximumf %118, %119 : vector<16x64xf32>
    %121 = arith.truncf %120 : vector<16x64xf32> to vector<16x64xbf16>
    %c0_100 = arith.constant 0 : index
    %c0_101 = arith.constant 0 : index
    %122 = vector.load %arg13[%c0_100, %c0_101] : memref<64x256xbf16, #tpu.memory_space<vmem>>, vector<64x256xbf16>
    %cst_102 = arith.constant dense<0.000000e+00> : vector<16x256xf32>
    %123 = tpu.matmul %121, %122, %cst_102 {dimension_numbers = #tpu.dot_dimension_numbers<[1], [0], [0], [1], [0, 0, 1, 1], [], []>} : vector<16x64xbf16>, vector<64x256xbf16>, vector<16x256xf32> -> vector<16x256xf32>
    %c0_103 = arith.constant 0 : index
    %c0_104 = arith.constant 0 : index
    %124 = vector.load %arg19[%c0_103, %c0_104] : memref<1008x32xbf16, #tpu.memory_space<vmem>>, vector<80x32xbf16>
    %c0_105 = arith.constant 0 : index
    %c0_106 = arith.constant 0 : index
    %c0_107 = arith.constant 0 : index
    %125 = vector.load %arg6[%c0_105, %c0_106, %c0_107] : memref<9x32x64xbf16, #tpu.memory_space<vmem>>, vector<1x32x64xbf16>
    %126 = vector.shape_cast %125 : vector<1x32x64xbf16> to vector<32x64xbf16>
    %cst_108 = arith.constant dense<0.000000e+00> : vector<80x64xf32>
    %127 = tpu.matmul %124, %126, %cst_108 {dimension_numbers = #tpu.dot_dimension_numbers<[1], [0], [0], [1], [0, 0, 1, 1], [], []>} : vector<80x32xbf16>, vector<32x64xbf16>, vector<80x64xf32> -> vector<80x64xf32>
    %c16 = arith.constant 16 : index
    %c0_109 = arith.constant 0 : index
    %128 = vector.load %arg19[%c16, %c0_109] : memref<1008x32xbf16, #tpu.memory_space<vmem>>, vector<80x32xbf16>
    %c1 = arith.constant 1 : index
    %c0_110 = arith.constant 0 : index
    %c0_111 = arith.constant 0 : index
    %129 = vector.load %arg6[%c1, %c0_110, %c0_111] : memref<9x32x64xbf16, #tpu.memory_space<vmem>>, vector<1x32x64xbf16>
    %130 = vector.shape_cast %129 : vector<1x32x64xbf16> to vector<32x64xbf16>
    %cst_112 = arith.constant dense<0.000000e+00> : vector<80x64xf32>
    %131 = tpu.matmul %128, %130, %cst_112 {dimension_numbers = #tpu.dot_dimension_numbers<[1], [0], [0], [1], [0, 0, 1, 1], [], []>} : vector<80x32xbf16>, vector<32x64xbf16>, vector<80x64xf32> -> vector<80x64xf32>
    %132 = arith.addf %127, %131 : vector<80x64xf32>
    %c32 = arith.constant 32 : index
    %c0_113 = arith.constant 0 : index
    %133 = vector.load %arg19[%c32, %c0_113] : memref<1008x32xbf16, #tpu.memory_space<vmem>>, vector<80x32xbf16>
    %c2 = arith.constant 2 : index
    %c0_114 = arith.constant 0 : index
    %c0_115 = arith.constant 0 : index
    %134 = vector.load %arg6[%c2, %c0_114, %c0_115] : memref<9x32x64xbf16, #tpu.memory_space<vmem>>, vector<1x32x64xbf16>
    %135 = vector.shape_cast %134 : vector<1x32x64xbf16> to vector<32x64xbf16>
    %cst_116 = arith.constant dense<0.000000e+00> : vector<80x64xf32>
    %136 = tpu.matmul %133, %135, %cst_116 {dimension_numbers = #tpu.dot_dimension_numbers<[1], [0], [0], [1], [0, 0, 1, 1], [], []>} : vector<80x32xbf16>, vector<32x64xbf16>, vector<80x64xf32> -> vector<80x64xf32>
    %137 = arith.addf %132, %136 : vector<80x64xf32>
    %c112 = arith.constant 112 : index
    %c0_117 = arith.constant 0 : index
    %138 = vector.load %arg19[%c112, %c0_117] : memref<1008x32xbf16, #tpu.memory_space<vmem>>, vector<80x32xbf16>
    %c3 = arith.constant 3 : index
    %c0_118 = arith.constant 0 : index
    %c0_119 = arith.constant 0 : index
    %139 = vector.load %arg6[%c3, %c0_118, %c0_119] : memref<9x32x64xbf16, #tpu.memory_space<vmem>>, vector<1x32x64xbf16>
    %140 = vector.shape_cast %139 : vector<1x32x64xbf16> to vector<32x64xbf16>
    %cst_120 = arith.constant dense<0.000000e+00> : vector<80x64xf32>
    %141 = tpu.matmul %138, %140, %cst_120 {dimension_numbers = #tpu.dot_dimension_numbers<[1], [0], [0], [1], [0, 0, 1, 1], [], []>} : vector<80x32xbf16>, vector<32x64xbf16>, vector<80x64xf32> -> vector<80x64xf32>
    %142 = arith.addf %137, %141 : vector<80x64xf32>
    %c128_121 = arith.constant 128 : index
    %c0_122 = arith.constant 0 : index
    %143 = vector.load %arg19[%c128_121, %c0_122] : memref<1008x32xbf16, #tpu.memory_space<vmem>>, vector<80x32xbf16>
    %c4 = arith.constant 4 : index
    %c0_123 = arith.constant 0 : index
    %c0_124 = arith.constant 0 : index
    %144 = vector.load %arg6[%c4, %c0_123, %c0_124] : memref<9x32x64xbf16, #tpu.memory_space<vmem>>, vector<1x32x64xbf16>
    %145 = vector.shape_cast %144 : vector<1x32x64xbf16> to vector<32x64xbf16>
    %cst_125 = arith.constant dense<0.000000e+00> : vector<80x64xf32>
    %146 = tpu.matmul %143, %145, %cst_125 {dimension_numbers = #tpu.dot_dimension_numbers<[1], [0], [0], [1], [0, 0, 1, 1], [], []>} : vector<80x32xbf16>, vector<32x64xbf16>, vector<80x64xf32> -> vector<80x64xf32>
    %147 = arith.addf %142, %146 : vector<80x64xf32>
    %c144 = arith.constant 144 : index
    %c0_126 = arith.constant 0 : index
    %148 = vector.load %arg19[%c144, %c0_126] : memref<1008x32xbf16, #tpu.memory_space<vmem>>, vector<80x32xbf16>
    %c5 = arith.constant 5 : index
    %c0_127 = arith.constant 0 : index
    %c0_128 = arith.constant 0 : index
    %149 = vector.load %arg6[%c5, %c0_127, %c0_128] : memref<9x32x64xbf16, #tpu.memory_space<vmem>>, vector<1x32x64xbf16>
    %150 = vector.shape_cast %149 : vector<1x32x64xbf16> to vector<32x64xbf16>
    %cst_129 = arith.constant dense<0.000000e+00> : vector<80x64xf32>
    %151 = tpu.matmul %148, %150, %cst_129 {dimension_numbers = #tpu.dot_dimension_numbers<[1], [0], [0], [1], [0, 0, 1, 1], [], []>} : vector<80x32xbf16>, vector<32x64xbf16>, vector<80x64xf32> -> vector<80x64xf32>
    %152 = arith.addf %147, %151 : vector<80x64xf32>
    %c224 = arith.constant 224 : index
    %c0_130 = arith.constant 0 : index
    %153 = vector.load %arg19[%c224, %c0_130] : memref<1008x32xbf16, #tpu.memory_space<vmem>>, vector<80x32xbf16>
    %c6 = arith.constant 6 : index
    %c0_131 = arith.constant 0 : index
    %c0_132 = arith.constant 0 : index
    %154 = vector.load %arg6[%c6, %c0_131, %c0_132] : memref<9x32x64xbf16, #tpu.memory_space<vmem>>, vector<1x32x64xbf16>
    %155 = vector.shape_cast %154 : vector<1x32x64xbf16> to vector<32x64xbf16>
    %cst_133 = arith.constant dense<0.000000e+00> : vector<80x64xf32>
    %156 = tpu.matmul %153, %155, %cst_133 {dimension_numbers = #tpu.dot_dimension_numbers<[1], [0], [0], [1], [0, 0, 1, 1], [], []>} : vector<80x32xbf16>, vector<32x64xbf16>, vector<80x64xf32> -> vector<80x64xf32>
    %157 = arith.addf %152, %156 : vector<80x64xf32>
    %c240_134 = arith.constant 240 : index
    %c0_135 = arith.constant 0 : index
    %158 = vector.load %arg19[%c240_134, %c0_135] : memref<1008x32xbf16, #tpu.memory_space<vmem>>, vector<80x32xbf16>
    %c7 = arith.constant 7 : index
    %c0_136 = arith.constant 0 : index
    %c0_137 = arith.constant 0 : index
    %159 = vector.load %arg6[%c7, %c0_136, %c0_137] : memref<9x32x64xbf16, #tpu.memory_space<vmem>>, vector<1x32x64xbf16>
    %160 = vector.shape_cast %159 : vector<1x32x64xbf16> to vector<32x64xbf16>
    %cst_138 = arith.constant dense<0.000000e+00> : vector<80x64xf32>
    %161 = tpu.matmul %158, %160, %cst_138 {dimension_numbers = #tpu.dot_dimension_numbers<[1], [0], [0], [1], [0, 0, 1, 1], [], []>} : vector<80x32xbf16>, vector<32x64xbf16>, vector<80x64xf32> -> vector<80x64xf32>
    %162 = arith.addf %157, %161 : vector<80x64xf32>
    %c256 = arith.constant 256 : index
    %c0_139 = arith.constant 0 : index
    %163 = vector.load %arg19[%c256, %c0_139] : memref<1008x32xbf16, #tpu.memory_space<vmem>>, vector<80x32xbf16>
    %c8 = arith.constant 8 : index
    %c0_140 = arith.constant 0 : index
    %c0_141 = arith.constant 0 : index
    %164 = vector.load %arg6[%c8, %c0_140, %c0_141] : memref<9x32x64xbf16, #tpu.memory_space<vmem>>, vector<1x32x64xbf16>
    %165 = vector.shape_cast %164 : vector<1x32x64xbf16> to vector<32x64xbf16>
    %cst_142 = arith.constant dense<0.000000e+00> : vector<80x64xf32>
    %166 = tpu.matmul %163, %165, %cst_142 {dimension_numbers = #tpu.dot_dimension_numbers<[1], [0], [0], [1], [0, 0, 1, 1], [], []>} : vector<80x32xbf16>, vector<32x64xbf16>, vector<80x64xf32> -> vector<80x64xf32>
    %167 = arith.addf %162, %166 : vector<80x64xf32>
    %c0_143 = arith.constant 0 : index
    %c0_144 = arith.constant 0 : index
    %168 = vector.load %arg7[%c0_143, %c0_144] : memref<1x64xf32, #tpu.memory_space<vmem>>, vector<1x64xf32>
    %169 = vector.broadcast %168 : vector<1x64xf32> to vector<80x64xf32>
    %170 = arith.mulf %167, %169 : vector<80x64xf32>
    %c0_145 = arith.constant 0 : index
    %c0_146 = arith.constant 0 : index
    %171 = vector.load %arg8[%c0_145, %c0_146] : memref<1x64xf32, #tpu.memory_space<vmem>>, vector<1x64xf32>
    %172 = vector.broadcast %171 : vector<1x64xf32> to vector<80x64xf32>
    %173 = arith.addf %170, %172 : vector<80x64xf32>
    %cst_147 = arith.constant 0.000000e+00 : f32
    %174 = vector.broadcast %cst_147 : f32 to vector<80x64xf32>
    %175 = arith.maximumf %173, %174 : vector<80x64xf32>
    %176 = arith.truncf %175 : vector<80x64xf32> to vector<80x64xbf16>
    %177 = vector.extract_strided_slice %176 {offsets = [0, 0], sizes = [16, 64], strides = [1, 1]} : vector<80x64xbf16> to vector<16x64xbf16>
    %c0_148 = arith.constant 0 : index
    %c0_149 = arith.constant 0 : index
    %c0_150 = arith.constant 0 : index
    %178 = vector.load %arg12[%c0_148, %c0_149, %c0_150] : memref<35x64x256xbf16, #tpu.memory_space<vmem>>, vector<1x64x256xbf16>
    %179 = vector.shape_cast %178 : vector<1x64x256xbf16> to vector<64x256xbf16>
    %cst_151 = arith.constant dense<0.000000e+00> : vector<16x256xf32>
    %180 = tpu.matmul %177, %179, %cst_151 {dimension_numbers = #tpu.dot_dimension_numbers<[1], [0], [0], [1], [0, 0, 1, 1], [], []>} : vector<16x64xbf16>, vector<64x256xbf16>, vector<16x256xf32> -> vector<16x256xf32>
    %181 = arith.addf %123, %180 : vector<16x256xf32>
    %182 = vector.extract_strided_slice %176 {offsets = [16, 0], sizes = [16, 64], strides = [1, 1]} : vector<80x64xbf16> to vector<16x64xbf16>
    %c1_152 = arith.constant 1 : index
    %c0_153 = arith.constant 0 : index
    %c0_154 = arith.constant 0 : index
    %183 = vector.load %arg12[%c1_152, %c0_153, %c0_154] : memref<35x64x256xbf16, #tpu.memory_space<vmem>>, vector<1x64x256xbf16>
    %184 = vector.shape_cast %183 : vector<1x64x256xbf16> to vector<64x256xbf16>
    %cst_155 = arith.constant dense<0.000000e+00> : vector<16x256xf32>
    %185 = tpu.matmul %182, %184, %cst_155 {dimension_numbers = #tpu.dot_dimension_numbers<[1], [0], [0], [1], [0, 0, 1, 1], [], []>} : vector<16x64xbf16>, vector<64x256xbf16>, vector<16x256xf32> -> vector<16x256xf32>
    %186 = arith.addf %181, %185 : vector<16x256xf32>
    %187 = vector.extract_strided_slice %176 {offsets = [32, 0], sizes = [16, 64], strides = [1, 1]} : vector<80x64xbf16> to vector<16x64xbf16>
    %c2_156 = arith.constant 2 : index
    %c0_157 = arith.constant 0 : index
    %c0_158 = arith.constant 0 : index
    %188 = vector.load %arg12[%c2_156, %c0_157, %c0_158] : memref<35x64x256xbf16, #tpu.memory_space<vmem>>, vector<1x64x256xbf16>
    %189 = vector.shape_cast %188 : vector<1x64x256xbf16> to vector<64x256xbf16>
    %cst_159 = arith.constant dense<0.000000e+00> : vector<16x256xf32>
    %190 = tpu.matmul %187, %189, %cst_159 {dimension_numbers = #tpu.dot_dimension_numbers<[1], [0], [0], [1], [0, 0, 1, 1], [], []>} : vector<16x64xbf16>, vector<64x256xbf16>, vector<16x256xf32> -> vector<16x256xf32>
    %191 = arith.addf %186, %190 : vector<16x256xf32>
    %192 = vector.extract_strided_slice %176 {offsets = [48, 0], sizes = [16, 64], strides = [1, 1]} : vector<80x64xbf16> to vector<16x64xbf16>
    %c3_160 = arith.constant 3 : index
    %c0_161 = arith.constant 0 : index
    %c0_162 = arith.constant 0 : index
    %193 = vector.load %arg12[%c3_160, %c0_161, %c0_162] : memref<35x64x256xbf16, #tpu.memory_space<vmem>>, vector<1x64x256xbf16>
    %194 = vector.shape_cast %193 : vector<1x64x256xbf16> to vector<64x256xbf16>
    %cst_163 = arith.constant dense<0.000000e+00> : vector<16x256xf32>
    %195 = tpu.matmul %192, %194, %cst_163 {dimension_numbers = #tpu.dot_dimension_numbers<[1], [0], [0], [1], [0, 0, 1, 1], [], []>} : vector<16x64xbf16>, vector<64x256xbf16>, vector<16x256xf32> -> vector<16x256xf32>
    %196 = arith.addf %191, %195 : vector<16x256xf32>
    %197 = vector.extract_strided_slice %176 {offsets = [64, 0], sizes = [16, 64], strides = [1, 1]} : vector<80x64xbf16> to vector<16x64xbf16>
    %c4_164 = arith.constant 4 : index
    %c0_165 = arith.constant 0 : index
    %c0_166 = arith.constant 0 : index
    %198 = vector.load %arg12[%c4_164, %c0_165, %c0_166] : memref<35x64x256xbf16, #tpu.memory_space<vmem>>, vector<1x64x256xbf16>
    %199 = vector.shape_cast %198 : vector<1x64x256xbf16> to vector<64x256xbf16>
    %cst_167 = arith.constant dense<0.000000e+00> : vector<16x256xf32>
    %200 = tpu.matmul %197, %199, %cst_167 {dimension_numbers = #tpu.dot_dimension_numbers<[1], [0], [0], [1], [0, 0, 1, 1], [], []>} : vector<16x64xbf16>, vector<64x256xbf16>, vector<16x256xf32> -> vector<16x256xf32>
    %201 = arith.addf %196, %200 : vector<16x256xf32>
    %c112_168 = arith.constant 112 : index
    %c0_169 = arith.constant 0 : index
    %202 = vector.load %arg19[%c112_168, %c0_169] : memref<1008x32xbf16, #tpu.memory_space<vmem>>, vector<80x32xbf16>
    %c0_170 = arith.constant 0 : index
    %c0_171 = arith.constant 0 : index
    %c0_172 = arith.constant 0 : index
    %203 = vector.load %arg6[%c0_170, %c0_171, %c0_172] : memref<9x32x64xbf16, #tpu.memory_space<vmem>>, vector<1x32x64xbf16>
    %204 = vector.shape_cast %203 : vector<1x32x64xbf16> to vector<32x64xbf16>
    %cst_173 = arith.constant dense<0.000000e+00> : vector<80x64xf32>
    %205 = tpu.matmul %202, %204, %cst_173 {dimension_numbers = #tpu.dot_dimension_numbers<[1], [0], [0], [1], [0, 0, 1, 1], [], []>} : vector<80x32xbf16>, vector<32x64xbf16>, vector<80x64xf32> -> vector<80x64xf32>
    %c128_174 = arith.constant 128 : index
    %c0_175 = arith.constant 0 : index
    %206 = vector.load %arg19[%c128_174, %c0_175] : memref<1008x32xbf16, #tpu.memory_space<vmem>>, vector<80x32xbf16>
    %c1_176 = arith.constant 1 : index
    %c0_177 = arith.constant 0 : index
    %c0_178 = arith.constant 0 : index
    %207 = vector.load %arg6[%c1_176, %c0_177, %c0_178] : memref<9x32x64xbf16, #tpu.memory_space<vmem>>, vector<1x32x64xbf16>
    %208 = vector.shape_cast %207 : vector<1x32x64xbf16> to vector<32x64xbf16>
    %cst_179 = arith.constant dense<0.000000e+00> : vector<80x64xf32>
    %209 = tpu.matmul %206, %208, %cst_179 {dimension_numbers = #tpu.dot_dimension_numbers<[1], [0], [0], [1], [0, 0, 1, 1], [], []>} : vector<80x32xbf16>, vector<32x64xbf16>, vector<80x64xf32> -> vector<80x64xf32>
    %210 = arith.addf %205, %209 : vector<80x64xf32>
    %c144_180 = arith.constant 144 : index
    %c0_181 = arith.constant 0 : index
    %211 = vector.load %arg19[%c144_180, %c0_181] : memref<1008x32xbf16, #tpu.memory_space<vmem>>, vector<80x32xbf16>
    %c2_182 = arith.constant 2 : index
    %c0_183 = arith.constant 0 : index
    %c0_184 = arith.constant 0 : index
    %212 = vector.load %arg6[%c2_182, %c0_183, %c0_184] : memref<9x32x64xbf16, #tpu.memory_space<vmem>>, vector<1x32x64xbf16>
    %213 = vector.shape_cast %212 : vector<1x32x64xbf16> to vector<32x64xbf16>
    %cst_185 = arith.constant dense<0.000000e+00> : vector<80x64xf32>
    %214 = tpu.matmul %211, %213, %cst_185 {dimension_numbers = #tpu.dot_dimension_numbers<[1], [0], [0], [1], [0, 0, 1, 1], [], []>} : vector<80x32xbf16>, vector<32x64xbf16>, vector<80x64xf32> -> vector<80x64xf32>
    %215 = arith.addf %210, %214 : vector<80x64xf32>
    %c224_186 = arith.constant 224 : index
    %c0_187 = arith.constant 0 : index
    %216 = vector.load %arg19[%c224_186, %c0_187] : memref<1008x32xbf16, #tpu.memory_space<vmem>>, vector<80x32xbf16>
    %c3_188 = arith.constant 3 : index
    %c0_189 = arith.constant 0 : index
    %c0_190 = arith.constant 0 : index
    %217 = vector.load %arg6[%c3_188, %c0_189, %c0_190] : memref<9x32x64xbf16, #tpu.memory_space<vmem>>, vector<1x32x64xbf16>
    %218 = vector.shape_cast %217 : vector<1x32x64xbf16> to vector<32x64xbf16>
    %cst_191 = arith.constant dense<0.000000e+00> : vector<80x64xf32>
    %219 = tpu.matmul %216, %218, %cst_191 {dimension_numbers = #tpu.dot_dimension_numbers<[1], [0], [0], [1], [0, 0, 1, 1], [], []>} : vector<80x32xbf16>, vector<32x64xbf16>, vector<80x64xf32> -> vector<80x64xf32>
    %220 = arith.addf %215, %219 : vector<80x64xf32>
    %c240_192 = arith.constant 240 : index
    %c0_193 = arith.constant 0 : index
    %221 = vector.load %arg19[%c240_192, %c0_193] : memref<1008x32xbf16, #tpu.memory_space<vmem>>, vector<80x32xbf16>
    %c4_194 = arith.constant 4 : index
    %c0_195 = arith.constant 0 : index
    %c0_196 = arith.constant 0 : index
    %222 = vector.load %arg6[%c4_194, %c0_195, %c0_196] : memref<9x32x64xbf16, #tpu.memory_space<vmem>>, vector<1x32x64xbf16>
    %223 = vector.shape_cast %222 : vector<1x32x64xbf16> to vector<32x64xbf16>
    %cst_197 = arith.constant dense<0.000000e+00> : vector<80x64xf32>
    %224 = tpu.matmul %221, %223, %cst_197 {dimension_numbers = #tpu.dot_dimension_numbers<[1], [0], [0], [1], [0, 0, 1, 1], [], []>} : vector<80x32xbf16>, vector<32x64xbf16>, vector<80x64xf32> -> vector<80x64xf32>
    %225 = arith.addf %220, %224 : vector<80x64xf32>
    %c256_198 = arith.constant 256 : index
    %c0_199 = arith.constant 0 : index
    %226 = vector.load %arg19[%c256_198, %c0_199] : memref<1008x32xbf16, #tpu.memory_space<vmem>>, vector<80x32xbf16>
    %c5_200 = arith.constant 5 : index
    %c0_201 = arith.constant 0 : index
    %c0_202 = arith.constant 0 : index
    %227 = vector.load %arg6[%c5_200, %c0_201, %c0_202] : memref<9x32x64xbf16, #tpu.memory_space<vmem>>, vector<1x32x64xbf16>
    %228 = vector.shape_cast %227 : vector<1x32x64xbf16> to vector<32x64xbf16>
    %cst_203 = arith.constant dense<0.000000e+00> : vector<80x64xf32>
    %229 = tpu.matmul %226, %228, %cst_203 {dimension_numbers = #tpu.dot_dimension_numbers<[1], [0], [0], [1], [0, 0, 1, 1], [], []>} : vector<80x32xbf16>, vector<32x64xbf16>, vector<80x64xf32> -> vector<80x64xf32>
    %230 = arith.addf %225, %229 : vector<80x64xf32>
    %c336 = arith.constant 336 : index
    %c0_204 = arith.constant 0 : index
    %231 = vector.load %arg19[%c336, %c0_204] : memref<1008x32xbf16, #tpu.memory_space<vmem>>, vector<80x32xbf16>
    %c6_205 = arith.constant 6 : index
    %c0_206 = arith.constant 0 : index
    %c0_207 = arith.constant 0 : index
    %232 = vector.load %arg6[%c6_205, %c0_206, %c0_207] : memref<9x32x64xbf16, #tpu.memory_space<vmem>>, vector<1x32x64xbf16>
    %233 = vector.shape_cast %232 : vector<1x32x64xbf16> to vector<32x64xbf16>
    %cst_208 = arith.constant dense<0.000000e+00> : vector<80x64xf32>
    %234 = tpu.matmul %231, %233, %cst_208 {dimension_numbers = #tpu.dot_dimension_numbers<[1], [0], [0], [1], [0, 0, 1, 1], [], []>} : vector<80x32xbf16>, vector<32x64xbf16>, vector<80x64xf32> -> vector<80x64xf32>
    %235 = arith.addf %230, %234 : vector<80x64xf32>
    %c352_209 = arith.constant 352 : index
    %c0_210 = arith.constant 0 : index
    %236 = vector.load %arg19[%c352_209, %c0_210] : memref<1008x32xbf16, #tpu.memory_space<vmem>>, vector<80x32xbf16>
    %c7_211 = arith.constant 7 : index
    %c0_212 = arith.constant 0 : index
    %c0_213 = arith.constant 0 : index
    %237 = vector.load %arg6[%c7_211, %c0_212, %c0_213] : memref<9x32x64xbf16, #tpu.memory_space<vmem>>, vector<1x32x64xbf16>
    %238 = vector.shape_cast %237 : vector<1x32x64xbf16> to vector<32x64xbf16>
    %cst_214 = arith.constant dense<0.000000e+00> : vector<80x64xf32>
    %239 = tpu.matmul %236, %238, %cst_214 {dimension_numbers = #tpu.dot_dimension_numbers<[1], [0], [0], [1], [0, 0, 1, 1], [], []>} : vector<80x32xbf16>, vector<32x64xbf16>, vector<80x64xf32> -> vector<80x64xf32>
    %240 = arith.addf %235, %239 : vector<80x64xf32>
    %c368 = arith.constant 368 : index
    %c0_215 = arith.constant 0 : index
    %241 = vector.load %arg19[%c368, %c0_215] : memref<1008x32xbf16, #tpu.memory_space<vmem>>, vector<80x32xbf16>
    %c8_216 = arith.constant 8 : index
    %c0_217 = arith.constant 0 : index
    %c0_218 = arith.constant 0 : index
    %242 = vector.load %arg6[%c8_216, %c0_217, %c0_218] : memref<9x32x64xbf16, #tpu.memory_space<vmem>>, vector<1x32x64xbf16>
    %243 = vector.shape_cast %242 : vector<1x32x64xbf16> to vector<32x64xbf16>
    %cst_219 = arith.constant dense<0.000000e+00> : vector<80x64xf32>
    %244 = tpu.matmul %241, %243, %cst_219 {dimension_numbers = #tpu.dot_dimension_numbers<[1], [0], [0], [1], [0, 0, 1, 1], [], []>} : vector<80x32xbf16>, vector<32x64xbf16>, vector<80x64xf32> -> vector<80x64xf32>
    %245 = arith.addf %240, %244 : vector<80x64xf32>
    %c0_220 = arith.constant 0 : index
    %c0_221 = arith.constant 0 : index
    %246 = vector.load %arg7[%c0_220, %c0_221] : memref<1x64xf32, #tpu.memory_space<vmem>>, vector<1x64xf32>
    %247 = vector.broadcast %246 : vector<1x64xf32> to vector<80x64xf32>
    %248 = arith.mulf %245, %247 : vector<80x64xf32>
    %c0_222 = arith.constant 0 : index
    %c0_223 = arith.constant 0 : index
    %249 = vector.load %arg8[%c0_222, %c0_223] : memref<1x64xf32, #tpu.memory_space<vmem>>, vector<1x64xf32>
    %250 = vector.broadcast %249 : vector<1x64xf32> to vector<80x64xf32>
    %251 = arith.addf %248, %250 : vector<80x64xf32>
    %cst_224 = arith.constant 0.000000e+00 : f32
    %252 = vector.broadcast %cst_224 : f32 to vector<80x64xf32>
    %253 = arith.maximumf %251, %252 : vector<80x64xf32>
    %254 = arith.truncf %253 : vector<80x64xf32> to vector<80x64xbf16>
    %255 = vector.extract_strided_slice %254 {offsets = [0, 0], sizes = [16, 64], strides = [1, 1]} : vector<80x64xbf16> to vector<16x64xbf16>
    %c5_225 = arith.constant 5 : index
    %c0_226 = arith.constant 0 : index
    %c0_227 = arith.constant 0 : index
    %256 = vector.load %arg12[%c5_225, %c0_226, %c0_227] : memref<35x64x256xbf16, #tpu.memory_space<vmem>>, vector<1x64x256xbf16>
    %257 = vector.shape_cast %256 : vector<1x64x256xbf16> to vector<64x256xbf16>
    %cst_228 = arith.constant dense<0.000000e+00> : vector<16x256xf32>
    %258 = tpu.matmul %255, %257, %cst_228 {dimension_numbers = #tpu.dot_dimension_numbers<[1], [0], [0], [1], [0, 0, 1, 1], [], []>} : vector<16x64xbf16>, vector<64x256xbf16>, vector<16x256xf32> -> vector<16x256xf32>
    %259 = arith.addf %201, %258 : vector<16x256xf32>
    %260 = vector.extract_strided_slice %254 {offsets = [16, 0], sizes = [16, 64], strides = [1, 1]} : vector<80x64xbf16> to vector<16x64xbf16>
    %c6_229 = arith.constant 6 : index
    %c0_230 = arith.constant 0 : index
    %c0_231 = arith.constant 0 : index
    %261 = vector.load %arg12[%c6_229, %c0_230, %c0_231] : memref<35x64x256xbf16, #tpu.memory_space<vmem>>, vector<1x64x256xbf16>
    %262 = vector.shape_cast %261 : vector<1x64x256xbf16> to vector<64x256xbf16>
    %cst_232 = arith.constant dense<0.000000e+00> : vector<16x256xf32>
    %263 = tpu.matmul %260, %262, %cst_232 {dimension_numbers = #tpu.dot_dimension_numbers<[1], [0], [0], [1], [0, 0, 1, 1], [], []>} : vector<16x64xbf16>, vector<64x256xbf16>, vector<16x256xf32> -> vector<16x256xf32>
    %264 = arith.addf %259, %263 : vector<16x256xf32>
    %265 = vector.extract_strided_slice %254 {offsets = [32, 0], sizes = [16, 64], strides = [1, 1]} : vector<80x64xbf16> to vector<16x64xbf16>
    %c7_233 = arith.constant 7 : index
    %c0_234 = arith.constant 0 : index
    %c0_235 = arith.constant 0 : index
    %266 = vector.load %arg12[%c7_233, %c0_234, %c0_235] : memref<35x64x256xbf16, #tpu.memory_space<vmem>>, vector<1x64x256xbf16>
    %267 = vector.shape_cast %266 : vector<1x64x256xbf16> to vector<64x256xbf16>
    %cst_236 = arith.constant dense<0.000000e+00> : vector<16x256xf32>
    %268 = tpu.matmul %265, %267, %cst_236 {dimension_numbers = #tpu.dot_dimension_numbers<[1], [0], [0], [1], [0, 0, 1, 1], [], []>} : vector<16x64xbf16>, vector<64x256xbf16>, vector<16x256xf32> -> vector<16x256xf32>
    %269 = arith.addf %264, %268 : vector<16x256xf32>
    %270 = vector.extract_strided_slice %254 {offsets = [48, 0], sizes = [16, 64], strides = [1, 1]} : vector<80x64xbf16> to vector<16x64xbf16>
    %c8_237 = arith.constant 8 : index
    %c0_238 = arith.constant 0 : index
    %c0_239 = arith.constant 0 : index
    %271 = vector.load %arg12[%c8_237, %c0_238, %c0_239] : memref<35x64x256xbf16, #tpu.memory_space<vmem>>, vector<1x64x256xbf16>
    %272 = vector.shape_cast %271 : vector<1x64x256xbf16> to vector<64x256xbf16>
    %cst_240 = arith.constant dense<0.000000e+00> : vector<16x256xf32>
    %273 = tpu.matmul %270, %272, %cst_240 {dimension_numbers = #tpu.dot_dimension_numbers<[1], [0], [0], [1], [0, 0, 1, 1], [], []>} : vector<16x64xbf16>, vector<64x256xbf16>, vector<16x256xf32> -> vector<16x256xf32>
    %274 = arith.addf %269, %273 : vector<16x256xf32>
    %275 = vector.extract_strided_slice %254 {offsets = [64, 0], sizes = [16, 64], strides = [1, 1]} : vector<80x64xbf16> to vector<16x64xbf16>
    %c9 = arith.constant 9 : index
    %c0_241 = arith.constant 0 : index
    %c0_242 = arith.constant 0 : index
    %276 = vector.load %arg12[%c9, %c0_241, %c0_242] : memref<35x64x256xbf16, #tpu.memory_space<vmem>>, vector<1x64x256xbf16>
    %277 = vector.shape_cast %276 : vector<1x64x256xbf16> to vector<64x256xbf16>
    %cst_243 = arith.constant dense<0.000000e+00> : vector<16x256xf32>
    %278 = tpu.matmul %275, %277, %cst_243 {dimension_numbers = #tpu.dot_dimension_numbers<[1], [0], [0], [1], [0, 0, 1, 1], [], []>} : vector<16x64xbf16>, vector<64x256xbf16>, vector<16x256xf32> -> vector<16x256xf32>
    %279 = arith.addf %274, %278 : vector<16x256xf32>
    %c224_244 = arith.constant 224 : index
    %c0_245 = arith.constant 0 : index
    %280 = vector.load %arg19[%c224_244, %c0_245] : memref<1008x32xbf16, #tpu.memory_space<vmem>>, vector<80x32xbf16>
    %c0_246 = arith.constant 0 : index
    %c0_247 = arith.constant 0 : index
    %c0_248 = arith.constant 0 : index
    %281 = vector.load %arg6[%c0_246, %c0_247, %c0_248] : memref<9x32x64xbf16, #tpu.memory_space<vmem>>, vector<1x32x64xbf16>
    %282 = vector.shape_cast %281 : vector<1x32x64xbf16> to vector<32x64xbf16>
    %cst_249 = arith.constant dense<0.000000e+00> : vector<80x64xf32>
    %283 = tpu.matmul %280, %282, %cst_249 {dimension_numbers = #tpu.dot_dimension_numbers<[1], [0], [0], [1], [0, 0, 1, 1], [], []>} : vector<80x32xbf16>, vector<32x64xbf16>, vector<80x64xf32> -> vector<80x64xf32>
    %c240_250 = arith.constant 240 : index
    %c0_251 = arith.constant 0 : index
    %284 = vector.load %arg19[%c240_250, %c0_251] : memref<1008x32xbf16, #tpu.memory_space<vmem>>, vector<80x32xbf16>
    %c1_252 = arith.constant 1 : index
    %c0_253 = arith.constant 0 : index
    %c0_254 = arith.constant 0 : index
    %285 = vector.load %arg6[%c1_252, %c0_253, %c0_254] : memref<9x32x64xbf16, #tpu.memory_space<vmem>>, vector<1x32x64xbf16>
    %286 = vector.shape_cast %285 : vector<1x32x64xbf16> to vector<32x64xbf16>
    %cst_255 = arith.constant dense<0.000000e+00> : vector<80x64xf32>
    %287 = tpu.matmul %284, %286, %cst_255 {dimension_numbers = #tpu.dot_dimension_numbers<[1], [0], [0], [1], [0, 0, 1, 1], [], []>} : vector<80x32xbf16>, vector<32x64xbf16>, vector<80x64xf32> -> vector<80x64xf32>
    %288 = arith.addf %283, %287 : vector<80x64xf32>
    %c256_256 = arith.constant 256 : index
    %c0_257 = arith.constant 0 : index
    %289 = vector.load %arg19[%c256_256, %c0_257] : memref<1008x32xbf16, #tpu.memory_space<vmem>>, vector<80x32xbf16>
    %c2_258 = arith.constant 2 : index
    %c0_259 = arith.constant 0 : index
    %c0_260 = arith.constant 0 : index
    %290 = vector.load %arg6[%c2_258, %c0_259, %c0_260] : memref<9x32x64xbf16, #tpu.memory_space<vmem>>, vector<1x32x64xbf16>
    %291 = vector.shape_cast %290 : vector<1x32x64xbf16> to vector<32x64xbf16>
    %cst_261 = arith.constant dense<0.000000e+00> : vector<80x64xf32>
    %292 = tpu.matmul %289, %291, %cst_261 {dimension_numbers = #tpu.dot_dimension_numbers<[1], [0], [0], [1], [0, 0, 1, 1], [], []>} : vector<80x32xbf16>, vector<32x64xbf16>, vector<80x64xf32> -> vector<80x64xf32>
    %293 = arith.addf %288, %292 : vector<80x64xf32>
    %c336_262 = arith.constant 336 : index
    %c0_263 = arith.constant 0 : index
    %294 = vector.load %arg19[%c336_262, %c0_263] : memref<1008x32xbf16, #tpu.memory_space<vmem>>, vector<80x32xbf16>
    %c3_264 = arith.constant 3 : index
    %c0_265 = arith.constant 0 : index
    %c0_266 = arith.constant 0 : index
    %295 = vector.load %arg6[%c3_264, %c0_265, %c0_266] : memref<9x32x64xbf16, #tpu.memory_space<vmem>>, vector<1x32x64xbf16>
    %296 = vector.shape_cast %295 : vector<1x32x64xbf16> to vector<32x64xbf16>
    %cst_267 = arith.constant dense<0.000000e+00> : vector<80x64xf32>
    %297 = tpu.matmul %294, %296, %cst_267 {dimension_numbers = #tpu.dot_dimension_numbers<[1], [0], [0], [1], [0, 0, 1, 1], [], []>} : vector<80x32xbf16>, vector<32x64xbf16>, vector<80x64xf32> -> vector<80x64xf32>
    %298 = arith.addf %293, %297 : vector<80x64xf32>
    %c352_268 = arith.constant 352 : index
    %c0_269 = arith.constant 0 : index
    %299 = vector.load %arg19[%c352_268, %c0_269] : memref<1008x32xbf16, #tpu.memory_space<vmem>>, vector<80x32xbf16>
    %c4_270 = arith.constant 4 : index
    %c0_271 = arith.constant 0 : index
    %c0_272 = arith.constant 0 : index
    %300 = vector.load %arg6[%c4_270, %c0_271, %c0_272] : memref<9x32x64xbf16, #tpu.memory_space<vmem>>, vector<1x32x64xbf16>
    %301 = vector.shape_cast %300 : vector<1x32x64xbf16> to vector<32x64xbf16>
    %cst_273 = arith.constant dense<0.000000e+00> : vector<80x64xf32>
    %302 = tpu.matmul %299, %301, %cst_273 {dimension_numbers = #tpu.dot_dimension_numbers<[1], [0], [0], [1], [0, 0, 1, 1], [], []>} : vector<80x32xbf16>, vector<32x64xbf16>, vector<80x64xf32> -> vector<80x64xf32>
    %303 = arith.addf %298, %302 : vector<80x64xf32>
    %c368_274 = arith.constant 368 : index
    %c0_275 = arith.constant 0 : index
    %304 = vector.load %arg19[%c368_274, %c0_275] : memref<1008x32xbf16, #tpu.memory_space<vmem>>, vector<80x32xbf16>
    %c5_276 = arith.constant 5 : index
    %c0_277 = arith.constant 0 : index
    %c0_278 = arith.constant 0 : index
    %305 = vector.load %arg6[%c5_276, %c0_277, %c0_278] : memref<9x32x64xbf16, #tpu.memory_space<vmem>>, vector<1x32x64xbf16>
    %306 = vector.shape_cast %305 : vector<1x32x64xbf16> to vector<32x64xbf16>
    %cst_279 = arith.constant dense<0.000000e+00> : vector<80x64xf32>
    %307 = tpu.matmul %304, %306, %cst_279 {dimension_numbers = #tpu.dot_dimension_numbers<[1], [0], [0], [1], [0, 0, 1, 1], [], []>} : vector<80x32xbf16>, vector<32x64xbf16>, vector<80x64xf32> -> vector<80x64xf32>
    %308 = arith.addf %303, %307 : vector<80x64xf32>
    %c448 = arith.constant 448 : index
    %c0_280 = arith.constant 0 : index
    %309 = vector.load %arg19[%c448, %c0_280] : memref<1008x32xbf16, #tpu.memory_space<vmem>>, vector<80x32xbf16>
    %c6_281 = arith.constant 6 : index
    %c0_282 = arith.constant 0 : index
    %c0_283 = arith.constant 0 : index
    %310 = vector.load %arg6[%c6_281, %c0_282, %c0_283] : memref<9x32x64xbf16, #tpu.memory_space<vmem>>, vector<1x32x64xbf16>
    %311 = vector.shape_cast %310 : vector<1x32x64xbf16> to vector<32x64xbf16>
    %cst_284 = arith.constant dense<0.000000e+00> : vector<80x64xf32>
    %312 = tpu.matmul %309, %311, %cst_284 {dimension_numbers = #tpu.dot_dimension_numbers<[1], [0], [0], [1], [0, 0, 1, 1], [], []>} : vector<80x32xbf16>, vector<32x64xbf16>, vector<80x64xf32> -> vector<80x64xf32>
    %313 = arith.addf %308, %312 : vector<80x64xf32>
    %c464_285 = arith.constant 464 : index
    %c0_286 = arith.constant 0 : index
    %314 = vector.load %arg19[%c464_285, %c0_286] : memref<1008x32xbf16, #tpu.memory_space<vmem>>, vector<80x32xbf16>
    %c7_287 = arith.constant 7 : index
    %c0_288 = arith.constant 0 : index
    %c0_289 = arith.constant 0 : index
    %315 = vector.load %arg6[%c7_287, %c0_288, %c0_289] : memref<9x32x64xbf16, #tpu.memory_space<vmem>>, vector<1x32x64xbf16>
    %316 = vector.shape_cast %315 : vector<1x32x64xbf16> to vector<32x64xbf16>
    %cst_290 = arith.constant dense<0.000000e+00> : vector<80x64xf32>
    %317 = tpu.matmul %314, %316, %cst_290 {dimension_numbers = #tpu.dot_dimension_numbers<[1], [0], [0], [1], [0, 0, 1, 1], [], []>} : vector<80x32xbf16>, vector<32x64xbf16>, vector<80x64xf32> -> vector<80x64xf32>
    %318 = arith.addf %313, %317 : vector<80x64xf32>
    %c480_291 = arith.constant 480 : index
    %c0_292 = arith.constant 0 : index
    %319 = vector.load %arg19[%c480_291, %c0_292] : memref<1008x32xbf16, #tpu.memory_space<vmem>>, vector<80x32xbf16>
    %c8_293 = arith.constant 8 : index
    %c0_294 = arith.constant 0 : index
    %c0_295 = arith.constant 0 : index
    %320 = vector.load %arg6[%c8_293, %c0_294, %c0_295] : memref<9x32x64xbf16, #tpu.memory_space<vmem>>, vector<1x32x64xbf16>
    %321 = vector.shape_cast %320 : vector<1x32x64xbf16> to vector<32x64xbf16>
    %cst_296 = arith.constant dense<0.000000e+00> : vector<80x64xf32>
    %322 = tpu.matmul %319, %321, %cst_296 {dimension_numbers = #tpu.dot_dimension_numbers<[1], [0], [0], [1], [0, 0, 1, 1], [], []>} : vector<80x32xbf16>, vector<32x64xbf16>, vector<80x64xf32> -> vector<80x64xf32>
    %323 = arith.addf %318, %322 : vector<80x64xf32>
    %c0_297 = arith.constant 0 : index
    %c0_298 = arith.constant 0 : index
    %324 = vector.load %arg7[%c0_297, %c0_298] : memref<1x64xf32, #tpu.memory_space<vmem>>, vector<1x64xf32>
    %325 = vector.broadcast %324 : vector<1x64xf32> to vector<80x64xf32>
    %326 = arith.mulf %323, %325 : vector<80x64xf32>
    %c0_299 = arith.constant 0 : index
    %c0_300 = arith.constant 0 : index
    %327 = vector.load %arg8[%c0_299, %c0_300] : memref<1x64xf32, #tpu.memory_space<vmem>>, vector<1x64xf32>
    %328 = vector.broadcast %327 : vector<1x64xf32> to vector<80x64xf32>
    %329 = arith.addf %326, %328 : vector<80x64xf32>
    %cst_301 = arith.constant 0.000000e+00 : f32
    %330 = vector.broadcast %cst_301 : f32 to vector<80x64xf32>
    %331 = arith.maximumf %329, %330 : vector<80x64xf32>
    %332 = arith.truncf %331 : vector<80x64xf32> to vector<80x64xbf16>
    %333 = vector.extract_strided_slice %332 {offsets = [0, 0], sizes = [16, 64], strides = [1, 1]} : vector<80x64xbf16> to vector<16x64xbf16>
    %c10 = arith.constant 10 : index
    %c0_302 = arith.constant 0 : index
    %c0_303 = arith.constant 0 : index
    %334 = vector.load %arg12[%c10, %c0_302, %c0_303] : memref<35x64x256xbf16, #tpu.memory_space<vmem>>, vector<1x64x256xbf16>
    %335 = vector.shape_cast %334 : vector<1x64x256xbf16> to vector<64x256xbf16>
    %cst_304 = arith.constant dense<0.000000e+00> : vector<16x256xf32>
    %336 = tpu.matmul %333, %335, %cst_304 {dimension_numbers = #tpu.dot_dimension_numbers<[1], [0], [0], [1], [0, 0, 1, 1], [], []>} : vector<16x64xbf16>, vector<64x256xbf16>, vector<16x256xf32> -> vector<16x256xf32>
    %337 = arith.addf %279, %336 : vector<16x256xf32>
    %338 = vector.extract_strided_slice %332 {offsets = [16, 0], sizes = [16, 64], strides = [1, 1]} : vector<80x64xbf16> to vector<16x64xbf16>
    %c11 = arith.constant 11 : index
    %c0_305 = arith.constant 0 : index
    %c0_306 = arith.constant 0 : index
    %339 = vector.load %arg12[%c11, %c0_305, %c0_306] : memref<35x64x256xbf16, #tpu.memory_space<vmem>>, vector<1x64x256xbf16>
    %340 = vector.shape_cast %339 : vector<1x64x256xbf16> to vector<64x256xbf16>
    %cst_307 = arith.constant dense<0.000000e+00> : vector<16x256xf32>
    %341 = tpu.matmul %338, %340, %cst_307 {dimension_numbers = #tpu.dot_dimension_numbers<[1], [0], [0], [1], [0, 0, 1, 1], [], []>} : vector<16x64xbf16>, vector<64x256xbf16>, vector<16x256xf32> -> vector<16x256xf32>
    %342 = arith.addf %337, %341 : vector<16x256xf32>
    %343 = vector.extract_strided_slice %332 {offsets = [32, 0], sizes = [16, 64], strides = [1, 1]} : vector<80x64xbf16> to vector<16x64xbf16>
    %c12 = arith.constant 12 : index
    %c0_308 = arith.constant 0 : index
    %c0_309 = arith.constant 0 : index
    %344 = vector.load %arg12[%c12, %c0_308, %c0_309] : memref<35x64x256xbf16, #tpu.memory_space<vmem>>, vector<1x64x256xbf16>
    %345 = vector.shape_cast %344 : vector<1x64x256xbf16> to vector<64x256xbf16>
    %cst_310 = arith.constant dense<0.000000e+00> : vector<16x256xf32>
    %346 = tpu.matmul %343, %345, %cst_310 {dimension_numbers = #tpu.dot_dimension_numbers<[1], [0], [0], [1], [0, 0, 1, 1], [], []>} : vector<16x64xbf16>, vector<64x256xbf16>, vector<16x256xf32> -> vector<16x256xf32>
    %347 = arith.addf %342, %346 : vector<16x256xf32>
    %348 = vector.extract_strided_slice %332 {offsets = [48, 0], sizes = [16, 64], strides = [1, 1]} : vector<80x64xbf16> to vector<16x64xbf16>
    %c13 = arith.constant 13 : index
    %c0_311 = arith.constant 0 : index
    %c0_312 = arith.constant 0 : index
    %349 = vector.load %arg12[%c13, %c0_311, %c0_312] : memref<35x64x256xbf16, #tpu.memory_space<vmem>>, vector<1x64x256xbf16>
    %350 = vector.shape_cast %349 : vector<1x64x256xbf16> to vector<64x256xbf16>
    %cst_313 = arith.constant dense<0.000000e+00> : vector<16x256xf32>
    %351 = tpu.matmul %348, %350, %cst_313 {dimension_numbers = #tpu.dot_dimension_numbers<[1], [0], [0], [1], [0, 0, 1, 1], [], []>} : vector<16x64xbf16>, vector<64x256xbf16>, vector<16x256xf32> -> vector<16x256xf32>
    %352 = arith.addf %347, %351 : vector<16x256xf32>
    %353 = vector.extract_strided_slice %332 {offsets = [64, 0], sizes = [16, 64], strides = [1, 1]} : vector<80x64xbf16> to vector<16x64xbf16>
    %c14 = arith.constant 14 : index
    %c0_314 = arith.constant 0 : index
    %c0_315 = arith.constant 0 : index
    %354 = vector.load %arg12[%c14, %c0_314, %c0_315] : memref<35x64x256xbf16, #tpu.memory_space<vmem>>, vector<1x64x256xbf16>
    %355 = vector.shape_cast %354 : vector<1x64x256xbf16> to vector<64x256xbf16>
    %cst_316 = arith.constant dense<0.000000e+00> : vector<16x256xf32>
    %356 = tpu.matmul %353, %355, %cst_316 {dimension_numbers = #tpu.dot_dimension_numbers<[1], [0], [0], [1], [0, 0, 1, 1], [], []>} : vector<16x64xbf16>, vector<64x256xbf16>, vector<16x256xf32> -> vector<16x256xf32>
    %357 = arith.addf %352, %356 : vector<16x256xf32>
    %c336_317 = arith.constant 336 : index
    %c0_318 = arith.constant 0 : index
    %358 = vector.load %arg19[%c336_317, %c0_318] : memref<1008x32xbf16, #tpu.memory_space<vmem>>, vector<80x32xbf16>
    %c0_319 = arith.constant 0 : index
    %c0_320 = arith.constant 0 : index
    %c0_321 = arith.constant 0 : index
    %359 = vector.load %arg6[%c0_319, %c0_320, %c0_321] : memref<9x32x64xbf16, #tpu.memory_space<vmem>>, vector<1x32x64xbf16>
    %360 = vector.shape_cast %359 : vector<1x32x64xbf16> to vector<32x64xbf16>
    %cst_322 = arith.constant dense<0.000000e+00> : vector<80x64xf32>
    %361 = tpu.matmul %358, %360, %cst_322 {dimension_numbers = #tpu.dot_dimension_numbers<[1], [0], [0], [1], [0, 0, 1, 1], [], []>} : vector<80x32xbf16>, vector<32x64xbf16>, vector<80x64xf32> -> vector<80x64xf32>
    %c352_323 = arith.constant 352 : index
    %c0_324 = arith.constant 0 : index
    %362 = vector.load %arg19[%c352_323, %c0_324] : memref<1008x32xbf16, #tpu.memory_space<vmem>>, vector<80x32xbf16>
    %c1_325 = arith.constant 1 : index
    %c0_326 = arith.constant 0 : index
    %c0_327 = arith.constant 0 : index
    %363 = vector.load %arg6[%c1_325, %c0_326, %c0_327] : memref<9x32x64xbf16, #tpu.memory_space<vmem>>, vector<1x32x64xbf16>
    %364 = vector.shape_cast %363 : vector<1x32x64xbf16> to vector<32x64xbf16>
    %cst_328 = arith.constant dense<0.000000e+00> : vector<80x64xf32>
    %365 = tpu.matmul %362, %364, %cst_328 {dimension_numbers = #tpu.dot_dimension_numbers<[1], [0], [0], [1], [0, 0, 1, 1], [], []>} : vector<80x32xbf16>, vector<32x64xbf16>, vector<80x64xf32> -> vector<80x64xf32>
    %366 = arith.addf %361, %365 : vector<80x64xf32>
    %c368_329 = arith.constant 368 : index
    %c0_330 = arith.constant 0 : index
    %367 = vector.load %arg19[%c368_329, %c0_330] : memref<1008x32xbf16, #tpu.memory_space<vmem>>, vector<80x32xbf16>
    %c2_331 = arith.constant 2 : index
    %c0_332 = arith.constant 0 : index
    %c0_333 = arith.constant 0 : index
    %368 = vector.load %arg6[%c2_331, %c0_332, %c0_333] : memref<9x32x64xbf16, #tpu.memory_space<vmem>>, vector<1x32x64xbf16>
    %369 = vector.shape_cast %368 : vector<1x32x64xbf16> to vector<32x64xbf16>
    %cst_334 = arith.constant dense<0.000000e+00> : vector<80x64xf32>
    %370 = tpu.matmul %367, %369, %cst_334 {dimension_numbers = #tpu.dot_dimension_numbers<[1], [0], [0], [1], [0, 0, 1, 1], [], []>} : vector<80x32xbf16>, vector<32x64xbf16>, vector<80x64xf32> -> vector<80x64xf32>
    %371 = arith.addf %366, %370 : vector<80x64xf32>
    %c448_335 = arith.constant 448 : index
    %c0_336 = arith.constant 0 : index
    %372 = vector.load %arg19[%c448_335, %c0_336] : memref<1008x32xbf16, #tpu.memory_space<vmem>>, vector<80x32xbf16>
    %c3_337 = arith.constant 3 : index
    %c0_338 = arith.constant 0 : index
    %c0_339 = arith.constant 0 : index
    %373 = vector.load %arg6[%c3_337, %c0_338, %c0_339] : memref<9x32x64xbf16, #tpu.memory_space<vmem>>, vector<1x32x64xbf16>
    %374 = vector.shape_cast %373 : vector<1x32x64xbf16> to vector<32x64xbf16>
    %cst_340 = arith.constant dense<0.000000e+00> : vector<80x64xf32>
    %375 = tpu.matmul %372, %374, %cst_340 {dimension_numbers = #tpu.dot_dimension_numbers<[1], [0], [0], [1], [0, 0, 1, 1], [], []>} : vector<80x32xbf16>, vector<32x64xbf16>, vector<80x64xf32> -> vector<80x64xf32>
    %376 = arith.addf %371, %375 : vector<80x64xf32>
    %c464_341 = arith.constant 464 : index
    %c0_342 = arith.constant 0 : index
    %377 = vector.load %arg19[%c464_341, %c0_342] : memref<1008x32xbf16, #tpu.memory_space<vmem>>, vector<80x32xbf16>
    %c4_343 = arith.constant 4 : index
    %c0_344 = arith.constant 0 : index
    %c0_345 = arith.constant 0 : index
    %378 = vector.load %arg6[%c4_343, %c0_344, %c0_345] : memref<9x32x64xbf16, #tpu.memory_space<vmem>>, vector<1x32x64xbf16>
    %379 = vector.shape_cast %378 : vector<1x32x64xbf16> to vector<32x64xbf16>
    %cst_346 = arith.constant dense<0.000000e+00> : vector<80x64xf32>
    %380 = tpu.matmul %377, %379, %cst_346 {dimension_numbers = #tpu.dot_dimension_numbers<[1], [0], [0], [1], [0, 0, 1, 1], [], []>} : vector<80x32xbf16>, vector<32x64xbf16>, vector<80x64xf32> -> vector<80x64xf32>
    %381 = arith.addf %376, %380 : vector<80x64xf32>
    %c480_347 = arith.constant 480 : index
    %c0_348 = arith.constant 0 : index
    %382 = vector.load %arg19[%c480_347, %c0_348] : memref<1008x32xbf16, #tpu.memory_space<vmem>>, vector<80x32xbf16>
    %c5_349 = arith.constant 5 : index
    %c0_350 = arith.constant 0 : index
    %c0_351 = arith.constant 0 : index
    %383 = vector.load %arg6[%c5_349, %c0_350, %c0_351] : memref<9x32x64xbf16, #tpu.memory_space<vmem>>, vector<1x32x64xbf16>
    %384 = vector.shape_cast %383 : vector<1x32x64xbf16> to vector<32x64xbf16>
    %cst_352 = arith.constant dense<0.000000e+00> : vector<80x64xf32>
    %385 = tpu.matmul %382, %384, %cst_352 {dimension_numbers = #tpu.dot_dimension_numbers<[1], [0], [0], [1], [0, 0, 1, 1], [], []>} : vector<80x32xbf16>, vector<32x64xbf16>, vector<80x64xf32> -> vector<80x64xf32>
    %386 = arith.addf %381, %385 : vector<80x64xf32>
    %c560 = arith.constant 560 : index
    %c0_353 = arith.constant 0 : index
    %387 = vector.load %arg19[%c560, %c0_353] : memref<1008x32xbf16, #tpu.memory_space<vmem>>, vector<80x32xbf16>
    %c6_354 = arith.constant 6 : index
    %c0_355 = arith.constant 0 : index
    %c0_356 = arith.constant 0 : index
    %388 = vector.load %arg6[%c6_354, %c0_355, %c0_356] : memref<9x32x64xbf16, #tpu.memory_space<vmem>>, vector<1x32x64xbf16>
    %389 = vector.shape_cast %388 : vector<1x32x64xbf16> to vector<32x64xbf16>
    %cst_357 = arith.constant dense<0.000000e+00> : vector<80x64xf32>
    %390 = tpu.matmul %387, %389, %cst_357 {dimension_numbers = #tpu.dot_dimension_numbers<[1], [0], [0], [1], [0, 0, 1, 1], [], []>} : vector<80x32xbf16>, vector<32x64xbf16>, vector<80x64xf32> -> vector<80x64xf32>
    %391 = arith.addf %386, %390 : vector<80x64xf32>
    %c576_358 = arith.constant 576 : index
    %c0_359 = arith.constant 0 : index
    %392 = vector.load %arg19[%c576_358, %c0_359] : memref<1008x32xbf16, #tpu.memory_space<vmem>>, vector<80x32xbf16>
    %c7_360 = arith.constant 7 : index
    %c0_361 = arith.constant 0 : index
    %c0_362 = arith.constant 0 : index
    %393 = vector.load %arg6[%c7_360, %c0_361, %c0_362] : memref<9x32x64xbf16, #tpu.memory_space<vmem>>, vector<1x32x64xbf16>
    %394 = vector.shape_cast %393 : vector<1x32x64xbf16> to vector<32x64xbf16>
    %cst_363 = arith.constant dense<0.000000e+00> : vector<80x64xf32>
    %395 = tpu.matmul %392, %394, %cst_363 {dimension_numbers = #tpu.dot_dimension_numbers<[1], [0], [0], [1], [0, 0, 1, 1], [], []>} : vector<80x32xbf16>, vector<32x64xbf16>, vector<80x64xf32> -> vector<80x64xf32>
    %396 = arith.addf %391, %395 : vector<80x64xf32>
    %c592 = arith.constant 592 : index
    %c0_364 = arith.constant 0 : index
    %397 = vector.load %arg19[%c592, %c0_364] : memref<1008x32xbf16, #tpu.memory_space<vmem>>, vector<80x32xbf16>
    %c8_365 = arith.constant 8 : index
    %c0_366 = arith.constant 0 : index
    %c0_367 = arith.constant 0 : index
    %398 = vector.load %arg6[%c8_365, %c0_366, %c0_367] : memref<9x32x64xbf16, #tpu.memory_space<vmem>>, vector<1x32x64xbf16>
    %399 = vector.shape_cast %398 : vector<1x32x64xbf16> to vector<32x64xbf16>
    %cst_368 = arith.constant dense<0.000000e+00> : vector<80x64xf32>
    %400 = tpu.matmul %397, %399, %cst_368 {dimension_numbers = #tpu.dot_dimension_numbers<[1], [0], [0], [1], [0, 0, 1, 1], [], []>} : vector<80x32xbf16>, vector<32x64xbf16>, vector<80x64xf32> -> vector<80x64xf32>
    %401 = arith.addf %396, %400 : vector<80x64xf32>
    %c0_369 = arith.constant 0 : index
    %c0_370 = arith.constant 0 : index
    %402 = vector.load %arg7[%c0_369, %c0_370] : memref<1x64xf32, #tpu.memory_space<vmem>>, vector<1x64xf32>
    %403 = vector.broadcast %402 : vector<1x64xf32> to vector<80x64xf32>
    %404 = arith.mulf %401, %403 : vector<80x64xf32>
    %c0_371 = arith.constant 0 : index
    %c0_372 = arith.constant 0 : index
    %405 = vector.load %arg8[%c0_371, %c0_372] : memref<1x64xf32, #tpu.memory_space<vmem>>, vector<1x64xf32>
    %406 = vector.broadcast %405 : vector<1x64xf32> to vector<80x64xf32>
    %407 = arith.addf %404, %406 : vector<80x64xf32>
    %cst_373 = arith.constant 0.000000e+00 : f32
    %408 = vector.broadcast %cst_373 : f32 to vector<80x64xf32>
    %409 = arith.maximumf %407, %408 : vector<80x64xf32>
    %410 = arith.truncf %409 : vector<80x64xf32> to vector<80x64xbf16>
    %411 = vector.extract_strided_slice %410 {offsets = [0, 0], sizes = [16, 64], strides = [1, 1]} : vector<80x64xbf16> to vector<16x64xbf16>
    %c15 = arith.constant 15 : index
    %c0_374 = arith.constant 0 : index
    %c0_375 = arith.constant 0 : index
    %412 = vector.load %arg12[%c15, %c0_374, %c0_375] : memref<35x64x256xbf16, #tpu.memory_space<vmem>>, vector<1x64x256xbf16>
    %413 = vector.shape_cast %412 : vector<1x64x256xbf16> to vector<64x256xbf16>
    %cst_376 = arith.constant dense<0.000000e+00> : vector<16x256xf32>
    %414 = tpu.matmul %411, %413, %cst_376 {dimension_numbers = #tpu.dot_dimension_numbers<[1], [0], [0], [1], [0, 0, 1, 1], [], []>} : vector<16x64xbf16>, vector<64x256xbf16>, vector<16x256xf32> -> vector<16x256xf32>
    %415 = arith.addf %357, %414 : vector<16x256xf32>
    %416 = vector.extract_strided_slice %410 {offsets = [16, 0], sizes = [16, 64], strides = [1, 1]} : vector<80x64xbf16> to vector<16x64xbf16>
    %c16_377 = arith.constant 16 : index
    %c0_378 = arith.constant 0 : index
    %c0_379 = arith.constant 0 : index
    %417 = vector.load %arg12[%c16_377, %c0_378, %c0_379] : memref<35x64x256xbf16, #tpu.memory_space<vmem>>, vector<1x64x256xbf16>
    %418 = vector.shape_cast %417 : vector<1x64x256xbf16> to vector<64x256xbf16>
    %cst_380 = arith.constant dense<0.000000e+00> : vector<16x256xf32>
    %419 = tpu.matmul %416, %418, %cst_380 {dimension_numbers = #tpu.dot_dimension_numbers<[1], [0], [0], [1], [0, 0, 1, 1], [], []>} : vector<16x64xbf16>, vector<64x256xbf16>, vector<16x256xf32> -> vector<16x256xf32>
    %420 = arith.addf %415, %419 : vector<16x256xf32>
    %421 = vector.extract_strided_slice %410 {offsets = [32, 0], sizes = [16, 64], strides = [1, 1]} : vector<80x64xbf16> to vector<16x64xbf16>
    %c17 = arith.constant 17 : index
    %c0_381 = arith.constant 0 : index
    %c0_382 = arith.constant 0 : index
    %422 = vector.load %arg12[%c17, %c0_381, %c0_382] : memref<35x64x256xbf16, #tpu.memory_space<vmem>>, vector<1x64x256xbf16>
    %423 = vector.shape_cast %422 : vector<1x64x256xbf16> to vector<64x256xbf16>
    %cst_383 = arith.constant dense<0.000000e+00> : vector<16x256xf32>
    %424 = tpu.matmul %421, %423, %cst_383 {dimension_numbers = #tpu.dot_dimension_numbers<[1], [0], [0], [1], [0, 0, 1, 1], [], []>} : vector<16x64xbf16>, vector<64x256xbf16>, vector<16x256xf32> -> vector<16x256xf32>
    %425 = arith.addf %420, %424 : vector<16x256xf32>
    %426 = vector.extract_strided_slice %410 {offsets = [48, 0], sizes = [16, 64], strides = [1, 1]} : vector<80x64xbf16> to vector<16x64xbf16>
    %c18 = arith.constant 18 : index
    %c0_384 = arith.constant 0 : index
    %c0_385 = arith.constant 0 : index
    %427 = vector.load %arg12[%c18, %c0_384, %c0_385] : memref<35x64x256xbf16, #tpu.memory_space<vmem>>, vector<1x64x256xbf16>
    %428 = vector.shape_cast %427 : vector<1x64x256xbf16> to vector<64x256xbf16>
    %cst_386 = arith.constant dense<0.000000e+00> : vector<16x256xf32>
    %429 = tpu.matmul %426, %428, %cst_386 {dimension_numbers = #tpu.dot_dimension_numbers<[1], [0], [0], [1], [0, 0, 1, 1], [], []>} : vector<16x64xbf16>, vector<64x256xbf16>, vector<16x256xf32> -> vector<16x256xf32>
    %430 = arith.addf %425, %429 : vector<16x256xf32>
    %431 = vector.extract_strided_slice %410 {offsets = [64, 0], sizes = [16, 64], strides = [1, 1]} : vector<80x64xbf16> to vector<16x64xbf16>
    %c19 = arith.constant 19 : index
    %c0_387 = arith.constant 0 : index
    %c0_388 = arith.constant 0 : index
    %432 = vector.load %arg12[%c19, %c0_387, %c0_388] : memref<35x64x256xbf16, #tpu.memory_space<vmem>>, vector<1x64x256xbf16>
    %433 = vector.shape_cast %432 : vector<1x64x256xbf16> to vector<64x256xbf16>
    %cst_389 = arith.constant dense<0.000000e+00> : vector<16x256xf32>
    %434 = tpu.matmul %431, %433, %cst_389 {dimension_numbers = #tpu.dot_dimension_numbers<[1], [0], [0], [1], [0, 0, 1, 1], [], []>} : vector<16x64xbf16>, vector<64x256xbf16>, vector<16x256xf32> -> vector<16x256xf32>
    %435 = arith.addf %430, %434 : vector<16x256xf32>
    %c448_390 = arith.constant 448 : index
    %c0_391 = arith.constant 0 : index
    %436 = vector.load %arg19[%c448_390, %c0_391] : memref<1008x32xbf16, #tpu.memory_space<vmem>>, vector<80x32xbf16>
    %c0_392 = arith.constant 0 : index
    %c0_393 = arith.constant 0 : index
    %c0_394 = arith.constant 0 : index
    %437 = vector.load %arg6[%c0_392, %c0_393, %c0_394] : memref<9x32x64xbf16, #tpu.memory_space<vmem>>, vector<1x32x64xbf16>
    %438 = vector.shape_cast %437 : vector<1x32x64xbf16> to vector<32x64xbf16>
    %cst_395 = arith.constant dense<0.000000e+00> : vector<80x64xf32>
    %439 = tpu.matmul %436, %438, %cst_395 {dimension_numbers = #tpu.dot_dimension_numbers<[1], [0], [0], [1], [0, 0, 1, 1], [], []>} : vector<80x32xbf16>, vector<32x64xbf16>, vector<80x64xf32> -> vector<80x64xf32>
    %c464_396 = arith.constant 464 : index
    %c0_397 = arith.constant 0 : index
    %440 = vector.load %arg19[%c464_396, %c0_397] : memref<1008x32xbf16, #tpu.memory_space<vmem>>, vector<80x32xbf16>
    %c1_398 = arith.constant 1 : index
    %c0_399 = arith.constant 0 : index
    %c0_400 = arith.constant 0 : index
    %441 = vector.load %arg6[%c1_398, %c0_399, %c0_400] : memref<9x32x64xbf16, #tpu.memory_space<vmem>>, vector<1x32x64xbf16>
    %442 = vector.shape_cast %441 : vector<1x32x64xbf16> to vector<32x64xbf16>
    %cst_401 = arith.constant dense<0.000000e+00> : vector<80x64xf32>
    %443 = tpu.matmul %440, %442, %cst_401 {dimension_numbers = #tpu.dot_dimension_numbers<[1], [0], [0], [1], [0, 0, 1, 1], [], []>} : vector<80x32xbf16>, vector<32x64xbf16>, vector<80x64xf32> -> vector<80x64xf32>
    %444 = arith.addf %439, %443 : vector<80x64xf32>
    %c480_402 = arith.constant 480 : index
    %c0_403 = arith.constant 0 : index
    %445 = vector.load %arg19[%c480_402, %c0_403] : memref<1008x32xbf16, #tpu.memory_space<vmem>>, vector<80x32xbf16>
    %c2_404 = arith.constant 2 : index
    %c0_405 = arith.constant 0 : index
    %c0_406 = arith.constant 0 : index
    %446 = vector.load %arg6[%c2_404, %c0_405, %c0_406] : memref<9x32x64xbf16, #tpu.memory_space<vmem>>, vector<1x32x64xbf16>
    %447 = vector.shape_cast %446 : vector<1x32x64xbf16> to vector<32x64xbf16>
    %cst_407 = arith.constant dense<0.000000e+00> : vector<80x64xf32>
    %448 = tpu.matmul %445, %447, %cst_407 {dimension_numbers = #tpu.dot_dimension_numbers<[1], [0], [0], [1], [0, 0, 1, 1], [], []>} : vector<80x32xbf16>, vector<32x64xbf16>, vector<80x64xf32> -> vector<80x64xf32>
    %449 = arith.addf %444, %448 : vector<80x64xf32>
    %c560_408 = arith.constant 560 : index
    %c0_409 = arith.constant 0 : index
    %450 = vector.load %arg19[%c560_408, %c0_409] : memref<1008x32xbf16, #tpu.memory_space<vmem>>, vector<80x32xbf16>
    %c3_410 = arith.constant 3 : index
    %c0_411 = arith.constant 0 : index
    %c0_412 = arith.constant 0 : index
    %451 = vector.load %arg6[%c3_410, %c0_411, %c0_412] : memref<9x32x64xbf16, #tpu.memory_space<vmem>>, vector<1x32x64xbf16>
    %452 = vector.shape_cast %451 : vector<1x32x64xbf16> to vector<32x64xbf16>
    %cst_413 = arith.constant dense<0.000000e+00> : vector<80x64xf32>
    %453 = tpu.matmul %450, %452, %cst_413 {dimension_numbers = #tpu.dot_dimension_numbers<[1], [0], [0], [1], [0, 0, 1, 1], [], []>} : vector<80x32xbf16>, vector<32x64xbf16>, vector<80x64xf32> -> vector<80x64xf32>
    %454 = arith.addf %449, %453 : vector<80x64xf32>
    %c576_414 = arith.constant 576 : index
    %c0_415 = arith.constant 0 : index
    %455 = vector.load %arg19[%c576_414, %c0_415] : memref<1008x32xbf16, #tpu.memory_space<vmem>>, vector<80x32xbf16>
    %c4_416 = arith.constant 4 : index
    %c0_417 = arith.constant 0 : index
    %c0_418 = arith.constant 0 : index
    %456 = vector.load %arg6[%c4_416, %c0_417, %c0_418] : memref<9x32x64xbf16, #tpu.memory_space<vmem>>, vector<1x32x64xbf16>
    %457 = vector.shape_cast %456 : vector<1x32x64xbf16> to vector<32x64xbf16>
    %cst_419 = arith.constant dense<0.000000e+00> : vector<80x64xf32>
    %458 = tpu.matmul %455, %457, %cst_419 {dimension_numbers = #tpu.dot_dimension_numbers<[1], [0], [0], [1], [0, 0, 1, 1], [], []>} : vector<80x32xbf16>, vector<32x64xbf16>, vector<80x64xf32> -> vector<80x64xf32>
    %459 = arith.addf %454, %458 : vector<80x64xf32>
    %c592_420 = arith.constant 592 : index
    %c0_421 = arith.constant 0 : index
    %460 = vector.load %arg19[%c592_420, %c0_421] : memref<1008x32xbf16, #tpu.memory_space<vmem>>, vector<80x32xbf16>
    %c5_422 = arith.constant 5 : index
    %c0_423 = arith.constant 0 : index
    %c0_424 = arith.constant 0 : index
    %461 = vector.load %arg6[%c5_422, %c0_423, %c0_424] : memref<9x32x64xbf16, #tpu.memory_space<vmem>>, vector<1x32x64xbf16>
    %462 = vector.shape_cast %461 : vector<1x32x64xbf16> to vector<32x64xbf16>
    %cst_425 = arith.constant dense<0.000000e+00> : vector<80x64xf32>
    %463 = tpu.matmul %460, %462, %cst_425 {dimension_numbers = #tpu.dot_dimension_numbers<[1], [0], [0], [1], [0, 0, 1, 1], [], []>} : vector<80x32xbf16>, vector<32x64xbf16>, vector<80x64xf32> -> vector<80x64xf32>
    %464 = arith.addf %459, %463 : vector<80x64xf32>
    %c672 = arith.constant 672 : index
    %c0_426 = arith.constant 0 : index
    %465 = vector.load %arg19[%c672, %c0_426] : memref<1008x32xbf16, #tpu.memory_space<vmem>>, vector<80x32xbf16>
    %c6_427 = arith.constant 6 : index
    %c0_428 = arith.constant 0 : index
    %c0_429 = arith.constant 0 : index
    %466 = vector.load %arg6[%c6_427, %c0_428, %c0_429] : memref<9x32x64xbf16, #tpu.memory_space<vmem>>, vector<1x32x64xbf16>
    %467 = vector.shape_cast %466 : vector<1x32x64xbf16> to vector<32x64xbf16>
    %cst_430 = arith.constant dense<0.000000e+00> : vector<80x64xf32>
    %468 = tpu.matmul %465, %467, %cst_430 {dimension_numbers = #tpu.dot_dimension_numbers<[1], [0], [0], [1], [0, 0, 1, 1], [], []>} : vector<80x32xbf16>, vector<32x64xbf16>, vector<80x64xf32> -> vector<80x64xf32>
    %469 = arith.addf %464, %468 : vector<80x64xf32>
    %c688_431 = arith.constant 688 : index
    %c0_432 = arith.constant 0 : index
    %470 = vector.load %arg19[%c688_431, %c0_432] : memref<1008x32xbf16, #tpu.memory_space<vmem>>, vector<80x32xbf16>
    %c7_433 = arith.constant 7 : index
    %c0_434 = arith.constant 0 : index
    %c0_435 = arith.constant 0 : index
    %471 = vector.load %arg6[%c7_433, %c0_434, %c0_435] : memref<9x32x64xbf16, #tpu.memory_space<vmem>>, vector<1x32x64xbf16>
    %472 = vector.shape_cast %471 : vector<1x32x64xbf16> to vector<32x64xbf16>
    %cst_436 = arith.constant dense<0.000000e+00> : vector<80x64xf32>
    %473 = tpu.matmul %470, %472, %cst_436 {dimension_numbers = #tpu.dot_dimension_numbers<[1], [0], [0], [1], [0, 0, 1, 1], [], []>} : vector<80x32xbf16>, vector<32x64xbf16>, vector<80x64xf32> -> vector<80x64xf32>
    %474 = arith.addf %469, %473 : vector<80x64xf32>
    %c704 = arith.constant 704 : index
    %c0_437 = arith.constant 0 : index
    %475 = vector.load %arg19[%c704, %c0_437] : memref<1008x32xbf16, #tpu.memory_space<vmem>>, vector<80x32xbf16>
    %c8_438 = arith.constant 8 : index
    %c0_439 = arith.constant 0 : index
    %c0_440 = arith.constant 0 : index
    %476 = vector.load %arg6[%c8_438, %c0_439, %c0_440] : memref<9x32x64xbf16, #tpu.memory_space<vmem>>, vector<1x32x64xbf16>
    %477 = vector.shape_cast %476 : vector<1x32x64xbf16> to vector<32x64xbf16>
    %cst_441 = arith.constant dense<0.000000e+00> : vector<80x64xf32>
    %478 = tpu.matmul %475, %477, %cst_441 {dimension_numbers = #tpu.dot_dimension_numbers<[1], [0], [0], [1], [0, 0, 1, 1], [], []>} : vector<80x32xbf16>, vector<32x64xbf16>, vector<80x64xf32> -> vector<80x64xf32>
    %479 = arith.addf %474, %478 : vector<80x64xf32>
    %c0_442 = arith.constant 0 : index
    %c0_443 = arith.constant 0 : index
    %480 = vector.load %arg7[%c0_442, %c0_443] : memref<1x64xf32, #tpu.memory_space<vmem>>, vector<1x64xf32>
    %481 = vector.broadcast %480 : vector<1x64xf32> to vector<80x64xf32>
    %482 = arith.mulf %479, %481 : vector<80x64xf32>
    %c0_444 = arith.constant 0 : index
    %c0_445 = arith.constant 0 : index
    %483 = vector.load %arg8[%c0_444, %c0_445] : memref<1x64xf32, #tpu.memory_space<vmem>>, vector<1x64xf32>
    %484 = vector.broadcast %483 : vector<1x64xf32> to vector<80x64xf32>
    %485 = arith.addf %482, %484 : vector<80x64xf32>
    %cst_446 = arith.constant 0.000000e+00 : f32
    %486 = vector.broadcast %cst_446 : f32 to vector<80x64xf32>
    %487 = arith.maximumf %485, %486 : vector<80x64xf32>
    %488 = arith.truncf %487 : vector<80x64xf32> to vector<80x64xbf16>
    %489 = vector.extract_strided_slice %488 {offsets = [0, 0], sizes = [16, 64], strides = [1, 1]} : vector<80x64xbf16> to vector<16x64xbf16>
    %c20 = arith.constant 20 : index
    %c0_447 = arith.constant 0 : index
    %c0_448 = arith.constant 0 : index
    %490 = vector.load %arg12[%c20, %c0_447, %c0_448] : memref<35x64x256xbf16, #tpu.memory_space<vmem>>, vector<1x64x256xbf16>
    %491 = vector.shape_cast %490 : vector<1x64x256xbf16> to vector<64x256xbf16>
    %cst_449 = arith.constant dense<0.000000e+00> : vector<16x256xf32>
    %492 = tpu.matmul %489, %491, %cst_449 {dimension_numbers = #tpu.dot_dimension_numbers<[1], [0], [0], [1], [0, 0, 1, 1], [], []>} : vector<16x64xbf16>, vector<64x256xbf16>, vector<16x256xf32> -> vector<16x256xf32>
    %493 = arith.addf %435, %492 : vector<16x256xf32>
    %494 = vector.extract_strided_slice %488 {offsets = [16, 0], sizes = [16, 64], strides = [1, 1]} : vector<80x64xbf16> to vector<16x64xbf16>
    %c21 = arith.constant 21 : index
    %c0_450 = arith.constant 0 : index
    %c0_451 = arith.constant 0 : index
    %495 = vector.load %arg12[%c21, %c0_450, %c0_451] : memref<35x64x256xbf16, #tpu.memory_space<vmem>>, vector<1x64x256xbf16>
    %496 = vector.shape_cast %495 : vector<1x64x256xbf16> to vector<64x256xbf16>
    %cst_452 = arith.constant dense<0.000000e+00> : vector<16x256xf32>
    %497 = tpu.matmul %494, %496, %cst_452 {dimension_numbers = #tpu.dot_dimension_numbers<[1], [0], [0], [1], [0, 0, 1, 1], [], []>} : vector<16x64xbf16>, vector<64x256xbf16>, vector<16x256xf32> -> vector<16x256xf32>
    %498 = arith.addf %493, %497 : vector<16x256xf32>
    %499 = vector.extract_strided_slice %488 {offsets = [32, 0], sizes = [16, 64], strides = [1, 1]} : vector<80x64xbf16> to vector<16x64xbf16>
    %c22 = arith.constant 22 : index
    %c0_453 = arith.constant 0 : index
    %c0_454 = arith.constant 0 : index
    %500 = vector.load %arg12[%c22, %c0_453, %c0_454] : memref<35x64x256xbf16, #tpu.memory_space<vmem>>, vector<1x64x256xbf16>
    %501 = vector.shape_cast %500 : vector<1x64x256xbf16> to vector<64x256xbf16>
    %cst_455 = arith.constant dense<0.000000e+00> : vector<16x256xf32>
    %502 = tpu.matmul %499, %501, %cst_455 {dimension_numbers = #tpu.dot_dimension_numbers<[1], [0], [0], [1], [0, 0, 1, 1], [], []>} : vector<16x64xbf16>, vector<64x256xbf16>, vector<16x256xf32> -> vector<16x256xf32>
    %503 = arith.addf %498, %502 : vector<16x256xf32>
    %504 = vector.extract_strided_slice %488 {offsets = [48, 0], sizes = [16, 64], strides = [1, 1]} : vector<80x64xbf16> to vector<16x64xbf16>
    %c23 = arith.constant 23 : index
    %c0_456 = arith.constant 0 : index
    %c0_457 = arith.constant 0 : index
    %505 = vector.load %arg12[%c23, %c0_456, %c0_457] : memref<35x64x256xbf16, #tpu.memory_space<vmem>>, vector<1x64x256xbf16>
    %506 = vector.shape_cast %505 : vector<1x64x256xbf16> to vector<64x256xbf16>
    %cst_458 = arith.constant dense<0.000000e+00> : vector<16x256xf32>
    %507 = tpu.matmul %504, %506, %cst_458 {dimension_numbers = #tpu.dot_dimension_numbers<[1], [0], [0], [1], [0, 0, 1, 1], [], []>} : vector<16x64xbf16>, vector<64x256xbf16>, vector<16x256xf32> -> vector<16x256xf32>
    %508 = arith.addf %503, %507 : vector<16x256xf32>
    %509 = vector.extract_strided_slice %488 {offsets = [64, 0], sizes = [16, 64], strides = [1, 1]} : vector<80x64xbf16> to vector<16x64xbf16>
    %c24 = arith.constant 24 : index
    %c0_459 = arith.constant 0 : index
    %c0_460 = arith.constant 0 : index
    %510 = vector.load %arg12[%c24, %c0_459, %c0_460] : memref<35x64x256xbf16, #tpu.memory_space<vmem>>, vector<1x64x256xbf16>
    %511 = vector.shape_cast %510 : vector<1x64x256xbf16> to vector<64x256xbf16>
    %cst_461 = arith.constant dense<0.000000e+00> : vector<16x256xf32>
    %512 = tpu.matmul %509, %511, %cst_461 {dimension_numbers = #tpu.dot_dimension_numbers<[1], [0], [0], [1], [0, 0, 1, 1], [], []>} : vector<16x64xbf16>, vector<64x256xbf16>, vector<16x256xf32> -> vector<16x256xf32>
    %513 = arith.addf %508, %512 : vector<16x256xf32>
    %c560_462 = arith.constant 560 : index
    %c0_463 = arith.constant 0 : index
    %514 = vector.load %arg19[%c560_462, %c0_463] : memref<1008x32xbf16, #tpu.memory_space<vmem>>, vector<80x32xbf16>
    %c0_464 = arith.constant 0 : index
    %c0_465 = arith.constant 0 : index
    %c0_466 = arith.constant 0 : index
    %515 = vector.load %arg6[%c0_464, %c0_465, %c0_466] : memref<9x32x64xbf16, #tpu.memory_space<vmem>>, vector<1x32x64xbf16>
    %516 = vector.shape_cast %515 : vector<1x32x64xbf16> to vector<32x64xbf16>
    %cst_467 = arith.constant dense<0.000000e+00> : vector<80x64xf32>
    %517 = tpu.matmul %514, %516, %cst_467 {dimension_numbers = #tpu.dot_dimension_numbers<[1], [0], [0], [1], [0, 0, 1, 1], [], []>} : vector<80x32xbf16>, vector<32x64xbf16>, vector<80x64xf32> -> vector<80x64xf32>
    %c576_468 = arith.constant 576 : index
    %c0_469 = arith.constant 0 : index
    %518 = vector.load %arg19[%c576_468, %c0_469] : memref<1008x32xbf16, #tpu.memory_space<vmem>>, vector<80x32xbf16>
    %c1_470 = arith.constant 1 : index
    %c0_471 = arith.constant 0 : index
    %c0_472 = arith.constant 0 : index
    %519 = vector.load %arg6[%c1_470, %c0_471, %c0_472] : memref<9x32x64xbf16, #tpu.memory_space<vmem>>, vector<1x32x64xbf16>
    %520 = vector.shape_cast %519 : vector<1x32x64xbf16> to vector<32x64xbf16>
    %cst_473 = arith.constant dense<0.000000e+00> : vector<80x64xf32>
    %521 = tpu.matmul %518, %520, %cst_473 {dimension_numbers = #tpu.dot_dimension_numbers<[1], [0], [0], [1], [0, 0, 1, 1], [], []>} : vector<80x32xbf16>, vector<32x64xbf16>, vector<80x64xf32> -> vector<80x64xf32>
    %522 = arith.addf %517, %521 : vector<80x64xf32>
    %c592_474 = arith.constant 592 : index
    %c0_475 = arith.constant 0 : index
    %523 = vector.load %arg19[%c592_474, %c0_475] : memref<1008x32xbf16, #tpu.memory_space<vmem>>, vector<80x32xbf16>
    %c2_476 = arith.constant 2 : index
    %c0_477 = arith.constant 0 : index
    %c0_478 = arith.constant 0 : index
    %524 = vector.load %arg6[%c2_476, %c0_477, %c0_478] : memref<9x32x64xbf16, #tpu.memory_space<vmem>>, vector<1x32x64xbf16>
    %525 = vector.shape_cast %524 : vector<1x32x64xbf16> to vector<32x64xbf16>
    %cst_479 = arith.constant dense<0.000000e+00> : vector<80x64xf32>
    %526 = tpu.matmul %523, %525, %cst_479 {dimension_numbers = #tpu.dot_dimension_numbers<[1], [0], [0], [1], [0, 0, 1, 1], [], []>} : vector<80x32xbf16>, vector<32x64xbf16>, vector<80x64xf32> -> vector<80x64xf32>
    %527 = arith.addf %522, %526 : vector<80x64xf32>
    %c672_480 = arith.constant 672 : index
    %c0_481 = arith.constant 0 : index
    %528 = vector.load %arg19[%c672_480, %c0_481] : memref<1008x32xbf16, #tpu.memory_space<vmem>>, vector<80x32xbf16>
    %c3_482 = arith.constant 3 : index
    %c0_483 = arith.constant 0 : index
    %c0_484 = arith.constant 0 : index
    %529 = vector.load %arg6[%c3_482, %c0_483, %c0_484] : memref<9x32x64xbf16, #tpu.memory_space<vmem>>, vector<1x32x64xbf16>
    %530 = vector.shape_cast %529 : vector<1x32x64xbf16> to vector<32x64xbf16>
    %cst_485 = arith.constant dense<0.000000e+00> : vector<80x64xf32>
    %531 = tpu.matmul %528, %530, %cst_485 {dimension_numbers = #tpu.dot_dimension_numbers<[1], [0], [0], [1], [0, 0, 1, 1], [], []>} : vector<80x32xbf16>, vector<32x64xbf16>, vector<80x64xf32> -> vector<80x64xf32>
    %532 = arith.addf %527, %531 : vector<80x64xf32>
    %c688_486 = arith.constant 688 : index
    %c0_487 = arith.constant 0 : index
    %533 = vector.load %arg19[%c688_486, %c0_487] : memref<1008x32xbf16, #tpu.memory_space<vmem>>, vector<80x32xbf16>
    %c4_488 = arith.constant 4 : index
    %c0_489 = arith.constant 0 : index
    %c0_490 = arith.constant 0 : index
    %534 = vector.load %arg6[%c4_488, %c0_489, %c0_490] : memref<9x32x64xbf16, #tpu.memory_space<vmem>>, vector<1x32x64xbf16>
    %535 = vector.shape_cast %534 : vector<1x32x64xbf16> to vector<32x64xbf16>
    %cst_491 = arith.constant dense<0.000000e+00> : vector<80x64xf32>
    %536 = tpu.matmul %533, %535, %cst_491 {dimension_numbers = #tpu.dot_dimension_numbers<[1], [0], [0], [1], [0, 0, 1, 1], [], []>} : vector<80x32xbf16>, vector<32x64xbf16>, vector<80x64xf32> -> vector<80x64xf32>
    %537 = arith.addf %532, %536 : vector<80x64xf32>
    %c704_492 = arith.constant 704 : index
    %c0_493 = arith.constant 0 : index
    %538 = vector.load %arg19[%c704_492, %c0_493] : memref<1008x32xbf16, #tpu.memory_space<vmem>>, vector<80x32xbf16>
    %c5_494 = arith.constant 5 : index
    %c0_495 = arith.constant 0 : index
    %c0_496 = arith.constant 0 : index
    %539 = vector.load %arg6[%c5_494, %c0_495, %c0_496] : memref<9x32x64xbf16, #tpu.memory_space<vmem>>, vector<1x32x64xbf16>
    %540 = vector.shape_cast %539 : vector<1x32x64xbf16> to vector<32x64xbf16>
    %cst_497 = arith.constant dense<0.000000e+00> : vector<80x64xf32>
    %541 = tpu.matmul %538, %540, %cst_497 {dimension_numbers = #tpu.dot_dimension_numbers<[1], [0], [0], [1], [0, 0, 1, 1], [], []>} : vector<80x32xbf16>, vector<32x64xbf16>, vector<80x64xf32> -> vector<80x64xf32>
    %542 = arith.addf %537, %541 : vector<80x64xf32>
    %c784 = arith.constant 784 : index
    %c0_498 = arith.constant 0 : index
    %543 = vector.load %arg19[%c784, %c0_498] : memref<1008x32xbf16, #tpu.memory_space<vmem>>, vector<80x32xbf16>
    %c6_499 = arith.constant 6 : index
    %c0_500 = arith.constant 0 : index
    %c0_501 = arith.constant 0 : index
    %544 = vector.load %arg6[%c6_499, %c0_500, %c0_501] : memref<9x32x64xbf16, #tpu.memory_space<vmem>>, vector<1x32x64xbf16>
    %545 = vector.shape_cast %544 : vector<1x32x64xbf16> to vector<32x64xbf16>
    %cst_502 = arith.constant dense<0.000000e+00> : vector<80x64xf32>
    %546 = tpu.matmul %543, %545, %cst_502 {dimension_numbers = #tpu.dot_dimension_numbers<[1], [0], [0], [1], [0, 0, 1, 1], [], []>} : vector<80x32xbf16>, vector<32x64xbf16>, vector<80x64xf32> -> vector<80x64xf32>
    %547 = arith.addf %542, %546 : vector<80x64xf32>
    %c800_503 = arith.constant 800 : index
    %c0_504 = arith.constant 0 : index
    %548 = vector.load %arg19[%c800_503, %c0_504] : memref<1008x32xbf16, #tpu.memory_space<vmem>>, vector<80x32xbf16>
    %c7_505 = arith.constant 7 : index
    %c0_506 = arith.constant 0 : index
    %c0_507 = arith.constant 0 : index
    %549 = vector.load %arg6[%c7_505, %c0_506, %c0_507] : memref<9x32x64xbf16, #tpu.memory_space<vmem>>, vector<1x32x64xbf16>
    %550 = vector.shape_cast %549 : vector<1x32x64xbf16> to vector<32x64xbf16>
    %cst_508 = arith.constant dense<0.000000e+00> : vector<80x64xf32>
    %551 = tpu.matmul %548, %550, %cst_508 {dimension_numbers = #tpu.dot_dimension_numbers<[1], [0], [0], [1], [0, 0, 1, 1], [], []>} : vector<80x32xbf16>, vector<32x64xbf16>, vector<80x64xf32> -> vector<80x64xf32>
    %552 = arith.addf %547, %551 : vector<80x64xf32>
    %c816 = arith.constant 816 : index
    %c0_509 = arith.constant 0 : index
    %553 = vector.load %arg19[%c816, %c0_509] : memref<1008x32xbf16, #tpu.memory_space<vmem>>, vector<80x32xbf16>
    %c8_510 = arith.constant 8 : index
    %c0_511 = arith.constant 0 : index
    %c0_512 = arith.constant 0 : index
    %554 = vector.load %arg6[%c8_510, %c0_511, %c0_512] : memref<9x32x64xbf16, #tpu.memory_space<vmem>>, vector<1x32x64xbf16>
    %555 = vector.shape_cast %554 : vector<1x32x64xbf16> to vector<32x64xbf16>
    %cst_513 = arith.constant dense<0.000000e+00> : vector<80x64xf32>
    %556 = tpu.matmul %553, %555, %cst_513 {dimension_numbers = #tpu.dot_dimension_numbers<[1], [0], [0], [1], [0, 0, 1, 1], [], []>} : vector<80x32xbf16>, vector<32x64xbf16>, vector<80x64xf32> -> vector<80x64xf32>
    %557 = arith.addf %552, %556 : vector<80x64xf32>
    %c0_514 = arith.constant 0 : index
    %c0_515 = arith.constant 0 : index
    %558 = vector.load %arg7[%c0_514, %c0_515] : memref<1x64xf32, #tpu.memory_space<vmem>>, vector<1x64xf32>
    %559 = vector.broadcast %558 : vector<1x64xf32> to vector<80x64xf32>
    %560 = arith.mulf %557, %559 : vector<80x64xf32>
    %c0_516 = arith.constant 0 : index
    %c0_517 = arith.constant 0 : index
    %561 = vector.load %arg8[%c0_516, %c0_517] : memref<1x64xf32, #tpu.memory_space<vmem>>, vector<1x64xf32>
    %562 = vector.broadcast %561 : vector<1x64xf32> to vector<80x64xf32>
    %563 = arith.addf %560, %562 : vector<80x64xf32>
    %cst_518 = arith.constant 0.000000e+00 : f32
    %564 = vector.broadcast %cst_518 : f32 to vector<80x64xf32>
    %565 = arith.maximumf %563, %564 : vector<80x64xf32>
    %566 = arith.truncf %565 : vector<80x64xf32> to vector<80x64xbf16>
    %567 = vector.extract_strided_slice %566 {offsets = [0, 0], sizes = [16, 64], strides = [1, 1]} : vector<80x64xbf16> to vector<16x64xbf16>
    %c25 = arith.constant 25 : index
    %c0_519 = arith.constant 0 : index
    %c0_520 = arith.constant 0 : index
    %568 = vector.load %arg12[%c25, %c0_519, %c0_520] : memref<35x64x256xbf16, #tpu.memory_space<vmem>>, vector<1x64x256xbf16>
    %569 = vector.shape_cast %568 : vector<1x64x256xbf16> to vector<64x256xbf16>
    %cst_521 = arith.constant dense<0.000000e+00> : vector<16x256xf32>
    %570 = tpu.matmul %567, %569, %cst_521 {dimension_numbers = #tpu.dot_dimension_numbers<[1], [0], [0], [1], [0, 0, 1, 1], [], []>} : vector<16x64xbf16>, vector<64x256xbf16>, vector<16x256xf32> -> vector<16x256xf32>
    %571 = arith.addf %513, %570 : vector<16x256xf32>
    %572 = vector.extract_strided_slice %566 {offsets = [16, 0], sizes = [16, 64], strides = [1, 1]} : vector<80x64xbf16> to vector<16x64xbf16>
    %c26 = arith.constant 26 : index
    %c0_522 = arith.constant 0 : index
    %c0_523 = arith.constant 0 : index
    %573 = vector.load %arg12[%c26, %c0_522, %c0_523] : memref<35x64x256xbf16, #tpu.memory_space<vmem>>, vector<1x64x256xbf16>
    %574 = vector.shape_cast %573 : vector<1x64x256xbf16> to vector<64x256xbf16>
    %cst_524 = arith.constant dense<0.000000e+00> : vector<16x256xf32>
    %575 = tpu.matmul %572, %574, %cst_524 {dimension_numbers = #tpu.dot_dimension_numbers<[1], [0], [0], [1], [0, 0, 1, 1], [], []>} : vector<16x64xbf16>, vector<64x256xbf16>, vector<16x256xf32> -> vector<16x256xf32>
    %576 = arith.addf %571, %575 : vector<16x256xf32>
    %577 = vector.extract_strided_slice %566 {offsets = [32, 0], sizes = [16, 64], strides = [1, 1]} : vector<80x64xbf16> to vector<16x64xbf16>
    %c27 = arith.constant 27 : index
    %c0_525 = arith.constant 0 : index
    %c0_526 = arith.constant 0 : index
    %578 = vector.load %arg12[%c27, %c0_525, %c0_526] : memref<35x64x256xbf16, #tpu.memory_space<vmem>>, vector<1x64x256xbf16>
    %579 = vector.shape_cast %578 : vector<1x64x256xbf16> to vector<64x256xbf16>
    %cst_527 = arith.constant dense<0.000000e+00> : vector<16x256xf32>
    %580 = tpu.matmul %577, %579, %cst_527 {dimension_numbers = #tpu.dot_dimension_numbers<[1], [0], [0], [1], [0, 0, 1, 1], [], []>} : vector<16x64xbf16>, vector<64x256xbf16>, vector<16x256xf32> -> vector<16x256xf32>
    %581 = arith.addf %576, %580 : vector<16x256xf32>
    %582 = vector.extract_strided_slice %566 {offsets = [48, 0], sizes = [16, 64], strides = [1, 1]} : vector<80x64xbf16> to vector<16x64xbf16>
    %c28 = arith.constant 28 : index
    %c0_528 = arith.constant 0 : index
    %c0_529 = arith.constant 0 : index
    %583 = vector.load %arg12[%c28, %c0_528, %c0_529] : memref<35x64x256xbf16, #tpu.memory_space<vmem>>, vector<1x64x256xbf16>
    %584 = vector.shape_cast %583 : vector<1x64x256xbf16> to vector<64x256xbf16>
    %cst_530 = arith.constant dense<0.000000e+00> : vector<16x256xf32>
    %585 = tpu.matmul %582, %584, %cst_530 {dimension_numbers = #tpu.dot_dimension_numbers<[1], [0], [0], [1], [0, 0, 1, 1], [], []>} : vector<16x64xbf16>, vector<64x256xbf16>, vector<16x256xf32> -> vector<16x256xf32>
    %586 = arith.addf %581, %585 : vector<16x256xf32>
    %587 = vector.extract_strided_slice %566 {offsets = [64, 0], sizes = [16, 64], strides = [1, 1]} : vector<80x64xbf16> to vector<16x64xbf16>
    %c29 = arith.constant 29 : index
    %c0_531 = arith.constant 0 : index
    %c0_532 = arith.constant 0 : index
    %588 = vector.load %arg12[%c29, %c0_531, %c0_532] : memref<35x64x256xbf16, #tpu.memory_space<vmem>>, vector<1x64x256xbf16>
    %589 = vector.shape_cast %588 : vector<1x64x256xbf16> to vector<64x256xbf16>
    %cst_533 = arith.constant dense<0.000000e+00> : vector<16x256xf32>
    %590 = tpu.matmul %587, %589, %cst_533 {dimension_numbers = #tpu.dot_dimension_numbers<[1], [0], [0], [1], [0, 0, 1, 1], [], []>} : vector<16x64xbf16>, vector<64x256xbf16>, vector<16x256xf32> -> vector<16x256xf32>
    %591 = arith.addf %586, %590 : vector<16x256xf32>
    %c672_534 = arith.constant 672 : index
    %c0_535 = arith.constant 0 : index
    %592 = vector.load %arg19[%c672_534, %c0_535] : memref<1008x32xbf16, #tpu.memory_space<vmem>>, vector<80x32xbf16>
    %c0_536 = arith.constant 0 : index
    %c0_537 = arith.constant 0 : index
    %c0_538 = arith.constant 0 : index
    %593 = vector.load %arg6[%c0_536, %c0_537, %c0_538] : memref<9x32x64xbf16, #tpu.memory_space<vmem>>, vector<1x32x64xbf16>
    %594 = vector.shape_cast %593 : vector<1x32x64xbf16> to vector<32x64xbf16>
    %cst_539 = arith.constant dense<0.000000e+00> : vector<80x64xf32>
    %595 = tpu.matmul %592, %594, %cst_539 {dimension_numbers = #tpu.dot_dimension_numbers<[1], [0], [0], [1], [0, 0, 1, 1], [], []>} : vector<80x32xbf16>, vector<32x64xbf16>, vector<80x64xf32> -> vector<80x64xf32>
    %c688_540 = arith.constant 688 : index
    %c0_541 = arith.constant 0 : index
    %596 = vector.load %arg19[%c688_540, %c0_541] : memref<1008x32xbf16, #tpu.memory_space<vmem>>, vector<80x32xbf16>
    %c1_542 = arith.constant 1 : index
    %c0_543 = arith.constant 0 : index
    %c0_544 = arith.constant 0 : index
    %597 = vector.load %arg6[%c1_542, %c0_543, %c0_544] : memref<9x32x64xbf16, #tpu.memory_space<vmem>>, vector<1x32x64xbf16>
    %598 = vector.shape_cast %597 : vector<1x32x64xbf16> to vector<32x64xbf16>
    %cst_545 = arith.constant dense<0.000000e+00> : vector<80x64xf32>
    %599 = tpu.matmul %596, %598, %cst_545 {dimension_numbers = #tpu.dot_dimension_numbers<[1], [0], [0], [1], [0, 0, 1, 1], [], []>} : vector<80x32xbf16>, vector<32x64xbf16>, vector<80x64xf32> -> vector<80x64xf32>
    %600 = arith.addf %595, %599 : vector<80x64xf32>
    %c704_546 = arith.constant 704 : index
    %c0_547 = arith.constant 0 : index
    %601 = vector.load %arg19[%c704_546, %c0_547] : memref<1008x32xbf16, #tpu.memory_space<vmem>>, vector<80x32xbf16>
    %c2_548 = arith.constant 2 : index
    %c0_549 = arith.constant 0 : index
    %c0_550 = arith.constant 0 : index
    %602 = vector.load %arg6[%c2_548, %c0_549, %c0_550] : memref<9x32x64xbf16, #tpu.memory_space<vmem>>, vector<1x32x64xbf16>
    %603 = vector.shape_cast %602 : vector<1x32x64xbf16> to vector<32x64xbf16>
    %cst_551 = arith.constant dense<0.000000e+00> : vector<80x64xf32>
    %604 = tpu.matmul %601, %603, %cst_551 {dimension_numbers = #tpu.dot_dimension_numbers<[1], [0], [0], [1], [0, 0, 1, 1], [], []>} : vector<80x32xbf16>, vector<32x64xbf16>, vector<80x64xf32> -> vector<80x64xf32>
    %605 = arith.addf %600, %604 : vector<80x64xf32>
    %c784_552 = arith.constant 784 : index
    %c0_553 = arith.constant 0 : index
    %606 = vector.load %arg19[%c784_552, %c0_553] : memref<1008x32xbf16, #tpu.memory_space<vmem>>, vector<80x32xbf16>
    %c3_554 = arith.constant 3 : index
    %c0_555 = arith.constant 0 : index
    %c0_556 = arith.constant 0 : index
    %607 = vector.load %arg6[%c3_554, %c0_555, %c0_556] : memref<9x32x64xbf16, #tpu.memory_space<vmem>>, vector<1x32x64xbf16>
    %608 = vector.shape_cast %607 : vector<1x32x64xbf16> to vector<32x64xbf16>
    %cst_557 = arith.constant dense<0.000000e+00> : vector<80x64xf32>
    %609 = tpu.matmul %606, %608, %cst_557 {dimension_numbers = #tpu.dot_dimension_numbers<[1], [0], [0], [1], [0, 0, 1, 1], [], []>} : vector<80x32xbf16>, vector<32x64xbf16>, vector<80x64xf32> -> vector<80x64xf32>
    %610 = arith.addf %605, %609 : vector<80x64xf32>
    %c800_558 = arith.constant 800 : index
    %c0_559 = arith.constant 0 : index
    %611 = vector.load %arg19[%c800_558, %c0_559] : memref<1008x32xbf16, #tpu.memory_space<vmem>>, vector<80x32xbf16>
    %c4_560 = arith.constant 4 : index
    %c0_561 = arith.constant 0 : index
    %c0_562 = arith.constant 0 : index
    %612 = vector.load %arg6[%c4_560, %c0_561, %c0_562] : memref<9x32x64xbf16, #tpu.memory_space<vmem>>, vector<1x32x64xbf16>
    %613 = vector.shape_cast %612 : vector<1x32x64xbf16> to vector<32x64xbf16>
    %cst_563 = arith.constant dense<0.000000e+00> : vector<80x64xf32>
    %614 = tpu.matmul %611, %613, %cst_563 {dimension_numbers = #tpu.dot_dimension_numbers<[1], [0], [0], [1], [0, 0, 1, 1], [], []>} : vector<80x32xbf16>, vector<32x64xbf16>, vector<80x64xf32> -> vector<80x64xf32>
    %615 = arith.addf %610, %614 : vector<80x64xf32>
    %c816_564 = arith.constant 816 : index
    %c0_565 = arith.constant 0 : index
    %616 = vector.load %arg19[%c816_564, %c0_565] : memref<1008x32xbf16, #tpu.memory_space<vmem>>, vector<80x32xbf16>
    %c5_566 = arith.constant 5 : index
    %c0_567 = arith.constant 0 : index
    %c0_568 = arith.constant 0 : index
    %617 = vector.load %arg6[%c5_566, %c0_567, %c0_568] : memref<9x32x64xbf16, #tpu.memory_space<vmem>>, vector<1x32x64xbf16>
    %618 = vector.shape_cast %617 : vector<1x32x64xbf16> to vector<32x64xbf16>
    %cst_569 = arith.constant dense<0.000000e+00> : vector<80x64xf32>
    %619 = tpu.matmul %616, %618, %cst_569 {dimension_numbers = #tpu.dot_dimension_numbers<[1], [0], [0], [1], [0, 0, 1, 1], [], []>} : vector<80x32xbf16>, vector<32x64xbf16>, vector<80x64xf32> -> vector<80x64xf32>
    %620 = arith.addf %615, %619 : vector<80x64xf32>
    %c896 = arith.constant 896 : index
    %c0_570 = arith.constant 0 : index
    %621 = vector.load %arg19[%c896, %c0_570] : memref<1008x32xbf16, #tpu.memory_space<vmem>>, vector<80x32xbf16>
    %c6_571 = arith.constant 6 : index
    %c0_572 = arith.constant 0 : index
    %c0_573 = arith.constant 0 : index
    %622 = vector.load %arg6[%c6_571, %c0_572, %c0_573] : memref<9x32x64xbf16, #tpu.memory_space<vmem>>, vector<1x32x64xbf16>
    %623 = vector.shape_cast %622 : vector<1x32x64xbf16> to vector<32x64xbf16>
    %cst_574 = arith.constant dense<0.000000e+00> : vector<80x64xf32>
    %624 = tpu.matmul %621, %623, %cst_574 {dimension_numbers = #tpu.dot_dimension_numbers<[1], [0], [0], [1], [0, 0, 1, 1], [], []>} : vector<80x32xbf16>, vector<32x64xbf16>, vector<80x64xf32> -> vector<80x64xf32>
    %625 = arith.addf %620, %624 : vector<80x64xf32>
    %c912 = arith.constant 912 : index
    %c0_575 = arith.constant 0 : index
    %626 = vector.load %arg19[%c912, %c0_575] : memref<1008x32xbf16, #tpu.memory_space<vmem>>, vector<80x32xbf16>
    %c7_576 = arith.constant 7 : index
    %c0_577 = arith.constant 0 : index
    %c0_578 = arith.constant 0 : index
    %627 = vector.load %arg6[%c7_576, %c0_577, %c0_578] : memref<9x32x64xbf16, #tpu.memory_space<vmem>>, vector<1x32x64xbf16>
    %628 = vector.shape_cast %627 : vector<1x32x64xbf16> to vector<32x64xbf16>
    %cst_579 = arith.constant dense<0.000000e+00> : vector<80x64xf32>
    %629 = tpu.matmul %626, %628, %cst_579 {dimension_numbers = #tpu.dot_dimension_numbers<[1], [0], [0], [1], [0, 0, 1, 1], [], []>} : vector<80x32xbf16>, vector<32x64xbf16>, vector<80x64xf32> -> vector<80x64xf32>
    %630 = arith.addf %625, %629 : vector<80x64xf32>
    %c928 = arith.constant 928 : index
    %c0_580 = arith.constant 0 : index
    %631 = vector.load %arg19[%c928, %c0_580] : memref<1008x32xbf16, #tpu.memory_space<vmem>>, vector<80x32xbf16>
    %c8_581 = arith.constant 8 : index
    %c0_582 = arith.constant 0 : index
    %c0_583 = arith.constant 0 : index
    %632 = vector.load %arg6[%c8_581, %c0_582, %c0_583] : memref<9x32x64xbf16, #tpu.memory_space<vmem>>, vector<1x32x64xbf16>
    %633 = vector.shape_cast %632 : vector<1x32x64xbf16> to vector<32x64xbf16>
    %cst_584 = arith.constant dense<0.000000e+00> : vector<80x64xf32>
    %634 = tpu.matmul %631, %633, %cst_584 {dimension_numbers = #tpu.dot_dimension_numbers<[1], [0], [0], [1], [0, 0, 1, 1], [], []>} : vector<80x32xbf16>, vector<32x64xbf16>, vector<80x64xf32> -> vector<80x64xf32>
    %635 = arith.addf %630, %634 : vector<80x64xf32>
    %c0_585 = arith.constant 0 : index
    %c0_586 = arith.constant 0 : index
    %636 = vector.load %arg7[%c0_585, %c0_586] : memref<1x64xf32, #tpu.memory_space<vmem>>, vector<1x64xf32>
    %637 = vector.broadcast %636 : vector<1x64xf32> to vector<80x64xf32>
    %638 = arith.mulf %635, %637 : vector<80x64xf32>
    %c0_587 = arith.constant 0 : index
    %c0_588 = arith.constant 0 : index
    %639 = vector.load %arg8[%c0_587, %c0_588] : memref<1x64xf32, #tpu.memory_space<vmem>>, vector<1x64xf32>
    %640 = vector.broadcast %639 : vector<1x64xf32> to vector<80x64xf32>
    %641 = arith.addf %638, %640 : vector<80x64xf32>
    %cst_589 = arith.constant 0.000000e+00 : f32
    %642 = vector.broadcast %cst_589 : f32 to vector<80x64xf32>
    %643 = arith.maximumf %641, %642 : vector<80x64xf32>
    %644 = arith.truncf %643 : vector<80x64xf32> to vector<80x64xbf16>
    %645 = vector.extract_strided_slice %644 {offsets = [0, 0], sizes = [16, 64], strides = [1, 1]} : vector<80x64xbf16> to vector<16x64xbf16>
    %c30 = arith.constant 30 : index
    %c0_590 = arith.constant 0 : index
    %c0_591 = arith.constant 0 : index
    %646 = vector.load %arg12[%c30, %c0_590, %c0_591] : memref<35x64x256xbf16, #tpu.memory_space<vmem>>, vector<1x64x256xbf16>
    %647 = vector.shape_cast %646 : vector<1x64x256xbf16> to vector<64x256xbf16>
    %cst_592 = arith.constant dense<0.000000e+00> : vector<16x256xf32>
    %648 = tpu.matmul %645, %647, %cst_592 {dimension_numbers = #tpu.dot_dimension_numbers<[1], [0], [0], [1], [0, 0, 1, 1], [], []>} : vector<16x64xbf16>, vector<64x256xbf16>, vector<16x256xf32> -> vector<16x256xf32>
    %649 = arith.addf %591, %648 : vector<16x256xf32>
    %650 = vector.extract_strided_slice %644 {offsets = [16, 0], sizes = [16, 64], strides = [1, 1]} : vector<80x64xbf16> to vector<16x64xbf16>
    %c31 = arith.constant 31 : index
    %c0_593 = arith.constant 0 : index
    %c0_594 = arith.constant 0 : index
    %651 = vector.load %arg12[%c31, %c0_593, %c0_594] : memref<35x64x256xbf16, #tpu.memory_space<vmem>>, vector<1x64x256xbf16>
    %652 = vector.shape_cast %651 : vector<1x64x256xbf16> to vector<64x256xbf16>
    %cst_595 = arith.constant dense<0.000000e+00> : vector<16x256xf32>
    %653 = tpu.matmul %650, %652, %cst_595 {dimension_numbers = #tpu.dot_dimension_numbers<[1], [0], [0], [1], [0, 0, 1, 1], [], []>} : vector<16x64xbf16>, vector<64x256xbf16>, vector<16x256xf32> -> vector<16x256xf32>
    %654 = arith.addf %649, %653 : vector<16x256xf32>
    %655 = vector.extract_strided_slice %644 {offsets = [32, 0], sizes = [16, 64], strides = [1, 1]} : vector<80x64xbf16> to vector<16x64xbf16>
    %c32_596 = arith.constant 32 : index
    %c0_597 = arith.constant 0 : index
    %c0_598 = arith.constant 0 : index
    %656 = vector.load %arg12[%c32_596, %c0_597, %c0_598] : memref<35x64x256xbf16, #tpu.memory_space<vmem>>, vector<1x64x256xbf16>
    %657 = vector.shape_cast %656 : vector<1x64x256xbf16> to vector<64x256xbf16>
    %cst_599 = arith.constant dense<0.000000e+00> : vector<16x256xf32>
    %658 = tpu.matmul %655, %657, %cst_599 {dimension_numbers = #tpu.dot_dimension_numbers<[1], [0], [0], [1], [0, 0, 1, 1], [], []>} : vector<16x64xbf16>, vector<64x256xbf16>, vector<16x256xf32> -> vector<16x256xf32>
    %659 = arith.addf %654, %658 : vector<16x256xf32>
    %660 = vector.extract_strided_slice %644 {offsets = [48, 0], sizes = [16, 64], strides = [1, 1]} : vector<80x64xbf16> to vector<16x64xbf16>
    %c33 = arith.constant 33 : index
    %c0_600 = arith.constant 0 : index
    %c0_601 = arith.constant 0 : index
    %661 = vector.load %arg12[%c33, %c0_600, %c0_601] : memref<35x64x256xbf16, #tpu.memory_space<vmem>>, vector<1x64x256xbf16>
    %662 = vector.shape_cast %661 : vector<1x64x256xbf16> to vector<64x256xbf16>
    %cst_602 = arith.constant dense<0.000000e+00> : vector<16x256xf32>
    %663 = tpu.matmul %660, %662, %cst_602 {dimension_numbers = #tpu.dot_dimension_numbers<[1], [0], [0], [1], [0, 0, 1, 1], [], []>} : vector<16x64xbf16>, vector<64x256xbf16>, vector<16x256xf32> -> vector<16x256xf32>
    %664 = arith.addf %659, %663 : vector<16x256xf32>
    %665 = vector.extract_strided_slice %644 {offsets = [64, 0], sizes = [16, 64], strides = [1, 1]} : vector<80x64xbf16> to vector<16x64xbf16>
    %c34 = arith.constant 34 : index
    %c0_603 = arith.constant 0 : index
    %c0_604 = arith.constant 0 : index
    %666 = vector.load %arg12[%c34, %c0_603, %c0_604] : memref<35x64x256xbf16, #tpu.memory_space<vmem>>, vector<1x64x256xbf16>
    %667 = vector.shape_cast %666 : vector<1x64x256xbf16> to vector<64x256xbf16>
    %cst_605 = arith.constant dense<0.000000e+00> : vector<16x256xf32>
    %668 = tpu.matmul %665, %667, %cst_605 {dimension_numbers = #tpu.dot_dimension_numbers<[1], [0], [0], [1], [0, 0, 1, 1], [], []>} : vector<16x64xbf16>, vector<64x256xbf16>, vector<16x256xf32> -> vector<16x256xf32>
    %669 = arith.addf %664, %668 : vector<16x256xf32>
    %c0_606 = arith.constant 0 : index
    %c0_607 = arith.constant 0 : index
    %670 = vector.load %arg14[%c0_606, %c0_607] : memref<1x256xf32, #tpu.memory_space<vmem>>, vector<1x256xf32>
    %671 = vector.broadcast %670 : vector<1x256xf32> to vector<16x256xf32>
    %672 = arith.mulf %669, %671 : vector<16x256xf32>
    %c0_608 = arith.constant 0 : index
    %c0_609 = arith.constant 0 : index
    %673 = vector.load %arg15[%c0_608, %c0_609] : memref<1x256xf32, #tpu.memory_space<vmem>>, vector<1x256xf32>
    %674 = vector.broadcast %673 : vector<1x256xf32> to vector<16x256xf32>
    %675 = arith.addf %672, %674 : vector<16x256xf32>
    %cst_610 = arith.constant 0.000000e+00 : f32
    %676 = vector.broadcast %cst_610 : f32 to vector<16x256xf32>
    %677 = arith.maximumf %675, %676 : vector<16x256xf32>
    %678 = arith.truncf %677 : vector<16x256xf32> to vector<16x256xbf16>
    %c0_611 = arith.constant 0 : index
    %c0_612 = arith.constant 0 : index
    %679 = vector.load %arg16[%c0_611, %c0_612] : memref<256x128xbf16, #tpu.memory_space<vmem>>, vector<256x128xbf16>
    %cst_613 = arith.constant dense<0.000000e+00> : vector<16x128xf32>
    %680 = tpu.matmul %678, %679, %cst_613 {dimension_numbers = #tpu.dot_dimension_numbers<[1], [0], [0], [1], [0, 0, 1, 1], [], []>} : vector<16x256xbf16>, vector<256x128xbf16>, vector<16x128xf32> -> vector<16x128xf32>
    %c0_614 = arith.constant 0 : index
    %c0_615 = arith.constant 0 : index
    %681 = vector.load %arg17[%c0_614, %c0_615] : memref<1x128xf32, #tpu.memory_space<vmem>>, vector<1x128xf32>
    %682 = vector.broadcast %681 : vector<1x128xf32> to vector<16x128xf32>
    %683 = arith.addf %680, %682 : vector<16x128xf32>
    %c0_616 = arith.constant 0 : index
    %c0_617 = arith.constant 0 : index
    %c0_618 = arith.constant 0 : index
    %684 = vector.load %arg18[%c0_616, %c0_617, %c0_618] : memref<1x16x128xf32, #tpu.memory_space<vmem>>, vector<1x16x128xf32>
    %685 = vector.shape_cast %684 : vector<1x16x128xf32> to vector<16x128xf32>
    %686 = vector.shape_cast %683 : vector<16x128xf32> to vector<1x16x128xf32>
    tpu.vector_store %arg18[%c0_616, %c0_617, %c0_618], %686 {strides = array<i32>} : memref<1x16x128xf32, #tpu.memory_space<vmem>>, vector<1x16x128xf32>,
    return
  }
  func.func @transform_0(%arg0: i32) -> (i32, i32, i32) {
    %c0_i32 = arith.constant 0 : i32
    %c0_i32_0 = arith.constant 0 : i32
    %c0_i32_1 = arith.constant 0 : i32
    return %arg0, %c0_i32, %c0_i32_0 : i32, i32, i32
  }
  func.func @transform_1(%arg0: i32) -> (i32, i32, i32) {
    %c0_i32 = arith.constant 0 : i32
    %c0_i32_0 = arith.constant 0 : i32
    %c0_i32_1 = arith.constant 0 : i32
    return %arg0, %c0_i32, %c0_i32_0 : i32, i32, i32
  }
  func.func @transform_2(%arg0: i32) -> (i32, i32) {
    %c0_i32 = arith.constant 0 : i32
    %c0_i32_0 = arith.constant 0 : i32
    %c0_i32_1 = arith.constant 0 : i32
    return %c0_i32, %c0_i32_0 : i32, i32
  }
  func.func @transform_3(%arg0: i32) -> (i32, i32) {
    %c0_i32 = arith.constant 0 : i32
    %c0_i32_0 = arith.constant 0 : i32
    %c0_i32_1 = arith.constant 0 : i32
    return %c0_i32, %c0_i32_0 : i32, i32
  }
  func.func @transform_4(%arg0: i32) -> (i32, i32) {
    %c0_i32 = arith.constant 0 : i32
    %c0_i32_0 = arith.constant 0 : i32
    %c0_i32_1 = arith.constant 0 : i32
    return %c0_i32, %c0_i32_0 : i32, i32
  }
  func.func @transform_5(%arg0: i32) -> (i32, i32, i32) {
    %c0_i32 = arith.constant 0 : i32
    %c0_i32_0 = arith.constant 0 : i32
    %c0_i32_1 = arith.constant 0 : i32
    %c0_i32_2 = arith.constant 0 : i32
    return %c0_i32, %c0_i32_0, %c0_i32_1 : i32, i32, i32
  }
  func.func @transform_6(%arg0: i32) -> (i32, i32) {
    %c0_i32 = arith.constant 0 : i32
    %c0_i32_0 = arith.constant 0 : i32
    %c0_i32_1 = arith.constant 0 : i32
    return %c0_i32, %c0_i32_0 : i32, i32
  }
  func.func @transform_7(%arg0: i32) -> (i32, i32) {
    %c0_i32 = arith.constant 0 : i32
    %c0_i32_0 = arith.constant 0 : i32
    %c0_i32_1 = arith.constant 0 : i32
    return %c0_i32, %c0_i32_0 : i32, i32
  }
  func.func @transform_8(%arg0: i32) -> (i32, i32) {
    %c0_i32 = arith.constant 0 : i32
    %c0_i32_0 = arith.constant 0 : i32
    %c0_i32_1 = arith.constant 0 : i32
    return %c0_i32, %c0_i32_0 : i32, i32
  }
  func.func @transform_9(%arg0: i32) -> (i32, i32) {
    %c0_i32 = arith.constant 0 : i32
    %c0_i32_0 = arith.constant 0 : i32
    %c0_i32_1 = arith.constant 0 : i32
    return %c0_i32, %c0_i32_0 : i32, i32
  }
  func.func @transform_10(%arg0: i32) -> (i32, i32) {
    %c0_i32 = arith.constant 0 : i32
    %c0_i32_0 = arith.constant 0 : i32
    %c0_i32_1 = arith.constant 0 : i32
    return %c0_i32, %c0_i32_0 : i32, i32
  }
  func.func @transform_11(%arg0: i32) -> (i32, i32, i32) {
    %c0_i32 = arith.constant 0 : i32
    %c0_i32_0 = arith.constant 0 : i32
    %c0_i32_1 = arith.constant 0 : i32
    %c0_i32_2 = arith.constant 0 : i32
    return %c0_i32, %c0_i32_0, %c0_i32_1 : i32, i32, i32
  }
  func.func @transform_12(%arg0: i32) -> (i32, i32) {
    %c0_i32 = arith.constant 0 : i32
    %c0_i32_0 = arith.constant 0 : i32
    %c0_i32_1 = arith.constant 0 : i32
    return %c0_i32, %c0_i32_0 : i32, i32
  }
  func.func @transform_13(%arg0: i32) -> (i32, i32) {
    %c0_i32 = arith.constant 0 : i32
    %c0_i32_0 = arith.constant 0 : i32
    %c0_i32_1 = arith.constant 0 : i32
    return %c0_i32, %c0_i32_0 : i32, i32
  }
  func.func @transform_14(%arg0: i32) -> (i32, i32) {
    %c0_i32 = arith.constant 0 : i32
    %c0_i32_0 = arith.constant 0 : i32
    %c0_i32_1 = arith.constant 0 : i32
    return %c0_i32, %c0_i32_0 : i32, i32
  }
  func.func @transform_15(%arg0: i32) -> (i32, i32) {
    %c0_i32 = arith.constant 0 : i32
    %c0_i32_0 = arith.constant 0 : i32
    %c0_i32_1 = arith.constant 0 : i32
    return %c0_i32, %c0_i32_0 : i32, i32
  }
  func.func @transform_16(%arg0: i32) -> (i32, i32) {
    %c0_i32 = arith.constant 0 : i32
    %c0_i32_0 = arith.constant 0 : i32
    %c0_i32_1 = arith.constant 0 : i32
    return %c0_i32, %c0_i32_0 : i32, i32
  }
  func.func @transform_17(%arg0: i32) -> (i32, i32, i32) {
    %c0_i32 = arith.constant 0 : i32
    %c0_i32_0 = arith.constant 0 : i32
    %c0_i32_1 = arith.constant 0 : i32
    return %arg0, %c0_i32, %c0_i32_0 : i32, i32, i32
  }
}

</mosaic_0001>

<bundles_post_ra>
// kernel: qnetwork_forward.1
= control target key start
LH: loop header
LB: loop body
LE: loop exit
PB: predicated region body
PF: predicated region fallthrough
CT: control target
= control target key end

     0   :  { %vm161_vm0 = vcmask 1041408   ;;  %v21483_v0 = vmov 0.0   ;;  %vm16928_vm1 = vmmov 0   ;;  %vm145_vm2 = vcmask 293888   ;;  %s21463_s2 = inlined_call_operand.vmem [shape: bf16[36,32], index: 2, kind: input, shape index: {}]   ;;  %s21464_s0 = inlined_call_operand.vmem [shape: bf16[1,560,36], index: 0, kind: input, shape index: {}]   ;;  %s21465_s5 = inlined_call_operand.vmem [shape: bf16[9,32,64], index: 5, kind: input, shape index: {}]   ;;  %s21466_s8 = inlined_call_operand.vmem [shape: bf16[8,64], index: 8, kind: input, shape index: {}]   ;;  %s21467_s1 = inlined_call_operand.vmem [shape: f32[1,16,8], index: 1, kind: input, shape index: {}]   ;;  %s21468_s3 = inlined_call_operand.vmem [shape: f32[1,32], index: 3, kind: input, shape index: {}]   ;;  %s21469_s4 = inlined_call_operand.vmem [shape: f32[1,32], index: 4, kind: input, shape index: {}]   ;;  %s21470_s12 = inlined_call_operand.vmem [shape: bf16[64,256], index: 12, kind: input, shape index: {}]   ;;  %s21471_s9 = inlined_call_operand.vmem [shape: f32[1,64], index: 9, kind: input, shape index: {}]   ;;  %s21472_s10 = inlined_call_operand.vmem [shape: f32[1,64], index: 10, kind: input, shape index: {}]   ;;  %s21473_s11 = inlined_call_operand.vmem [shape: bf16[35,64,256], index: 11, kind: input, shape index: {}]   ;;  %s21474_s6 = inlined_call_operand.vmem [shape: f32[1,64], index: 6, kind: input, shape index: {}]   ;;  %s21475_s7 = inlined_call_operand.vmem [shape: f32[1,64], index: 7, kind: input, shape index: {}]   ;;  %s21476_s15 = inlined_call_operand.vmem [shape: bf16[256,128], index: 15, kind: input, shape index: {}]   ;;  %s21477_s13 = inlined_call_operand.vmem [shape: f32[1,256], index: 13, kind: input, shape index: {}]   ;;  %s21478_s14 = inlined_call_operand.vmem [shape: f32[1,256], index: 14, kind: input, shape index: {}]   ;;  %s21479_s16 = inlined_call_operand.vmem [shape: f32[1,128], index: 16, kind: input, shape index: {}]   ;;  %s21480_s17 = inlined_call_operand.vmem [shape: f32[1,16,128], index: 17, kind: output, shape index: {}]  }
   0x1   :  { %21487 = sst [smem:[#allocation27_spill]] %s21463_s2  ;;  %14336 = vmatprep.subr.bf16.mxu0 %v21483_v0  ;;  %16036 = vmatprep.subr.bf16.mxu1 %v21483_v0  ;;  %vm57_vm3 = vcmask 257024   ;;  %v21485_v15 = vmov 0   ;;  %vm1804_vm4 = vcmask 1043456   ;;  %v1799_v53 = vld [vmem:[%s21466_s8] sm:$0xf] }
   0x2   :  { %21488 = sst [smem:[#allocation28_spill]] %s21464_s0  ;;  %14342 = vmatprep.mubr.msk.bf16.mxu0 %vm16928_vm1, %v21483_v0  ;;  %14358 = vmatprep.mubr.msk.bf16.mxu1 %vm16928_vm1, %v21483_v0  ;;  %60 = vst.msk [vmem:[#allocation2 + $0x8] sm:$0xf] %vm57_vm3, %v21485_v15  ;;  %61 = vst.msk [vmem:[#allocation2 + $0xc] sm:$0xf] %vm57_vm3, %v21485_v15  ;;  %v1806_v55 = vsel %vm1804_vm4, %v1799_v53, 0 }
   0x3   :  { %s21489_s26 = sld [smem:[#allocation27_spill]]  ;;  %58 = vst.msk [vmem:[#allocation2] sm:$0xf] %vm57_vm3, %v21485_v15  ;;  %59 = vst.msk [vmem:[#allocation2 + $0x4] sm:$0xf] %vm57_vm3, %v21485_v15  ;;  %v16102_v61 = vld [vmem:[%s21465_s5 + $0x8] sm:$0xff]  }
   0x4   :  { %s21490_s20 = sld [smem:[#allocation28_spill]]  ;;  %62 = vst.msk [vmem:[#allocation2 + $0x10] sm:$0xf] %vm57_vm3, %v21485_v15  ;;  %63 = vst.msk [vmem:[#allocation2 + $0x14] sm:$0xf] %vm57_vm3, %v21485_v15  ;;  %v16107_v63 = vld [vmem:[%s21465_s5] sm:$0xff]  }
   0x5   :  { %64 = vst.msk [vmem:[#allocation2 + $0x18] sm:$0xf] %vm57_vm3, %v21485_v15  ;;  %65 = vst.msk [vmem:[#allocation2 + $0x1c] sm:$0xf] %vm57_vm3, %v21485_v15  ;;  %vm1800_vm5 = vcmask 64512   ;;  %vm1936_vm6 = vcmask 261120  }
   0x6   :  { %66 = vst.msk [vmem:[#allocation2 + $0x20] sm:$0xf] %vm57_vm3, %v21485_v15  ;;  %67 = vst.msk [vmem:[#allocation2 + $0x24] sm:$0xf] %vm57_vm3, %v21485_v15  ;;  %vm3265_vm7 = vcmask 523264  }
   0x7   :  { %68 = vst.msk [vmem:[#allocation2 + $0x28] sm:$0xf] %vm57_vm3, %v21485_v15  ;;  %69 = vst.msk [vmem:[#allocation2 + $0x2c] sm:$0xf] %vm57_vm3, %v21485_v15 }
   0x8   :  { %70 = vst.msk [vmem:[#allocation2 + $0x30] sm:$0xf] %vm57_vm3, %v21485_v15  ;;  %71 = vst.msk [vmem:[#allocation2 + $0x34] sm:$0xf] %vm57_vm3, %v21485_v15 }
   0x9   :  { %v16045_v1 = vld [vmem:[%s21489_s26 + $0x10] ss:$0 sps:$4 sm:$0x33]   ;;  %v16046_v3 = vld [vmem:[%s21489_s26 + $0x8] sm:$0xff]   ;;  %v16047_v5 = vld [vmem:[%s21489_s26] sm:$0xff]  }
   0xa   :  { %v163_v2 = vsel %vm161_vm0, %v16045_v1, 0  ;;  %v16050_v4 = vld [vmem:[%s21489_s26 + $0x10] ss:$0 sps:$4 sm:$0x33]   ;;  %v16048_v6 = vld [vmem:[%s21490_s20] sm:$0xff]   ;;  %v17061_v11 = vld [vmem:[%s21489_s26 + $0x8] sm:$0xff]  }
   0xb   :  { %14337 = vmatpush3.bf16.msra.mxu0 %v163_v2  ;;  %16039 = vmatpush3.bf16.msra.mxu1 %v163_v2  ;;  %v16049_v7 = vld [vmem:[%s21490_s20 + $0x20] sm:$0xff]   ;;  %v407_v8 = vsel %vm161_vm0, %v16050_v4, 0  ;;  %v16058_v9 = vld [vmem:[%s21489_s26 + $0x10] ss:$0 sps:$4 sm:$0x33]   ;;  %v17071_v12 = vld [vmem:[%s21489_s26 + $0x8] sm:$0xff]  }
   0xc   :  { %14338 = vmatprep.subr.bf16.mxu0 %v21483_v0  ;;  %16037 = vmatprep.subr.bf16.mxu1 %v21483_v0  ;;  %v651_v10 = vsel %vm161_vm0, %v16058_v9, 0  ;;  %v17076_v13 = vld [vmem:[%s21490_s20 + $0x8] sm:$0xff]   ;;  %v17081_v14 = vld [vmem:[%s21489_s26 + $0x10] ss:$0 sps:$4 sm:$0x33]   ;;  %v16053_v16 = vld [vmem:[%s21489_s26] sm:$0xff]  }
   0xd   :  { %72 = vst.msk [vmem:[#allocation2 + $0x38] sm:$0xf] %vm57_vm3, %v21485_v15  ;;  %73 = vst.msk [vmem:[#allocation2 + $0x3c] sm:$0xf] %vm57_vm3, %v21485_v15  ;;  %v16063_v17 = vld [vmem:[%s21489_s26] sm:$0xff]   ;;  %v16054_v18 = vld [vmem:[%s21490_s20 + $0x28] sm:$0xff]  }
   0xe   :  { %74 = vst.msk [vmem:[#allocation2 + $0x1b8] sm:$0xf] %vm57_vm3, %v21485_v15  ;;  %75 = vst.msk [vmem:[#allocation2 + $0x1bc] sm:$0xf] %vm57_vm3, %v21485_v15  ;;  %v895_v19 = vsel %vm161_vm0, %v17081_v14, 0  ;;  %v16056_v20 = vld [vmem:[%s21490_s20 + $0x10] sm:$0xff]  }
   0xf   :  { %14339 = vmatpush3.bf16.msra.mxu0 %v16046_v3  ;;  %16040 = vmatpush3.bf16.msra.mxu1 %v16046_v3  ;;  %76 = vst.msk [vmem:[#allocation2 + $0x1c0] sm:$0xf] %vm57_vm3, %v21485_v15  ;;  %77 = vst.msk [vmem:[#allocation2 + $0x1c4] sm:$0xf] %vm57_vm3, %v21485_v15  ;;  %v16061_v22 = vld [vmem:[%s21489_s26 + $0x8] sm:$0xff]   ;;  %v16057_v24 = vld [vmem:[%s21490_s20 + $0x30] sm:$0xff]  }
  0x10   :  { %14340 = vmatprep.subr.bf16.mxu0 %v21483_v0  ;;  %16038 = vmatprep.subr.bf16.mxu1 %v21483_v0  ;;  %78 = vst.msk [vmem:[#allocation2 + $0x1c8] sm:$0xf] %vm57_vm3, %v21485_v15  ;;  %79 = vst.msk [vmem:[#allocation2 + $0x1cc] sm:$0xf] %vm57_vm3, %v21485_v15  ;;  %v16067_v25 = vld [vmem:[%s21489_s26] sm:$0xff]   ;;  %v16059_v26 = vld [vmem:[%s21490_s20 + $0x18] sm:$0xff]  }
  0x11   :  { %80 = vst.msk [vmem:[#allocation2 + $0x1d0] sm:$0xf] %vm57_vm3, %v21485_v15  ;;  %81 = vst.msk [vmem:[#allocation2 + $0x1d4] sm:$0xf] %vm57_vm3, %v21485_v15  ;;  %v16062_v27 = vld [vmem:[%s21490_s20 + $0x38] sm:$0xff]   ;;  %v16064_v29 = vld [vmem:[%s21490_s20 + $0x50] sm:$0xff]  }
  0x12   :  { %82 = vst.msk [vmem:[#allocation2 + $0x1d8] sm:$0xf] %vm57_vm3, %v21485_v15  ;;  %83 = vst.msk [vmem:[#allocation2 + $0x1dc] sm:$0xf] %vm57_vm3, %v21485_v15  ;;  %v16065_v33 = vld [vmem:[%s21490_s20 + $0x40] sm:$0xff]   ;;  %v16076_v34 = vld [vmem:[%s21489_s26 + $0x8] sm:$0xff]  }
  0x13   :  { %14341 = vmatpush3.bf16.msra.mxu0 %v16047_v5  ;;  %16041 = vmatpush3.bf16.msra.mxu1 %v16047_v5  ;;  %84 = vst.msk [vmem:[#allocation2 + $0x1e0] sm:$0xf] %vm57_vm3, %v21485_v15  ;;  %85 = vst.msk [vmem:[#allocation2 + $0x1e4] sm:$0xf] %vm57_vm3, %v21485_v15  ;;  %v16066_v35 = vld [vmem:[%s21490_s20 + $0x58] sm:$0xff]   ;;  %v16079_v36 = vld [vmem:[%s21489_s26] sm:$0xff]  }
  0x14   :  { %14362 = vmatprep.subr.bf16.mxu1 %v21483_v0  ;;  %14388 = vmatprep.subr.bf16.mxu0 %v21483_v0  ;;  %86 = vst.msk [vmem:[#allocation2 + $0x1e8] sm:$0xf] %vm57_vm3, %v21485_v15  ;;  %87 = vst.msk [vmem:[#allocation2 + $0x1ec] sm:$0xf] %vm57_vm3, %v21485_v15  ;;  %v16068_v37 = vld [vmem:[%s21490_s20 + $0x48] sm:$0xff]   ;;  %v16069_v38 = vld [vmem:[%s21490_s20 + $0x60] sm:$0xff]  }
  0x15   :  { %88 = vst.msk [vmem:[#allocation2 + $0x1f0] sm:$0xf] %vm57_vm3, %v21485_v15  ;;  %89 = vst.msk [vmem:[#allocation2 + $0x1f4] sm:$0xf] %vm57_vm3, %v21485_v15  ;;  %v16070_v39 = vld [vmem:[%s21490_s20 + $0x78] sm:$0xff]   ;;  %v16072_v40 = vld [vmem:[%s21490_s20 + $0x68] sm:$0xff]  }
  0x16   :  { %14343 = vmatmul.mubr.msk.bf16.vlgmr.msra.gmra.mxu0 %vm145_vm2, %v16048_v6  ;;  %14359 = vmatmul.mubr.msk.bf16.vlgmr.msra.gmra.mxu1 %vm145_vm2, %v16049_v7  ;;  %332 = vst.msk [vmem:[#allocation2 + $0x68] sm:$0xf] %vm57_vm3, %v21485_v15  ;;  %333 = vst.msk [vmem:[#allocation2 + $0x6c] sm:$0xf] %vm57_vm3, %v21485_v15  ;;  %v16077_v41 = vld [vmem:[%s21489_s26 + $0x8] sm:$0xff]   ;;  %v16074_v42 = vld [vmem:[%s21490_s20 + $0x80] sm:$0xff]  }
  0x17   :  { %14363 = vmatpush3.bf16.msra.mxu1 %v407_v8  ;;  %14346 = vmatprep.mubr.msk.bf16.mxu0 %vm16928_vm1, %v21483_v0  ;;  %334 = vst.msk [vmem:[#allocation2 + $0x70] sm:$0xf] %vm57_vm3, %v21485_v15  ;;  %335 = vst.msk [vmem:[#allocation2 + $0x74] sm:$0xf] %vm57_vm3, %v21485_v15  ;;  %v16083_v43 = vld [vmem:[%s21489_s26] sm:$0xff]   ;;  %v16075_v44 = vld [vmem:[%s21490_s20 + $0x70] sm:$0xff]  }
  0x18   :  { %14364 = vmatprep.subr.bf16.mxu1 %v21483_v0  ;;  %14368 = vmatprep.mubr.msk.bf16.mxu1 %vm16928_vm1, %v21483_v0  ;;  %576 = vst.msk [vmem:[#allocation2 + $0xa0] sm:$0xf] %vm57_vm3, %v21485_v15  ;;  %577 = vst.msk [vmem:[#allocation2 + $0xa4] sm:$0xf] %vm57_vm3, %v21485_v15  ;;  %v16078_v45 = vld [vmem:[%s21490_s20 + $0x88] sm:$0xff]   ;;  %v16080_v46 = vld [vmem:[%s21490_s20 + $0xa0] sm:$0xff]  }
  0x19   :  { %14389 = vmatpush3.bf16.msra.mxu0 %v651_v10  ;;  %578 = vst.msk [vmem:[#allocation2 + $0xa8] sm:$0xf] %vm57_vm3, %v21485_v15  ;;  %579 = vst.msk [vmem:[#allocation2 + $0xac] sm:$0xf] %vm57_vm3, %v21485_v15  ;;  %v16081_v47 = vld [vmem:[%s21490_s20 + $0x90] sm:$0xff]   ;;  %v16091_v48 = vld [vmem:[%s21489_s26 + $0x8] sm:$0xff]  }
  0x1a   :  { %14390 = vmatprep.subr.bf16.mxu0 %v21483_v0  ;;  %820 = vst.msk [vmem:[#allocation2 + $0xd8] sm:$0xf] %vm57_vm3, %v21485_v15  ;;  %821 = vst.msk [vmem:[#allocation2 + $0xdc] sm:$0xf] %vm57_vm3, %v21485_v15  ;;  %v16082_v49 = vld [vmem:[%s21490_s20 + $0xa8] sm:$0xff]   ;;  %v16093_v50 = vld [vmem:[%s21489_s26] sm:$0xff]  }
  0x1b   :  { %822 = vst.msk [vmem:[#allocation2 + $0xe0] sm:$0xf] %vm57_vm3, %v21485_v15  ;;  %823 = vst.msk [vmem:[#allocation2 + $0xe4] sm:$0xf] %vm57_vm3, %v21485_v15  ;;  %14365 = vmatpush3.bf16.msra.mxu1 %v17061_v11  ;;  %v16084_v51 = vld [vmem:[%s21490_s20 + $0x98] sm:$0xff]   ;;  %v16085_v52 = vld [vmem:[%s21490_s20 + $0xb0] sm:$0xff]  }
  0x1c   :  { %1064 = vst.msk [vmem:[#allocation2 + $0x110] sm:$0xf] %vm57_vm3, %v21485_v15  ;;  %1065 = vst.msk [vmem:[#allocation2 + $0x114] sm:$0xf] %vm57_vm3, %v21485_v15  ;;  %14366 = vmatprep.subr.bf16.mxu1 %v21483_v0  ;;  %v16086_v54 = vld [vmem:[%s21490_s20 + $0xc8] sm:$0xff]   ;;  %v16087_v56 = vld [vmem:[%s21490_s20 + $0xb8] sm:$0xff]  }
  0x1d   :  { %1066 = vst.msk [vmem:[#allocation2 + $0x118] sm:$0xf] %vm57_vm3, %v21485_v15  ;;  %1067 = vst.msk [vmem:[#allocation2 + $0x11c] sm:$0xf] %vm57_vm3, %v21485_v15  ;;  %14391 = vmatpush3.bf16.msra.mxu0 %v17071_v12  ;;  %v16089_v57 = vld [vmem:[%s21490_s20 + $0xd0] sm:$0xff]   ;;  %v16090_v58 = vld [vmem:[%s21490_s20 + $0xc0] sm:$0xff]  }
  0x1e   :  { %1308 = vst.msk [vmem:[#allocation2 + $0x148] sm:$0xf] %vm57_vm3, %v21485_v15  ;;  %1309 = vst.msk [vmem:[#allocation2 + $0x14c] sm:$0xf] %vm57_vm3, %v21485_v15  ;;  %14347 = vmatmul.mubr.msk.bf16.gmra.mxu0 %vm145_vm2, %v17076_v13  ;;  %14392 = vmatprep.subr.bf16.mxu0 %v21483_v0  ;;  %v16092_v59 = vld [vmem:[%s21490_s20 + $0xd8] sm:$0xff]   ;;  %v16094_v60 = vld [vmem:[%s21490_s20 + $0xf0] sm:$0xff]  }
  0x1f   :  { %1310 = vst.msk [vmem:[#allocation2 + $0x150] sm:$0xf] %vm57_vm3, %v21485_v15  ;;  %1311 = vst.msk [vmem:[#allocation2 + $0x154] sm:$0xf] %vm57_vm3, %v21485_v15  ;;  %14367 = vmatpush3.bf16.msra.mxu1 %v16053_v16  ;;  %14350 = vmatprep.mubr.msk.bf16.mxu0 %vm16928_vm1, %v21483_v0  ;;  %v16095_v62 = vld [vmem:[%s21490_s20 + $0xe0] sm:$0xff]   ;;  %v16096_v1 = vld [vmem:[%s21490_s20 + $0xf8] sm:$0xff]  }
  0x20   :  { %1552 = vst.msk [vmem:[#allocation2 + $0x180] sm:$0xf] %vm57_vm3, %v21485_v15  ;;  %1553 = vst.msk [vmem:[#allocation2 + $0x184] sm:$0xf] %vm57_vm3, %v21485_v15  ;;  %14414 = vmatprep.subr.bf16.mxu1 %v21483_v0  ;;  %v16097_v2 = vld [vmem:[%s21490_s20 + $0xe8] sm:$0xff]   ;;  %v16098_v3 = vld [vmem:[%s21490_s20 + $0x100] sm:$0xff]  }
  0x21   :  { %1554 = vst.msk [vmem:[#allocation2 + $0x188] sm:$0xf] %vm57_vm3, %v21485_v15  ;;  %1555 = vst.msk [vmem:[#allocation2 + $0x18c] sm:$0xf] %vm57_vm3, %v21485_v15  ;;  %14393 = vmatpush3.bf16.msra.mxu0 %v16063_v17  ;;  %v1796_v4 = vld [vmem:[%s21467_s1] sm:$0xff]  ;;  %v1797_v5 = vld [vmem:[%s21467_s1 + $0x8] sm:$0xff] }
  0x22   :  { %v16071_v21 = vld [vmem:[%s21489_s26 + $0x10] ss:$0 sps:$4 sm:$0x33]   ;;  %14369 = vmatmul.mubr.msk.bf16.vlgmr.msra.gmra.mxu1 %vm145_vm2, %v16054_v18  ;;  %14440 = vmatprep.subr.bf16.mxu0 %v21483_v0  ;;  %v1798_v6 = vpack.c.bf16 %v1797_v5, %v1796_v4  ;;  %v16099_v7 = vld [vmem:[%s21465_s5 + $0x18] sm:$0xff]   ;;  %v16100_v8 = vld [vmem:[%s21490_s20 + $0x108] sm:$0xff]  }
  0x23   :  { %14415 = vmatpush3.bf16.msra.mxu1 %v895_v19  ;;  %14372 = vmatprep.mubr.msk.bf16.mxu1 %vm16928_vm1, %v21483_v0  ;;  %v1383_v23 = vsel %vm161_vm0, %v16071_v21, 0  ;;  %v16073_v28 = vld [vmem:[%s21489_s26 + $0x10] ss:$0 sps:$4 sm:$0x33]   ;;  %v16103_v10 = vld [vmem:[#allocation2 + $0x8] sm:$0xff]   ;;  %v16110_v13 = vld [vmem:[%s21465_s5 + $0x20] sm:$0xff]  }
  0x24   :  { %14416 = vmatprep.subr.bf16.mxu1 %v21483_v0  ;;  %v16088_v30 = vld [vmem:[%s21489_s26 + $0x10] ss:$0 sps:$4 sm:$0x33]   ;;  %v1139_v31 = vsel %vm161_vm0, %v16073_v28, 0  ;;  %v16104_v11 = vld [vmem:[%s21465_s5 + $0x28] sm:$0xff]   ;;  %v16108_v16 = vld [vmem:[#allocation2] sm:$0xff]  }
  0x25   :  { %v1627_v32 = vsel %vm161_vm0, %v16088_v30, 0  ;;  %v16101_v9 = vld [vmem:[%s21465_s5 + $0x10] sm:$0xff]   ;;  %v16113_v17 = vld [vmem:[%s21465_s5 + $0x38] sm:$0xff]   ;;  %v16112_v21 = vld [vmem:[#allocation2 + $0x28] sm:$0xff]  }
  0x26   :  { %14351 = vmatmul.mubr.msk.bf16.gmra.mxu0 %vm145_vm2, %v16056_v20  ;;  %v16105_v12 = vld [vmem:[%s21490_s20 + $0x110] sm:$0xff]   ;;  %v16109_v18 = vld [vmem:[#allocation2 + $0x18] sm:$0xff]   ;;  %v16111_v20 = vld [vmem:[#allocation2 + $0x20] sm:$0xff]  }
  0x27   :  { %14354 = vmatprep.mubr.msk.bf16.mxu0 %vm16928_vm1, %v21483_v0  ;;  %14417 = vmatpush3.bf16.msra.mxu1 %v16061_v22  ;;  %v16106_v14 = vld [vmem:[#allocation2 + $0x10] sm:$0xff]   ;;  %v17548_v28 = vld [vmem:[%s21468_s3] ss:$0 sm:$0xff]  ;;  %v16121_v53 = vld [vmem:[#allocation2 + $0x28] sm:$0xff]  }
  0x28   :  { %14418 = vmatprep.subr.bf16.mxu1 %v21483_v0  ;;  %v16117_v19 = vld [vmem:[%s21465_s5 + $0x30] sm:$0xff]   ;;  %v17553_v30 = vld [vmem:[%s21469_s4] ss:$0 sm:$0xff] }
  0x29   :  { %v16114_v22 = vld [vmem:[#allocation2 + $0x10] sm:$0xff]  }
  0x2a   :  { %14373 = vmatmul.mubr.msk.bf16.gmra.mxu1 %vm145_vm2, %v16057_v24  ;;  %v16120_v24 = vld [vmem:[%s21465_s5 + $0x40] sm:$0xff]  }
  0x2b   :  { %14376 = vmatprep.mubr.msk.bf16.mxu1 %vm16928_vm1, %v21483_v0  ;;  %14419 = vmatpush3.bf16.msra.mxu1 %v16067_v25  ;;  %v16116_v25 = vld [vmem:[#allocation2 + $0x18] sm:$0xff]  }
  0x2c   :  { %14466 = vmatprep.subr.bf16.mxu1 %v21483_v0 }
  0x2e   :  { %14355 = vmatmul.mubr.msk.bf16.gmra.mxu0 %vm145_vm2, %v16059_v26  ;;  %v16118_v26 = vld [vmem:[#allocation2 + $0x38] sm:$0xff]  }
  0x2f   :  { %14394 = vmatprep.mubr.msk.bf16.mxu0 %vm16928_vm1, %v21483_v0 }
  0x32   :  { %14377 = vmatmul.mubr.msk.bf16.gmra.mxu1 %vm145_vm2, %v16062_v27  ;;  %v16124_v27 = vld [vmem:[%s21465_s5 + $0x58] sm:$0xff]  }
  0x33   :  { %14380 = vmatprep.mubr.msk.bf16.mxu1 %vm16928_vm1, %v21483_v0 }
  0x36   :  { %14395 = vmatmul.mubr.msk.bf16.vlgmr.msra.gmra.mxu0 %vm145_vm2, %v16064_v29 }
  0x37   :  { %14398 = vmatprep.mubr.msk.bf16.mxu0 %vm16928_vm1, %v21483_v0  ;;  %14441 = vmatpush3.bf16.msra.mxu0 %v1139_v31 }
  0x38   :  { %14442 = vmatprep.subr.bf16.mxu0 %v21483_v0 }
  0x3a   :  { %14381 = vmatmul.mubr.msk.bf16.gmra.mxu1 %vm145_vm2, %v16065_v33 }
  0x3b   :  { %14384 = vmatprep.mubr.msk.bf16.mxu1 %vm16928_vm1, %v21483_v0  ;;  %14443 = vmatpush3.bf16.msra.mxu0 %v16076_v34 }
  0x3c   :  { %14444 = vmatprep.subr.bf16.mxu0 %v21483_v0 }
  0x3e   :  { %14399 = vmatmul.mubr.msk.bf16.gmra.mxu0 %vm145_vm2, %v16066_v35  ;;  %v16132_v35 = vld [vmem:[%s21465_s5 + $0x50] sm:$0xff]  }
  0x3f   :  { %14402 = vmatprep.mubr.msk.bf16.mxu0 %vm16928_vm1, %v21483_v0  ;;  %14445 = vmatpush3.bf16.msra.mxu0 %v16079_v36 }
  0x40   :  { %14492 = vmatprep.subr.bf16.mxu0 %v21483_v0 }
  0x42   :  { %14385 = vmatmul.mubr.msk.bf16.gmra.mxu1 %vm145_vm2, %v16068_v37 }
  0x43   :  { %14420 = vmatprep.mubr.msk.bf16.mxu1 %vm16928_vm1, %v21483_v0 }
  0x46   :  { %14403 = vmatmul.mubr.msk.bf16.gmra.mxu0 %vm145_vm2, %v16069_v38 }
  0x47   :  { %14406 = vmatprep.mubr.msk.bf16.mxu0 %vm16928_vm1, %v21483_v0 }
  0x4a   :  { %14421 = vmatmul.mubr.msk.bf16.vlgmr.msra.gmra.mxu1 %vm145_vm2, %v16070_v39 }
  0x4b   :  { %14467 = vmatpush3.bf16.msra.mxu1 %v1383_v23  ;;  %14424 = vmatprep.mubr.msk.bf16.mxu1 %vm16928_vm1, %v21483_v0  ;;  %v16115_v23 = vld [vmem:[%s21465_s5 + $0x48] sm:$0xff]  }
  0x4c   :  { %14468 = vmatprep.subr.bf16.mxu1 %v21483_v0 }
  0x4e   :  { %14407 = vmatmul.mubr.msk.bf16.gmra.mxu0 %vm145_vm2, %v16072_v40 }
  0x4f   :  { %14410 = vmatprep.mubr.msk.bf16.mxu0 %vm16928_vm1, %v21483_v0  ;;  %14469 = vmatpush3.bf16.msra.mxu1 %v16077_v41 }
  0x50   :  { %14470 = vmatprep.subr.bf16.mxu1 %v21483_v0 }
  0x52   :  { %14425 = vmatmul.mubr.msk.bf16.gmra.mxu1 %vm145_vm2, %v16074_v42 }
  0x53   :  { %14428 = vmatprep.mubr.msk.bf16.mxu1 %vm16928_vm1, %v21483_v0  ;;  %14471 = vmatpush3.bf16.msra.mxu1 %v16083_v43 }
  0x54   :  { %14518 = vmatprep.subr.bf16.mxu1 %v21483_v0 }
  0x56   :  { %14411 = vmatmul.mubr.msk.bf16.gmra.mxu0 %vm145_vm2, %v16075_v44 }
  0x57   :  { %14446 = vmatprep.mubr.msk.bf16.mxu0 %vm16928_vm1, %v21483_v0 }
  0x5a   :  { %14429 = vmatmul.mubr.msk.bf16.gmra.mxu1 %vm145_vm2, %v16078_v45 }
  0x5b   :  { %14432 = vmatprep.mubr.msk.bf16.mxu1 %vm16928_vm1, %v21483_v0 }
  0x5e   :  { %14447 = vmatmul.mubr.msk.bf16.vlgmr.msra.gmra.mxu0 %vm145_vm2, %v16080_v46 }
  0x5f   :  { %14450 = vmatprep.mubr.msk.bf16.mxu0 %vm16928_vm1, %v21483_v0  ;;  %14493 = vmatpush3.bf16.msra.mxu0 %v1627_v32  ;;  %v16119_v32 = vld [vmem:[#allocation2 + $0x20] sm:$0xff]  }
  0x60   :  { %14494 = vmatprep.subr.bf16.mxu0 %v21483_v0 }
  0x62   :  { %14433 = vmatmul.mubr.msk.bf16.gmra.mxu1 %vm145_vm2, %v16081_v47 }
  0x63   :  { %14436 = vmatprep.mubr.msk.bf16.mxu1 %vm16928_vm1, %v21483_v0  ;;  %14495 = vmatpush3.bf16.msra.mxu0 %v16091_v48 }
  0x64   :  { %14496 = vmatprep.subr.bf16.mxu0 %v21483_v0 }
  0x66   :  { %14451 = vmatmul.mubr.msk.bf16.gmra.mxu0 %vm145_vm2, %v16082_v49 }
  0x67   :  { %14454 = vmatprep.mubr.msk.bf16.mxu0 %vm16928_vm1, %v21483_v0  ;;  %14497 = vmatpush3.bf16.msra.mxu0 %v16093_v50 }
  0x68   :  { %14548 = vmatprep.subr.bf16.mxu0 %v21483_v0 }
  0x6a   :  { %14437 = vmatmul.mubr.msk.bf16.gmra.mxu1 %vm145_vm2, %v16084_v51 }
  0x6b   :  { %14472 = vmatprep.mubr.msk.bf16.mxu1 %vm16928_vm1, %v21483_v0 }
  0x6e   :  { %14455 = vmatmul.mubr.msk.bf16.gmra.mxu0 %vm145_vm2, %v16085_v52 }
  0x6f   :  { %14458 = vmatprep.mubr.msk.bf16.mxu0 %vm16928_vm1, %v21483_v0 }
  0x72   :  { %14473 = vmatmul.mubr.msk.bf16.vlgmr.msra.gmra.mxu1 %vm145_vm2, %v16086_v54 }
  0x73   :  { %14519 = vmatpush3.bf16.msra.mxu1 %v1806_v55  ;;  %14476 = vmatprep.mubr.msk.bf16.mxu1 %vm16928_vm1, %v21483_v0 }
  0x74   :  { %14524 = vmatprep.subr.bf16.mxu1 %v21483_v0 }
  0x76   :  { %14459 = vmatmul.mubr.msk.bf16.gmra.mxu0 %vm145_vm2, %v16087_v56 }
  0x77   :  { %14462 = vmatprep.mubr.msk.bf16.mxu0 %vm16928_vm1, %v21483_v0 }
  0x7a   :  { %14477 = vmatmul.mubr.msk.bf16.gmra.mxu1 %vm145_vm2, %v16089_v57 }
  0x7b   :  { %14480 = vmatprep.mubr.msk.bf16.mxu1 %vm16928_vm1, %v21483_v0 }
  0x7e   :  { %14463 = vmatmul.mubr.msk.bf16.gmra.mxu0 %vm145_vm2, %v16090_v58 }
  0x7f   :  { %14498 = vmatprep.mubr.msk.bf16.mxu0 %vm16928_vm1, %v21483_v0 }
  0x82   :  { %14481 = vmatmul.mubr.msk.bf16.gmra.mxu1 %vm145_vm2, %v16092_v59 }
  0x83   :  { %14484 = vmatprep.mubr.msk.bf16.mxu1 %vm16928_vm1, %v21483_v0 }
  0x86   :  { %14499 = vmatmul.mubr.msk.bf16.vlgmr.msra.gmra.mxu0 %vm145_vm2, %v16094_v60 }
  0x87   :  { %14502 = vmatprep.mubr.msk.bf16.mxu0 %vm16928_vm1, %v21483_v0  ;;  %14549 = vmatpush3.bf16.msra.mxu0 %v16102_v61 }
  0x88   :  { %14550 = vmatprep.subr.bf16.mxu0 %v21483_v0 }
  0x8a   :  { %14485 = vmatmul.mubr.msk.bf16.gmra.mxu1 %vm145_vm2, %v16095_v62 }
  0x8b   :  { %14488 = vmatprep.mubr.msk.bf16.mxu1 %vm16928_vm1, %v21483_v0  ;;  %14551 = vmatpush3.bf16.msra.mxu0 %v16107_v63 }
  0x8c   :  { %14596 = vmatprep.subr.bf16.mxu0 %v21483_v0 }
  0x8e   :  { %14503 = vmatmul.mubr.msk.bf16.gmra.mxu0 %vm145_vm2, %v16096_v1 }
  0x8f   :  { %14506 = vmatprep.mubr.msk.bf16.mxu0 %vm16928_vm1, %v21483_v0 }
  0x92   :  { %14489 = vmatmul.mubr.msk.bf16.gmra.mxu1 %vm145_vm2, %v16097_v2 }
  0x93   :  { %14520 = vmatprep.mubr.msk.bf16.mxu1 %vm16928_vm1, %v21483_v0 }
  0x96   :  { %14507 = vmatmul.mubr.msk.bf16.gmra.mxu0 %vm145_vm2, %v16098_v3 }
  0x97   :  { %14510 = vmatprep.mubr.msk.bf16.mxu0 %vm16928_vm1, %v21483_v0 }
  0x9a   :  { %14521 = vmatmul.mubr.msk.bf16.vlgmr.msra.gmra.mxu1 %vm1800_vm5, %v1798_v6 }
  0x9b   :  { %14525 = vmatpush3.bf16.msra.mxu1 %v16099_v7  ;;  %14528 = vmatprep.mubr.msk.bf16.mxu1 %vm16928_vm1, %v21483_v0 }
  0x9c   :  { %14526 = vmatprep.subr.bf16.mxu1 %v21483_v0 }
  0x9e   :  { %14511 = vmatmul.mubr.msk.bf16.gmra.mxu0 %vm145_vm2, %v16100_v8  ;;  %v16122_v8 = vld [vmem:[#allocation2 + $0x30] sm:$0xff]  }
  0x9f   :  { %14527 = vmatpush3.bf16.msra.mxu1 %v16101_v9  ;;  %14514 = vmatprep.mubr.msk.bf16.mxu0 %vm16928_vm1, %v21483_v0 }
  0xa0   :  { %14572 = vmatprep.subr.bf16.mxu1 %v21483_v0 }
  0xa2   :  { %14529 = vmatmul.mubr.msk.bf16.vlgmr.msra.gmra.mxu1 %vm1936_vm6, %v16103_v10 }
  0xa3   :  { %14573 = vmatpush3.bf16.msra.mxu1 %v16104_v11  ;;  %14532 = vmatprep.mubr.msk.bf16.mxu1 %vm16928_vm1, %v21483_v0 }
  0xa4   :  { %14574 = vmatprep.subr.bf16.mxu1 %v21483_v0 }
  0xa6   :  { %14515 = vmatmul.mubr.msk.bf16.gmra.mxu0 %vm145_vm2, %v16105_v12 }
  0xa7   :  { %14552 = vmatprep.mubr.msk.bf16.mxu0 %vm16928_vm1, %v21483_v0  ;;  %14575 = vmatpush3.bf16.msra.mxu1 %v16110_v13 }
  0xa8   :  { %14620 = vmatprep.subr.bf16.mxu1 %v21483_v0 }
  0xaa   :  { %14533 = vmatmul.mubr.msk.bf16.gmra.mxu1 %vm1936_vm6, %v16106_v14 }
  0xab   :  { %14536 = vmatprep.mubr.msk.bf16.mxu1 %vm16928_vm1, %v21483_v0 }
  0xae   :  { %14553 = vmatmul.mubr.msk.bf16.vlgmr.msra.gmra.mxu0 %vm1936_vm6, %v16108_v16 }
  0xaf   :  { %14556 = vmatprep.mubr.msk.bf16.mxu0 %vm16928_vm1, %v21483_v0  ;;  %14597 = vmatpush3.bf16.msra.mxu0 %v16113_v17 }
  0xb0   :  { %14598 = vmatprep.subr.bf16.mxu0 %v21483_v0 }
  0xb2   :  { %14537 = vmatmul.mubr.msk.bf16.gmra.mxu1 %vm1936_vm6, %v16109_v18 }
  0xb3   :  { %14540 = vmatprep.mubr.msk.bf16.mxu1 %vm16928_vm1, %v21483_v0  ;;  %14599 = vmatpush3.bf16.msra.mxu0 %v16117_v19 }
  0xb4   :  { %14644 = vmatprep.subr.bf16.mxu0 %v21483_v0 }
  0xb6   :  { %14557 = vmatmul.mubr.msk.bf16.gmra.mxu0 %vm1936_vm6, %v16103_v10 }
  0xb7   :  { %14560 = vmatprep.mubr.msk.bf16.mxu0 %vm16928_vm1, %v21483_v0 }
  0xba   :  { %14541 = vmatmul.mubr.msk.bf16.gmra.mxu1 %vm1936_vm6, %v16111_v20 }
  0xbb   :  { %14544 = vmatprep.mubr.msk.bf16.mxu1 %vm16928_vm1, %v21483_v0 }
  0xbe   :  { %14561 = vmatmul.mubr.msk.bf16.gmra.mxu0 %vm1936_vm6, %v16106_v14 }
  0xbf   :  { %14564 = vmatprep.mubr.msk.bf16.mxu0 %vm16928_vm1, %v21483_v0 }
  0xc2   :  { %14545 = vmatmul.mubr.msk.bf16.gmra.mxu1 %vm1936_vm6, %v16112_v21 }
  0xc3   :  { %14576 = vmatprep.mubr.msk.bf16.mxu1 %vm16928_vm1, %v21483_v0 }
  0xc6   :  { %14565 = vmatmul.mubr.msk.bf16.gmra.mxu0 %vm1936_vm6, %v16109_v18 }
  0xc7   :  { %14568 = vmatprep.mubr.msk.bf16.mxu0 %vm16928_vm1, %v21483_v0 }
  0xca   :  { %14577 = vmatmul.mubr.msk.bf16.vlgmr.msra.gmra.mxu1 %vm1936_vm6, %v16114_v22 }
  0xcb   :  { %14621 = vmatpush3.bf16.msra.mxu1 %v16115_v23  ;;  %14580 = vmatprep.mubr.msk.bf16.mxu1 %vm16928_vm1, %v21483_v0 }
  0xcc   :  { %14622 = vmatprep.subr.bf16.mxu1 %v21483_v0 }
  0xce   :  { %14569 = vmatmul.mubr.msk.bf16.gmra.mxu0 %vm1936_vm6, %v16111_v20 }
  0xcf   :  { %14600 = vmatprep.mubr.msk.bf16.mxu0 %vm16928_vm1, %v21483_v0  ;;  %14623 = vmatpush3.bf16.msra.mxu1 %v16120_v24 }
  0xd0   :  { %14668 = vmatprep.subr.bf16.mxu1 %v21483_v0 }
  0xd2   :  { %14581 = vmatmul.mubr.msk.bf16.gmra.mxu1 %vm1936_vm6, %v16116_v25 }
  0xd3   :  { %14584 = vmatprep.mubr.msk.bf16.mxu1 %vm16928_vm1, %v21483_v0 }
  0xd6   :  { %v199_v29 = vpop.f32.mrf.mxu0  ;;  %v231_v31 = vpop.f32.mrf.mxu1  ;;  %14601 = vmatmul.mubr.msk.bf16.vlgmr.msra.gmra.mxu0 %vm1936_vm6, %v16118_v26 }
  0xd7   :  { %v245_v33 = vmul.f32 %v17548_v28, %v199_v29  ;;  %v253_v34 = vmul.f32 %v17548_v28, %v231_v31  ;;  %14604 = vmatprep.mubr.msk.bf16.mxu0 %vm16928_vm1, %v21483_v0  ;;  %14645 = vmatpush3.bf16.msra.mxu0 %v16124_v27 }
  0xd8   :  { %v14344_v36 = vpop.f32.mrf.mxu0  ;;  %v14360_v37 = vpop.f32.mrf.mxu1  ;;  %14646 = vmatprep.subr.bf16.mxu0 %v21483_v0 }
  0xd9   :  { %v262_v38 = vadd.f32 %v17553_v30, %v245_v33  ;;  %v270_v39 = vadd.f32 %v17553_v30, %v253_v34 }
  0xda   :  { %v202_v40 = vpop.f32.mrf.mxu0  ;;  %v234_v41 = vpop.f32.mrf.mxu1  ;;  %14585 = vmatmul.mubr.msk.bf16.gmra.mxu1 %vm1936_vm6, %v16119_v32 }
  0xdb   :  { %v272_v42 = vmax.f32 %v262_v38, 0.0  ;;  %v280_v43 = vmax.f32 %v270_v39, 0.0  ;;  %v246_v44 = vmul.f32 %v17548_v28, %v202_v40  ;;  %v254_v45 = vmul.f32 %v17548_v28, %v234_v41  ;;  %14588 = vmatprep.mubr.msk.bf16.mxu1 %vm16928_vm1, %v21483_v0  ;;  %14647 = vmatpush3.bf16.msra.mxu0 %v16132_v35 }
  0xdc   :  { %v14345_v46 = vpop.f32.mrf.mxu0  ;;  %v14361_v47 = vpop.f32.mrf.mxu1  ;;  %14692 = vmatprep.subr.bf16.mxu0 %v21483_v0 }
  0xdd   :  { %v13745_v48 = vpack.c.bf16 %v272_v42, %v272_v42  ;;  %v13753_v49 = vpack.c.bf16 %v280_v43, %v280_v43  ;;  %v263_v50 = vadd.f32 %v17553_v30, %v246_v44  ;;  %v271_v51 = vadd.f32 %v17553_v30, %v254_v45  ;;  %v16126_v43 = vld [vmem:[%s21465_s5 + $0x68] sm:$0xff]  }
  0xde   :  { %v207_v52 = vpop.f32.mrf.mxu0 }
  0xdf   :  { %322 = vst.msk [vmem:[#allocation2 + $0x40] sm:$0xf] %vm57_vm3, %v13745_v48  ;;  %330 = vst.msk [vmem:[#allocation2 + $0x60] sm:$0xf] %vm57_vm3, %v13753_v49  ;;  %v273_v54 = vmax.f32 %v263_v50, 0.0  ;;  %v281_v55 = vmax.f32 %v271_v51, 0.0  ;;  %v247_v56 = vmul.f32 %v17548_v28, %v207_v52 }
  0xe0   :  { %v14348_v57 = vpop.f32.mrf.mxu0 }
  0xe1   :  { %v13746_v58 = vpack.c.bf16 %v273_v54, %v273_v54  ;;  %v13754_v59 = vpack.c.bf16 %v281_v55, %v281_v55  ;;  %v264_v60 = vadd.f32 %v17553_v30, %v247_v56 }
  0xe2   :  { %v210_v61 = vpop.f32.mrf.mxu0  ;;  %v443_v62 = vpop.f32.mrf.mxu1  ;;  %14589 = vmatmul.mubr.msk.bf16.gmra.mxu1 %vm1936_vm6, %v16121_v53 }
  0xe3   :  { %323 = vst.msk [vmem:[#allocation2 + $0x44] sm:$0xf] %vm57_vm3, %v13746_v58  ;;  %331 = vst.msk [vmem:[#allocation2 + $0x64] sm:$0xf] %vm57_vm3, %v13754_v59  ;;  %v274_v63 = vmax.f32 %v264_v60, 0.0  ;;  %v248_v1 = vmul.f32 %v17548_v28, %v210_v61  ;;  %v489_v2 = vmul.f32 %v17548_v28, %v443_v62  ;;  %14592 = vmatprep.mubr.msk.bf16.mxu1 %vm16928_vm1, %v21483_v0  ;;  %v16133_v58 = vld [vmem:[%s21465_s5 + $0x60] sm:$0xff]  }
  0xe4   :  { %v14349_v3 = vpop.f32.mrf.mxu0  ;;  %v14370_v4 = vpop.f32.mrf.mxu1 }
  0xe5   :  { %v13747_v5 = vpack.c.bf16 %v274_v63, %v274_v63  ;;  %v265_v6 = vadd.f32 %v17553_v30, %v248_v1  ;;  %v506_v7 = vadd.f32 %v17553_v30, %v489_v2 }
  0xe6   :  { %v215_v9 = vpop.f32.mrf.mxu0  ;;  %v446_v10 = vpop.f32.mrf.mxu1 }
  0xe7   :  { %324 = vst.msk [vmem:[#allocation2 + $0x48] sm:$0xf] %vm57_vm3, %v13747_v5  ;;  %v275_v11 = vmax.f32 %v265_v6, 0.0  ;;  %v516_v12 = vmax.f32 %v506_v7, 0.0  ;;  %v249_v13 = vmul.f32 %v17548_v28, %v215_v9  ;;  %v490_v14 = vmul.f32 %v17548_v28, %v446_v10 }
  0xe8   :  { %v14352_v16 = vpop.f32.mrf.mxu0  ;;  %v14371_v17 = vpop.f32.mrf.mxu1 }
  0xe9   :  { %v13748_v18 = vpack.c.bf16 %v275_v11, %v275_v11  ;;  %v13755_v19 = vpack.c.bf16 %v516_v12, %v516_v12  ;;  %v266_v20 = vadd.f32 %v17553_v30, %v249_v13  ;;  %v507_v21 = vadd.f32 %v17553_v30, %v490_v14 }
  0xea   :  { %v218_v22 = vpop.f32.mrf.mxu0  ;;  %v451_v23 = vpop.f32.mrf.mxu1  ;;  %14593 = vmatmul.mubr.msk.bf16.gmra.mxu1 %vm1936_vm6, %v16122_v8  ;;  %v16123_v24 = vld [vmem:[#allocation2 + $0x40] sm:$0xff]  }
  0xeb   :  { %325 = vst.msk [vmem:[#allocation2 + $0x4c] sm:$0xf] %vm57_vm3, %v13748_v18  ;;  %566 = vst.msk [vmem:[#allocation2 + $0x78] sm:$0xf] %vm57_vm3, %v13755_v19  ;;  %v276_v25 = vmax.f32 %v266_v20, 0.0  ;;  %v517_v26 = vmax.f32 %v507_v21, 0.0  ;;  %v250_v27 = vmul.f32 %v17548_v28, %v218_v22  ;;  %v491_v29 = vmul.f32 %v17548_v28, %v451_v23  ;;  %14624 = vmatprep.mubr.msk.bf16.mxu1 %vm16928_vm1, %v21483_v0 }
  0xec   :  { %v14353_v31 = vpop.f32.mrf.mxu0  ;;  %v14374_v32 = vpop.f32.mrf.mxu1  ;;  %14605 = vmatmul.mubr.msk.bf16.gmra.mxu0 %vm1936_vm6, %v16123_v24  ;;  %v16125_v46 = vld [vmem:[#allocation2 + $0x40] sm:$0xff]  }
  0xed   :  { %v13749_v33 = vpack.c.bf16 %v276_v25, %v276_v25  ;;  %v13756_v34 = vpack.c.bf16 %v517_v26, %v517_v26  ;;  %v267_v35 = vadd.f32 %v17553_v30, %v250_v27  ;;  %v508_v36 = vadd.f32 %v17553_v30, %v491_v29  ;;  %14608 = vmatprep.mubr.msk.bf16.mxu0 %vm16928_vm1, %v21483_v0 }
  0xee   :  { %v223_v37 = vpop.f32.mrf.mxu0  ;;  %v454_v38 = vpop.f32.mrf.mxu1 }
  0xef   :  { %326 = vst.msk [vmem:[#allocation2 + $0x50] sm:$0xf] %vm57_vm3, %v13749_v33  ;;  %567 = vst.msk [vmem:[#allocation2 + $0x7c] sm:$0xf] %vm57_vm3, %v13756_v34  ;;  %v277_v39 = vmax.f32 %v267_v35, 0.0  ;;  %v518_v40 = vmax.f32 %v508_v36, 0.0  ;;  %v251_v41 = vmul.f32 %v17548_v28, %v223_v37  ;;  %v492_v42 = vmul.f32 %v17548_v28, %v454_v38 }
  0xf0   :  { %v14356_v44 = vpop.f32.mrf.mxu0  ;;  %v14375_v45 = vpop.f32.mrf.mxu1 }
  0xf1   :  { %v13750_v47 = vpack.c.bf16 %v277_v39, %v277_v39  ;;  %v13757_v48 = vpack.c.bf16 %v518_v40, %v518_v40  ;;  %v268_v49 = vadd.f32 %v17553_v30, %v251_v41  ;;  %v509_v50 = vadd.f32 %v17553_v30, %v492_v42 }
  0xf2   :  { %v226_v51 = vpop.f32.mrf.mxu0  ;;  %v459_v52 = vpop.f32.mrf.mxu1  ;;  %14625 = vmatmul.mubr.msk.bf16.vlgmr.msra.gmra.mxu1 %vm1936_vm6, %v16125_v46  ;;  %v16127_v53 = vld [vmem:[#allocation2 + $0x48] sm:$0xff]  }
  0xf3   :  { %327 = vst.msk [vmem:[#allocation2 + $0x54] sm:$0xf] %vm57_vm3, %v13750_v47  ;;  %568 = vst.msk [vmem:[#allocation2 + $0x80] sm:$0xf] %vm57_vm3, %v13757_v48  ;;  %v278_v54 = vmax.f32 %v268_v49, 0.0  ;;  %v519_v55 = vmax.f32 %v509_v50, 0.0  ;;  %v252_v56 = vmul.f32 %v17548_v28, %v226_v51  ;;  %v493_v57 = vmul.f32 %v17548_v28, %v459_v52  ;;  %14669 = vmatpush3.bf16.msra.mxu1 %v16126_v43 }
  0xf4   :  { %14628 = vmatprep.mubr.msk.bf16.mxu1 %vm16928_vm1, %v21483_v0  ;;  %v14357_v59 = vpop.f32.mrf.mxu0  ;;  %v14378_v60 = vpop.f32.mrf.mxu1  ;;  %14609 = vmatmul.mubr.msk.bf16.gmra.mxu0 %vm1936_vm6, %v16127_v53  ;;  %v16128_v10 = vld [vmem:[#allocation2 + $0x48] sm:$0xff]  }
  0xf5   :  { %14670 = vmatprep.subr.bf16.mxu1 %v21483_v0  ;;  %v13751_v61 = vpack.c.bf16 %v278_v54, %v278_v54  ;;  %v13758_v62 = vpack.c.bf16 %v519_v55, %v519_v55  ;;  %v269_v63 = vadd.f32 %v17553_v30, %v252_v56  ;;  %v510_v1 = vadd.f32 %v17553_v30, %v493_v57 }
  0xf6   :  { %14612 = vmatprep.mubr.msk.bf16.mxu0 %vm16928_vm1, %v21483_v0  ;;  %v462_v2 = vpop.f32.mrf.mxu1  ;;  %v687_v3 = vpop.f32.mrf.mxu0 }
  0xf7   :  { %328 = vst.msk [vmem:[#allocation2 + $0x58] sm:$0xf] %vm57_vm3, %v13751_v61  ;;  %569 = vst.msk [vmem:[#allocation2 + $0x84] sm:$0xf] %vm57_vm3, %v13758_v62  ;;  %v279_v4 = vmax.f32 %v269_v63, 0.0  ;;  %v520_v5 = vmax.f32 %v510_v1, 0.0  ;;  %v494_v6 = vmul.f32 %v17548_v28, %v462_v2  ;;  %v733_v7 = vmul.f32 %v17548_v28, %v687_v3  ;;  %14671 = vmatpush3.bf16.msra.mxu1 %v16133_v58 }
  0xf8   :  { %v14379_v8 = vpop.f32.mrf.mxu1  ;;  %v14396_v9 = vpop.f32.mrf.mxu0  ;;  %14716 = vmatprep.subr.bf16.mxu1 %v21483_v0 }
  0xf9   :  { %v13752_v11 = vpack.c.bf16 %v279_v4, %v279_v4  ;;  %v13759_v12 = vpack.c.bf16 %v520_v5, %v520_v5  ;;  %v511_v13 = vadd.f32 %v17553_v30, %v494_v6  ;;  %v750_v14 = vadd.f32 %v17553_v30, %v733_v7  ;;  %v16135_v7 = vld [vmem:[#allocation2 + $0x48] sm:$0xff]   ;;  %v16138_v8 = vld [vmem:[%s21465_s5 + $0x78] sm:$0xff]  }
  0xfa   :  { %v467_v16 = vpop.f32.mrf.mxu1  ;;  %v690_v17 = vpop.f32.mrf.mxu0  ;;  %14629 = vmatmul.mubr.msk.bf16.gmra.mxu1 %vm1936_vm6, %v16128_v10  ;;  %v16129_v18 = vld [vmem:[#allocation2 + $0x50] sm:$0xff]  }
  0xfb   :  { %329 = vst.msk [vmem:[#allocation2 + $0x5c] sm:$0xf] %vm57_vm3, %v13752_v11  ;;  %570 = vst.msk [vmem:[#allocation2 + $0x88] sm:$0xf] %vm57_vm3, %v13759_v12  ;;  %v521_v19 = vmax.f32 %v511_v13, 0.0  ;;  %v760_v20 = vmax.f32 %v750_v14, 0.0  ;;  %v495_v21 = vmul.f32 %v17548_v28, %v467_v16  ;;  %v734_v22 = vmul.f32 %v17548_v28, %v690_v17  ;;  %14632 = vmatprep.mubr.msk.bf16.mxu1 %vm16928_vm1, %v21483_v0 }
  0xfc   :  { %v14382_v23 = vpop.f32.mrf.mxu1  ;;  %v14397_v24 = vpop.f32.mrf.mxu0  ;;  %14613 = vmatmul.mubr.msk.bf16.gmra.mxu0 %vm1936_vm6, %v16129_v18  ;;  %v16130_v39 = vld [vmem:[#allocation2 + $0x50] sm:$0xff]  }
  0xfd   :  { %v13760_v25 = vpack.c.bf16 %v521_v19, %v521_v19  ;;  %v13765_v26 = vpack.c.bf16 %v760_v20, %v760_v20  ;;  %v512_v27 = vadd.f32 %v17553_v30, %v495_v21  ;;  %v751_v29 = vadd.f32 %v17553_v30, %v734_v22  ;;  %14616 = vmatprep.mubr.msk.bf16.mxu0 %vm16928_vm1, %v21483_v0  ;;  %v16146_v24 = vld [vmem:[%s21465_s5 + $0x70] sm:$0xff]  }
  0xfe   :  { %v470_v31 = vpop.f32.mrf.mxu1  ;;  %v695_v32 = vpop.f32.mrf.mxu0 }
  0xff   :  { %571 = vst.msk [vmem:[#allocation2 + $0x8c] sm:$0xf] %vm57_vm3, %v13760_v25  ;;  %810 = vst.msk [vmem:[#allocation2 + $0xb0] sm:$0xf] %vm57_vm3, %v13765_v26  ;;  %v522_v33 = vmax.f32 %v512_v27, 0.0  ;;  %v761_v34 = vmax.f32 %v751_v29, 0.0  ;;  %v496_v35 = vmul.f32 %v17548_v28, %v470_v31  ;;  %v735_v36 = vmul.f32 %v17548_v28, %v695_v32 }
 0x100   :  { %v14383_v37 = vpop.f32.mrf.mxu1  ;;  %v14400_v38 = vpop.f32.mrf.mxu0  ;;  %v16136_v31 = vld [vmem:[#allocation2 + $0x60] sm:$0xff]  }
 0x101   :  { %v13761_v40 = vpack.c.bf16 %v522_v33, %v522_v33  ;;  %v13766_v41 = vpack.c.bf16 %v761_v34, %v761_v34  ;;  %v513_v42 = vadd.f32 %v17553_v30, %v496_v35  ;;  %v752_v43 = vadd.f32 %v17553_v30, %v735_v36  ;;  %v16137_v38 = vld [vmem:[#allocation2 + $0x50] sm:$0xff]  }
 0x102   :  { %v475_v44 = vpop.f32.mrf.mxu1  ;;  %v698_v45 = vpop.f32.mrf.mxu0  ;;  %14633 = vmatmul.mubr.msk.bf16.gmra.mxu1 %vm1936_vm6, %v16130_v39  ;;  %v16131_v46 = vld [vmem:[#allocation2 + $0x58] sm:$0xff]  }
 0x103   :  { %572 = vst.msk [vmem:[#allocation2 + $0x90] sm:$0xf] %vm57_vm3, %v13761_v40  ;;  %811 = vst.msk [vmem:[#allocation2 + $0xb4] sm:$0xf] %vm57_vm3, %v13766_v41  ;;  %v523_v47 = vmax.f32 %v513_v42, 0.0  ;;  %v762_v48 = vmax.f32 %v752_v43, 0.0  ;;  %v497_v49 = vmul.f32 %v17548_v28, %v475_v44  ;;  %v736_v50 = vmul.f32 %v17548_v28, %v698_v45  ;;  %14636 = vmatprep.mubr.msk.bf16.mxu1 %vm16928_vm1, %v21483_v0 }
 0x104   :  { %v14386_v51 = vpop.f32.mrf.mxu1  ;;  %v14401_v52 = vpop.f32.mrf.mxu0  ;;  %14617 = vmatmul.mubr.msk.bf16.gmra.mxu0 %vm1936_vm6, %v16131_v46  ;;  %v16134_v2 = vld [vmem:[#allocation2 + $0x58] sm:$0xff]  }
 0x105   :  { %v13762_v53 = vpack.c.bf16 %v523_v47, %v523_v47  ;;  %v13767_v54 = vpack.c.bf16 %v762_v48, %v762_v48  ;;  %v514_v55 = vadd.f32 %v17553_v30, %v497_v49  ;;  %v753_v56 = vadd.f32 %v17553_v30, %v736_v50  ;;  %14648 = vmatprep.mubr.msk.bf16.mxu0 %vm16928_vm1, %v21483_v0 }
 0x106   :  { %v478_v57 = vpop.f32.mrf.mxu1  ;;  %v703_v58 = vpop.f32.mrf.mxu0 }
 0x107   :  { %573 = vst.msk [vmem:[#allocation2 + $0x94] sm:$0xf] %vm57_vm3, %v13762_v53  ;;  %812 = vst.msk [vmem:[#allocation2 + $0xb8] sm:$0xf] %vm57_vm3, %v13767_v54  ;;  %v524_v59 = vmax.f32 %v514_v55, 0.0  ;;  %v763_v60 = vmax.f32 %v753_v56, 0.0  ;;  %v498_v61 = vmul.f32 %v17548_v28, %v478_v57  ;;  %v737_v62 = vmul.f32 %v17548_v28, %v703_v58 }
 0x108   :  { %v14387_v63 = vpop.f32.mrf.mxu1  ;;  %v14404_v1 = vpop.f32.mrf.mxu0  ;;  %v16139_v53 = vld [vmem:[#allocation2 + $0x70] sm:$0xff]   ;;  %v16140_v58 = vld [vmem:[%s21465_s5 + $0x88] sm:$0xff]  }
 0x109   :  { %v13763_v3 = vpack.c.bf16 %v524_v59, %v524_v59  ;;  %v13768_v4 = vpack.c.bf16 %v763_v60, %v763_v60  ;;  %v515_v5 = vadd.f32 %v17553_v30, %v498_v61  ;;  %v754_v6 = vadd.f32 %v17553_v30, %v737_v62 }
 0x10a   :  { %v706_v9 = vpop.f32.mrf.mxu0  ;;  %v931_v10 = vpop.f32.mrf.mxu1  ;;  %14637 = vmatmul.mubr.msk.bf16.gmra.mxu1 %vm1936_vm6, %v16134_v2 }
 0x10b   :  { %574 = vst.msk [vmem:[#allocation2 + $0x98] sm:$0xf] %vm57_vm3, %v13763_v3  ;;  %813 = vst.msk [vmem:[#allocation2 + $0xbc] sm:$0xf] %vm57_vm3, %v13768_v4  ;;  %v525_v11 = vmax.f32 %v515_v5, 0.0  ;;  %v764_v12 = vmax.f32 %v754_v6, 0.0  ;;  %v738_v13 = vmul.f32 %v17548_v28, %v706_v9  ;;  %v977_v14 = vmul.f32 %v17548_v28, %v931_v10  ;;  %14640 = vmatprep.mubr.msk.bf16.mxu1 %vm16928_vm1, %v21483_v0 }
 0x10c   :  { %v14405_v16 = vpop.f32.mrf.mxu0  ;;  %v14422_v17 = vpop.f32.mrf.mxu1  ;;  %14649 = vmatmul.mubr.msk.bf16.vlgmr.msra.gmra.mxu0 %vm1936_vm6, %v16135_v7  ;;  %v16141_v4 = vld [vmem:[#allocation2 + $0x58] sm:$0xff]   ;;  %v16147_v9 = vld [vmem:[%s21465_s5 + $0x80] sm:$0xff]  }
 0x10d   :  { %v13764_v18 = vpack.c.bf16 %v525_v11, %v525_v11  ;;  %v13769_v19 = vpack.c.bf16 %v764_v12, %v764_v12  ;;  %v755_v20 = vadd.f32 %v17553_v30, %v738_v13  ;;  %v994_v21 = vadd.f32 %v17553_v30, %v977_v14  ;;  %14652 = vmatprep.mubr.msk.bf16.mxu0 %vm16928_vm1, %v21483_v0  ;;  %v16161_v12 = vld [vmem:[%s21470_s12 + $0x34] ss:$8 sps:$4 sm:$0xff]  }
 0x10e   :  { %v711_v22 = vpop.f32.mrf.mxu0  ;;  %v934_v23 = vpop.f32.mrf.mxu1  ;;  %14693 = vmatpush3.bf16.msra.mxu0 %v16138_v8 }
 0x10f   :  { %575 = vst.msk [vmem:[#allocation2 + $0x9c] sm:$0xf] %vm57_vm3, %v13764_v18  ;;  %814 = vst.msk [vmem:[#allocation2 + $0xc0] sm:$0xf] %vm57_vm3, %v13769_v19  ;;  %v765_v25 = vmax.f32 %v755_v20, 0.0  ;;  %v1004_v26 = vmax.f32 %v994_v21, 0.0  ;;  %v739_v27 = vmul.f32 %v17548_v28, %v711_v22  ;;  %v978_v29 = vmul.f32 %v17548_v28, %v934_v23  ;;  %14694 = vmatprep.subr.bf16.mxu0 %v21483_v0 }
 0x110   :  { %v14408_v32 = vpop.f32.mrf.mxu0  ;;  %v14423_v33 = vpop.f32.mrf.mxu1 }
 0x111   :  { %v13770_v34 = vpack.c.bf16 %v765_v25, %v765_v25  ;;  %v13775_v35 = vpack.c.bf16 %v1004_v26, %v1004_v26  ;;  %v756_v36 = vadd.f32 %v17553_v30, %v739_v27  ;;  %v995_v37 = vadd.f32 %v17553_v30, %v978_v29  ;;  %v16142_v26 = vld [vmem:[#allocation2 + $0x78] sm:$0xff]  }
 0x112   :  { %v714_v39 = vpop.f32.mrf.mxu0  ;;  %v939_v40 = vpop.f32.mrf.mxu1  ;;  %14641 = vmatmul.mubr.msk.bf16.gmra.mxu1 %vm1936_vm6, %v16136_v31  ;;  %14695 = vmatpush3.bf16.msra.mxu0 %v16146_v24 }
 0x113   :  { %815 = vst.msk [vmem:[#allocation2 + $0xc4] sm:$0xf] %vm57_vm3, %v13770_v34  ;;  %1054 = vst.msk [vmem:[#allocation2 + $0xe8] sm:$0xf] %vm57_vm3, %v13775_v35  ;;  %v766_v41 = vmax.f32 %v756_v36, 0.0  ;;  %v1005_v42 = vmax.f32 %v995_v37, 0.0  ;;  %v740_v43 = vmul.f32 %v17548_v28, %v714_v39  ;;  %v979_v44 = vmul.f32 %v17548_v28, %v939_v40  ;;  %14672 = vmatprep.mubr.msk.bf16.mxu1 %vm16928_vm1, %v21483_v0 }
 0x114   :  { %v14409_v45 = vpop.f32.mrf.mxu0  ;;  %v14426_v46 = vpop.f32.mrf.mxu1  ;;  %14653 = vmatmul.mubr.msk.bf16.gmra.mxu0 %vm1936_vm6, %v16137_v38  ;;  %v16143_v35 = vld [vmem:[#allocation2 + $0x60] sm:$0xff]  }
 0x115   :  { %v13771_v47 = vpack.c.bf16 %v766_v41, %v766_v41  ;;  %v13776_v48 = vpack.c.bf16 %v1005_v42, %v1005_v42  ;;  %v757_v49 = vadd.f32 %v17553_v30, %v740_v43  ;;  %v996_v50 = vadd.f32 %v17553_v30, %v979_v44  ;;  %14656 = vmatprep.mubr.msk.bf16.mxu0 %vm16928_vm1, %v21483_v0 }
 0x116   :  { %v719_v51 = vpop.f32.mrf.mxu0  ;;  %v942_v52 = vpop.f32.mrf.mxu1 }
 0x117   :  { %816 = vst.msk [vmem:[#allocation2 + $0xc8] sm:$0xf] %vm57_vm3, %v13771_v47  ;;  %1055 = vst.msk [vmem:[#allocation2 + $0xec] sm:$0xf] %vm57_vm3, %v13776_v48  ;;  %v767_v54 = vmax.f32 %v757_v49, 0.0  ;;  %v1006_v55 = vmax.f32 %v996_v50, 0.0  ;;  %v741_v56 = vmul.f32 %v17548_v28, %v719_v51  ;;  %v980_v57 = vmul.f32 %v17548_v28, %v942_v52 }
 0x118   :  { %v14412_v59 = vpop.f32.mrf.mxu0  ;;  %v14427_v60 = vpop.f32.mrf.mxu1 }
 0x119   :  { %v13772_v61 = vpack.c.bf16 %v767_v54, %v767_v54  ;;  %v13777_v62 = vpack.c.bf16 %v1006_v55, %v1006_v55  ;;  %v758_v63 = vadd.f32 %v17553_v30, %v741_v56  ;;  %v997_v1 = vadd.f32 %v17553_v30, %v980_v57  ;;  %v16144_v54 = vld [vmem:[#allocation2 + $0x80] sm:$0xff]   ;;  %v16145_v55 = vld [vmem:[#allocation2 + $0x68] sm:$0xff]  }
 0x11a   :  { %v722_v2 = vpop.f32.mrf.mxu0  ;;  %v947_v3 = vpop.f32.mrf.mxu1  ;;  %14673 = vmatmul.mubr.msk.bf16.vlgmr.msra.gmra.mxu1 %vm1936_vm6, %v16139_v53 }
 0x11b   :  { %817 = vst.msk [vmem:[#allocation2 + $0xcc] sm:$0xf] %vm57_vm3, %v13772_v61  ;;  %1056 = vst.msk [vmem:[#allocation2 + $0xf0] sm:$0xf] %vm57_vm3, %v13777_v62  ;;  %v768_v5 = vmax.f32 %v758_v63, 0.0  ;;  %v1007_v6 = vmax.f32 %v997_v1, 0.0  ;;  %v742_v7 = vmul.f32 %v17548_v28, %v722_v2  ;;  %v981_v8 = vmul.f32 %v17548_v28, %v947_v3  ;;  %14717 = vmatpush3.bf16.msra.mxu1 %v16140_v58 }
 0x11c   :  { %14676 = vmatprep.mubr.msk.bf16.mxu1 %vm16928_vm1, %v21483_v0  ;;  %v14413_v10 = vpop.f32.mrf.mxu0  ;;  %v14430_v11 = vpop.f32.mrf.mxu1  ;;  %14657 = vmatmul.mubr.msk.bf16.gmra.mxu0 %vm1936_vm6, %v16141_v4 }
 0x11d   :  { %14718 = vmatprep.subr.bf16.mxu1 %v21483_v0  ;;  %v13773_v13 = vpack.c.bf16 %v768_v5, %v768_v5  ;;  %v13778_v14 = vpack.c.bf16 %v1007_v6, %v1007_v6  ;;  %v759_v16 = vadd.f32 %v17553_v30, %v742_v7  ;;  %v998_v17 = vadd.f32 %v17553_v30, %v981_v8 }
 0x11e   :  { %14660 = vmatprep.mubr.msk.bf16.mxu0 %vm16928_vm1, %v21483_v0  ;;  %v950_v18 = vpop.f32.mrf.mxu1  ;;  %v1175_v19 = vpop.f32.mrf.mxu0 }
 0x11f   :  { %818 = vst.msk [vmem:[#allocation2 + $0xd0] sm:$0xf] %vm57_vm3, %v13773_v13  ;;  %1057 = vst.msk [vmem:[#allocation2 + $0xf4] sm:$0xf] %vm57_vm3, %v13778_v14  ;;  %v769_v20 = vmax.f32 %v759_v16, 0.0  ;;  %v1008_v21 = vmax.f32 %v998_v17, 0.0  ;;  %v982_v22 = vmul.f32 %v17548_v28, %v950_v18  ;;  %v1221_v23 = vmul.f32 %v17548_v28, %v1175_v19  ;;  %14719 = vmatpush3.bf16.msra.mxu1 %v16147_v9 }
 0x120   :  { %v14431_v24 = vpop.f32.mrf.mxu1  ;;  %v14448_v25 = vpop.f32.mrf.mxu0  ;;  %3363 = vmatprep.subr.bf16.mxu1 %v16161_v12  ;;  %v16148_v18 = vld [vmem:[#allocation2 + $0x88] sm:$0xff]  }
 0x121   :  { %v13774_v27 = vpack.c.bf16 %v769_v20, %v769_v20  ;;  %v13779_v29 = vpack.c.bf16 %v1008_v21, %v1008_v21  ;;  %v999_v31 = vadd.f32 %v17553_v30, %v982_v22  ;;  %v1238_v32 = vadd.f32 %v17553_v30, %v1221_v23  ;;  %v16149_v23 = vld [vmem:[#allocation2 + $0x78] sm:$0xff]  }
 0x122   :  { %v955_v33 = vpop.f32.mrf.mxu1  ;;  %v1178_v34 = vpop.f32.mrf.mxu0  ;;  %14677 = vmatmul.mubr.msk.bf16.gmra.mxu1 %vm1936_vm6, %v16142_v26 }
 0x123   :  { %819 = vst.msk [vmem:[#allocation2 + $0xd4] sm:$0xf] %vm57_vm3, %v13774_v27  ;;  %1058 = vst.msk [vmem:[#allocation2 + $0xf8] sm:$0xf] %vm57_vm3, %v13779_v29  ;;  %v1009_v36 = vmax.f32 %v999_v31, 0.0  ;;  %v1248_v37 = vmax.f32 %v1238_v32, 0.0  ;;  %v983_v38 = vmul.f32 %v17548_v28, %v955_v33  ;;  %v1222_v39 = vmul.f32 %v17548_v28, %v1178_v34  ;;  %14680 = vmatprep.mubr.msk.bf16.mxu1 %vm16928_vm1, %v21483_v0 }
 0x124   :  { %v14434_v40 = vpop.f32.mrf.mxu1  ;;  %v14449_v41 = vpop.f32.mrf.mxu0  ;;  %14661 = vmatmul.mubr.msk.bf16.gmra.mxu0 %vm1936_vm6, %v16143_v35  ;;  %v17786_v31 = vld [vmem:[%s21468_s3] ss:$0 sm:$0xff] }
 0x125   :  { %v13780_v42 = vpack.c.bf16 %v1009_v36, %v1009_v36  ;;  %v13785_v43 = vpack.c.bf16 %v1248_v37, %v1248_v37  ;;  %v1000_v44 = vadd.f32 %v17553_v30, %v983_v38  ;;  %v1239_v45 = vadd.f32 %v17553_v30, %v1222_v39  ;;  %14664 = vmatprep.mubr.msk.bf16.mxu0 %vm16928_vm1, %v21483_v0 }
 0x126   :  { %v958_v46 = vpop.f32.mrf.mxu1  ;;  %v1183_v47 = vpop.f32.mrf.mxu0 }
 0x127   :  { %1059 = vst.msk [vmem:[#allocation2 + $0xfc] sm:$0xf] %vm57_vm3, %v13780_v42  ;;  %1298 = vst.msk [vmem:[#allocation2 + $0x120] sm:$0xf] %vm57_vm3, %v13785_v43  ;;  %v1010_v48 = vmax.f32 %v1000_v44, 0.0  ;;  %v1249_v49 = vmax.f32 %v1239_v45, 0.0  ;;  %v984_v50 = vmul.f32 %v17548_v28, %v958_v46  ;;  %v1223_v51 = vmul.f32 %v17548_v28, %v1183_v47 }
 0x128   :  { %v14435_v52 = vpop.f32.mrf.mxu1  ;;  %v14452_v53 = vpop.f32.mrf.mxu0  ;;  %v16150_v44 = vld [vmem:[#allocation2 + $0x90] sm:$0xff]  }
 0x129   :  { %v13781_v56 = vpack.c.bf16 %v1010_v48, %v1010_v48  ;;  %v13786_v57 = vpack.c.bf16 %v1249_v49, %v1249_v49  ;;  %v1001_v58 = vadd.f32 %v17553_v30, %v984_v50  ;;  %v1240_v59 = vadd.f32 %v17553_v30, %v1223_v51  ;;  %v16151_v51 = vld [vmem:[#allocation2 + $0x80] sm:$0xff]  }
 0x12a   :  { %v963_v60 = vpop.f32.mrf.mxu1  ;;  %v1186_v61 = vpop.f32.mrf.mxu0  ;;  %14681 = vmatmul.mubr.msk.bf16.gmra.mxu1 %vm1936_vm6, %v16144_v54 }
 0x12b   :  { %1060 = vst.msk [vmem:[#allocation2 + $0x100] sm:$0xf] %vm57_vm3, %v13781_v56  ;;  %1299 = vst.msk [vmem:[#allocation2 + $0x124] sm:$0xf] %vm57_vm3, %v13786_v57  ;;  %v1011_v62 = vmax.f32 %v1001_v58, 0.0  ;;  %v1250_v63 = vmax.f32 %v1240_v59, 0.0  ;;  %v985_v1 = vmul.f32 %v17548_v28, %v963_v60  ;;  %v1224_v2 = vmul.f32 %v17548_v28, %v1186_v61  ;;  %14684 = vmatprep.mubr.msk.bf16.mxu1 %vm16928_vm1, %v21483_v0 }
 0x12c   :  { %v14438_v3 = vpop.f32.mrf.mxu1  ;;  %v14453_v4 = vpop.f32.mrf.mxu0  ;;  %14665 = vmatmul.mubr.msk.bf16.gmra.mxu0 %vm1936_vm6, %v16145_v55 }
 0x12d   :  { %v13782_v5 = vpack.c.bf16 %v1011_v62, %v1011_v62  ;;  %v13787_v6 = vpack.c.bf16 %v1250_v63, %v1250_v63  ;;  %v1002_v7 = vadd.f32 %v17553_v30, %v985_v1  ;;  %v1241_v8 = vadd.f32 %v17553_v30, %v1224_v2  ;;  %14696 = vmatprep.mubr.msk.bf16.mxu0 %vm16928_vm1, %v21483_v0  ;;  %v16159_v3 = vld [vmem:[%s21470_s12 + $0x30] ss:$8 sps:$4 sm:$0xff]  }
 0x12e   :  { %v966_v9 = vpop.f32.mrf.mxu1  ;;  %v1191_v10 = vpop.f32.mrf.mxu0 }
 0x12f   :  { %1061 = vst.msk [vmem:[#allocation2 + $0x104] sm:$0xf] %vm57_vm3, %v13782_v5  ;;  %1300 = vst.msk [vmem:[#allocation2 + $0x128] sm:$0xf] %vm57_vm3, %v13787_v6  ;;  %v1012_v11 = vmax.f32 %v1002_v7, 0.0  ;;  %v1251_v12 = vmax.f32 %v1241_v8, 0.0  ;;  %v986_v13 = vmul.f32 %v17548_v28, %v966_v9  ;;  %v1225_v14 = vmul.f32 %v17548_v28, %v1191_v10 }
 0x130   :  { %v14439_v16 = vpop.f32.mrf.mxu1  ;;  %v14456_v17 = vpop.f32.mrf.mxu0  ;;  %v16164_v8 = vld [vmem:[%s21470_s12 + $0x24] ss:$8 sps:$4 sm:$0xff]  }
 0x131   :  { %v13783_v19 = vpack.c.bf16 %v1012_v11, %v1012_v11  ;;  %v13788_v20 = vpack.c.bf16 %v1251_v12, %v1251_v12  ;;  %v1003_v21 = vadd.f32 %v17553_v30, %v986_v13  ;;  %v1242_v22 = vadd.f32 %v17553_v30, %v1225_v14  ;;  %v16152_v11 = vld [vmem:[#allocation2 + $0x80] sm:$0xff]  }
 0x132   :  { %v1194_v24 = vpop.f32.mrf.mxu0  ;;  %v1419_v25 = vpop.f32.mrf.mxu1  ;;  %14685 = vmatmul.mubr.msk.bf16.gmra.mxu1 %vm1936_vm6, %v16148_v18 }
 0x133   :  { %1062 = vst.msk [vmem:[#allocation2 + $0x108] sm:$0xf] %vm57_vm3, %v13783_v19  ;;  %1301 = vst.msk [vmem:[#allocation2 + $0x12c] sm:$0xf] %vm57_vm3, %v13788_v20  ;;  %v1013_v26 = vmax.f32 %v1003_v21, 0.0  ;;  %v1252_v27 = vmax.f32 %v1242_v22, 0.0  ;;  %v1226_v29 = vmul.f32 %v17548_v28, %v1194_v24  ;;  %v1465_v30 = vmul.f32 %v17786_v31, %v1419_v25  ;;  %14688 = vmatprep.mubr.msk.bf16.mxu1 %vm16928_vm1, %v21483_v0 }
 0x134   :  { %v14457_v32 = vpop.f32.mrf.mxu0  ;;  %v14474_v33 = vpop.f32.mrf.mxu1  ;;  %14697 = vmatmul.mubr.msk.bf16.vlgmr.msra.gmra.mxu0 %vm1936_vm6, %v16149_v23  ;;  %v17795_v28 = vld [vmem:[%s21469_s4] ss:$0 sm:$0xff]  ;;  %v16153_v19 = vld [vmem:[#allocation2 + $0x88] sm:$0xff]  }
 0x135   :  { %v13784_v34 = vpack.c.bf16 %v1013_v26, %v1013_v26  ;;  %v13789_v35 = vpack.c.bf16 %v1252_v27, %v1252_v27  ;;  %v1243_v36 = vadd.f32 %v17795_v28, %v1226_v29  ;;  %v1482_v37 = vadd.f32 %v17795_v28, %v1465_v30  ;;  %14700 = vmatprep.mubr.msk.bf16.mxu0 %vm16928_vm1, %v21483_v0  ;;  %v17835_v20 = vld [vmem:[%s21468_s3] ss:$0 sm:$0xff]  ;;  %v16168_v29 = vld [vmem:[%s21470_s12 + $0x14] ss:$8 sps:$4 sm:$0xff]  }
 0x136   :  { %v1199_v38 = vpop.f32.mrf.mxu0  ;;  %v1422_v39 = vpop.f32.mrf.mxu1  ;;  %v16162_v25 = vld [vmem:[%s21470_s12 + $0x20] ss:$8 sps:$4 sm:$0xff]  }
 0x137   :  { %1063 = vst.msk [vmem:[#allocation2 + $0x10c] sm:$0xf] %vm57_vm3, %v13784_v34  ;;  %1302 = vst.msk [vmem:[#allocation2 + $0x130] sm:$0xf] %vm57_vm3, %v13789_v35  ;;  %v1253_v40 = vmax.f32 %v1243_v36, 0.0  ;;  %v1492_v41 = vmax.f32 %v1482_v37, 0.0  ;;  %v1227_v42 = vmul.f32 %v17786_v31, %v1199_v38  ;;  %v1466_v43 = vmul.f32 %v17786_v31, %v1422_v39 }
 0x138   :  { %v14460_v45 = vpop.f32.mrf.mxu0  ;;  %v14475_v46 = vpop.f32.mrf.mxu1  ;;  %v17855_v35 = vld [vmem:[%s21469_s4] ss:$0 sm:$0xff] }
 0x139   :  { %v13790_v47 = vpack.c.bf16 %v1253_v40, %v1253_v40  ;;  %v13795_v48 = vpack.c.bf16 %v1492_v41, %v1492_v41  ;;  %v1244_v49 = vadd.f32 %v17795_v28, %v1227_v42  ;;  %v1483_v50 = vadd.f32 %v17795_v28, %v1466_v43  ;;  %v16166_v42 = vld [vmem:[%s21470_s12 + $0x10] ss:$8 sps:$4 sm:$0xff]   ;;  %v16154_v45 = vld [vmem:[#allocation2 + $0x88] sm:$0xff]  }
 0x13a   :  { %v1202_v52 = vpop.f32.mrf.mxu0  ;;  %v1427_v53 = vpop.f32.mrf.mxu1  ;;  %14689 = vmatmul.mubr.msk.bf16.gmra.mxu1 %vm1936_vm6, %v16150_v44  ;;  %v16171_v46 = vld [vmem:[%s21470_s12 + $0x4] ss:$8 sps:$4 sm:$0xff]  }
 0x13b   :  { %1303 = vst.msk [vmem:[#allocation2 + $0x134] sm:$0xf] %vm57_vm3, %v13790_v47  ;;  %1542 = vst.msk [vmem:[#allocation2 + $0x158] sm:$0xf] %vm57_vm3, %v13795_v48  ;;  %v1254_v54 = vmax.f32 %v1244_v49, 0.0  ;;  %v1493_v55 = vmax.f32 %v1483_v50, 0.0  ;;  %v1228_v56 = vmul.f32 %v17786_v31, %v1202_v52  ;;  %v1467_v57 = vmul.f32 %v17786_v31, %v1427_v53  ;;  %14720 = vmatprep.mubr.msk.bf16.mxu1 %vm16928_vm1, %v21483_v0 }
 0x13c   :  { %v14461_v58 = vpop.f32.mrf.mxu0  ;;  %v14478_v59 = vpop.f32.mrf.mxu1  ;;  %14701 = vmatmul.mubr.msk.bf16.gmra.mxu0 %vm1936_vm6, %v16151_v51  ;;  %v16155_v53 = vld [vmem:[#allocation2 + $0x90] sm:$0xff]  }
 0x13d   :  { %v13791_v60 = vpack.c.bf16 %v1254_v54, %v1254_v54  ;;  %v13796_v61 = vpack.c.bf16 %v1493_v55, %v1493_v55  ;;  %v1245_v62 = vadd.f32 %v17795_v28, %v1228_v56  ;;  %v1484_v63 = vadd.f32 %v17795_v28, %v1467_v57  ;;  %14704 = vmatprep.mubr.msk.bf16.mxu0 %vm16928_vm1, %v21483_v0  ;;  %v16169_v58 = vld [vmem:[%s21470_s12] ss:$8 sps:$4 sm:$0xff]  }
 0x13e   :  { %v1207_v1 = vpop.f32.mrf.mxu0  ;;  %v1430_v2 = vpop.f32.mrf.mxu1 }
 0x13f   :  { %1304 = vst.msk [vmem:[#allocation2 + $0x138] sm:$0xf] %vm57_vm3, %v13791_v60  ;;  %1543 = vst.msk [vmem:[#allocation2 + $0x15c] sm:$0xf] %vm57_vm3, %v13796_v61  ;;  %v1255_v4 = vmax.f32 %v1245_v62, 0.0  ;;  %v1494_v5 = vmax.f32 %v1484_v63, 0.0  ;;  %v1229_v6 = vmul.f32 %v17786_v31, %v1207_v1  ;;  %v1468_v7 = vmul.f32 %v17786_v31, %v1430_v2 }
 0x140   :  { %v14464_v9 = vpop.f32.mrf.mxu0  ;;  %v14479_v10 = vpop.f32.mrf.mxu1 }
 0x141   :  { %v13792_v12 = vpack.c.bf16 %v1255_v4, %v1255_v4  ;;  %v13797_v13 = vpack.c.bf16 %v1494_v5, %v1494_v5  ;;  %v1246_v14 = vadd.f32 %v17795_v28, %v1229_v6  ;;  %v1485_v16 = vadd.f32 %v17795_v28, %v1468_v7  ;;  %v16156_v10 = vld [vmem:[#allocation2 + $0x90] sm:$0xff]  }
 0x142   :  { %v1210_v17 = vpop.f32.mrf.mxu0  ;;  %v1435_v18 = vpop.f32.mrf.mxu1  ;;  %14721 = vmatmul.mubr.msk.bf16.vlgmr.msra.gmra.mxu1 %vm1936_vm6, %v16152_v11 }
 0x143   :  { %1305 = vst.msk [vmem:[#allocation2 + $0x13c] sm:$0xf] %vm57_vm3, %v13792_v12  ;;  %1544 = vst.msk [vmem:[#allocation2 + $0x160] sm:$0xf] %vm57_vm3, %v13797_v13  ;;  %v1256_v21 = vmax.f32 %v1246_v14, 0.0  ;;  %v1495_v22 = vmax.f32 %v1485_v16, 0.0  ;;  %v1230_v23 = vmul.f32 %v17786_v31, %v1210_v17  ;;  %v1469_v24 = vmul.f32 %v17786_v31, %v1435_v18  ;;  %14724 = vmatprep.mubr.msk.bf16.mxu1 %vm16928_vm1, %v21483_v0 }
 0x144   :  { %3364 = vmatpush1.bf16.msra.mxu1 %v16159_v3  ;;  %v14465_v26 = vpop.f32.mrf.mxu0  ;;  %v14482_v27 = vpop.f32.mrf.mxu1  ;;  %14705 = vmatmul.mubr.msk.bf16.gmra.mxu0 %vm1936_vm6, %v16153_v19  ;;  %v16157_v18 = vld [vmem:[#allocation2 + $0x98] sm:$0xff]  }
 0x145   :  { %3365 = vmatprep.subr.bf16.mxu1 %v16164_v8  ;;  %v13793_v30 = vpack.c.bf16 %v1256_v21, %v1256_v21  ;;  %v13798_v32 = vpack.c.bf16 %v1495_v22, %v1495_v22  ;;  %v1247_v33 = vadd.f32 %v17795_v28, %v1230_v23  ;;  %v1486_v34 = vadd.f32 %v17795_v28, %v1469_v24 }
 0x146   :  { %14708 = vmatprep.mubr.msk.bf16.mxu0 %vm16928_vm1, %v21483_v0  ;;  %v1438_v36 = vpop.f32.mrf.mxu1  ;;  %v1663_v37 = vpop.f32.mrf.mxu0 }
 0x147   :  { %1306 = vst.msk [vmem:[#allocation2 + $0x140] sm:$0xf] %vm57_vm3, %v13793_v30  ;;  %1545 = vst.msk [vmem:[#allocation2 + $0x164] sm:$0xf] %vm57_vm3, %v13798_v32  ;;  %v1257_v38 = vmax.f32 %v1247_v33, 0.0  ;;  %v1496_v39 = vmax.f32 %v1486_v34, 0.0  ;;  %v1470_v40 = vmul.f32 %v17786_v31, %v1438_v36  ;;  %v1709_v41 = vmul.f32 %v17835_v20, %v1663_v37 }
 0x148   :  { %3366 = vmatpush1.bf16.msra.mxu1 %v16162_v25  ;;  %v14483_v43 = vpop.f32.mrf.mxu1  ;;  %v14500_v44 = vpop.f32.mrf.mxu0 }
 0x149   :  { %3367 = vmatprep.subr.bf16.mxu1 %v16168_v29  ;;  %v13794_v47 = vpack.c.bf16 %v1257_v38, %v1257_v38  ;;  %v13799_v48 = vpack.c.bf16 %v1496_v39, %v1496_v39  ;;  %v1487_v49 = vadd.f32 %v17795_v28, %v1470_v40  ;;  %v1726_v50 = vadd.f32 %v17855_v35, %v1709_v41  ;;  %v16158_v41 = vld [vmem:[#allocation2 + $0x98] sm:$0xff]  }
 0x14a   :  { %v1443_v51 = vpop.f32.mrf.mxu1  ;;  %v1666_v52 = vpop.f32.mrf.mxu0  ;;  %14725 = vmatmul.mubr.msk.bf16.gmra.mxu1 %vm1936_vm6, %v16154_v45 }
 0x14b   :  { %1307 = vst.msk [vmem:[#allocation2 + $0x144] sm:$0xf] %vm57_vm3, %v13794_v47  ;;  %1546 = vst.msk [vmem:[#allocation2 + $0x168] sm:$0xf] %vm57_vm3, %v13799_v48  ;;  %v1497_v54 = vmax.f32 %v1487_v49, 0.0  ;;  %v1736_v55 = vmax.f32 %v1726_v50, 0.0  ;;  %v1471_v56 = vmul.f32 %v17786_v31, %v1443_v51  ;;  %v1710_v57 = vmul.f32 %v17835_v20, %v1666_v52  ;;  %14728 = vmatprep.mubr.msk.bf16.mxu1 %vm16928_vm1, %v21483_v0 }
 0x14c   :  { %3368 = vmatpush1.bf16.msra.mxu1 %v16166_v42  ;;  %v14486_v59 = vpop.f32.mrf.mxu1  ;;  %v14501_v60 = vpop.f32.mrf.mxu0  ;;  %14709 = vmatmul.mubr.msk.bf16.gmra.mxu0 %vm1936_vm6, %v16155_v53  ;;  %v12632_v50 = vld [vmem:[%s21471_s9] ss:$0 sm:$0xff] }
 0x14d   :  { %3369 = vmatprep.subr.bf16.mxu1 %v16171_v46  ;;  %v13800_v61 = vpack.c.bf16 %v1497_v54, %v1497_v54  ;;  %v13805_v62 = vpack.c.bf16 %v1736_v55, %v1736_v55  ;;  %v1488_v63 = vadd.f32 %v17795_v28, %v1471_v56  ;;  %v1727_v1 = vadd.f32 %v17855_v35, %v1710_v57  ;;  %v12633_v60 = vld [vmem:[%s21472_s10] ss:$0 sm:$0xff] }
 0x14e   :  { %14712 = vmatprep.mubr.msk.bf16.mxu0 %vm16928_vm1, %v21483_v0  ;;  %v1446_v2 = vpop.f32.mrf.mxu1  ;;  %v1671_v3 = vpop.f32.mrf.mxu0 }
 0x14f   :  { %1547 = vst.msk [vmem:[#allocation2 + $0x16c] sm:$0xf] %vm57_vm3, %v13800_v61  ;;  %1786 = vst.msk [vmem:[#allocation2 + $0x190] sm:$0xf] %vm57_vm3, %v13805_v62  ;;  %v1498_v4 = vmax.f32 %v1488_v63, 0.0  ;;  %v1737_v5 = vmax.f32 %v1727_v1, 0.0  ;;  %v1472_v6 = vmul.f32 %v17786_v31, %v1446_v2  ;;  %v1711_v7 = vmul.f32 %v17835_v20, %v1671_v3 }
 0x150   :  { %3370 = vmatpush1.bf16.msra.mxu1 %v16169_v58  ;;  %v14487_v8 = vpop.f32.mrf.mxu1  ;;  %v14504_v9 = vpop.f32.mrf.mxu0  ;;  %v16165_v58 = vld [vmem:[#allocation2 + $0xa0] sm:$0xff]  }
 0x151   :  { %v13801_v11 = vpack.c.bf16 %v1498_v4, %v1498_v4  ;;  %v13806_v12 = vpack.c.bf16 %v1737_v5, %v1737_v5  ;;  %v1489_v13 = vadd.f32 %v17795_v28, %v1472_v6  ;;  %v1728_v14 = vadd.f32 %v17855_v35, %v1711_v7 }
 0x152   :  { %v1451_v16 = vpop.f32.mrf.mxu1  ;;  %v1674_v17 = vpop.f32.mrf.mxu0  ;;  %14729 = vmatmul.mubr.msk.bf16.gmra.mxu1 %vm1936_vm6, %v16156_v10 }
 0x153   :  { %1548 = vst.msk [vmem:[#allocation2 + $0x170] sm:$0xf] %vm57_vm3, %v13801_v11  ;;  %1787 = vst.msk [vmem:[#allocation2 + $0x194] sm:$0xf] %vm57_vm3, %v13806_v12  ;;  %v1499_v19 = vmax.f32 %v1489_v13, 0.0  ;;  %v1738_v21 = vmax.f32 %v1728_v14, 0.0  ;;  %v1473_v22 = vmul.f32 %v17786_v31, %v1451_v16  ;;  %v1712_v23 = vmul.f32 %v17835_v20, %v1674_v17  ;;  %14732 = vmatprep.mubr.msk.bf16.mxu1 %vm16928_vm1, %v21483_v0 }
 0x154   :  { %v14490_v24 = vpop.f32.mrf.mxu1  ;;  %v14505_v25 = vpop.f32.mrf.mxu0  ;;  %14713 = vmatmul.mubr.msk.bf16.gmra.mxu0 %vm1936_vm6, %v16157_v18 }
 0x155   :  { %v13802_v26 = vpack.c.bf16 %v1499_v19, %v1499_v19  ;;  %v13807_v27 = vpack.c.bf16 %v1738_v21, %v1738_v21  ;;  %v1490_v29 = vadd.f32 %v17795_v28, %v1473_v22  ;;  %v1729_v30 = vadd.f32 %v17855_v35, %v1712_v23  ;;  %3301 = vmatprep.mubr.bf16.mxu0 %v21485_v15 }
 0x156   :  { %v1454_v32 = vpop.f32.mrf.mxu1  ;;  %v1679_v33 = vpop.f32.mrf.mxu0 }
 0x157   :  { %1549 = vst.msk [vmem:[#allocation2 + $0x174] sm:$0xf] %vm57_vm3, %v13802_v26  ;;  %1788 = vst.msk [vmem:[#allocation2 + $0x198] sm:$0xf] %vm57_vm3, %v13807_v27  ;;  %v1500_v34 = vmax.f32 %v1490_v29, 0.0  ;;  %v1739_v36 = vmax.f32 %v1729_v30, 0.0  ;;  %v1474_v37 = vmul.f32 %v17786_v31, %v1454_v32  ;;  %v1713_v38 = vmul.f32 %v17835_v20, %v1679_v33 }
 0x158   :  { %v14491_v39 = vpop.f32.mrf.mxu1  ;;  %v14508_v40 = vpop.f32.mrf.mxu0  ;;  %v16172_v30 = vld [vmem:[%s21473_s11 + $0x30] ss:$8 sps:$4 sm:$0xff]  }
 0x159   :  { %v13803_v42 = vpack.c.bf16 %v1500_v34, %v1500_v34  ;;  %v13808_v43 = vpack.c.bf16 %v1739_v36, %v1739_v36  ;;  %v1491_v44 = vadd.f32 %v17795_v28, %v1474_v37  ;;  %v1730_v45 = vadd.f32 %v17855_v35, %v1713_v38  ;;  %v16174_v34 = vld [vmem:[%s21473_s11 + $0x34] ss:$8 sps:$4 sm:$0xff]  }
 0x15a   :  { %v1682_v46 = vpop.f32.mrf.mxu0  ;;  %v1842_v47 = vpop.f32.mrf.mxu1  ;;  %14733 = vmatmul.mubr.msk.bf16.gmra.mxu1 %vm1936_vm6, %v16158_v41  ;;  %3277 = vmatprep.subr.bf16.mxu0 %v16174_v34 }
 0x15b   :  { %1550 = vst.msk [vmem:[#allocation2 + $0x178] sm:$0xf] %vm57_vm3, %v13803_v42  ;;  %1789 = vst.msk [vmem:[#allocation2 + $0x19c] sm:$0xf] %vm57_vm3, %v13808_v43  ;;  %v1501_v31 = vmax.f32 %v1491_v44, 0.0  ;;  %v1740_v48 = vmax.f32 %v1730_v45, 0.0  ;;  %v1714_v49 = vmul.f32 %v17835_v20, %v1682_v46  ;;  %14736 = vmatprep.mubr.msk.bf16.mxu1 %vm16928_vm1, %v21483_v0  ;;  %v1856_v55 = vmul.f32 %v12632_v50, %v1842_v47 }
 0x15c   :  { %v14509_v28 = vpop.f32.mrf.mxu0  ;;  %v14522_v51 = vpop.f32.mrf.mxu1  ;;  %3278 = vmatpush1.bf16.msra.mxu0 %v16172_v30 }
 0x15d   :  { %v13804_v52 = vpack.c.bf16 %v1501_v31, %v1501_v31  ;;  %v13809_v53 = vpack.c.bf16 %v1740_v48, %v1740_v48  ;;  %v1731_v54 = vadd.f32 %v17855_v35, %v1714_v49  ;;  %v1865_v5 = vadd.f32 %v12633_v60, %v1856_v55  ;;  %v16177_v48 = vld [vmem:[%s21473_s11 + $0x24] ss:$8 sps:$4 sm:$0xff]  }
 0x15e   :  { %v1687_v56 = vpop.f32.mrf.mxu0  ;;  %v1845_v57 = vpop.f32.mrf.mxu1  ;;  %3279 = vmatprep.subr.bf16.mxu0 %v16177_v48 }
 0x15f   :  { %1551 = vst.msk [vmem:[#allocation2 + $0x17c] sm:$0xf] %vm57_vm3, %v13804_v52  ;;  %1790 = vst.msk [vmem:[#allocation2 + $0x1a0] sm:$0xf] %vm57_vm3, %v13809_v53  ;;  %v1741_v59 = vmax.f32 %v1731_v54, 0.0  ;;  %v1715_v61 = vmul.f32 %v17835_v20, %v1687_v56  ;;  %v1857_v62 = vmul.f32 %v12632_v50, %v1845_v57  ;;  %v1867_v16 = vmax.f32 %v1865_v5, 0.0 }
 0x160   :  { %v14512_v63 = vpop.f32.mrf.mxu0  ;;  %v14523_v1 = vpop.f32.mrf.mxu1 }
 0x161   :  { %v13810_v2 = vpack.c.bf16 %v1741_v59, %v1741_v59  ;;  %v1732_v3 = vadd.f32 %v17855_v35, %v1715_v61  ;;  %v1866_v4 = vadd.f32 %v12633_v60, %v1857_v62  ;;  %v16178_v60 = vld [vmem:[%s21473_s11 + $0x10] ss:$8 sps:$4 sm:$0xff]   ;;  %v16180_v61 = vld [vmem:[%s21473_s11 + $0x14] ss:$8 sps:$4 sm:$0xff]  }
 0x162   :  { %v1690_v6 = vpop.f32.mrf.mxu0  ;;  %v1986_v7 = vpop.f32.mrf.mxu1  ;;  %14737 = vmatmul.mubr.msk.bf16.gmra.mxu1 %vm1936_vm6, %v16165_v58 }
 0x163   :  { %1791 = vst.msk [vmem:[#allocation2 + $0x1a4] sm:$0xf] %vm57_vm3, %v13810_v2  ;;  %v1742_v8 = vmax.f32 %v1732_v3, 0.0  ;;  %v1716_v9 = vmul.f32 %v17835_v20, %v1690_v6  ;;  %3387 = vmatprep.mubr.bf16.mxu1 %v21485_v15  ;;  %v1868_v10 = vmax.f32 %v1866_v4, 0.0 }
 0x164   :  { %v14513_v11 = vpop.f32.mrf.mxu0  ;;  %v14530_v12 = vpop.f32.mrf.mxu1 }
 0x165   :  { %v13811_v13 = vpack.c.bf16 %v1742_v8, %v1742_v8  ;;  %v1733_v14 = vadd.f32 %v17855_v35, %v1716_v9  ;;  %v1869_v22 = vpack.c.bf16 %v1868_v10, %v1867_v16 }
 0x166   :  { %v1695_v17 = vpop.f32.mrf.mxu0  ;;  %v1989_v18 = vpop.f32.mrf.mxu1 }
 0x167   :  { %1792 = vst.msk [vmem:[#allocation2 + $0x1a8] sm:$0xf] %vm57_vm3, %v13811_v13  ;;  %v1743_v19 = vmax.f32 %v1733_v14, 0.0  ;;  %v1717_v21 = vmul.f32 %v17835_v20, %v1695_v17 }
 0x168   :  { %v14516_v23 = vpop.f32.mrf.mxu0  ;;  %v14531_v24 = vpop.f32.mrf.mxu1 }
 0x169   :  { %v13812_v25 = vpack.c.bf16 %v1743_v19, %v1743_v19  ;;  %v1734_v26 = vadd.f32 %v17855_v35, %v1717_v21  ;;  %v16181_v23 = vld [vmem:[%s21473_s11] ss:$8 sps:$4 sm:$0xff]  }
 0x16a   :  { %v1698_v27 = vpop.f32.mrf.mxu0  ;;  %v1994_v29 = vpop.f32.mrf.mxu1  ;;  %12789 = vmatmul.mubr.msk.bf16.vlgmr.msra.gmra.mxu1 %vm3265_vm7, %v1869_v22  ;;  %v16183_v22 = vld [vmem:[%s21473_s11 + $0x4] ss:$8 sps:$4 sm:$0xff]  }
 0x16b   :  { %1793 = vst.msk [vmem:[#allocation2 + $0x1ac] sm:$0xf] %vm57_vm3, %v13812_v25  ;;  %v1744_v32 = vmax.f32 %v1734_v26, 0.0  ;;  %v1718_v33 = vmul.f32 %v17835_v20, %v1698_v27  ;;  %3581 = vmatprep.mubr.bf16.mxu1 %v21485_v15 }
 0x16c   :  { %v14517_v36 = vpop.f32.mrf.mxu0  ;;  %v14534_v37 = vpop.f32.mrf.mxu1 }
 0x16d   :  { %v13813_v38 = vpack.c.bf16 %v1744_v32, %v1744_v32  ;;  %v1735_v39 = vadd.f32 %v17855_v35, %v1718_v33  ;;  %v16175_v35 = vld [vmem:[%s21473_s11 + $0x20] ss:$8 sps:$4 sm:$0xff]   ;;  %v16186_v32 = vld [vmem:[%s21473_s11 + $0x74] ss:$8 sps:$4 sm:$0xff]   ;;  %v16187_v37 = vld [vmem:[%s21473_s11 + $0xb0] ss:$8 sps:$4 sm:$0xff]  }
 0x16e   :  { %v1997_v40 = vpop.f32.mrf.mxu1  ;;  %v2079_v41 = vpop.f32.mrf.mxu0  ;;  %3280 = vmatpush1.bf16.msra.mxu0 %v16175_v35  ;;  %v16189_v33 = vld [vmem:[%s21473_s11 + $0xb4] ss:$8 sps:$4 sm:$0xff]  }
 0x16f   :  { %1794 = vst.msk [vmem:[#allocation2 + $0x1b0] sm:$0xf] %vm57_vm3, %v13813_v38  ;;  %v1745_v42 = vmax.f32 %v1735_v39, 0.0  ;;  %v2080_v43 = vadd.f32 %v2079_v41, %v1986_v7  ;;  %3281 = vmatprep.subr.bf16.mxu0 %v16180_v61  ;;  %3557 = vmatprep.subr.bf16.mxu1 %v16189_v33  ;;  %v16201_v35 = vld [vmem:[%s21473_s11 + $0x94] ss:$8 sps:$4 sm:$0xff]  }
 0x170   :  { %v14535_v20 = vpop.f32.mrf.mxu1  ;;  %v14554_v44 = vpop.f32.mrf.mxu0  ;;  %3558 = vmatpush1.bf16.msra.mxu1 %v16187_v37 }
 0x171   :  { %v13814_v45 = vpack.c.bf16 %v1745_v42, %v1745_v42  ;;  %v16195_v42 = vld [vmem:[%s21473_s11 + $0xa4] ss:$8 sps:$4 sm:$0xff]   ;;  %v16193_v44 = vld [vmem:[%s21473_s11 + $0xa0] ss:$8 sps:$4 sm:$0xff]  }
 0x172   :  { %v2002_v46 = vpop.f32.mrf.mxu1  ;;  %v2082_v47 = vpop.f32.mrf.mxu0  ;;  %3282 = vmatpush1.bf16.msra.mxu0 %v16178_v60  ;;  %3559 = vmatprep.subr.bf16.mxu1 %v16195_v42 }
 0x173   :  { %1795 = vst.msk [vmem:[#allocation2 + $0x1b4] sm:$0xf] %vm57_vm3, %v13814_v45  ;;  %v2083_v31 = vadd.f32 %v2082_v47, %v1989_v18  ;;  %3283 = vmatprep.subr.bf16.mxu0 %v16183_v22 }
 0x174   :  { %v14538_v49 = vpop.f32.mrf.mxu1  ;;  %v14555_v50 = vpop.f32.mrf.mxu0  ;;  %3560 = vmatpush1.bf16.msra.mxu1 %v16193_v44 }
 0x175   :  { %v16199_v50 = vld [vmem:[%s21473_s11 + $0x90] ss:$8 sps:$4 sm:$0xff]   ;;  %3561 = vmatprep.subr.bf16.mxu1 %v16201_v35 }
 0x176   :  { %v2005_v28 = vpop.f32.mrf.mxu1  ;;  %v2087_v51 = vpop.f32.mrf.mxu0  ;;  %3284 = vmatpush1.bf16.msra.mxu0 %v16181_v23 }
 0x177   :  { %v2088_v52 = vadd.f32 %v2087_v51, %v1994_v29  ;;  %3458 = vmatprep.subr.bf16.mxu0 %v16186_v32 }
 0x178   :  { %v14539_v53 = vpop.f32.mrf.mxu1  ;;  %v14558_v54 = vpop.f32.mrf.mxu0  ;;  %3562 = vmatpush1.bf16.msra.mxu1 %v16199_v50 }
 0x179   :  { %v16207_v54 = vld [vmem:[%s21473_s11 + $0x84] ss:$8 sps:$4 sm:$0xff]  }
 0x17a   :  { %v2010_v55 = vpop.f32.mrf.mxu1  ;;  %v2090_v56 = vpop.f32.mrf.mxu0  ;;  %3563 = vmatprep.subr.bf16.mxu1 %v16207_v54 }
 0x17b   :  { %v2091_v57 = vadd.f32 %v2090_v56, %v1997_v40  ;;  %v16205_v56 = vld [vmem:[%s21473_s11 + $0x80] ss:$8 sps:$4 sm:$0xff]  }
 0x17c   :  { %v14542_v58 = vpop.f32.mrf.mxu1  ;;  %v14559_v59 = vpop.f32.mrf.mxu0  ;;  %3564 = vmatpush1.bf16.msra.mxu1 %v16205_v56 }
 0x17d   :  { %v16213_v59 = vld [vmem:[%s21473_s11 + $0x134] ss:$8 sps:$4 sm:$0xff]  }
 0x17e   :  { %v2013_v62 = vpop.f32.mrf.mxu1  ;;  %v2095_v63 = vpop.f32.mrf.mxu0  ;;  %3755 = vmatprep.subr.bf16.mxu1 %v16213_v59 }
 0x17f   :  { %v2096_v1 = vadd.f32 %v2095_v63, %v2002_v46 }
 0x180   :  { %v14543_v2 = vpop.f32.mrf.mxu1  ;;  %v14562_v3 = vpop.f32.mrf.mxu0 }
 0x182   :  { %v2018_v4 = vpop.f32.mrf.mxu1  ;;  %v2098_v5 = vpop.f32.mrf.mxu0 }
 0x183   :  { %v2099_v6 = vadd.f32 %v2098_v5, %v2005_v28 }
 0x184   :  { %v14546_v7 = vpop.f32.mrf.mxu1  ;;  %v14563_v8 = vpop.f32.mrf.mxu0 }
 0x186   :  { %v2021_v9 = vpop.f32.mrf.mxu1  ;;  %v2103_v10 = vpop.f32.mrf.mxu0 }
 0x187   :  { %v2104_v11 = vadd.f32 %v2103_v10, %v2010_v55 }
 0x188   :  { %v14547_v12 = vpop.f32.mrf.mxu1  ;;  %v14566_v13 = vpop.f32.mrf.mxu0 }
 0x18a   :  { %v2106_v14 = vpop.f32.mrf.mxu0  ;;  %v2219_v16 = vpop.f32.mrf.mxu1 }
 0x18b   :  { %v2107_v17 = vadd.f32 %v2106_v14, %v2013_v62  ;;  %v2258_v18 = vadd.f32 %v2219_v16, %v2080_v43 }
 0x18c   :  { %v14567_v19 = vpop.f32.mrf.mxu0  ;;  %v14578_v21 = vpop.f32.mrf.mxu1 }
 0x18e   :  { %v2111_v24 = vpop.f32.mrf.mxu0  ;;  %v2222_v25 = vpop.f32.mrf.mxu1 }
 0x18f   :  { %v2112_v26 = vadd.f32 %v2111_v24, %v2018_v4  ;;  %v2259_v27 = vadd.f32 %v2222_v25, %v2083_v31 }
 0x190   :  { %v14570_v29 = vpop.f32.mrf.mxu0  ;;  %v14579_v30 = vpop.f32.mrf.mxu1 }
 0x192   :  { %v2114_v34 = vpop.f32.mrf.mxu0  ;;  %v2227_v36 = vpop.f32.mrf.mxu1 }
 0x193   :  { %v2115_v38 = vadd.f32 %v2114_v34, %v2021_v9  ;;  %v2260_v39 = vadd.f32 %v2227_v36, %v2088_v52 }
 0x194   :  { %v14571_v40 = vpop.f32.mrf.mxu0  ;;  %v14582_v41 = vpop.f32.mrf.mxu1 }
 0x196   :  { %v2230_v43 = vpop.f32.mrf.mxu1  ;;  %v2369_v20 = vpop.f32.mrf.mxu0 }
 0x197   :  { %v2261_v45 = vadd.f32 %v2230_v43, %v2091_v57  ;;  %v2408_v46 = vadd.f32 %v2369_v20, %v2258_v18 }
 0x198   :  { %v14583_v47 = vpop.f32.mrf.mxu1  ;;  %v14602_v31 = vpop.f32.mrf.mxu0 }
 0x19a   :  { %v2235_v48 = vpop.f32.mrf.mxu1  ;;  %v2372_v49 = vpop.f32.mrf.mxu0 }
 0x19b   :  { %v2262_v28 = vadd.f32 %v2235_v48, %v2096_v1  ;;  %v2409_v51 = vadd.f32 %v2372_v49, %v2259_v27 }
 0x19c   :  { %v14586_v52 = vpop.f32.mrf.mxu1  ;;  %v14603_v53 = vpop.f32.mrf.mxu0 }
 0x19e   :  { %v2238_v55 = vpop.f32.mrf.mxu1 }
 0x19f   :  { %v2263_v57 = vadd.f32 %v2238_v55, %v2099_v6 }
 0x1a0   :  { %v14587_v58 = vpop.f32.mrf.mxu1 }
 0x1a2   :  { %v2243_v60 = vpop.f32.mrf.mxu1 }
 0x1a3   :  { %v2264_v61 = vadd.f32 %v2243_v60, %v2104_v11 }
 0x1a4   :  { %v14590_v62 = vpop.f32.mrf.mxu1 }
 0x1a6   :  { %v2246_v63 = vpop.f32.mrf.mxu1 }
 0x1a7   :  { %v2265_v1 = vadd.f32 %v2246_v63, %v2107_v17 }
 0x1a8   :  { %v14591_v2 = vpop.f32.mrf.mxu1 }
 0x1aa   :  { %v2251_v3 = vpop.f32.mrf.mxu1 }
 0x1ab   :  { %v2266_v4 = vadd.f32 %v2251_v3, %v2112_v26 }
 0x1ac   :  { %v14594_v5 = vpop.f32.mrf.mxu1  ;;  %v2377_v7 = vpop.f32.mrf.mxu0 }
 0x1ad   :  { %v2410_v8 = vadd.f32 %v2377_v7, %v2260_v39 }
 0x1ae   :  { %v2254_v6 = vpop.f32.mrf.mxu1  ;;  %v14606_v9 = vpop.f32.mrf.mxu0 }
 0x1af   :  { %v2267_v10 = vadd.f32 %v2254_v6, %v2115_v38 }
 0x1b0   :  { %v14595_v12 = vpop.f32.mrf.mxu1  ;;  %v2380_v13 = vpop.f32.mrf.mxu0 }
 0x1b1   :  { %v2411_v14 = vadd.f32 %v2380_v13, %v2261_v45 }
 0x1b2   :  { %v2519_v16 = vpop.f32.mrf.mxu1  ;;  %v14607_v18 = vpop.f32.mrf.mxu0 }
 0x1b3   :  { %v17995_v19 = vadd.f32 %v2519_v16, %v2408_v46 }
 0x1b4   :  { %v14626_v11 = vpop.f32.mrf.mxu1  ;;  %v2385_v21 = vpop.f32.mrf.mxu0 }
 0x1b5   :  { %v2412_v22 = vadd.f32 %v2385_v21, %v2262_v28 }
 0x1b6   :  { %v2522_v17 = vpop.f32.mrf.mxu1  ;;  %v14610_v23 = vpop.f32.mrf.mxu0 }
 0x1b7   :  { %v17997_v24 = vadd.f32 %v2522_v17, %v2409_v51 }
 0x1b8   :  { %v14627_v25 = vpop.f32.mrf.mxu1  ;;  %v2388_v26 = vpop.f32.mrf.mxu0 }
 0x1b9   :  { %v2413_v27 = vadd.f32 %v2388_v26, %v2263_v57 }
 0x1ba   :  { %v2527_v29 = vpop.f32.mrf.mxu1  ;;  %v14611_v30 = vpop.f32.mrf.mxu0 }
 0x1bb   :  { %v17999_v32 = vadd.f32 %v2527_v29, %v2410_v8 }
 0x1bc   :  { %v14630_v33 = vpop.f32.mrf.mxu1  ;;  %v2393_v34 = vpop.f32.mrf.mxu0 }
 0x1bd   :  { %v2414_v36 = vadd.f32 %v2393_v34, %v2264_v61 }
 0x1be   :  { %v2530_v37 = vpop.f32.mrf.mxu1  ;;  %v14614_v38 = vpop.f32.mrf.mxu0 }
 0x1bf   :  { %v18001_v39 = vadd.f32 %v2530_v37, %v2411_v14 }
 0x1c0   :  { %v14631_v40 = vpop.f32.mrf.mxu1  ;;  %v2396_v41 = vpop.f32.mrf.mxu0 }
 0x1c1   :  { %v2415_v42 = vadd.f32 %v2396_v41, %v2265_v1 }
 0x1c2   :  { %v2535_v43 = vpop.f32.mrf.mxu1  ;;  %v14615_v20 = vpop.f32.mrf.mxu0 }
 0x1c3   :  { %v18003_v44 = vadd.f32 %v2535_v43, %v2412_v22 }
 0x1c4   :  { %v14634_v45 = vpop.f32.mrf.mxu1  ;;  %v2401_v46 = vpop.f32.mrf.mxu0 }
 0x1c5   :  { %v2416_v47 = vadd.f32 %v2401_v46, %v2266_v4 }
 0x1c6   :  { %v2538_v31 = vpop.f32.mrf.mxu1  ;;  %v14618_v35 = vpop.f32.mrf.mxu0 }
 0x1c7   :  { %v18005_v48 = vadd.f32 %v2538_v31, %v2413_v27 }
 0x1c8   :  { %v14635_v49 = vpop.f32.mrf.mxu1  ;;  %v2404_v50 = vpop.f32.mrf.mxu0 }
 0x1c9   :  { %v2417_v28 = vadd.f32 %v2404_v50, %v2267_v10 }
 0x1ca   :  { %v2543_v51 = vpop.f32.mrf.mxu1  ;;  %v14619_v52 = vpop.f32.mrf.mxu0 }
 0x1cb   :  { %v18007_v53 = vadd.f32 %v2543_v51, %v2414_v36 }
 0x1cc   :  { %v14638_v54 = vpop.f32.mrf.mxu1  ;;  %v2669_v55 = vpop.f32.mrf.mxu0 }
 0x1cd   :  { %v2708_v51 = vadd.f32 %v2669_v55, %v17995_v19 }
 0x1ce   :  { %v2546_v56 = vpop.f32.mrf.mxu1  ;;  %v14650_v57 = vpop.f32.mrf.mxu0 }
 0x1cf   :  { %v18009_v58 = vadd.f32 %v2546_v56, %v2415_v42 }
 0x1d0   :  { %v14639_v59 = vpop.f32.mrf.mxu1  ;;  %v2672_v60 = vpop.f32.mrf.mxu0 }
 0x1d2   :  { %v2551_v61 = vpop.f32.mrf.mxu1  ;;  %v14651_v62 = vpop.f32.mrf.mxu0 }
 0x1d3   :  { %v18011_v63 = vadd.f32 %v2551_v61, %v2416_v47  ;;  %v2709_v61 = vadd.f32 %v2672_v60, %v17997_v24  ;;  %v18053_v24 = vld [vmem:[%s21475_s7] ss:$0 sm:$0xff] }
 0x1d4   :  { %v14642_v1 = vpop.f32.mrf.mxu1  ;;  %v2677_v2 = vpop.f32.mrf.mxu0 }
 0x1d5   :  { %v2710_v55 = vadd.f32 %v2677_v2, %v17999_v32 }
 0x1d6   :  { %v2554_v3 = vpop.f32.mrf.mxu1  ;;  %v14654_v4 = vpop.f32.mrf.mxu0 }
 0x1d7   :  { %v18013_v5 = vadd.f32 %v2554_v3, %v2417_v28  ;;  %v18046_v3 = vld [vmem:[%s21474_s6] ss:$0 sm:$0xff] }
 0x1d8   :  { %v14643_v7 = vpop.f32.mrf.mxu1  ;;  %v18015_v8 = vpop.f32.mrf.mxu0 }
 0x1da   :  { %v2819_v6 = vpop.f32.mrf.mxu1  ;;  %v14655_v9 = vpop.f32.mrf.mxu0 }
 0x1db   :  { %v2858_v56 = vadd.f32 %v2819_v6, %v2708_v51 }
 0x1dc   :  { %v14674_v10 = vpop.f32.mrf.mxu1  ;;  %v18017_v12 = vpop.f32.mrf.mxu0 }
 0x1de   :  { %v2822_v13 = vpop.f32.mrf.mxu1  ;;  %v14658_v14 = vpop.f32.mrf.mxu0 }
 0x1df   :  { %v2859_v7 = vadd.f32 %v2822_v13, %v2709_v61  ;;  %v2711_v13 = vadd.f32 %v18015_v8, %v18001_v39 }
 0x1e0   :  { %v14675_v16 = vpop.f32.mrf.mxu1  ;;  %v18019_v18 = vpop.f32.mrf.mxu0 }
 0x1e2   :  { %v2827_v11 = vpop.f32.mrf.mxu1  ;;  %v14659_v21 = vpop.f32.mrf.mxu0 }
 0x1e3   :  { %v2860_v21 = vadd.f32 %v2827_v11, %v2710_v55  ;;  %v2712_v11 = vadd.f32 %v18017_v12, %v18003_v44  ;;  %v16192_v44 = vld [vmem:[%s21473_s11 + $0x64] ss:$8 sps:$4 sm:$0xff]  }
 0x1e4   :  { %v14678_v22 = vpop.f32.mrf.mxu1  ;;  %v18021_v17 = vpop.f32.mrf.mxu0 }
 0x1e6   :  { %v2830_v23 = vpop.f32.mrf.mxu1  ;;  %v14662_v25 = vpop.f32.mrf.mxu0 }
 0x1e8   :  { %v14679_v26 = vpop.f32.mrf.mxu1  ;;  %v18023_v27 = vpop.f32.mrf.mxu0 }
 0x1ea   :  { %v18025_v29 = vpop.f32.mrf.mxu1  ;;  %v14663_v30 = vpop.f32.mrf.mxu0 }
 0x1ec   :  { %v14682_v33 = vpop.f32.mrf.mxu1  ;;  %v18027_v34 = vpop.f32.mrf.mxu0 }
 0x1ee   :  { %v18029_v36 = vpop.f32.mrf.mxu1  ;;  %v14666_v37 = vpop.f32.mrf.mxu0 }
 0x1f0   :  { %v14683_v38 = vpop.f32.mrf.mxu1  ;;  %v18031_v40 = vpop.f32.mrf.mxu0 }
 0x1f1   :  { %v2861_v38 = vadd.f32 %v2830_v23, %v2711_v13  ;;  %v2862_v23 = vadd.f32 %v18025_v29, %v2712_v11 }
 0x1f2   :  { %v18033_v41 = vpop.f32.mrf.mxu1  ;;  %v14667_v42 = vpop.f32.mrf.mxu0 }
 0x1f4   :  { %v14686_v43 = vpop.f32.mrf.mxu1  ;;  %v2969_v20 = vpop.f32.mrf.mxu0 }
 0x1f5   :  { %v3008_v62 = vadd.f32 %v2969_v20, %v2858_v56 }
 0x1f6   :  { %v18035_v45 = vpop.f32.mrf.mxu1  ;;  %v14698_v46 = vpop.f32.mrf.mxu0 }
 0x1f8   :  { %v14687_v47 = vpop.f32.mrf.mxu1  ;;  %v2972_v31 = vpop.f32.mrf.mxu0 }
 0x1f9   :  { %v3009_v14 = vadd.f32 %v2972_v31, %v2859_v7 }
 0x1fa   :  { %v18037_v35 = vpop.f32.mrf.mxu1  ;;  %v14699_v49 = vpop.f32.mrf.mxu0 }
 0x1fc   :  { %v14690_v50 = vpop.f32.mrf.mxu1  ;;  %v2977_v28 = vpop.f32.mrf.mxu0 }
 0x1fd   :  { %v3010_v30 = vadd.f32 %v2977_v28, %v2860_v21  ;;  %v16184_v28 = vld [vmem:[%s21473_s11 + $0x70] ss:$8 sps:$4 sm:$0xff]  }
 0x1fe   :  { %v18040_v52 = vpop.f32.mrf.mxu1  ;;  %v14702_v54 = vpop.f32.mrf.mxu0 }
 0x200   :  { %v14691_v57 = vpop.f32.mrf.mxu1  ;;  %v2980_v59 = vpop.f32.mrf.mxu0 }
 0x201   :  { %v3011_v47 = vadd.f32 %v2980_v59, %v2861_v38  ;;  %v2713_v57 = vadd.f32 %v18019_v18, %v18005_v48 }
 0x202   :  { %v3119_v1 = vpop.f32.mrf.mxu1  ;;  %v14703_v4 = vpop.f32.mrf.mxu0 }
 0x203   :  { %v3158_v9 = vadd.f32 %v3119_v1, %v3008_v62  ;;  %v16190_v4 = vld [vmem:[%s21473_s11 + $0x60] ss:$8 sps:$4 sm:$0xff]   ;;  %v2863_v7 = vadd.f32 %v18029_v36, %v2713_v57 }
 0x204   :  { %v14722_v10 = vpop.f32.mrf.mxu1  ;;  %v2985_v19 = vpop.f32.mrf.mxu0 }
 0x205   :  { %v3175_v6 = vmul.f32 %v18046_v3, %v3158_v9  ;;  %v3012_v59 = vadd.f32 %v2985_v19, %v2862_v23  ;;  %v16198_v9 = vld [vmem:[%s21473_s11 + $0x54] ss:$8 sps:$4 sm:$0xff]   ;;  %v2714_v10 = vadd.f32 %v18021_v17, %v18007_v53  ;;  %v16204_v53 = vld [vmem:[%s21473_s11 + $0x44] ss:$8 sps:$4 sm:$0xff]  }
 0x206   :  { %v3122_v60 = vpop.f32.mrf.mxu1  ;;  %v14706_v16 = vpop.f32.mrf.mxu0 }
 0x207   :  { %v3159_v22 = vadd.f32 %v3122_v60, %v3009_v14  ;;  %v3192_v32 = vadd.f32 %v18053_v24, %v3175_v6 }
 0x208   :  { %v14723_v25 = vpop.f32.mrf.mxu1  ;;  %v2988_v26 = vpop.f32.mrf.mxu0 }
 0x209   :  { %v3176_v2 = vmul.f32 %v18046_v3, %v3159_v22  ;;  %v3202_v31 = vmax.f32 %v3192_v32, 0.0  ;;  %v3013_v14 = vadd.f32 %v2988_v26, %v2863_v7  ;;  %v16196_v22 = vld [vmem:[%s21473_s11 + $0x50] ss:$8 sps:$4 sm:$0xff]   ;;  %v2864_v25 = vadd.f32 %v18033_v41, %v2714_v10 }
 0x20a   :  { %v3127_v33 = vpop.f32.mrf.mxu1  ;;  %v14707_v37 = vpop.f32.mrf.mxu0  ;;  %v2715_v32 = vadd.f32 %v18023_v27, %v18009_v58  ;;  %v16210_v58 = vld [vmem:[%s21473_s11 + $0xf4] ss:$8 sps:$4 sm:$0xff]   ;;  %v2716_v27 = vadd.f32 %v18027_v34, %v18011_v63  ;;  %v16216_v34 = vld [vmem:[%s21473_s11 + $0xe4] ss:$8 sps:$4 sm:$0xff]   ;;  %v16220_v10 = vld [vmem:[%s21473_s11 + $0xd0] ss:$8 sps:$4 sm:$0xff]  }
 0x20b   :  { %v3193_v42 = vadd.f32 %v18053_v24, %v3176_v2  ;;  %v3160_v43 = vadd.f32 %v3127_v33, %v3010_v30 }
 0x20c   :  { %v14726_v20 = vpop.f32.mrf.mxu1  ;;  %v2993_v46 = vpop.f32.mrf.mxu0 }
 0x20d   :  { %v3203_v49 = vmax.f32 %v3193_v42, 0.0  ;;  %v3177_v39 = vmul.f32 %v18046_v3, %v3160_v43  ;;  %v3014_v2 = vadd.f32 %v2993_v46, %v2864_v25  ;;  %v16202_v42 = vld [vmem:[%s21473_s11 + $0x40] ss:$8 sps:$4 sm:$0xff]   ;;  %v2865_v43 = vadd.f32 %v18035_v45, %v2715_v32  ;;  %v16208_v45 = vld [vmem:[%s21473_s11 + $0xf0] ss:$8 sps:$4 sm:$0xff]  }
 0x20e   :  { %v3130_v8 = vpop.f32.mrf.mxu1  ;;  %v14710_v50 = vpop.f32.mrf.mxu0  ;;  %v16229_v25 = vld [vmem:[%s21473_s11 + $0x100] ss:$8 sps:$4 sm:$0xff]  }
 0x20f   :  { %v3212_v51 = vpack.c.bf16 %v3203_v49, %v3202_v31  ;;  %v3161_v54 = vadd.f32 %v3130_v8, %v3011_v47  ;;  %v3194_v61 = vadd.f32 %v18053_v24, %v3177_v39  ;;  %v16211_v50 = vld [vmem:[%s21473_s11 + $0x130] ss:$8 sps:$4 sm:$0xff]   ;;  %v16703_v32 = vld [vmem:[%s21465_s5] sm:$0xff]  }
 0x210   :  { %v14727_v12 = vpop.f32.mrf.mxu1  ;;  %v2996_v56 = vpop.f32.mrf.mxu0 }
 0x211   :  { %v3178_v62 = vmul.f32 %v18046_v3, %v3161_v54  ;;  %12780 = vmatmul.mubr.msk.bf16.vlgmr.msra.gmra.mxu0 %vm3265_vm7, %v3212_v51  ;;  %v3204_v6 = vmax.f32 %v3194_v61, 0.0  ;;  %v3015_v47 = vadd.f32 %v2996_v56, %v2865_v43  ;;  %v16219_v51 = vld [vmem:[%s21473_s11 + $0x124] ss:$8 sps:$4 sm:$0xff]   ;;  %v2717_v54 = vadd.f32 %v18031_v40, %v18013_v5  ;;  %v16217_v5 = vld [vmem:[%s21473_s11 + $0x120] ss:$8 sps:$4 sm:$0xff]  }
 0x212   :  { %3459 = vmatpush1.bf16.msra.mxu0 %v16184_v28  ;;  %v3135_v29 = vpop.f32.mrf.mxu1  ;;  %v14711_v1 = vpop.f32.mrf.mxu0  ;;  %3482 = vmatprep.mubr.bf16.mxu0 %v21485_v15  ;;  %v2866_v28 = vadd.f32 %v18037_v35, %v2716_v27  ;;  %v16710_v43 = vld [vmem:[#allocation2 + $0x48] sm:$0xff]   ;;  %v16714_v27 = vld [vmem:[#allocation2 + $0x58] sm:$0xff]  }
 0x213   :  { %v3195_v48 = vadd.f32 %v18053_v24, %v3178_v62  ;;  %v3162_v18 = vadd.f32 %v3135_v29, %v3012_v59  ;;  %3460 = vmatprep.subr.bf16.mxu0 %v16192_v44  ;;  %v16214_v59 = vld [vmem:[%s21473_s11 + $0xe0] ss:$8 sps:$4 sm:$0xff]   ;;  %v2867_v40 = vadd.f32 %v18040_v52, %v2717_v54  ;;  %v16222_v29 = vld [vmem:[%s21473_s11 + $0xd4] ss:$8 sps:$4 sm:$0xff]  }
 0x214   :  { %v14730_v19 = vpop.f32.mrf.mxu1  ;;  %v3001_v55 = vpop.f32.mrf.mxu0  ;;  %v16225_v1 = vld [vmem:[%s21473_s11 + $0x114] ss:$8 sps:$4 sm:$0xff]   ;;  %v16728_v54 = vld [vmem:[#allocation2 + $0x60] sm:$0xff]  }
 0x215   :  { %v3205_v60 = vmax.f32 %v3195_v48, 0.0  ;;  %v3179_v16 = vmul.f32 %v18046_v3, %v3162_v18  ;;  %v3016_v12 = vadd.f32 %v3001_v55, %v2866_v28  ;;  %v16223_v19 = vld [vmem:[%s21473_s11 + $0x110] ss:$8 sps:$4 sm:$0xff]  }
 0x216   :  { %3461 = vmatpush1.bf16.msra.mxu0 %v16190_v4  ;;  %v3138_v36 = vpop.f32.mrf.mxu1  ;;  %v14714_v21 = vpop.f32.mrf.mxu0  ;;  %v16723_v28 = vld [vmem:[%s21465_s5 + $0x50] sm:$0xff]  }
 0x217   :  { %v3213_v13 = vpack.c.bf16 %v3205_v60, %v3204_v6  ;;  %v3163_v30 = vadd.f32 %v3138_v36, %v3013_v14  ;;  %3462 = vmatprep.subr.bf16.mxu0 %v16198_v9  ;;  %v3196_v33 = vadd.f32 %v18053_v24, %v3179_v16  ;;  %v16228_v6 = vld [vmem:[%s21473_s11 + $0xc4] ss:$8 sps:$4 sm:$0xff]  }
 0x218   :  { %v14731_v17 = vpop.f32.mrf.mxu1  ;;  %v3004_v26 = vpop.f32.mrf.mxu0  ;;  %v16231_v60 = vld [vmem:[%s21473_s11 + $0x104] ss:$8 sps:$4 sm:$0xff]  }
 0x219   :  { %v3180_v37 = vmul.f32 %v18046_v3, %v3163_v30  ;;  %v3206_v31 = vmax.f32 %v3196_v33, 0.0  ;;  %v3017_v7 = vadd.f32 %v3004_v26, %v2867_v40  ;;  %v16702_v26 = vld [vmem:[%s21465_s5 + $0x10] sm:$0xff]   ;;  %v16705_v33 = vld [vmem:[#allocation2 + $0x38] sm:$0xff]   ;;  %v16736_v40 = vld [vmem:[%s21465_s5 + $0x60] sm:$0xff]  }
 0x21a   :  { %3463 = vmatpush1.bf16.msra.mxu0 %v16196_v22  ;;  %v3143_v38 = vpop.f32.mrf.mxu1  ;;  %v14715_v41 = vpop.f32.mrf.mxu0  ;;  %v16226_v22 = vld [vmem:[%s21473_s11 + $0xc0] ss:$8 sps:$4 sm:$0xff]  }
 0x21b   :  { %v3197_v11 = vadd.f32 %v18053_v24, %v3180_v37  ;;  %v3164_v20 = vadd.f32 %v3143_v38, %v3014_v2  ;;  %3464 = vmatprep.subr.bf16.mxu0 %v16204_v53  ;;  %v16704_v2 = vld [vmem:[#allocation2 + $0x40] sm:$0xff]   ;;  %v16706_v37 = vld [vmem:[%s21465_s5 + $0x28] sm:$0xff]   ;;  %v16707_v38 = vld [vmem:[%s21465_s5 + $0x38] sm:$0xff]  }
 0x21c   :  { %v14734_v46 = vpop.f32.mrf.mxu1  ;;  %v16708_v41 = vld [vmem:[%s21465_s5 + $0x20] sm:$0xff]  }
 0x21d   :  { %v3207_v49 = vmax.f32 %v3197_v11, 0.0  ;;  %v3181_v39 = vmul.f32 %v18046_v3, %v3164_v20  ;;  %v16711_v11 = vld [vmem:[#allocation2 + $0x40] sm:$0xff]   ;;  %v16712_v20 = vld [vmem:[#allocation2 + $0x50] sm:$0xff]  }
 0x21e   :  { %3465 = vmatpush1.bf16.msra.mxu0 %v16202_v42  ;;  %v3146_v8 = vpop.f32.mrf.mxu1  ;;  %v16709_v42 = vld [vmem:[%s21465_s5 + $0x30] sm:$0xff]  }
 0x21f   :  { %v3214_v23 = vpack.c.bf16 %v3207_v49, %v3206_v31  ;;  %v3165_v63 = vadd.f32 %v3146_v8, %v3015_v47  ;;  %3656 = vmatprep.subr.bf16.mxu0 %v16210_v58  ;;  %v3198_v56 = vadd.f32 %v18053_v24, %v3181_v39  ;;  %v16713_v58 = vld [vmem:[#allocation2 + $0x48] sm:$0xff]   ;;  %v16715_v46 = vld [vmem:[#allocation2 + $0x50] sm:$0xff]   ;;  %v16716_v47 = vld [vmem:[#allocation2 + $0x60] sm:$0xff]  }
 0x220   :  { %v14735_v44 = vpop.f32.mrf.mxu1  ;;  %v16717_v31 = vld [vmem:[#allocation2 + $0x58] sm:$0xff]   ;;  %v16718_v49 = vld [vmem:[#allocation2 + $0x48] sm:$0xff]   ;;  %v16719_v39 = vld [vmem:[#allocation2 + $0x70] sm:$0xff]  }
 0x221   :  { %v3182_v35 = vmul.f32 %v18046_v3, %v3165_v63  ;;  %12806 = vmatmul.mubr.msk.bf16.vlgmr.msra.gmra.mxu0 %vm3265_vm7, %v3213_v13  ;;  %12823 = vmatmul.mubr.msk.bf16.vlgmr.msra.gmra.mxu1 %vm3265_vm7, %v3214_v23  ;;  %v3208_v52 = vmax.f32 %v3198_v56, 0.0  ;;  %v16720_v8 = vld [vmem:[%s21465_s5 + $0x48] sm:$0xff]   ;;  %v16724_v23 = vld [vmem:[#allocation2 + $0x50] sm:$0xff]   ;;  %v16725_v63 = vld [vmem:[#allocation2 + $0x78] sm:$0xff]  }
 0x222   :  { %3657 = vmatpush1.bf16.msra.mxu0 %v16208_v45  ;;  %v3151_v57 = vpop.f32.mrf.mxu1  ;;  %3756 = vmatpush1.bf16.msra.mxu1 %v16211_v50  ;;  %v16721_v45 = vld [vmem:[%s21465_s5 + $0x58] sm:$0xff]   ;;  %v16722_v50 = vld [vmem:[%s21465_s5 + $0x40] sm:$0xff]   ;;  %v16729_v44 = vld [vmem:[#allocation2 + $0x88] sm:$0xff]  }
 0x223   :  { %v3199_v61 = vadd.f32 %v18053_v24, %v3182_v35  ;;  %v3166_v62 = vadd.f32 %v3151_v57, %v3016_v12  ;;  %3658 = vmatprep.subr.bf16.mxu0 %v16216_v34  ;;  %3757 = vmatprep.subr.bf16.mxu1 %v16219_v51  ;;  %v16726_v34 = vld [vmem:[#allocation2 + $0x58] sm:$0xff]   ;;  %v16727_v51 = vld [vmem:[#allocation2 + $0x80] sm:$0xff]   ;;  %v16730_v12 = vld [vmem:[#allocation2 + $0x68] sm:$0xff]  }
 0x224   :  { %v14738_v4 = vpop.f32.mrf.mxu1  ;;  %3680 = vmatprep.mubr.bf16.mxu0 %v21485_v15  ;;  %3779 = vmatprep.mubr.bf16.mxu1 %v21485_v15  ;;  %v16731_v56 = vld [vmem:[#allocation2 + $0x90] sm:$0xff]   ;;  %v18282_v35 = vld [vmem:[#allocation2 + $0x78] sm:$0xff]   ;;  %v16733_v57 = vld [vmem:[#allocation2 + $0x80] sm:$0xff]  }
 0x225   :  { %v3209_v48 = vmax.f32 %v3199_v61, 0.0  ;;  %v3183_v18 = vmul.f32 %v18046_v3, %v3166_v62  ;;  %v16737_v61 = vld [vmem:[%s21465_s5 + $0x70] sm:$0xff]   ;;  %v18306_v62 = vld [vmem:[#allocation2 + $0x80] sm:$0xff]  }
 0x226   :  { %3659 = vmatpush1.bf16.msra.mxu0 %v16214_v59  ;;  %v3154_v9 = vpop.f32.mrf.mxu1  ;;  %3758 = vmatpush1.bf16.msra.mxu1 %v16217_v5  ;;  %v16734_v59 = vld [vmem:[%s21465_s5 + $0x68] sm:$0xff]   ;;  %v16735_v5 = vld [vmem:[%s21465_s5 + $0x78] sm:$0xff]   ;;  %v16741_v4 = vld [vmem:[#allocation2 + $0x90] sm:$0xff]  }
 0x227   :  { %v3215_v55 = vpack.c.bf16 %v3209_v48, %v3208_v52  ;;  %v3167_v14 = vadd.f32 %v3154_v9, %v3017_v7  ;;  %3660 = vmatprep.subr.bf16.mxu0 %v16222_v29  ;;  %3759 = vmatprep.subr.bf16.mxu1 %v16225_v1  ;;  %v3200_v36 = vadd.f32 %v18053_v24, %v3183_v18  ;;  %v16739_v29 = vld [vmem:[#allocation2 + $0x88] sm:$0xff]   ;;  %v18324_v7 = vld [vmem:[#allocation2 + $0x90] sm:$0xff]   ;;  %v16743_v52 = vld [vmem:[#allocation2 + $0x98] sm:$0xff]  }
 0x228   :  { %v14739_v16 = vpop.f32.mrf.mxu1  ;;  %v18315_v1 = vld [vmem:[#allocation2 + $0x88] sm:$0xff]   ;;  %v18333_v48 = vld [vmem:[#allocation2 + $0x98] sm:$0xff]   ;;  %v16745_v18 = vld [vmem:[#allocation2 + $0xa0] sm:$0xff]  }
 0x229   :  { %v3184_v21 = vmul.f32 %v18046_v3, %v3167_v14  ;;  %v3210_v30 = vmax.f32 %v3200_v36, 0.0  ;;  %v16700_v3 = vld [vmem:[%s21465_s5 + $0x18] sm:$0xff]   ;;  %v18342_v9 = vld [vmem:[#allocation2 + $0xa8] sm:$0xff]   ;;  %v16234_v14 = vld [vmem:[#allocation2 + $0xb0] sm:$0xff]  }
 0x22a   :  { %3661 = vmatpush1.bf16.msra.mxu0 %v16220_v10  ;;  %3760 = vmatpush1.bf16.msra.mxu1 %v16223_v19  ;;  %v16233_v10 = vld [vmem:[#allocation2 + $0xb0] sm:$0xff]   ;;  %v16746_v19 = vld [vmem:[%s21465_s5 + $0x88] sm:$0xff]   ;;  %v16237_v16 = vld [vmem:[#allocation2 + $0xc0] sm:$0xff]  }
 0x22b   :  { %v3201_v13 = vadd.f32 %v18053_v24, %v3184_v21  ;;  %3662 = vmatprep.subr.bf16.mxu0 %v16228_v6  ;;  %3761 = vmatprep.subr.bf16.mxu1 %v16231_v60  ;;  %v16701_v24 = vld [vmem:[%s21465_s5 + $0x8] sm:$0xff]   ;;  %v16235_v6 = vld [vmem:[#allocation2 + $0xb8] sm:$0xff]   ;;  %v18370_v36 = vld [vmem:[#allocation2 + $0xc0] sm:$0xff]  }
 0x22c   :  { %v16236_v60 = vld [vmem:[#allocation2 + $0xb8] sm:$0xff]   ;;  %v16239_v21 = vld [vmem:[#allocation2 + $0xc8] sm:$0xff]  }
 0x22d   :  { %v3211_v53 = vmax.f32 %v3201_v13, 0.0  ;;  %v3389_v13 = vpop.f32.mrf.mxu1 }
 0x22e   :  { %3663 = vmatpush1.bf16.msra.mxu0 %v16226_v22  ;;  %3762 = vmatpush1.bf16.msra.mxu1 %v16229_v25  ;;  %v18379_v22 = vld [vmem:[#allocation2 + $0xc8] sm:$0xff]   ;;  %v16241_v25 = vld [vmem:[#allocation2 + $0xd0] sm:$0xff]  }
 0x22f   :  { %v3216_v17 = vpack.c.bf16 %v3211_v53, %v3210_v30  ;;  %14740 = vmatprep.subr.bf16.mxu0 %v21483_v0  ;;  %14764 = vmatprep.subr.bf16.mxu1 %v21483_v0  ;;  %v3391_v53 = vpop.f32.mrf.mxu1 }
 0x231   :  { %12840 = vmatmul.mubr.msk.bf16.vlgmr.msra.gmra.mxu0 %vm3265_vm7, %v3215_v55  ;;  %12857 = vmatmul.mubr.msk.bf16.vlgmr.msra.gmra.mxu1 %vm3265_vm7, %v3216_v17  ;;  %v16747_v55 = vld [vmem:[%s21465_s5 + $0x80] sm:$0xff]  }
 0x232   :  { %14741 = vmatpush3.bf16.msra.mxu0 %v16700_v3  ;;  %14765 = vmatpush3.bf16.msra.mxu1 %v16701_v24  ;;  %v18387_v3 = vld [vmem:[#allocation2 + $0xb8] sm:$0xff]   ;;  %v3393_v24 = vpop.f32.mrf.mxu1 }
 0x233   :  { %14742 = vmatprep.subr.bf16.mxu0 %v21483_v0  ;;  %14766 = vmatprep.subr.bf16.mxu1 %v21483_v0 }
 0x234   :  { %14744 = vmatprep.mubr.msk.bf16.mxu0 %vm16928_vm1, %v21483_v0  ;;  %14768 = vmatprep.mubr.msk.bf16.mxu1 %vm16928_vm1, %v21483_v0 }
 0x236   :  { %14743 = vmatpush3.bf16.msra.mxu0 %v16702_v26  ;;  %14767 = vmatpush3.bf16.msra.mxu1 %v16703_v32  ;;  %v18393_v32 = vpop.f32.mrf.mxu1 }
 0x237   :  { %14788 = vmatprep.subr.bf16.mxu0 %v21483_v0  ;;  %14812 = vmatprep.subr.bf16.mxu1 %v21483_v0 }
 0x239   :  { %14745 = vmatmul.mubr.msk.bf16.vlgmr.msra.gmra.mxu0 %vm1936_vm6, %v16704_v2  ;;  %14769 = vmatmul.mubr.msk.bf16.vlgmr.msra.gmra.mxu1 %vm1936_vm6, %v16705_v33  ;;  %v18397_v33 = vld [vmem:[#allocation2 + $0xc0] sm:$0xff]  }
 0x23a   :  { %14789 = vmatpush3.bf16.msra.mxu0 %v16706_v37  ;;  %14748 = vmatprep.mubr.msk.bf16.mxu0 %vm16928_vm1, %v21483_v0 }
 0x23b   :  { %14772 = vmatprep.mubr.msk.bf16.mxu1 %vm16928_vm1, %v21483_v0  ;;  %14790 = vmatprep.subr.bf16.mxu0 %v21483_v0 }
 0x23c   :  { %14813 = vmatpush3.bf16.msra.mxu1 %v16707_v38 }
 0x23d   :  { %14814 = vmatprep.subr.bf16.mxu1 %v21483_v0 }
 0x23e   :  { %14791 = vmatpush3.bf16.msra.mxu0 %v16708_v41 }
 0x23f   :  { %14836 = vmatprep.subr.bf16.mxu0 %v21483_v0 }
 0x240   :  { %14815 = vmatpush3.bf16.msra.mxu1 %v16709_v42 }
 0x241   :  { %14749 = vmatmul.mubr.msk.bf16.gmra.mxu0 %vm1936_vm6, %v16710_v43  ;;  %14773 = vmatmul.mubr.msk.bf16.gmra.mxu1 %vm1936_vm6, %v16711_v11 }
 0x242   :  { %14752 = vmatprep.mubr.msk.bf16.mxu0 %vm16928_vm1, %v21483_v0  ;;  %14776 = vmatprep.mubr.msk.bf16.mxu1 %vm16928_vm1, %v21483_v0 }
 0x243   :  { %14860 = vmatprep.subr.bf16.mxu1 %v21483_v0 }
 0x249   :  { %14753 = vmatmul.mubr.msk.bf16.gmra.mxu0 %vm1936_vm6, %v16712_v20  ;;  %14777 = vmatmul.mubr.msk.bf16.gmra.mxu1 %vm1936_vm6, %v16713_v58 }
 0x24a   :  { %14756 = vmatprep.mubr.msk.bf16.mxu0 %vm16928_vm1, %v21483_v0  ;;  %14780 = vmatprep.mubr.msk.bf16.mxu1 %vm16928_vm1, %v21483_v0 }
 0x251   :  { %14757 = vmatmul.mubr.msk.bf16.gmra.mxu0 %vm1936_vm6, %v16714_v27  ;;  %14781 = vmatmul.mubr.msk.bf16.gmra.mxu1 %vm1936_vm6, %v16715_v46 }
 0x252   :  { %14760 = vmatprep.mubr.msk.bf16.mxu0 %vm16928_vm1, %v21483_v0  ;;  %14784 = vmatprep.mubr.msk.bf16.mxu1 %vm16928_vm1, %v21483_v0 }
 0x259   :  { %14761 = vmatmul.mubr.msk.bf16.gmra.mxu0 %vm1936_vm6, %v16716_v47  ;;  %14785 = vmatmul.mubr.msk.bf16.gmra.mxu1 %vm1936_vm6, %v16717_v31 }
 0x25a   :  { %14792 = vmatprep.mubr.msk.bf16.mxu0 %vm16928_vm1, %v21483_v0  ;;  %14816 = vmatprep.mubr.msk.bf16.mxu1 %vm16928_vm1, %v21483_v0 }
 0x261   :  { %14793 = vmatmul.mubr.msk.bf16.vlgmr.msra.gmra.mxu0 %vm1936_vm6, %v16718_v49  ;;  %14817 = vmatmul.mubr.msk.bf16.vlgmr.msra.gmra.mxu1 %vm1936_vm6, %v16719_v39 }
 0x262   :  { %14837 = vmatpush3.bf16.msra.mxu0 %v16720_v8  ;;  %14796 = vmatprep.mubr.msk.bf16.mxu0 %vm16928_vm1, %v21483_v0  ;;  %v18403_v8 = vld [vmem:[#allocation2 + $0xc8] sm:$0xff]  }
 0x263   :  { %14820 = vmatprep.mubr.msk.bf16.mxu1 %vm16928_vm1, %v21483_v0  ;;  %14838 = vmatprep.subr.bf16.mxu0 %v21483_v0 }
 0x264   :  { %14861 = vmatpush3.bf16.msra.mxu1 %v16721_v45 }
 0x265   :  { %14862 = vmatprep.subr.bf16.mxu1 %v21483_v0 }
 0x266   :  { %14839 = vmatpush3.bf16.msra.mxu0 %v16722_v50 }
 0x267   :  { %14884 = vmatprep.subr.bf16.mxu0 %v21483_v0 }
 0x268   :  { %14863 = vmatpush3.bf16.msra.mxu1 %v16723_v28 }
 0x269   :  { %14797 = vmatmul.mubr.msk.bf16.gmra.mxu0 %vm1936_vm6, %v16724_v23  ;;  %14821 = vmatmul.mubr.msk.bf16.gmra.mxu1 %vm1936_vm6, %v16725_v63  ;;  %v18413_v23 = vld [vmem:[#allocation2 + $0xd0] sm:$0xff]  }
 0x26a   :  { %14800 = vmatprep.mubr.msk.bf16.mxu0 %vm16928_vm1, %v21483_v0  ;;  %14824 = vmatprep.mubr.msk.bf16.mxu1 %vm16928_vm1, %v21483_v0 }
 0x26b   :  { %14908 = vmatprep.subr.bf16.mxu1 %v21483_v0 }
 0x271   :  { %14801 = vmatmul.mubr.msk.bf16.gmra.mxu0 %vm1936_vm6, %v16726_v34  ;;  %14825 = vmatmul.mubr.msk.bf16.gmra.mxu1 %vm1936_vm6, %v16727_v51 }
 0x272   :  { %14804 = vmatprep.mubr.msk.bf16.mxu0 %vm16928_vm1, %v21483_v0  ;;  %14828 = vmatprep.mubr.msk.bf16.mxu1 %vm16928_vm1, %v21483_v0 }
 0x279   :  { %14805 = vmatmul.mubr.msk.bf16.gmra.mxu0 %vm1936_vm6, %v16728_v54  ;;  %14829 = vmatmul.mubr.msk.bf16.gmra.mxu1 %vm1936_vm6, %v16729_v44 }
 0x27a   :  { %14808 = vmatprep.mubr.msk.bf16.mxu0 %vm16928_vm1, %v21483_v0  ;;  %14832 = vmatprep.mubr.msk.bf16.mxu1 %vm16928_vm1, %v21483_v0 }
 0x281   :  { %14809 = vmatmul.mubr.msk.bf16.gmra.mxu0 %vm1936_vm6, %v16730_v12  ;;  %14833 = vmatmul.mubr.msk.bf16.gmra.mxu1 %vm1936_vm6, %v16731_v56 }
 0x282   :  { %14840 = vmatprep.mubr.msk.bf16.mxu0 %vm16928_vm1, %v21483_v0  ;;  %14864 = vmatprep.mubr.msk.bf16.mxu1 %vm16928_vm1, %v21483_v0 }
 0x289   :  { %14841 = vmatmul.mubr.msk.bf16.vlgmr.msra.gmra.mxu0 %vm1936_vm6, %v18282_v35  ;;  %14865 = vmatmul.mubr.msk.bf16.vlgmr.msra.gmra.mxu1 %vm1936_vm6, %v16733_v57 }
 0x28a   :  { %14885 = vmatpush3.bf16.msra.mxu0 %v16734_v59  ;;  %14844 = vmatprep.mubr.msk.bf16.mxu0 %vm16928_vm1, %v21483_v0 }
 0x28b   :  { %14868 = vmatprep.mubr.msk.bf16.mxu1 %vm16928_vm1, %v21483_v0  ;;  %14886 = vmatprep.subr.bf16.mxu0 %v21483_v0 }
 0x28c   :  { %14909 = vmatpush3.bf16.msra.mxu1 %v16735_v5  ;;  %v18421_v5 = vld [vmem:[#allocation2 + $0xd8] sm:$0xff]  }
 0x28d   :  { %14910 = vmatprep.subr.bf16.mxu1 %v21483_v0 }
 0x28e   :  { %14887 = vmatpush3.bf16.msra.mxu0 %v16736_v40 }
 0x28f   :  { %14932 = vmatprep.subr.bf16.mxu0 %v21483_v0 }
 0x290   :  { %14911 = vmatpush3.bf16.msra.mxu1 %v16737_v61 }
 0x291   :  { %14845 = vmatmul.mubr.msk.bf16.gmra.mxu0 %vm1936_vm6, %v18306_v62  ;;  %14869 = vmatmul.mubr.msk.bf16.gmra.mxu1 %vm1936_vm6, %v16739_v29 }
 0x292   :  { %14848 = vmatprep.mubr.msk.bf16.mxu0 %vm16928_vm1, %v21483_v0  ;;  %14872 = vmatprep.mubr.msk.bf16.mxu1 %vm16928_vm1, %v21483_v0 }
 0x299   :  { %14849 = vmatmul.mubr.msk.bf16.gmra.mxu0 %vm1936_vm6, %v18315_v1  ;;  %14873 = vmatmul.mubr.msk.bf16.gmra.mxu1 %vm1936_vm6, %v16741_v4 }
 0x29a   :  { %14852 = vmatprep.mubr.msk.bf16.mxu0 %vm16928_vm1, %v21483_v0  ;;  %14876 = vmatprep.mubr.msk.bf16.mxu1 %vm16928_vm1, %v21483_v0 }
 0x2a1   :  { %14853 = vmatmul.mubr.msk.bf16.gmra.mxu0 %vm1936_vm6, %v18324_v7  ;;  %14877 = vmatmul.mubr.msk.bf16.gmra.mxu1 %vm1936_vm6, %v16743_v52 }
 0x2a2   :  { %14856 = vmatprep.mubr.msk.bf16.mxu0 %vm16928_vm1, %v21483_v0  ;;  %14880 = vmatprep.mubr.msk.bf16.mxu1 %vm16928_vm1, %v21483_v0 }
 0x2a9   :  { %14857 = vmatmul.mubr.msk.bf16.gmra.mxu0 %vm1936_vm6, %v18333_v48  ;;  %14881 = vmatmul.mubr.msk.bf16.gmra.mxu1 %vm1936_vm6, %v16745_v18 }
 0x2aa   :  { %14888 = vmatprep.mubr.msk.bf16.mxu0 %vm16928_vm1, %v21483_v0  ;;  %14912 = vmatprep.mubr.msk.bf16.mxu1 %vm16928_vm1, %v21483_v0 }
 0x2b1   :  { %14889 = vmatmul.mubr.msk.bf16.vlgmr.msra.gmra.mxu0 %vm1936_vm6, %v18342_v9  ;;  %14913 = vmatmul.mubr.msk.bf16.vlgmr.msra.gmra.mxu1 %vm1936_vm6, %v16233_v10 }
 0x2b2   :  { %14933 = vmatpush3.bf16.msra.mxu0 %v16746_v19  ;;  %14892 = vmatprep.mubr.msk.bf16.mxu0 %vm16928_vm1, %v21483_v0 }
 0x2b3   :  { %14916 = vmatprep.mubr.msk.bf16.mxu1 %vm16928_vm1, %v21483_v0  ;;  %14934 = vmatprep.subr.bf16.mxu0 %v21483_v0 }
 0x2b6   :  { %14935 = vmatpush3.bf16.msra.mxu0 %v16747_v55 }
 0x2b9   :  { %14893 = vmatmul.mubr.msk.bf16.gmra.mxu0 %vm1936_vm6, %v16234_v14  ;;  %14917 = vmatmul.mubr.msk.bf16.gmra.mxu1 %vm1936_vm6, %v16235_v6 }
 0x2ba   :  { %14896 = vmatprep.mubr.msk.bf16.mxu0 %vm16928_vm1, %v21483_v0  ;;  %14920 = vmatprep.mubr.msk.bf16.mxu1 %vm16928_vm1, %v21483_v0 }
 0x2c1   :  { %14897 = vmatmul.mubr.msk.bf16.gmra.mxu0 %vm1936_vm6, %v16236_v60  ;;  %14921 = vmatmul.mubr.msk.bf16.gmra.mxu1 %vm1936_vm6, %v16237_v16 }
 0x2c2   :  { %14900 = vmatprep.mubr.msk.bf16.mxu0 %vm16928_vm1, %v21483_v0  ;;  %14924 = vmatprep.mubr.msk.bf16.mxu1 %vm16928_vm1, %v21483_v0 }
 0x2c9   :  { %14901 = vmatmul.mubr.msk.bf16.gmra.mxu0 %vm1936_vm6, %v18370_v36  ;;  %14925 = vmatmul.mubr.msk.bf16.gmra.mxu1 %vm1936_vm6, %v16239_v21 }
 0x2ca   :  { %14904 = vmatprep.mubr.msk.bf16.mxu0 %vm16928_vm1, %v21483_v0  ;;  %14928 = vmatprep.mubr.msk.bf16.mxu1 %vm16928_vm1, %v21483_v0 }
 0x2d1   :  { %14905 = vmatmul.mubr.msk.bf16.gmra.mxu0 %vm1936_vm6, %v18379_v22  ;;  %14929 = vmatmul.mubr.msk.bf16.gmra.mxu1 %vm1936_vm6, %v16241_v25  ;;  %v3303_v30 = vpop.f32.mrf.mxu0 }
 0x2d2   :  { %14936 = vmatprep.mubr.msk.bf16.mxu0 %vm16928_vm1, %v21483_v0  ;;  %4790 = vmatprep.mubr.bf16.mxu1 %v21485_v15  ;;  %v3390_v37 = vadd.f32 %v3389_v13, %v3303_v30  ;;  %v16247_v13 = vld [vmem:[%s21473_s11 + $0x170] ss:$8 sps:$4 sm:$0xff]   ;;  %v16249_v30 = vld [vmem:[%s21473_s11 + $0x174] ss:$8 sps:$4 sm:$0xff]  }
 0x2d3   :  { %v3305_v17 = vpop.f32.mrf.mxu0  ;;  %4766 = vmatprep.subr.bf16.mxu1 %v16249_v30 }
 0x2d4   :  { %v3392_v42 = vadd.f32 %v3391_v53, %v3305_v17  ;;  %4767 = vmatpush1.bf16.msra.mxu1 %v16247_v13 }
 0x2d5   :  { %v3307_v26 = vpop.f32.mrf.mxu0 }
 0x2d6   :  { %v3394_v58 = vadd.f32 %v3393_v24, %v3307_v26 }
 0x2d7   :  { %v18395_v2 = vpop.f32.mrf.mxu0 }
 0x2d9   :  { %14937 = vmatmul.mubr.msk.bf16.vlgmr.msra.gmra.mxu0 %vm1936_vm6, %v18387_v3 }
 0x2da   :  { %14940 = vmatprep.mubr.msk.bf16.mxu0 %vm16928_vm1, %v21483_v0 }
 0x2e1   :  { %v3484_v38 = vpop.f32.mrf.mxu0  ;;  %14941 = vmatmul.mubr.msk.bf16.gmra.mxu0 %vm1936_vm6, %v18397_v33  ;;  %v3583_v41 = vpop.f32.mrf.mxu1 }
 0x2e2   :  { %v3493_v43 = vadd.f32 %v3484_v38, %v3390_v37  ;;  %14944 = vmatprep.mubr.msk.bf16.mxu0 %vm16928_vm1, %v21483_v0 }
 0x2e3   :  { %v3486_v11 = vpop.f32.mrf.mxu0  ;;  %v3585_v20 = vpop.f32.mrf.mxu1 }
 0x2e4   :  { %v3592_v27 = vadd.f32 %v3583_v41, %v3493_v43  ;;  %v3494_v46 = vadd.f32 %v3486_v11, %v3392_v42 }
 0x2e5   :  { %v3488_v47 = vpop.f32.mrf.mxu0  ;;  %v3587_v31 = vpop.f32.mrf.mxu1 }
 0x2e6   :  { %v3593_v49 = vadd.f32 %v3585_v20, %v3494_v46  ;;  %v3495_v39 = vadd.f32 %v3488_v47, %v3394_v58 }
 0x2e7   :  { %v18409_v50 = vpop.f32.mrf.mxu0  ;;  %v18411_v28 = vpop.f32.mrf.mxu1 }
 0x2e8   :  { %v3594_v45 = vadd.f32 %v3587_v31, %v3495_v39  ;;  %21491 = vst [vmem:[#allocation3_spill] sm:$0xff] %v18409_v50  ;;  %21492 = vst [vmem:[#allocation4_spill] sm:$0xff] %v18411_v28  ;;  %v16250_v31 = vld [vmem:[%s21473_s11 + $0x160] ss:$8 sps:$4 sm:$0xff]  }
 0x2e9   :  { %14945 = vmatmul.mubr.msk.bf16.gmra.mxu0 %vm1936_vm6, %v18403_v8 }
 0x2ea   :  { %14948 = vmatprep.mubr.msk.bf16.mxu0 %vm16928_vm1, %v21483_v0 }
 0x2f1   :  { %v3682_v63 = vpop.f32.mrf.mxu0  ;;  %14949 = vmatmul.mubr.msk.bf16.gmra.mxu0 %vm1936_vm6, %v18413_v23  ;;  %v3781_v34 = vpop.f32.mrf.mxu1 }
 0x2f2   :  { %v3691_v51 = vadd.f32 %v3682_v63, %v3592_v27  ;;  %14952 = vmatprep.mubr.msk.bf16.mxu0 %vm16928_vm1, %v21483_v0 }
 0x2f3   :  { %v3684_v54 = vpop.f32.mrf.mxu0  ;;  %v3783_v44 = vpop.f32.mrf.mxu1 }
 0x2f4   :  { %v18419_v12 = vadd.f32 %v3781_v34, %v3691_v51  ;;  %v3692_v56 = vadd.f32 %v3684_v54, %v3593_v49  ;;  %v16252_v49 = vld [vmem:[%s21473_s11 + $0x164] ss:$8 sps:$4 sm:$0xff]  }
 0x2f5   :  { %v3686_v57 = vpop.f32.mrf.mxu0  ;;  %v3785_v59 = vpop.f32.mrf.mxu1  ;;  %4768 = vmatprep.subr.bf16.mxu1 %v16252_v49 }
 0x2f6   :  { %v18423_v40 = vadd.f32 %v3783_v44, %v3692_v56  ;;  %v3693_v61 = vadd.f32 %v3686_v57, %v3594_v45  ;;  %4769 = vmatpush1.bf16.msra.mxu1 %v16250_v31  ;;  %v16256_v31 = vld [vmem:[%s21473_s11 + $0x140] ss:$8 sps:$4 sm:$0xff]  }
 0x2f7   :  { %v18425_v29 = vpop.f32.mrf.mxu0  ;;  %v18427_v4 = vpop.f32.mrf.mxu1 }
 0x2f8   :  { %21493 = vst [vmem:[#allocation5_spill] sm:$0xff] %v18425_v29  ;;  %21494 = vst [vmem:[#allocation6_spill] sm:$0xff] %v18427_v4  ;;  %v18429_v52 = vadd.f32 %v3785_v59, %v3693_v61  ;;  %v16253_v61 = vld [vmem:[%s21473_s11 + $0x150] ss:$8 sps:$4 sm:$0xff]  }
 0x2f9   :  { %v3828_v18 = vpop.f32.mrf.mxu0  ;;  %14953 = vmatmul.mubr.msk.bf16.gmra.mxu0 %vm1936_vm6, %v18421_v5  ;;  %v3901_v10 = vpop.f32.mrf.mxu1 }
 0x2fa   :  { %v18433_v19 = vadd.f32 %v3901_v10, %v3828_v18  ;;  %4988 = vmatprep.mubr.bf16.mxu0 %v21485_v15  ;;  %v16255_v18 = vld [vmem:[%s21473_s11 + $0x154] ss:$8 sps:$4 sm:$0xff]  }
 0x2fb   :  { %v14746_v55 = vpop.f32.mrf.mxu0  ;;  %v14770_v14 = vpop.f32.mrf.mxu1  ;;  %4770 = vmatprep.subr.bf16.mxu1 %v16255_v18 }
 0x2fc   :  { %4771 = vmatpush1.bf16.msra.mxu1 %v16253_v61 }
 0x2fd   :  { %v3831_v6 = vpop.f32.mrf.mxu0  ;;  %v3904_v60 = vpop.f32.mrf.mxu1 }
 0x2fe   :  { %v18436_v16 = vadd.f32 %v3904_v60, %v3831_v6 }
 0x2ff   :  { %v14747_v21 = vpop.f32.mrf.mxu0  ;;  %v14771_v25 = vpop.f32.mrf.mxu1 }
 0x301   :  { %v3836_v53 = vpop.f32.mrf.mxu0  ;;  %v3909_v17 = vpop.f32.mrf.mxu1 }
 0x302   :  { %v18444_v24 = vadd.f32 %v3909_v17, %v3836_v53 }
 0x303   :  { %v14750_v26 = vpop.f32.mrf.mxu0  ;;  %v14774_v37 = vpop.f32.mrf.mxu1 }
 0x305   :  { %v3839_v38 = vpop.f32.mrf.mxu0  ;;  %v3912_v41 = vpop.f32.mrf.mxu1 }
 0x306   :  { %v18446_v42 = vadd.f32 %v3912_v41, %v3839_v38 }
 0x307   :  { %v14751_v43 = vpop.f32.mrf.mxu0  ;;  %v14775_v11 = vpop.f32.mrf.mxu1 }
 0x309   :  { %v3844_v20 = vpop.f32.mrf.mxu0  ;;  %v3917_v58 = vpop.f32.mrf.mxu1 }
 0x30a   :  { %v18448_v27 = vadd.f32 %v3917_v58, %v3844_v20  ;;  %v16258_v58 = vld [vmem:[%s21473_s11 + $0x144] ss:$8 sps:$4 sm:$0xff]  }
 0x30b   :  { %v14754_v46 = vpop.f32.mrf.mxu0  ;;  %v14778_v47 = vpop.f32.mrf.mxu1  ;;  %4772 = vmatprep.subr.bf16.mxu1 %v16258_v58 }
 0x30c   :  { %4773 = vmatpush1.bf16.msra.mxu1 %v16256_v31  ;;  %v16280_v31 = vld [vmem:[%s21473_s11 + $0x1c0] ss:$8 sps:$4 sm:$0xff]  }
 0x30d   :  { %v3847_v39 = vpop.f32.mrf.mxu0  ;;  %v3920_v45 = vpop.f32.mrf.mxu1 }
 0x30e   :  { %v18456_v63 = vadd.f32 %v3920_v45, %v3847_v39 }
 0x30f   :  { %v14755_v34 = vpop.f32.mrf.mxu0  ;;  %v14779_v51 = vpop.f32.mrf.mxu1 }
 0x311   :  { %v3852_v54 = vpop.f32.mrf.mxu0  ;;  %v3925_v44 = vpop.f32.mrf.mxu1 }
 0x312   :  { %v18458_v56 = vadd.f32 %v3925_v44, %v3852_v54  ;;  %v16264_v44 = vld [vmem:[%s21473_s11 + $0x1f4] ss:$8 sps:$4 sm:$0xff]  }
 0x313   :  { %v14758_v57 = vpop.f32.mrf.mxu0  ;;  %v14782_v59 = vpop.f32.mrf.mxu1  ;;  %4964 = vmatprep.subr.bf16.mxu0 %v16264_v44 }
 0x314   :  { %v16262_v59 = vld [vmem:[%s21473_s11 + $0x1f0] ss:$8 sps:$4 sm:$0xff]  }
 0x315   :  { %v3855_v10 = vpop.f32.mrf.mxu0  ;;  %v3928_v55 = vpop.f32.mrf.mxu1  ;;  %4965 = vmatpush1.bf16.msra.mxu0 %v16262_v59 }
 0x316   :  { %v18466_v14 = vadd.f32 %v3928_v55, %v3855_v10 }
 0x317   :  { %v14759_v6 = vpop.f32.mrf.mxu0  ;;  %v14783_v60 = vpop.f32.mrf.mxu1 }
 0x318   :  { %v16270_v6 = vld [vmem:[%s21473_s11 + $0x1e4] ss:$8 sps:$4 sm:$0xff]  }
 0x319   :  { %v3860_v21 = vpop.f32.mrf.mxu0  ;;  %v3933_v25 = vpop.f32.mrf.mxu1  ;;  %4966 = vmatprep.subr.bf16.mxu0 %v16270_v6 }
 0x31a   :  { %v18468_v13 = vadd.f32 %v3933_v25, %v3860_v21  ;;  %v16268_v21 = vld [vmem:[%s21473_s11 + $0x1e0] ss:$8 sps:$4 sm:$0xff]  }
 0x31b   :  { %v14762_v30 = vpop.f32.mrf.mxu0  ;;  %v14786_v53 = vpop.f32.mrf.mxu1  ;;  %4967 = vmatpush1.bf16.msra.mxu0 %v16268_v21 }
 0x31d   :  { %v3863_v17 = vpop.f32.mrf.mxu0  ;;  %v3936_v26 = vpop.f32.mrf.mxu1 }
 0x31e   :  { %v18470_v37 = vadd.f32 %v3936_v26, %v3863_v17  ;;  %v16276_v26 = vld [vmem:[%s21473_s11 + $0x1d4] ss:$8 sps:$4 sm:$0xff]  }
 0x31f   :  { %v14763_v38 = vpop.f32.mrf.mxu0  ;;  %v14787_v41 = vpop.f32.mrf.mxu1  ;;  %4968 = vmatprep.subr.bf16.mxu0 %v16276_v26 }
 0x320   :  { %v16274_v41 = vld [vmem:[%s21473_s11 + $0x1d0] ss:$8 sps:$4 sm:$0xff]  }
 0x321   :  { %v3974_v43 = vpop.f32.mrf.mxu0  ;;  %v4057_v11 = vpop.f32.mrf.mxu1  ;;  %4969 = vmatpush1.bf16.msra.mxu0 %v16274_v41 }
 0x322   :  { %v4013_v20 = vadd.f32 %v3974_v43, %v18433_v19  ;;  %v16261_v19 = vld [vmem:[%s21473_s11 + $0x1b4] ss:$8 sps:$4 sm:$0xff]  }
 0x323   :  { %v14794_v46 = vpop.f32.mrf.mxu0  ;;  %v14818_v47 = vpop.f32.mrf.mxu1  ;;  %4865 = vmatprep.subr.bf16.mxu1 %v16261_v19 }
 0x324   :  { %v18479_v49 = vadd.f32 %v4057_v11, %v4013_v20  ;;  %v16282_v46 = vld [vmem:[%s21473_s11 + $0x1c4] ss:$8 sps:$4 sm:$0xff]  }
 0x325   :  { %v3977_v39 = vpop.f32.mrf.mxu0  ;;  %v4060_v45 = vpop.f32.mrf.mxu1  ;;  %4970 = vmatprep.subr.bf16.mxu0 %v16282_v46 }
 0x326   :  { %v4014_v34 = vadd.f32 %v3977_v39, %v18436_v16  ;;  %4971 = vmatpush1.bf16.msra.mxu0 %v16280_v31 }
 0x327   :  { %v14795_v51 = vpop.f32.mrf.mxu0  ;;  %v14819_v54 = vpop.f32.mrf.mxu1 }
 0x328   :  { %v18488_v57 = vadd.f32 %v4060_v45, %v4014_v34  ;;  %v16288_v51 = vld [vmem:[%s21473_s11 + $0x274] ss:$8 sps:$4 sm:$0xff]  }
 0x329   :  { %v3982_v61 = vpop.f32.mrf.mxu0  ;;  %v4065_v18 = vpop.f32.mrf.mxu1  ;;  %5162 = vmatprep.subr.bf16.mxu0 %v16288_v51 }
 0x32a   :  { %v4015_v16 = vadd.f32 %v3982_v61, %v18444_v24 }
 0x32b   :  { %v14798_v10 = vpop.f32.mrf.mxu0  ;;  %v14822_v55 = vpop.f32.mrf.mxu1 }
 0x32c   :  { %v18497_v60 = vadd.f32 %v4065_v18, %v4015_v16 }
 0x32d   :  { %v3985_v25 = vpop.f32.mrf.mxu0  ;;  %v4068_v30 = vpop.f32.mrf.mxu1 }
 0x32e   :  { %v4016_v53 = vadd.f32 %v3985_v25, %v18446_v42 }
 0x32f   :  { %v14799_v24 = vpop.f32.mrf.mxu0  ;;  %v14823_v17 = vpop.f32.mrf.mxu1 }
 0x330   :  { %v18506_v38 = vadd.f32 %v4068_v30, %v4016_v53 }
 0x331   :  { %v3990_v43 = vpop.f32.mrf.mxu0  ;;  %v4073_v11 = vpop.f32.mrf.mxu1 }
 0x332   :  { %v4017_v20 = vadd.f32 %v3990_v43, %v18448_v27 }
 0x333   :  { %v14802_v42 = vpop.f32.mrf.mxu0  ;;  %v14826_v58 = vpop.f32.mrf.mxu1 }
 0x334   :  { %v4100_v47 = vadd.f32 %v4073_v11, %v4017_v20 }
 0x335   :  { %v3993_v39 = vpop.f32.mrf.mxu0  ;;  %v4076_v45 = vpop.f32.mrf.mxu1 }
 0x336   :  { %v4018_v34 = vadd.f32 %v3993_v39, %v18456_v63 }
 0x337   :  { %v14803_v19 = vpop.f32.mrf.mxu0  ;;  %v14827_v27 = vpop.f32.mrf.mxu1 }
 0x338   :  { %v4101_v54 = vadd.f32 %v4076_v45, %v4018_v34 }
 0x339   :  { %v3998_v44 = vpop.f32.mrf.mxu0  ;;  %v4081_v59 = vpop.f32.mrf.mxu1 }
 0x33a   :  { %v4019_v61 = vadd.f32 %v3998_v44, %v18458_v56 }
 0x33b   :  { %v14806_v18 = vpop.f32.mrf.mxu0  ;;  %v14830_v16 = vpop.f32.mrf.mxu1 }
 0x33c   :  { %v4102_v10 = vadd.f32 %v4081_v59, %v4019_v61 }
 0x33d   :  { %v4001_v55 = vpop.f32.mrf.mxu0  ;;  %v4084_v6 = vpop.f32.mrf.mxu1 }
 0x33e   :  { %v4020_v63 = vadd.f32 %v4001_v55, %v18466_v14 }
 0x33f   :  { %v14807_v21 = vpop.f32.mrf.mxu0  ;;  %v14831_v25 = vpop.f32.mrf.mxu1 }
 0x340   :  { %v4103_v30 = vadd.f32 %v4084_v6, %v4020_v63 }
 0x341   :  { %v4006_v53 = vpop.f32.mrf.mxu0  ;;  %v4089_v24 = vpop.f32.mrf.mxu1 }
 0x342   :  { %v4021_v17 = vadd.f32 %v4006_v53, %v18468_v13 }
 0x343   :  { %v14810_v26 = vpop.f32.mrf.mxu0  ;;  %v14834_v41 = vpop.f32.mrf.mxu1 }
 0x344   :  { %v4104_v43 = vadd.f32 %v4089_v24, %v4021_v17 }
 0x345   :  { %v4009_v11 = vpop.f32.mrf.mxu0  ;;  %v4092_v20 = vpop.f32.mrf.mxu1 }
 0x346   :  { %v4022_v56 = vadd.f32 %v4009_v11, %v18470_v37 }
 0x347   :  { %v14811_v42 = vpop.f32.mrf.mxu0  ;;  %v14835_v58 = vpop.f32.mrf.mxu1 }
 0x348   :  { %v4105_v46 = vadd.f32 %v4092_v20, %v4022_v56 }
 0x349   :  { %v4140_v31 = vpop.f32.mrf.mxu0  ;;  %v4223_v39 = vpop.f32.mrf.mxu1 }
 0x34a   :  { %v4179_v14 = vadd.f32 %v4140_v31, %v18479_v49 }
 0x34b   :  { %v14842_v45 = vpop.f32.mrf.mxu0  ;;  %v14866_v34 = vpop.f32.mrf.mxu1 }
 0x34c   :  { %v18527_v19 = vadd.f32 %v4223_v39, %v4179_v14 }
 0x34d   :  { %v4143_v27 = vpop.f32.mrf.mxu0  ;;  %v4226_v13 = vpop.f32.mrf.mxu1 }
 0x34e   :  { %v4180_v51 = vadd.f32 %v4143_v27, %v18488_v57 }
 0x34f   :  { %v14843_v44 = vpop.f32.mrf.mxu0  ;;  %v14867_v59 = vpop.f32.mrf.mxu1 }
 0x350   :  { %v18530_v61 = vadd.f32 %v4226_v13, %v4180_v51 }
 0x351   :  { %v4148_v37 = vpop.f32.mrf.mxu0  ;;  %v4231_v18 = vpop.f32.mrf.mxu1 }
 0x352   :  { %v4181_v16 = vadd.f32 %v4148_v37, %v18497_v60 }
 0x353   :  { %v14846_v55 = vpop.f32.mrf.mxu0  ;;  %v14870_v6 = vpop.f32.mrf.mxu1 }
 0x354   :  { %v18533_v63 = vadd.f32 %v4231_v18, %v4181_v16 }
 0x355   :  { %v4151_v49 = vpop.f32.mrf.mxu0  ;;  %v4234_v21 = vpop.f32.mrf.mxu1 }
 0x356   :  { %v4182_v25 = vadd.f32 %v4151_v49, %v18506_v38 }
 0x357   :  { %v14847_v53 = vpop.f32.mrf.mxu0  ;;  %v14871_v24 = vpop.f32.mrf.mxu1 }
 0x358   :  { %v18536_v17 = vadd.f32 %v4234_v21, %v4182_v25 }
 0x359   :  { %v4156_v57 = vpop.f32.mrf.mxu0  ;;  %v4239_v26 = vpop.f32.mrf.mxu1 }
 0x35a   :  { %v4183_v41 = vadd.f32 %v4156_v57, %v4100_v47 }
 0x35b   :  { %v14850_v11 = vpop.f32.mrf.mxu0  ;;  %v14874_v20 = vpop.f32.mrf.mxu1 }
 0x35c   :  { %v18538_v56 = vadd.f32 %v4239_v26, %v4183_v41 }
 0x35d   :  { %v4159_v60 = vpop.f32.mrf.mxu0  ;;  %v4242_v42 = vpop.f32.mrf.mxu1 }
 0x35e   :  { %v4184_v58 = vadd.f32 %v4159_v60, %v4101_v54 }
 0x35f   :  { %v14851_v31 = vpop.f32.mrf.mxu0  ;;  %v14875_v39 = vpop.f32.mrf.mxu1 }
 0x360   :  { %v18540_v14 = vadd.f32 %v4242_v42, %v4184_v58 }
 0x361   :  { %v4164_v45 = vpop.f32.mrf.mxu0  ;;  %v4247_v38 = vpop.f32.mrf.mxu1 }
 0x362   :  { %v4185_v34 = vadd.f32 %v4164_v45, %v4102_v10 }
 0x363   :  { %v14854_v27 = vpop.f32.mrf.mxu0  ;;  %v14878_v13 = vpop.f32.mrf.mxu1 }
 0x364   :  { %v18542_v51 = vadd.f32 %v4247_v38, %v4185_v34 }
 0x365   :  { %v4167_v44 = vpop.f32.mrf.mxu0  ;;  %v4250_v47 = vpop.f32.mrf.mxu1 }
 0x366   :  { %v4186_v59 = vadd.f32 %v4167_v44, %v4103_v30 }
 0x367   :  { %v14855_v37 = vpop.f32.mrf.mxu0  ;;  %v14879_v18 = vpop.f32.mrf.mxu1 }
 0x368   :  { %v18544_v16 = vadd.f32 %v4250_v47, %v4186_v59 }
 0x369   :  { %v4172_v55 = vpop.f32.mrf.mxu0  ;;  %v4255_v54 = vpop.f32.mrf.mxu1 }
 0x36a   :  { %v4187_v6 = vadd.f32 %v4172_v55, %v4104_v43 }
 0x36b   :  { %v14858_v49 = vpop.f32.mrf.mxu0  ;;  %v14882_v21 = vpop.f32.mrf.mxu1 }
 0x36c   :  { %v18546_v25 = vadd.f32 %v4255_v54, %v4187_v6 }
 0x36d   :  { %v4175_v53 = vpop.f32.mrf.mxu0  ;;  %v4258_v10 = vpop.f32.mrf.mxu1 }
 0x36e   :  { %v4188_v24 = vadd.f32 %v4175_v53, %v4105_v46 }
 0x36f   :  { %v14859_v57 = vpop.f32.mrf.mxu0  ;;  %v14883_v26 = vpop.f32.mrf.mxu1 }
 0x370   :  { %v18548_v41 = vadd.f32 %v4258_v10, %v4188_v24 }
 0x371   :  { %v4356_v11 = vpop.f32.mrf.mxu0  ;;  %v4489_v30 = vpop.f32.mrf.mxu1 }
 0x373   :  { %v14890_v20 = vpop.f32.mrf.mxu0  ;;  %v14914_v60 = vpop.f32.mrf.mxu1 }
 0x375   :  { %v4359_v42 = vpop.f32.mrf.mxu0  ;;  %v4492_v58 = vpop.f32.mrf.mxu1 }
 0x377   :  { %v14891_v31 = vpop.f32.mrf.mxu0  ;;  %v14915_v39 = vpop.f32.mrf.mxu1 }
 0x379   :  { %v4364_v43 = vpop.f32.mrf.mxu0  ;;  %v4497_v45 = vpop.f32.mrf.mxu1 }
 0x37a   :  { %v4397_v15 = vadd.f32 %v4364_v43, %v18533_v63 }
 0x37b   :  { %v14894_v38 = vpop.f32.mrf.mxu0  ;;  %v14918_v34 = vpop.f32.mrf.mxu1 }
 0x37d   :  { %v4367_v27 = vpop.f32.mrf.mxu0  ;;  %v4500_v13 = vpop.f32.mrf.mxu1 }
 0x37f   :  { %v14895_v44 = vpop.f32.mrf.mxu0  ;;  %v14919_v46 = vpop.f32.mrf.mxu1 }
 0x380   :  { %v4395_v44 = vadd.f32 %v4356_v11, %v18527_v19 }
 0x381   :  { %v4372_v47 = vpop.f32.mrf.mxu0  ;;  %v4505_v59 = vpop.f32.mrf.mxu1 }
 0x383   :  { %v14898_v37 = vpop.f32.mrf.mxu0  ;;  %v14922_v18 = vpop.f32.mrf.mxu1 }
 0x385   :  { %v4375_v55 = vpop.f32.mrf.mxu0  ;;  %v18550_v54 = vpop.f32.mrf.mxu1 }
 0x387   :  { %v14899_v6 = vpop.f32.mrf.mxu0  ;;  %v14923_v49 = vpop.f32.mrf.mxu1 }
 0x388   :  { %v4528_v49 = vadd.f32 %v4489_v30, %v4395_v44  ;;  %v4530_v44 = vadd.f32 %v4497_v45, %v4397_v15 }
 0x389   :  { %v18552_v21 = vpop.f32.mrf.mxu0  ;;  %v18554_v53 = vpop.f32.mrf.mxu1 }
 0x38b   :  { %v14902_v10 = vpop.f32.mrf.mxu0  ;;  %v14926_v24 = vpop.f32.mrf.mxu1 }
 0x38c   :  { %v4396_v10 = vadd.f32 %v4359_v42, %v18530_v61  ;;  %v18581_v61 = vld [vmem:[%s21475_s7] ss:$0 sm:$0xff] }
 0x38d   :  { %v18556_v57 = vpop.f32.mrf.mxu0  ;;  %v18558_v26 = vpop.f32.mrf.mxu1 }
 0x38e   :  { %v4529_v0 = vadd.f32 %v4492_v58, %v4396_v10 }
 0x38f   :  { %v14903_v20 = vpop.f32.mrf.mxu0  ;;  %v14927_v60 = vpop.f32.mrf.mxu1 }
 0x391   :  { %v18560_v31 = vpop.f32.mrf.mxu0  ;;  %v18562_v39 = vpop.f32.mrf.mxu1 }
 0x393   :  { %v14906_v38 = vpop.f32.mrf.mxu0  ;;  %v14930_v34 = vpop.f32.mrf.mxu1 }
 0x394   :  { %v18574_v38 = vld [vmem:[%s21474_s6] ss:$0 sm:$0xff] }
 0x395   :  { %v18565_v46 = vpop.f32.mrf.mxu0  ;;  %v18567_v37 = vpop.f32.mrf.mxu1 }
 0x397   :  { %v14907_v18 = vpop.f32.mrf.mxu0  ;;  %v14931_v6 = vpop.f32.mrf.mxu1 }
 0x398   :  { %v4398_v18 = vadd.f32 %v4367_v27, %v18536_v17 }
 0x399   :  { %v4622_v24 = vpop.f32.mrf.mxu0 }
 0x39a   :  { %v4661_v20 = vadd.f32 %v4622_v24, %v4528_v49  ;;  %v4531_v49 = vadd.f32 %v4500_v13, %v4398_v18  ;;  %v16259_v24 = vld [vmem:[%s21473_s11 + $0x1b0] ss:$8 sps:$4 sm:$0xff]   ;;  %v4400_v13 = vadd.f32 %v4375_v55, %v18540_v14  ;;  %v16273_v14 = vld [vmem:[%s21473_s11 + $0x194] ss:$8 sps:$4 sm:$0xff]  }
 0x39b   :  { %v14938_v60 = vpop.f32.mrf.mxu0 }
 0x39c   :  { %v4671_v19 = vmul.f32 %v18574_v38, %v4661_v20 }
 0x39d   :  { %v4625_v11 = vpop.f32.mrf.mxu0 }
 0x39e   :  { %v4662_v34 = vadd.f32 %v4625_v11, %v4529_v0  ;;  %v4681_v63 = vadd.f32 %v18581_v61, %v4671_v19  ;;  %v4399_v0 = vadd.f32 %v4372_v47, %v18538_v56  ;;  %v16267_v19 = vld [vmem:[%s21473_s11 + $0x1a4] ss:$8 sps:$4 sm:$0xff]  }
 0x39f   :  { %v14939_v30 = vpop.f32.mrf.mxu0 }
 0x3a0   :  { %v4672_v42 = vmul.f32 %v18574_v38, %v4662_v34  ;;  %v4691_v17 = vmax.f32 %v4681_v63, 0.0  ;;  %v4532_v34 = vadd.f32 %v4505_v59, %v4399_v0  ;;  %v16265_v30 = vld [vmem:[%s21473_s11 + $0x1a0] ss:$8 sps:$4 sm:$0xff]   ;;  %v4533_v59 = vadd.f32 %v18550_v54, %v4400_v13  ;;  %v16271_v0 = vld [vmem:[%s21473_s11 + $0x190] ss:$8 sps:$4 sm:$0xff]  }
 0x3a1   :  { %v4630_v58 = vpop.f32.mrf.mxu0  ;;  %v16279_v54 = vld [vmem:[%s21473_s11 + $0x184] ss:$8 sps:$4 sm:$0xff]  }
 0x3a2   :  { %v4682_v43 = vadd.f32 %v18581_v61, %v4672_v42  ;;  %v4663_v6 = vadd.f32 %v4630_v58, %v4530_v44  ;;  %v21495_v44 = vmov 0   ;;  %v4401_v58 = vadd.f32 %v18552_v21, %v18542_v51 }
 0x3a3   :  { %v14942_v10 = vpop.f32.mrf.mxu0  ;;  %v4402_v21 = vadd.f32 %v18556_v57, %v18544_v16  ;;  %v4403_v16 = vadd.f32 %v18560_v31, %v18546_v25  ;;  %v16291_v25 = vld [vmem:[%s21473_s11 + $0x224] ss:$8 sps:$4 sm:$0xff]  }
 0x3a4   :  { %v4692_v27 = vmax.f32 %v4682_v43, 0.0  ;;  %v4673_v15 = vmul.f32 %v18574_v38, %v4663_v6  ;;  %v4534_v51 = vadd.f32 %v18554_v53, %v4401_v58  ;;  %v16285_v53 = vld [vmem:[%s21473_s11 + $0x234] ss:$8 sps:$4 sm:$0xff]  }
 0x3a5   :  { %v4633_v45 = vpop.f32.mrf.mxu0  ;;  %v4536_v31 = vadd.f32 %v18562_v39, %v4403_v16  ;;  %v16292_v39 = vld [vmem:[%s21473_s11 + $0x260] ss:$8 sps:$4 sm:$0xff]  }
 0x3a6   :  { %v4701_v20 = vpack.c.bf16 %v4692_v27, %v4691_v17  ;;  %v4664_v60 = vadd.f32 %v4633_v45, %v4531_v49  ;;  %v4683_v56 = vadd.f32 %v18581_v61, %v4673_v15 }
 0x3a7   :  { %v14943_v11 = vpop.f32.mrf.mxu0 }
 0x3a8   :  { %v4674_v47 = vmul.f32 %v18574_v38, %v4664_v60  ;;  %12934 = vmatmul.mubr.msk.bf16.vlgmr.msra.gmra.mxu1 %vm3265_vm7, %v4701_v20  ;;  %v4693_v43 = vmax.f32 %v4683_v56, 0.0  ;;  %v16277_v60 = vld [vmem:[%s21473_s11 + $0x180] ss:$8 sps:$4 sm:$0xff]   ;;  %v4535_v11 = vadd.f32 %v18558_v26, %v4402_v21  ;;  %v16294_v26 = vld [vmem:[%s21473_s11 + $0x264] ss:$8 sps:$4 sm:$0xff]  }
 0x3a9   :  { %4866 = vmatpush1.bf16.msra.mxu1 %v16259_v24  ;;  %v4638_v18 = vpop.f32.mrf.mxu0  ;;  %4889 = vmatprep.mubr.bf16.mxu1 %v21495_v44 }
 0x3aa   :  { %v4684_v63 = vadd.f32 %v18581_v61, %v4674_v47  ;;  %v4665_v42 = vadd.f32 %v4638_v18, %v4532_v34  ;;  %4867 = vmatprep.subr.bf16.mxu1 %v16267_v19 }
 0x3ab   :  { %v14946_v55 = vpop.f32.mrf.mxu0 }
 0x3ac   :  { %v4694_v6 = vmax.f32 %v4684_v63, 0.0  ;;  %v4675_v49 = vmul.f32 %v18574_v38, %v4665_v42  ;;  %v16286_v63 = vld [vmem:[%s21473_s11 + $0x270] ss:$8 sps:$4 sm:$0xff]   ;;  %v4404_v55 = vadd.f32 %v18565_v46, %v18548_v41 }
 0x3ad   :  { %4868 = vmatpush1.bf16.msra.mxu1 %v16265_v30  ;;  %v4641_v10 = vpop.f32.mrf.mxu0  ;;  %v16283_v30 = vld [vmem:[%s21473_s11 + $0x230] ss:$8 sps:$4 sm:$0xff]  }
 0x3ae   :  { %v4702_v17 = vpack.c.bf16 %v4694_v6, %v4693_v43  ;;  %v4666_v27 = vadd.f32 %v4641_v10, %v4533_v59  ;;  %4869 = vmatprep.subr.bf16.mxu1 %v16273_v14  ;;  %v4685_v45 = vadd.f32 %v18581_v61, %v4675_v49  ;;  %v16289_v49 = vld [vmem:[%s21473_s11 + $0x220] ss:$8 sps:$4 sm:$0xff]   ;;  %v16297_v10 = vld [vmem:[%s21473_s11 + $0x214] ss:$8 sps:$4 sm:$0xff]  }
 0x3af   :  { %v14947_v15 = vpop.f32.mrf.mxu0 }
 0x3b0   :  { %v4676_v24 = vmul.f32 %v18574_v38, %v4666_v27  ;;  %v4695_v34 = vmax.f32 %v4685_v45, 0.0  ;;  %v4537_v27 = vadd.f32 %v18567_v37, %v4404_v55  ;;  %v16295_v45 = vld [vmem:[%s21473_s11 + $0x210] ss:$8 sps:$4 sm:$0xff]   ;;  %v16303_v37 = vld [vmem:[%s21473_s11 + $0x204] ss:$8 sps:$4 sm:$0xff]  }
 0x3b1   :  { %4870 = vmatpush1.bf16.msra.mxu1 %v16271_v0  ;;  %v4646_v20 = vpop.f32.mrf.mxu0  ;;  %v16300_v0 = vld [vmem:[%s21473_s11 + $0x254] ss:$8 sps:$4 sm:$0xff]   ;;  %v16760_v55 = vld [vmem:[#allocation2 + $0x80] sm:$0xff]  }
 0x3b2   :  { %v4686_v19 = vadd.f32 %v18581_v61, %v4676_v24  ;;  %v4667_v13 = vadd.f32 %v4646_v20, %v4534_v51  ;;  %4871 = vmatprep.subr.bf16.mxu1 %v16279_v54  ;;  %v16298_v24 = vld [vmem:[%s21473_s11 + $0x250] ss:$8 sps:$4 sm:$0xff]  }
 0x3b3   :  { %v14950_v57 = vpop.f32.mrf.mxu0 }
 0x3b4   :  { %v4696_v56 = vmax.f32 %v4686_v19, 0.0  ;;  %v4677_v47 = vmul.f32 %v18574_v38, %v4667_v13  ;;  %v16306_v19 = vld [vmem:[%s21473_s11 + $0x244] ss:$8 sps:$4 sm:$0xff]   ;;  %v16301_v57 = vld [vmem:[%s21473_s11 + $0x200] ss:$8 sps:$4 sm:$0xff]  }
 0x3b5   :  { %4872 = vmatpush1.bf16.msra.mxu1 %v16277_v60  ;;  %v4649_v18 = vpop.f32.mrf.mxu0 }
 0x3b6   :  { %v4703_v42 = vpack.c.bf16 %v4696_v56, %v4695_v34  ;;  %v4668_v14 = vadd.f32 %v4649_v18, %v4535_v11  ;;  %5063 = vmatprep.subr.bf16.mxu1 %v16285_v53  ;;  %v4687_v58 = vadd.f32 %v18581_v61, %v4677_v47  ;;  %v16304_v11 = vld [vmem:[%s21473_s11 + $0x240] ss:$8 sps:$4 sm:$0xff]  }
 0x3b7   :  { %v14951_v59 = vpop.f32.mrf.mxu0 }
 0x3b8   :  { %v4678_v43 = vmul.f32 %v18574_v38, %v4668_v14  ;;  %12951 = vmatmul.mubr.msk.bf16.vlgmr.msra.gmra.mxu1 %vm3265_vm7, %v4702_v17  ;;  %12968 = vmatmul.mubr.msk.bf16.vlgmr.msra.gmra.mxu0 %vm3265_vm7, %v4703_v42  ;;  %v4697_v54 = vmax.f32 %v4687_v58, 0.0  ;;  %v16753_v42 = vld [vmem:[%s21465_s5] sm:$0xff]   ;;  %v16754_v14 = vld [vmem:[#allocation2 + $0x70] sm:$0xff]   ;;  %v16759_v59 = vld [vmem:[#allocation2 + $0x78] sm:$0xff]  }
 0x3b9   :  { %5064 = vmatpush1.bf16.msra.mxu1 %v16283_v30  ;;  %v4654_v6 = vpop.f32.mrf.mxu0  ;;  %5163 = vmatpush1.bf16.msra.mxu0 %v16286_v63  ;;  %v16750_v30 = vld [vmem:[%s21465_s5 + $0x18] sm:$0xff]   ;;  %v16752_v63 = vld [vmem:[%s21465_s5 + $0x10] sm:$0xff]   ;;  %v16764_v58 = vld [vmem:[%s21465_s5 + $0x48] sm:$0xff]  }
 0x3ba   :  { %v4688_v41 = vadd.f32 %v18581_v61, %v4678_v43  ;;  %v4669_v46 = vadd.f32 %v4654_v6, %v4536_v31  ;;  %5065 = vmatprep.subr.bf16.mxu1 %v16291_v25  ;;  %5164 = vmatprep.subr.bf16.mxu0 %v16294_v26  ;;  %v16755_v25 = vld [vmem:[%s21465_s5 + $0x28] sm:$0xff]   ;;  %v16757_v26 = vld [vmem:[%s21465_s5 + $0x20] sm:$0xff]   ;;  %v16758_v31 = vld [vmem:[%s21465_s5 + $0x30] sm:$0xff]  }
 0x3bb   :  { %v14954_v17 = vpop.f32.mrf.mxu0  ;;  %5087 = vmatprep.mubr.bf16.mxu1 %v21495_v44  ;;  %5186 = vmatprep.mubr.bf16.mxu0 %v21495_v44  ;;  %v16767_v43 = vld [vmem:[%s21465_s5 + $0x50] sm:$0xff]   ;;  %v16768_v6 = vld [vmem:[#allocation2 + $0x88] sm:$0xff]  }
 0x3bc   :  { %v4698_v15 = vmax.f32 %v4688_v41, 0.0  ;;  %v4679_v51 = vmul.f32 %v18574_v38, %v4669_v46  ;;  %v16771_v41 = vld [vmem:[#allocation2 + $0xb8] sm:$0xff]   ;;  %v16778_v17 = vld [vmem:[%s21465_s5 + $0x70] sm:$0xff]  }
 0x3bd   :  { %5066 = vmatpush1.bf16.msra.mxu1 %v16289_v49  ;;  %v4657_v21 = vpop.f32.mrf.mxu0  ;;  %5165 = vmatpush1.bf16.msra.mxu0 %v16292_v39  ;;  %v16769_v49 = vld [vmem:[#allocation2 + $0xb0] sm:$0xff]   ;;  %v16772_v46 = vld [vmem:[#allocation2 + $0x98] sm:$0xff]  }
 0x3be   :  { %v4704_v20 = vpack.c.bf16 %v4698_v15, %v4697_v54  ;;  %v4670_v60 = vadd.f32 %v4657_v21, %v4537_v27  ;;  %5067 = vmatprep.subr.bf16.mxu1 %v16297_v10  ;;  %5166 = vmatprep.subr.bf16.mxu0 %v16300_v0  ;;  %v4689_v53 = vadd.f32 %v18581_v61, %v4679_v51  ;;  %v16770_v39 = vld [vmem:[#allocation2 + $0x90] sm:$0xff]   ;;  %v16773_v10 = vld [vmem:[#allocation2 + $0xa0] sm:$0xff]   ;;  %v18838_v27 = vld [vmem:[#allocation2 + $0xb8] sm:$0xff]  }
 0x3bf   :  { %v14955_v13 = vpop.f32.mrf.mxu0  ;;  %v18813_v0 = vld [vmem:[#allocation2 + $0xb0] sm:$0xff]   ;;  %v18848_v54 = vld [vmem:[#allocation2 + $0xc0] sm:$0xff]   ;;  %v16308_v15 = vld [vmem:[#allocation2 + $0xe8] sm:$0xff]  }
 0x3c0   :  { %v4680_v16 = vmul.f32 %v18574_v38, %v4670_v60  ;;  %v4699_v56 = vmax.f32 %v4689_v53, 0.0  ;;  %v21496_v38 = vmov 0.0   ;;  %v16783_v51 = vld [vmem:[%s21465_s5 + $0x88] sm:$0xff]   ;;  %v18912_v60 = vld [vmem:[#allocation2 + $0xf8] sm:$0xff]  }
 0x3c1   :  { %5068 = vmatpush1.bf16.msra.mxu1 %v16295_v45  ;;  %5167 = vmatpush1.bf16.msra.mxu0 %v16298_v24  ;;  %v18894_v21 = vld [vmem:[#allocation2 + $0xe8] sm:$0xff]   ;;  %v16310_v45 = vld [vmem:[#allocation2 + $0xf0] sm:$0xff]  }
 0x3c2   :  { %v4690_v34 = vadd.f32 %v18581_v61, %v4680_v16  ;;  %5069 = vmatprep.subr.bf16.mxu1 %v16303_v37  ;;  %5168 = vmatprep.subr.bf16.mxu0 %v16306_v19  ;;  %v16751_v61 = vld [vmem:[%s21465_s5 + $0x8] sm:$0xff]   ;;  %v18903_v24 = vld [vmem:[#allocation2 + $0xf0] sm:$0xff]   ;;  %v16314_v37 = vld [vmem:[#allocation2 + $0x100] sm:$0xff]  }
 0x3c3   :  { %v18921_v19 = vld [vmem:[#allocation2 + $0x100] sm:$0xff]   ;;  %v16316_v13 = vld [vmem:[#allocation2 + $0x108] sm:$0xff]  }
 0x3c4   :  { %v4700_v47 = vmax.f32 %v4690_v34, 0.0 }
 0x3c5   :  { %5070 = vmatpush1.bf16.msra.mxu1 %v16301_v57  ;;  %5169 = vmatpush1.bf16.msra.mxu0 %v16304_v11 }
 0x3c6   :  { %v4705_v18 = vpack.c.bf16 %v4700_v47, %v4699_v56  ;;  %14956 = vmatprep.subr.bf16.mxu1 %v21496_v38  ;;  %14980 = vmatprep.subr.bf16.mxu0 %v21496_v38  ;;  %v18932_v47 = vld [vmem:[#allocation2 + $0xf0] sm:$0xff]  }
 0x3c8   :  { %12985 = vmatmul.mubr.msk.bf16.vlgmr.msra.gmra.mxu1 %vm3265_vm7, %v4704_v20  ;;  %13002 = vmatmul.mubr.msk.bf16.vlgmr.msra.gmra.mxu0 %vm3265_vm7, %v4705_v18  ;;  %v16312_v20 = vld [vmem:[#allocation2 + $0xf8] sm:$0xff]  }
 0x3c9   :  { %14957 = vmatpush3.bf16.msra.mxu1 %v16750_v30  ;;  %14981 = vmatpush3.bf16.msra.mxu0 %v16751_v61  ;;  %v18940_v18 = vld [vmem:[#allocation2 + $0xf8] sm:$0xff]  }
 0x3ca   :  { %14958 = vmatprep.subr.bf16.mxu1 %v21496_v38  ;;  %14982 = vmatprep.subr.bf16.mxu0 %v21496_v38 }
 0x3cb   :  { %14960 = vmatprep.mubr.msk.bf16.mxu1 %vm16928_vm1, %v21496_v38  ;;  %14984 = vmatprep.mubr.msk.bf16.mxu0 %vm16928_vm1, %v21496_v38 }
 0x3cd   :  { %14959 = vmatpush3.bf16.msra.mxu1 %v16752_v63  ;;  %14983 = vmatpush3.bf16.msra.mxu0 %v16753_v42 }
 0x3ce   :  { %15004 = vmatprep.subr.bf16.mxu1 %v21496_v38  ;;  %15028 = vmatprep.subr.bf16.mxu0 %v21496_v38 }
 0x3d0   :  { %14961 = vmatmul.mubr.msk.bf16.vlgmr.msra.gmra.mxu1 %vm1936_vm6, %v18282_v35  ;;  %14985 = vmatmul.mubr.msk.bf16.vlgmr.msra.gmra.mxu0 %vm1936_vm6, %v16754_v14  ;;  %v16756_v35 = vld [vmem:[%s21465_s5 + $0x38] sm:$0xff]  }
 0x3d1   :  { %15005 = vmatpush3.bf16.msra.mxu1 %v16755_v25  ;;  %14964 = vmatprep.mubr.msk.bf16.mxu1 %vm16928_vm1, %v21496_v38 }
 0x3d2   :  { %14988 = vmatprep.mubr.msk.bf16.mxu0 %vm16928_vm1, %v21496_v38  ;;  %15006 = vmatprep.subr.bf16.mxu1 %v21496_v38 }
 0x3d3   :  { %15029 = vmatpush3.bf16.msra.mxu0 %v16756_v35 }
 0x3d4   :  { %15030 = vmatprep.subr.bf16.mxu0 %v21496_v38 }
 0x3d5   :  { %15007 = vmatpush3.bf16.msra.mxu1 %v16757_v26 }
 0x3d6   :  { %15052 = vmatprep.subr.bf16.mxu1 %v21496_v38 }
 0x3d7   :  { %15031 = vmatpush3.bf16.msra.mxu0 %v16758_v31 }
 0x3d8   :  { %14965 = vmatmul.mubr.msk.bf16.gmra.mxu1 %vm1936_vm6, %v18306_v62  ;;  %14989 = vmatmul.mubr.msk.bf16.gmra.mxu0 %vm1936_vm6, %v16759_v59  ;;  %v16761_v62 = vld [vmem:[#allocation2 + $0x88] sm:$0xff]   ;;  %v18946_v59 = vld [vmem:[#allocation2 + $0x100] sm:$0xff]  }
 0x3d9   :  { %14968 = vmatprep.mubr.msk.bf16.mxu1 %vm16928_vm1, %v21496_v38  ;;  %14992 = vmatprep.mubr.msk.bf16.mxu0 %vm16928_vm1, %v21496_v38 }
 0x3da   :  { %15076 = vmatprep.subr.bf16.mxu0 %v21496_v38 }
 0x3e0   :  { %14969 = vmatmul.mubr.msk.bf16.gmra.mxu1 %vm1936_vm6, %v18315_v1  ;;  %14993 = vmatmul.mubr.msk.bf16.gmra.mxu0 %vm1936_vm6, %v16760_v55  ;;  %v16762_v1 = vld [vmem:[#allocation2 + $0x90] sm:$0xff]  }
 0x3e1   :  { %14972 = vmatprep.mubr.msk.bf16.mxu1 %vm16928_vm1, %v21496_v38  ;;  %14996 = vmatprep.mubr.msk.bf16.mxu0 %vm16928_vm1, %v21496_v38 }
 0x3e8   :  { %14973 = vmatmul.mubr.msk.bf16.gmra.mxu1 %vm1936_vm6, %v18324_v7  ;;  %14997 = vmatmul.mubr.msk.bf16.gmra.mxu0 %vm1936_vm6, %v16761_v62  ;;  %v16763_v7 = vld [vmem:[#allocation2 + $0x80] sm:$0xff]  }
 0x3e9   :  { %14976 = vmatprep.mubr.msk.bf16.mxu1 %vm16928_vm1, %v21496_v38  ;;  %15000 = vmatprep.mubr.msk.bf16.mxu0 %vm16928_vm1, %v21496_v38 }
 0x3f0   :  { %14977 = vmatmul.mubr.msk.bf16.gmra.mxu1 %vm1936_vm6, %v18333_v48  ;;  %15001 = vmatmul.mubr.msk.bf16.gmra.mxu0 %vm1936_vm6, %v16762_v1  ;;  %v16765_v48 = vld [vmem:[%s21465_s5 + $0x58] sm:$0xff]  }
 0x3f1   :  { %15008 = vmatprep.mubr.msk.bf16.mxu1 %vm16928_vm1, %v21496_v38  ;;  %15032 = vmatprep.mubr.msk.bf16.mxu0 %vm16928_vm1, %v21496_v38 }
 0x3f8   :  { %15009 = vmatmul.mubr.msk.bf16.vlgmr.msra.gmra.mxu1 %vm1936_vm6, %v16763_v7  ;;  %15033 = vmatmul.mubr.msk.bf16.vlgmr.msra.gmra.mxu0 %vm1936_vm6, %v18342_v9  ;;  %v16766_v9 = vld [vmem:[%s21465_s5 + $0x40] sm:$0xff]   ;;  %v18956_v7 = vld [vmem:[#allocation2 + $0x108] sm:$0xff]  }
 0x3f9   :  { %15053 = vmatpush3.bf16.msra.mxu1 %v16764_v58  ;;  %15012 = vmatprep.mubr.msk.bf16.mxu1 %vm16928_vm1, %v21496_v38 }
 0x3fa   :  { %15036 = vmatprep.mubr.msk.bf16.mxu0 %vm16928_vm1, %v21496_v38  ;;  %15054 = vmatprep.subr.bf16.mxu1 %v21496_v38 }
 0x3fb   :  { %15077 = vmatpush3.bf16.msra.mxu0 %v16765_v48 }
 0x3fc   :  { %15078 = vmatprep.subr.bf16.mxu0 %v21496_v38 }
 0x3fd   :  { %15055 = vmatpush3.bf16.msra.mxu1 %v16766_v9 }
 0x3fe   :  { %15100 = vmatprep.subr.bf16.mxu1 %v21496_v38 }
 0x3ff   :  { %15079 = vmatpush3.bf16.msra.mxu0 %v16767_v43 }
 0x400   :  { %15013 = vmatmul.mubr.msk.bf16.gmra.mxu1 %vm1936_vm6, %v16768_v6  ;;  %15037 = vmatmul.mubr.msk.bf16.gmra.mxu0 %vm1936_vm6, %v16769_v49 }
 0x401   :  { %15016 = vmatprep.mubr.msk.bf16.mxu1 %vm16928_vm1, %v21496_v38  ;;  %15040 = vmatprep.mubr.msk.bf16.mxu0 %vm16928_vm1, %v21496_v38 }
 0x402   :  { %15124 = vmatprep.subr.bf16.mxu0 %v21496_v38 }
 0x408   :  { %15017 = vmatmul.mubr.msk.bf16.gmra.mxu1 %vm1936_vm6, %v16770_v39  ;;  %15041 = vmatmul.mubr.msk.bf16.gmra.mxu0 %vm1936_vm6, %v16771_v41 }
 0x409   :  { %15020 = vmatprep.mubr.msk.bf16.mxu1 %vm16928_vm1, %v21496_v38  ;;  %15044 = vmatprep.mubr.msk.bf16.mxu0 %vm16928_vm1, %v21496_v38 }
 0x410   :  { %15021 = vmatmul.mubr.msk.bf16.gmra.mxu1 %vm1936_vm6, %v16772_v46  ;;  %15045 = vmatmul.mubr.msk.bf16.gmra.mxu0 %vm1936_vm6, %v18370_v36  ;;  %v16775_v36 = vld [vmem:[%s21465_s5 + $0x68] sm:$0xff]  }
 0x411   :  { %15024 = vmatprep.mubr.msk.bf16.mxu1 %vm16928_vm1, %v21496_v38  ;;  %15048 = vmatprep.mubr.msk.bf16.mxu0 %vm16928_vm1, %v21496_v38 }
 0x418   :  { %15025 = vmatmul.mubr.msk.bf16.gmra.mxu1 %vm1936_vm6, %v16773_v10  ;;  %15049 = vmatmul.mubr.msk.bf16.gmra.mxu0 %vm1936_vm6, %v18379_v22  ;;  %v16776_v22 = vld [vmem:[%s21465_s5 + $0x78] sm:$0xff]   ;;  %v18964_v10 = vld [vmem:[#allocation2 + $0x110] sm:$0xff]  }
 0x419   :  { %15056 = vmatprep.mubr.msk.bf16.mxu1 %vm16928_vm1, %v21496_v38  ;;  %15080 = vmatprep.mubr.msk.bf16.mxu0 %vm16928_vm1, %v21496_v38 }
 0x420   :  { %15057 = vmatmul.mubr.msk.bf16.vlgmr.msra.gmra.mxu1 %vm1936_vm6, %v18813_v0  ;;  %15081 = vmatmul.mubr.msk.bf16.vlgmr.msra.gmra.mxu0 %vm1936_vm6, %v18387_v3  ;;  %v16777_v3 = vld [vmem:[%s21465_s5 + $0x60] sm:$0xff]  }
 0x421   :  { %15101 = vmatpush3.bf16.msra.mxu1 %v16775_v36  ;;  %15060 = vmatprep.mubr.msk.bf16.mxu1 %vm16928_vm1, %v21496_v38 }
 0x422   :  { %15084 = vmatprep.mubr.msk.bf16.mxu0 %vm16928_vm1, %v21496_v38  ;;  %15102 = vmatprep.subr.bf16.mxu1 %v21496_v38 }
 0x423   :  { %15125 = vmatpush3.bf16.msra.mxu0 %v16776_v22 }
 0x424   :  { %15126 = vmatprep.subr.bf16.mxu0 %v21496_v38 }
 0x425   :  { %15103 = vmatpush3.bf16.msra.mxu1 %v16777_v3 }
 0x426   :  { %15148 = vmatprep.subr.bf16.mxu1 %v21496_v38 }
 0x427   :  { %15127 = vmatpush3.bf16.msra.mxu0 %v16778_v17 }
 0x428   :  { %15061 = vmatmul.mubr.msk.bf16.gmra.mxu1 %vm1936_vm6, %v18838_v27  ;;  %15085 = vmatmul.mubr.msk.bf16.gmra.mxu0 %vm1936_vm6, %v18397_v33  ;;  %v18858_v33 = vld [vmem:[#allocation2 + $0xc8] sm:$0xff]  }
 0x429   :  { %15064 = vmatprep.mubr.msk.bf16.mxu1 %vm16928_vm1, %v21496_v38  ;;  %15088 = vmatprep.mubr.msk.bf16.mxu0 %vm16928_vm1, %v21496_v38 }
 0x430   :  { %15065 = vmatmul.mubr.msk.bf16.gmra.mxu1 %vm1936_vm6, %v18848_v54  ;;  %15089 = vmatmul.mubr.msk.bf16.gmra.mxu0 %vm1936_vm6, %v18403_v8  ;;  %v18868_v8 = vld [vmem:[#allocation2 + $0xd0] sm:$0xff]  }
 0x431   :  { %15068 = vmatprep.mubr.msk.bf16.mxu1 %vm16928_vm1, %v21496_v38  ;;  %15092 = vmatprep.mubr.msk.bf16.mxu0 %vm16928_vm1, %v21496_v38 }
 0x438   :  { %15069 = vmatmul.mubr.msk.bf16.gmra.mxu1 %vm1936_vm6, %v18858_v33  ;;  %15093 = vmatmul.mubr.msk.bf16.gmra.mxu0 %vm1936_vm6, %v18413_v23  ;;  %v18878_v23 = vld [vmem:[#allocation2 + $0xe0] sm:$0xff]  }
 0x439   :  { %15072 = vmatprep.mubr.msk.bf16.mxu1 %vm16928_vm1, %v21496_v38  ;;  %15096 = vmatprep.mubr.msk.bf16.mxu0 %vm16928_vm1, %v21496_v38 }
 0x440   :  { %15073 = vmatmul.mubr.msk.bf16.gmra.mxu1 %vm1936_vm6, %v18868_v8  ;;  %15097 = vmatmul.mubr.msk.bf16.gmra.mxu0 %vm1936_vm6, %v18421_v5  ;;  %v16784_v5 = vld [vmem:[%s21465_s5 + $0x80] sm:$0xff]  }
 0x441   :  { %15104 = vmatprep.mubr.msk.bf16.mxu1 %vm16928_vm1, %v21496_v38  ;;  %15128 = vmatprep.mubr.msk.bf16.mxu0 %vm16928_vm1, %v21496_v38 }
 0x448   :  { %15105 = vmatmul.mubr.msk.bf16.vlgmr.msra.gmra.mxu1 %vm1936_vm6, %v18878_v23  ;;  %15129 = vmatmul.mubr.msk.bf16.vlgmr.msra.gmra.mxu0 %vm1936_vm6, %v16308_v15 }
 0x449   :  { %15149 = vmatpush3.bf16.msra.mxu1 %v16783_v51  ;;  %15108 = vmatprep.mubr.msk.bf16.mxu1 %vm16928_vm1, %v21496_v38 }
 0x44a   :  { %15132 = vmatprep.mubr.msk.bf16.mxu0 %vm16928_vm1, %v21496_v38  ;;  %15150 = vmatprep.subr.bf16.mxu1 %v21496_v38 }
 0x44d   :  { %15151 = vmatpush3.bf16.msra.mxu1 %v16784_v5 }
 0x450   :  { %15109 = vmatmul.mubr.msk.bf16.gmra.mxu1 %vm1936_vm6, %v18894_v21  ;;  %15133 = vmatmul.mubr.msk.bf16.gmra.mxu0 %vm1936_vm6, %v16310_v45 }
 0x451   :  { %15112 = vmatprep.mubr.msk.bf16.mxu1 %vm16928_vm1, %v21496_v38  ;;  %15136 = vmatprep.mubr.msk.bf16.mxu0 %vm16928_vm1, %v21496_v38 }
 0x458   :  { %15113 = vmatmul.mubr.msk.bf16.gmra.mxu1 %vm1936_vm6, %v18903_v24  ;;  %15137 = vmatmul.mubr.msk.bf16.gmra.mxu0 %vm1936_vm6, %v16312_v20 }
 0x459   :  { %15116 = vmatprep.mubr.msk.bf16.mxu1 %vm16928_vm1, %v21496_v38  ;;  %15140 = vmatprep.mubr.msk.bf16.mxu0 %vm16928_vm1, %v21496_v38 }
 0x460   :  { %15117 = vmatmul.mubr.msk.bf16.gmra.mxu1 %vm1936_vm6, %v18912_v60  ;;  %15141 = vmatmul.mubr.msk.bf16.gmra.mxu0 %vm1936_vm6, %v16314_v37 }
 0x461   :  { %15120 = vmatprep.mubr.msk.bf16.mxu1 %vm16928_vm1, %v21496_v38  ;;  %15144 = vmatprep.mubr.msk.bf16.mxu0 %vm16928_vm1, %v21496_v38 }
 0x468   :  { %15121 = vmatmul.mubr.msk.bf16.gmra.mxu1 %vm1936_vm6, %v18921_v19  ;;  %v4792_v53 = vpop.f32.mrf.mxu1  ;;  %15145 = vmatmul.mubr.msk.bf16.gmra.mxu0 %vm1936_vm6, %v16316_v13 }
 0x469   :  { %v4801_v16 = vadd.f32 %v4792_v53, %v18419_v12  ;;  %15152 = vmatprep.mubr.msk.bf16.mxu1 %vm16928_vm1, %v21496_v38  ;;  %6197 = vmatprep.mubr.bf16.mxu0 %v21495_v44 }
 0x46a   :  { %v4794_v57 = vpop.f32.mrf.mxu1 }
 0x46b   :  { %v4802_v11 = vadd.f32 %v4794_v57, %v18423_v40 }
 0x46c   :  { %v4796_v34 = vpop.f32.mrf.mxu1 }
 0x46d   :  { %v4803_v56 = vadd.f32 %v4796_v34, %v18429_v52  ;;  %v16322_v34 = vld [vmem:[%s21473_s11 + $0x2b0] ss:$8 sps:$4 sm:$0xff]  }
 0x46e   :  { %v18938_v12 = vpop.f32.mrf.mxu1 }
 0x46f   :  { %21497 = vst [vmem:[#allocation7_spill] sm:$0xff] %v18938_v12 }
 0x470   :  { %15153 = vmatmul.mubr.msk.bf16.vlgmr.msra.gmra.mxu1 %vm1936_vm6, %v18932_v47 }
 0x471   :  { %15156 = vmatprep.mubr.msk.bf16.mxu1 %vm16928_vm1, %v21496_v38 }
 0x478   :  { %v4891_v30 = vpop.f32.mrf.mxu1  ;;  %15157 = vmatmul.mubr.msk.bf16.gmra.mxu1 %vm1936_vm6, %v18940_v18  ;;  %v4990_v40 = vpop.f32.mrf.mxu0 }
 0x479   :  { %v4900_v61 = vadd.f32 %v4891_v30, %v4801_v16  ;;  %15160 = vmatprep.mubr.msk.bf16.mxu1 %vm16928_vm1, %v21496_v38 }
 0x47a   :  { %v4893_v52 = vpop.f32.mrf.mxu1  ;;  %v4992_v63 = vpop.f32.mrf.mxu0 }
 0x47b   :  { %v4999_v42 = vadd.f32 %v4990_v40, %v4900_v61  ;;  %v4901_v14 = vadd.f32 %v4893_v52, %v4802_v11 }
 0x47c   :  { %v4895_v25 = vpop.f32.mrf.mxu1  ;;  %v4994_v35 = vpop.f32.mrf.mxu0 }
 0x47d   :  { %v5000_v26 = vadd.f32 %v4992_v63, %v4901_v14  ;;  %v4902_v31 = vadd.f32 %v4895_v25, %v4803_v56  ;;  %v16324_v56 = vld [vmem:[%s21473_s11 + $0x2b4] ss:$8 sps:$4 sm:$0xff]  }
 0x47e   :  { %v18952_v62 = vpop.f32.mrf.mxu1  ;;  %v18954_v1 = vpop.f32.mrf.mxu0  ;;  %6173 = vmatprep.subr.bf16.mxu0 %v16324_v56 }
 0x47f   :  { %v5001_v55 = vadd.f32 %v4994_v35, %v4902_v31  ;;  %21498 = vst [vmem:[#allocation8_spill] sm:$0xff] %v18952_v62  ;;  %21499 = vst [vmem:[#allocation9_spill] sm:$0xff] %v18954_v1  ;;  %6174 = vmatpush1.bf16.msra.mxu0 %v16322_v34 }
 0x480   :  { %15161 = vmatmul.mubr.msk.bf16.gmra.mxu1 %vm1936_vm6, %v18946_v59 }
 0x481   :  { %15164 = vmatprep.mubr.msk.bf16.mxu1 %vm16928_vm1, %v21496_v38 }
 0x488   :  { %v5089_v58 = vpop.f32.mrf.mxu1  ;;  %15165 = vmatmul.mubr.msk.bf16.gmra.mxu1 %vm1936_vm6, %v18956_v7  ;;  %v5188_v48 = vpop.f32.mrf.mxu0 }
 0x489   :  { %v5098_v9 = vadd.f32 %v5089_v58, %v4999_v42  ;;  %15168 = vmatprep.mubr.msk.bf16.mxu1 %vm16928_vm1, %v21496_v38 }
 0x48a   :  { %v5091_v43 = vpop.f32.mrf.mxu1  ;;  %v5190_v6 = vpop.f32.mrf.mxu0 }
 0x48b   :  { %v18962_v49 = vadd.f32 %v5188_v48, %v5098_v9  ;;  %v5099_v39 = vadd.f32 %v5091_v43, %v5000_v26  ;;  %v16325_v43 = vld [vmem:[%s21473_s11 + $0x2a0] ss:$8 sps:$4 sm:$0xff]  }
 0x48c   :  { %v5093_v41 = vpop.f32.mrf.mxu1  ;;  %v5192_v46 = vpop.f32.mrf.mxu0 }
 0x48d   :  { %v18966_v36 = vadd.f32 %v5190_v6, %v5099_v39  ;;  %v5100_v22 = vadd.f32 %v5093_v41, %v5001_v55  ;;  %v16327_v6 = vld [vmem:[%s21473_s11 + $0x2a4] ss:$8 sps:$4 sm:$0xff]  }
 0x48e   :  { %v18968_v3 = vpop.f32.mrf.mxu1  ;;  %v18970_v17 = vpop.f32.mrf.mxu0  ;;  %6175 = vmatprep.subr.bf16.mxu0 %v16327_v6 }
 0x48f   :  { %21500 = vst [vmem:[#allocation10_spill] sm:$0xff] %v18968_v3  ;;  %21501 = vst [vmem:[#allocation11_spill] sm:$0xff] %v18970_v17  ;;  %v18972_v15 = vadd.f32 %v5192_v46, %v5100_v22  ;;  %6176 = vmatpush1.bf16.msra.mxu0 %v16325_v43 }
 0x490   :  { %v5235_v51 = vpop.f32.mrf.mxu1  ;;  %15169 = vmatmul.mubr.msk.bf16.gmra.mxu1 %vm1936_vm6, %v18964_v10  ;;  %v5308_v5 = vpop.f32.mrf.mxu0 }
 0x491   :  { %v18976_v45 = vadd.f32 %v5308_v5, %v5235_v51  ;;  %6395 = vmatprep.mubr.bf16.mxu1 %v21495_v44 }
 0x492   :  { %v14962_v20 = vpop.f32.mrf.mxu1  ;;  %v14986_v37 = vpop.f32.mrf.mxu0 }
 0x494   :  { %v5238_v13 = vpop.f32.mrf.mxu1  ;;  %v5311_v53 = vpop.f32.mrf.mxu0 }
 0x495   :  { %v18979_v16 = vadd.f32 %v5311_v53, %v5238_v13 }
 0x496   :  { %v14963_v57 = vpop.f32.mrf.mxu1  ;;  %v14987_v11 = vpop.f32.mrf.mxu0 }
 0x497   :  { %v16328_v57 = vld [vmem:[%s21473_s11 + $0x290] ss:$8 sps:$4 sm:$0xff]   ;;  %v16330_v11 = vld [vmem:[%s21473_s11 + $0x294] ss:$8 sps:$4 sm:$0xff]  }
 0x498   :  { %v5243_v30 = vpop.f32.mrf.mxu1  ;;  %v5316_v40 = vpop.f32.mrf.mxu0  ;;  %6177 = vmatprep.subr.bf16.mxu0 %v16330_v11  ;;  %v16336_v11 = vld [vmem:[%s21473_s11 + $0x2f4] ss:$8 sps:$4 sm:$0xff]  }
 0x499   :  { %v18987_v61 = vadd.f32 %v5316_v40, %v5243_v30  ;;  %6178 = vmatpush1.bf16.msra.mxu0 %v16328_v57 }
 0x49a   :  { %v14966_v52 = vpop.f32.mrf.mxu1  ;;  %v14990_v63 = vpop.f32.mrf.mxu0 }
 0x49c   :  { %v5246_v42 = vpop.f32.mrf.mxu1  ;;  %v5319_v14 = vpop.f32.mrf.mxu0 }
 0x49d   :  { %v18989_v25 = vadd.f32 %v5319_v14, %v5246_v42 }
 0x49e   :  { %v14967_v35 = vpop.f32.mrf.mxu1  ;;  %v14991_v26 = vpop.f32.mrf.mxu0 }
 0x4a0   :  { %v5251_v31 = vpop.f32.mrf.mxu1  ;;  %v5324_v55 = vpop.f32.mrf.mxu0 }
 0x4a1   :  { %v18991_v58 = vadd.f32 %v5324_v55, %v5251_v31 }
 0x4a2   :  { %v14970_v48 = vpop.f32.mrf.mxu1  ;;  %v14994_v9 = vpop.f32.mrf.mxu0 }
 0x4a4   :  { %v5254_v39 = vpop.f32.mrf.mxu1  ;;  %v5327_v41 = vpop.f32.mrf.mxu0 }
 0x4a5   :  { %v18999_v46 = vadd.f32 %v5327_v41, %v5254_v39  ;;  %v16333_v41 = vld [vmem:[%s21473_s11 + $0x284] ss:$8 sps:$4 sm:$0xff]  }
 0x4a6   :  { %v14971_v22 = vpop.f32.mrf.mxu1  ;;  %v14995_v51 = vpop.f32.mrf.mxu0  ;;  %6179 = vmatprep.subr.bf16.mxu0 %v16333_v41 }
 0x4a7   :  { %v16331_v51 = vld [vmem:[%s21473_s11 + $0x280] ss:$8 sps:$4 sm:$0xff]  }
 0x4a8   :  { %v5259_v5 = vpop.f32.mrf.mxu1  ;;  %v5332_v20 = vpop.f32.mrf.mxu0  ;;  %6180 = vmatpush1.bf16.msra.mxu0 %v16331_v51  ;;  %v16351_v51 = vld [vmem:[%s21473_s11 + $0x314] ss:$8 sps:$4 sm:$0xff]  }
 0x4a9   :  { %v19001_v37 = vadd.f32 %v5332_v20, %v5259_v5  ;;  %6272 = vmatprep.subr.bf16.mxu0 %v16336_v11 }
 0x4aa   :  { %v14974_v13 = vpop.f32.mrf.mxu1  ;;  %v14998_v53 = vpop.f32.mrf.mxu0 }
 0x4ac   :  { %v5262_v34 = vpop.f32.mrf.mxu1  ;;  %v5335_v56 = vpop.f32.mrf.mxu0 }
 0x4ad   :  { %v19009_v30 = vadd.f32 %v5335_v56, %v5262_v34 }
 0x4ae   :  { %v14975_v40 = vpop.f32.mrf.mxu1  ;;  %v14999_v52 = vpop.f32.mrf.mxu0 }
 0x4af   :  { %v16339_v40 = vld [vmem:[%s21473_s11 + $0x334] ss:$8 sps:$4 sm:$0xff]  }
 0x4b0   :  { %v5267_v63 = vpop.f32.mrf.mxu1  ;;  %v5340_v42 = vpop.f32.mrf.mxu0  ;;  %6371 = vmatprep.subr.bf16.mxu1 %v16339_v40  ;;  %v16355_v40 = vld [vmem:[%s21473_s11 + $0x300] ss:$8 sps:$4 sm:$0xff]  }
 0x4b1   :  { %v19011_v14 = vadd.f32 %v5340_v42, %v5267_v63  ;;  %v16337_v63 = vld [vmem:[%s21473_s11 + $0x330] ss:$8 sps:$4 sm:$0xff]  }
 0x4b2   :  { %v14978_v35 = vpop.f32.mrf.mxu1  ;;  %v15002_v26 = vpop.f32.mrf.mxu0  ;;  %6372 = vmatpush1.bf16.msra.mxu1 %v16337_v63 }
 0x4b4   :  { %v5270_v31 = vpop.f32.mrf.mxu1  ;;  %v5343_v55 = vpop.f32.mrf.mxu0 }
 0x4b5   :  { %v19013_v48 = vadd.f32 %v5343_v55, %v5270_v31  ;;  %v16345_v55 = vld [vmem:[%s21473_s11 + $0x324] ss:$8 sps:$4 sm:$0xff]  }
 0x4b6   :  { %v14979_v9 = vpop.f32.mrf.mxu1  ;;  %v15003_v43 = vpop.f32.mrf.mxu0  ;;  %6373 = vmatprep.subr.bf16.mxu1 %v16345_v55 }
 0x4b7   :  { %v16343_v43 = vld [vmem:[%s21473_s11 + $0x320] ss:$8 sps:$4 sm:$0xff]  }
 0x4b8   :  { %v5381_v6 = vpop.f32.mrf.mxu1  ;;  %v5464_v39 = vpop.f32.mrf.mxu0  ;;  %6374 = vmatpush1.bf16.msra.mxu1 %v16343_v43 }
 0x4b9   :  { %v5420_v22 = vadd.f32 %v5381_v6, %v18976_v45  ;;  %6375 = vmatprep.subr.bf16.mxu1 %v16351_v51 }
 0x4ba   :  { %v15010_v5 = vpop.f32.mrf.mxu1  ;;  %v15034_v20 = vpop.f32.mrf.mxu0 }
 0x4bb   :  { %v19022_v13 = vadd.f32 %v5464_v39, %v5420_v22  ;;  %v16349_v20 = vld [vmem:[%s21473_s11 + $0x310] ss:$8 sps:$4 sm:$0xff]  }
 0x4bc   :  { %v5384_v53 = vpop.f32.mrf.mxu1  ;;  %v5467_v57 = vpop.f32.mrf.mxu0  ;;  %6376 = vmatpush1.bf16.msra.mxu1 %v16349_v20 }
 0x4bd   :  { %v5421_v34 = vadd.f32 %v5384_v53, %v18979_v16 }
 0x4be   :  { %v15011_v56 = vpop.f32.mrf.mxu1  ;;  %v15035_v45 = vpop.f32.mrf.mxu0 }
 0x4bf   :  { %v19031_v52 = vadd.f32 %v5467_v57, %v5421_v34  ;;  %v16357_v56 = vld [vmem:[%s21473_s11 + $0x304] ss:$8 sps:$4 sm:$0xff]  }
 0x4c0   :  { %v5389_v42 = vpop.f32.mrf.mxu1  ;;  %v5472_v35 = vpop.f32.mrf.mxu0  ;;  %6377 = vmatprep.subr.bf16.mxu1 %v16357_v56 }
 0x4c1   :  { %v5422_v26 = vadd.f32 %v5389_v42, %v18987_v61  ;;  %6378 = vmatpush1.bf16.msra.mxu1 %v16355_v40 }
 0x4c2   :  { %v15014_v16 = vpop.f32.mrf.mxu1  ;;  %v15038_v31 = vpop.f32.mrf.mxu0 }
 0x4c3   :  { %v19040_v9 = vadd.f32 %v5472_v35, %v5422_v26  ;;  %v16363_v16 = vld [vmem:[%s21473_s11 + $0x3b4] ss:$8 sps:$4 sm:$0xff]  }
 0x4c4   :  { %v5392_v6 = vpop.f32.mrf.mxu1  ;;  %v5475_v39 = vpop.f32.mrf.mxu0  ;;  %6569 = vmatprep.subr.bf16.mxu1 %v16363_v16 }
 0x4c5   :  { %v5423_v41 = vadd.f32 %v5392_v6, %v18989_v25 }
 0x4c6   :  { %v15015_v61 = vpop.f32.mrf.mxu1  ;;  %v15039_v22 = vpop.f32.mrf.mxu0 }
 0x4c7   :  { %v19049_v5 = vadd.f32 %v5475_v39, %v5423_v41 }
 0x4c8   :  { %v5397_v53 = vpop.f32.mrf.mxu1  ;;  %v5480_v57 = vpop.f32.mrf.mxu0 }
 0x4c9   :  { %v5424_v11 = vadd.f32 %v5397_v53, %v18991_v58 }
 0x4ca   :  { %v15018_v25 = vpop.f32.mrf.mxu1  ;;  %v15042_v34 = vpop.f32.mrf.mxu0 }
 0x4cb   :  { %v5507_v45 = vadd.f32 %v5480_v57, %v5424_v11 }
 0x4cc   :  { %v5400_v63 = vpop.f32.mrf.mxu1  ;;  %v5483_v42 = vpop.f32.mrf.mxu0 }
 0x4cd   :  { %v5425_v35 = vadd.f32 %v5400_v63, %v18999_v46 }
 0x4ce   :  { %v15019_v26 = vpop.f32.mrf.mxu1  ;;  %v15043_v58 = vpop.f32.mrf.mxu0 }
 0x4cf   :  { %v5508_v31 = vadd.f32 %v5483_v42, %v5425_v35 }
 0x4d0   :  { %v5405_v55 = vpop.f32.mrf.mxu1  ;;  %v5488_v43 = vpop.f32.mrf.mxu0 }
 0x4d1   :  { %v5426_v6 = vadd.f32 %v5405_v55, %v19001_v37 }
 0x4d2   :  { %v15022_v39 = vpop.f32.mrf.mxu1  ;;  %v15046_v41 = vpop.f32.mrf.mxu0 }
 0x4d3   :  { %v5509_v61 = vadd.f32 %v5488_v43, %v5426_v6 }
 0x4d4   :  { %v5408_v22 = vpop.f32.mrf.mxu1  ;;  %v5491_v51 = vpop.f32.mrf.mxu0 }
 0x4d5   :  { %v5427_v46 = vadd.f32 %v5408_v22, %v19009_v30 }
 0x4d6   :  { %v15023_v20 = vpop.f32.mrf.mxu1  ;;  %v15047_v53 = vpop.f32.mrf.mxu0 }
 0x4d7   :  { %v5510_v57 = vadd.f32 %v5491_v51, %v5427_v46 }
 0x4d8   :  { %v5413_v11 = vpop.f32.mrf.mxu1  ;;  %v5496_v25 = vpop.f32.mrf.mxu0 }
 0x4d9   :  { %v5428_v34 = vadd.f32 %v5413_v11, %v19011_v14 }
 0x4da   :  { %v15026_v56 = vpop.f32.mrf.mxu1  ;;  %v15050_v40 = vpop.f32.mrf.mxu0 }
 0x4db   :  { %v5511_v63 = vadd.f32 %v5496_v25, %v5428_v34 }
 0x4dc   :  { %v5416_v42 = vpop.f32.mrf.mxu1  ;;  %v5499_v35 = vpop.f32.mrf.mxu0 }
 0x4dd   :  { %v5429_v37 = vadd.f32 %v5416_v42, %v19013_v48 }
 0x4de   :  { %v15027_v26 = vpop.f32.mrf.mxu1  ;;  %v15051_v58 = vpop.f32.mrf.mxu0 }
 0x4df   :  { %v5512_v16 = vadd.f32 %v5499_v35, %v5429_v37 }
 0x4e0   :  { %v5547_v55 = vpop.f32.mrf.mxu1  ;;  %v5630_v43 = vpop.f32.mrf.mxu0 }
 0x4e1   :  { %v5586_v30 = vadd.f32 %v5547_v55, %v19022_v13 }
 0x4e2   :  { %v15058_v6 = vpop.f32.mrf.mxu1  ;;  %v15082_v39 = vpop.f32.mrf.mxu0 }
 0x4e3   :  { %v19070_v41 = vadd.f32 %v5630_v43, %v5586_v30 }
 0x4e4   :  { %v5550_v22 = vpop.f32.mrf.mxu1  ;;  %v5633_v14 = vpop.f32.mrf.mxu0 }
 0x4e5   :  { %v5587_v51 = vadd.f32 %v5550_v22, %v19031_v52 }
 0x4e6   :  { %v15059_v46 = vpop.f32.mrf.mxu1  ;;  %v15083_v20 = vpop.f32.mrf.mxu0 }
 0x4e7   :  { %v19073_v53 = vadd.f32 %v5633_v14, %v5587_v51 }
 0x4e8   :  { %v5555_v48 = vpop.f32.mrf.mxu1  ;;  %v5638_v11 = vpop.f32.mrf.mxu0 }
 0x4e9   :  { %v5588_v25 = vadd.f32 %v5555_v48, %v19040_v9 }
 0x4ea   :  { %v15062_v34 = vpop.f32.mrf.mxu1  ;;  %v15086_v56 = vpop.f32.mrf.mxu0 }
 0x4eb   :  { %v19076_v40 = vadd.f32 %v5638_v11, %v5588_v25 }
 0x4ec   :  { %v5558_v13 = vpop.f32.mrf.mxu1  ;;  %v5641_v42 = vpop.f32.mrf.mxu0 }
 0x4ed   :  { %v5589_v35 = vadd.f32 %v5558_v13, %v19049_v5 }
 0x4ee   :  { %v15063_v37 = vpop.f32.mrf.mxu1  ;;  %v15087_v26 = vpop.f32.mrf.mxu0 }
 0x4ef   :  { %v19079_v58 = vadd.f32 %v5641_v42, %v5589_v35 }
 0x4f0   :  { %v5563_v52 = vpop.f32.mrf.mxu1  ;;  %v5646_v55 = vpop.f32.mrf.mxu0 }
 0x4f1   :  { %v5590_v43 = vadd.f32 %v5563_v52, %v5507_v45 }
 0x4f2   :  { %v15066_v30 = vpop.f32.mrf.mxu1  ;;  %v15090_v6 = vpop.f32.mrf.mxu0 }
 0x4f3   :  { %v19081_v39 = vadd.f32 %v5646_v55, %v5590_v43 }
 0x4f4   :  { %v5566_v9 = vpop.f32.mrf.mxu1  ;;  %v5649_v22 = vpop.f32.mrf.mxu0 }
 0x4f5   :  { %v5591_v14 = vadd.f32 %v5566_v9, %v5508_v31 }
 0x4f6   :  { %v15067_v51 = vpop.f32.mrf.mxu1  ;;  %v15091_v46 = vpop.f32.mrf.mxu0 }
 0x4f7   :  { %v19083_v20 = vadd.f32 %v5649_v22, %v5591_v14 }
 0x4f8   :  { %v5571_v48 = vpop.f32.mrf.mxu1  ;;  %v5654_v5 = vpop.f32.mrf.mxu0 }
 0x4f9   :  { %v5592_v11 = vadd.f32 %v5571_v48, %v5509_v61 }
 0x4fa   :  { %v15070_v25 = vpop.f32.mrf.mxu1  ;;  %v15094_v34 = vpop.f32.mrf.mxu0 }
 0x4fb   :  { %v19085_v56 = vadd.f32 %v5654_v5, %v5592_v11 }
 0x4fc   :  { %v5574_v13 = vpop.f32.mrf.mxu1  ;;  %v5657_v45 = vpop.f32.mrf.mxu0 }
 0x4fd   :  { %v5593_v42 = vadd.f32 %v5574_v13, %v5510_v57 }
 0x4fe   :  { %v15071_v35 = vpop.f32.mrf.mxu1  ;;  %v15095_v37 = vpop.f32.mrf.mxu0 }
 0x4ff   :  { %v19087_v26 = vadd.f32 %v5657_v45, %v5593_v42 }
 0x500   :  { %v5579_v52 = vpop.f32.mrf.mxu1  ;;  %v5662_v31 = vpop.f32.mrf.mxu0 }
 0x501   :  { %v5594_v55 = vadd.f32 %v5579_v52, %v5511_v63 }
 0x502   :  { %v15074_v43 = vpop.f32.mrf.mxu1  ;;  %v15098_v30 = vpop.f32.mrf.mxu0 }
 0x503   :  { %v19089_v6 = vadd.f32 %v5662_v31, %v5594_v55 }
 0x504   :  { %v5582_v9 = vpop.f32.mrf.mxu1  ;;  %v5665_v61 = vpop.f32.mrf.mxu0 }
 0x505   :  { %v5595_v22 = vadd.f32 %v5582_v9, %v5512_v16 }
 0x506   :  { %v15075_v14 = vpop.f32.mrf.mxu1  ;;  %v15099_v51 = vpop.f32.mrf.mxu0 }
 0x507   :  { %v19091_v46 = vadd.f32 %v5665_v61, %v5595_v22 }
 0x508   :  { %v5763_v48 = vpop.f32.mrf.mxu1  ;;  %v5896_v57 = vpop.f32.mrf.mxu0 }
 0x50a   :  { %v15106_v5 = vpop.f32.mrf.mxu1  ;;  %v15130_v11 = vpop.f32.mrf.mxu0 }
 0x50c   :  { %v5766_v25 = vpop.f32.mrf.mxu1  ;;  %v5899_v34 = vpop.f32.mrf.mxu0 }
 0x50d   :  { %v5803_v4 = vadd.f32 %v5766_v25, %v19073_v53 }
 0x50e   :  { %v15107_v13 = vpop.f32.mrf.mxu1  ;;  %v15131_v45 = vpop.f32.mrf.mxu0 }
 0x50f   :  { %v5936_v28 = vadd.f32 %v5899_v34, %v5803_v4 }
 0x510   :  { %v5771_v63 = vpop.f32.mrf.mxu1  ;;  %v5904_v42 = vpop.f32.mrf.mxu0 }
 0x511   :  { %v5804_v50 = vadd.f32 %v5771_v63, %v19076_v40 }
 0x512   :  { %v15110_v35 = vpop.f32.mrf.mxu1  ;;  %v15134_v37 = vpop.f32.mrf.mxu0 }
 0x514   :  { %v5774_v52 = vpop.f32.mrf.mxu1  ;;  %v5907_v31 = vpop.f32.mrf.mxu0 }
 0x516   :  { %v15111_v55 = vpop.f32.mrf.mxu1  ;;  %v15135_v16 = vpop.f32.mrf.mxu0 }
 0x518   :  { %v5779_v43 = vpop.f32.mrf.mxu1  ;;  %v5912_v30 = vpop.f32.mrf.mxu0 }
 0x51a   :  { %v15114_v9 = vpop.f32.mrf.mxu1  ;;  %v15138_v61 = vpop.f32.mrf.mxu0 }
 0x51c   :  { %v5782_v22 = vpop.f32.mrf.mxu1  ;;  %v19093_v14 = vpop.f32.mrf.mxu0 }
 0x51e   :  { %v15115_v51 = vpop.f32.mrf.mxu1  ;;  %v15139_v5 = vpop.f32.mrf.mxu0 }
 0x51f   :  { %v5802_v51 = vadd.f32 %v5763_v48, %v19070_v41 }
 0x520   :  { %v19095_v11 = vpop.f32.mrf.mxu1  ;;  %v19097_v13 = vpop.f32.mrf.mxu0 }
 0x521   :  { %v5935_v12 = vadd.f32 %v5896_v57, %v5802_v51  ;;  %v5937_v51 = vadd.f32 %v5904_v42, %v5804_v50 }
 0x522   :  { %v15118_v45 = vpop.f32.mrf.mxu1  ;;  %v15142_v35 = vpop.f32.mrf.mxu0 }
 0x524   :  { %v19099_v37 = vpop.f32.mrf.mxu1  ;;  %v19101_v17 = vpop.f32.mrf.mxu0 }
 0x526   :  { %v15119_v55 = vpop.f32.mrf.mxu1  ;;  %v15143_v16 = vpop.f32.mrf.mxu0 }
 0x528   :  { %v19103_v3 = vpop.f32.mrf.mxu1  ;;  %v19105_v9 = vpop.f32.mrf.mxu0 }
 0x52a   :  { %v15122_v61 = vpop.f32.mrf.mxu1  ;;  %v15146_v1 = vpop.f32.mrf.mxu0 }
 0x52b   :  { %v19117_v1 = vld [vmem:[%s21474_s6] ss:$0 sm:$0xff] }
 0x52c   :  { %v19108_v5 = vpop.f32.mrf.mxu1  ;;  %v19110_v62 = vpop.f32.mrf.mxu0 }
 0x52e   :  { %v15123_v45 = vpop.f32.mrf.mxu1  ;;  %v15147_v35 = vpop.f32.mrf.mxu0 }
 0x52f   :  { %v5805_v45 = vadd.f32 %v5774_v52, %v19079_v58  ;;  %v16334_v35 = vld [vmem:[%s21473_s11 + $0x2f0] ss:$8 sps:$4 sm:$0xff]  }
 0x530   :  { %v6029_v29 = vpop.f32.mrf.mxu1 }
 0x531   :  { %v6068_v55 = vadd.f32 %v6029_v29, %v5935_v12  ;;  %v19124_v29 = vld [vmem:[%s21475_s7] ss:$0 sm:$0xff]  ;;  %v5938_v34 = vadd.f32 %v5907_v31, %v5805_v45  ;;  %v5807_v31 = vadd.f32 %v5782_v22, %v19083_v20  ;;  %v16348_v20 = vld [vmem:[%s21473_s11 + $0x2d4] ss:$8 sps:$4 sm:$0xff]  }
 0x532   :  { %v15154_v16 = vpop.f32.mrf.mxu1 }
 0x533   :  { %v6078_v41 = vmul.f32 %v19117_v1, %v6068_v55 }
 0x534   :  { %v6032_v48 = vpop.f32.mrf.mxu1 }
 0x535   :  { %v6069_v61 = vadd.f32 %v6032_v48, %v5936_v28  ;;  %v6088_v4 = vadd.f32 %v19124_v29, %v6078_v41  ;;  %v5806_v28 = vadd.f32 %v5779_v43, %v19081_v39  ;;  %v16342_v41 = vld [vmem:[%s21473_s11 + $0x2e4] ss:$8 sps:$4 sm:$0xff]  }
 0x536   :  { %v15155_v57 = vpop.f32.mrf.mxu1 }
 0x537   :  { %v6079_v12 = vmul.f32 %v19117_v1, %v6069_v61  ;;  %v6098_v58 = vmax.f32 %v6088_v4, 0.0  ;;  %v5939_v61 = vadd.f32 %v5912_v30, %v5806_v28  ;;  %v16340_v57 = vld [vmem:[%s21473_s11 + $0x2e0] ss:$8 sps:$4 sm:$0xff]   ;;  %v5940_v30 = vadd.f32 %v19093_v14, %v5807_v31  ;;  %v16354_v14 = vld [vmem:[%s21473_s11 + $0x2c4] ss:$8 sps:$4 sm:$0xff]  }
 0x538   :  { %v6037_v53 = vpop.f32.mrf.mxu1 }
 0x539   :  { %v6089_v40 = vadd.f32 %v19124_v29, %v6079_v12  ;;  %v6070_v25 = vadd.f32 %v6037_v53, %v5937_v51  ;;  %v5808_v12 = vadd.f32 %v19095_v11, %v19085_v56  ;;  %v5809_v11 = vadd.f32 %v19099_v37, %v19087_v26 }
 0x53a   :  { %v15158_v63 = vpop.f32.mrf.mxu1  ;;  %v5810_v26 = vadd.f32 %v19103_v3, %v19089_v6  ;;  %v16366_v3 = vld [vmem:[%s21473_s11 + $0x364] ss:$8 sps:$4 sm:$0xff]  }
 0x53b   :  { %v6099_v52 = vmax.f32 %v6089_v40, 0.0  ;;  %v6080_v50 = vmul.f32 %v19117_v1, %v6070_v25  ;;  %v16346_v63 = vld [vmem:[%s21473_s11 + $0x2d0] ss:$8 sps:$4 sm:$0xff]   ;;  %v5941_v56 = vadd.f32 %v19097_v13, %v5808_v12  ;;  %v16360_v13 = vld [vmem:[%s21473_s11 + $0x374] ss:$8 sps:$4 sm:$0xff]   ;;  %v5942_v31 = vadd.f32 %v19101_v17, %v5809_v11 }
 0x53c   :  { %v6040_v42 = vpop.f32.mrf.mxu1  ;;  %v16369_v17 = vld [vmem:[%s21473_s11 + $0x3a4] ss:$8 sps:$4 sm:$0xff]   ;;  %v5943_v6 = vadd.f32 %v19105_v9, %v5810_v26  ;;  %v16367_v9 = vld [vmem:[%s21473_s11 + $0x3a0] ss:$8 sps:$4 sm:$0xff]   ;;  %v16370_v11 = vld [vmem:[%s21473_s11 + $0x350] ss:$8 sps:$4 sm:$0xff]  }
 0x53d   :  { %v6108_v55 = vpack.c.bf16 %v6099_v52, %v6098_v58  ;;  %v6071_v16 = vadd.f32 %v6040_v42, %v5938_v34  ;;  %v6090_v39 = vadd.f32 %v19124_v29, %v6080_v50  ;;  %v16376_v26 = vld [vmem:[%s21473_s11 + $0x340] ss:$8 sps:$4 sm:$0xff]  }
 0x53e   :  { %v15159_v48 = vpop.f32.mrf.mxu1 }
 0x53f   :  { %v6081_v43 = vmul.f32 %v19117_v1, %v6071_v16  ;;  %13079 = vmatmul.mubr.msk.bf16.vlgmr.msra.gmra.mxu0 %vm3265_vm7, %v6108_v55  ;;  %v6100_v53 = vmax.f32 %v6090_v39, 0.0  ;;  %v16352_v55 = vld [vmem:[%s21473_s11 + $0x2c0] ss:$8 sps:$4 sm:$0xff]  }
 0x540   :  { %6273 = vmatpush1.bf16.msra.mxu0 %v16334_v35  ;;  %v6045_v45 = vpop.f32.mrf.mxu1  ;;  %6296 = vmatprep.mubr.bf16.mxu0 %v21495_v44 }
 0x541   :  { %v6091_v51 = vadd.f32 %v19124_v29, %v6081_v43  ;;  %v6072_v4 = vadd.f32 %v6045_v45, %v5939_v61  ;;  %6274 = vmatprep.subr.bf16.mxu0 %v16342_v41  ;;  %v16358_v45 = vld [vmem:[%s21473_s11 + $0x370] ss:$8 sps:$4 sm:$0xff]  }
 0x542   :  { %v15162_v22 = vpop.f32.mrf.mxu1 }
 0x543   :  { %v6101_v40 = vmax.f32 %v6091_v51, 0.0  ;;  %v6082_v25 = vmul.f32 %v19117_v1, %v6072_v4 }
 0x544   :  { %6275 = vmatpush1.bf16.msra.mxu0 %v16340_v57  ;;  %v6048_v34 = vpop.f32.mrf.mxu1  ;;  %v16361_v57 = vld [vmem:[%s21473_s11 + $0x3b0] ss:$8 sps:$4 sm:$0xff]  }
 0x545   :  { %v6109_v28 = vpack.c.bf16 %v6101_v40, %v6100_v53  ;;  %v6073_v58 = vadd.f32 %v6048_v34, %v5940_v30  ;;  %6276 = vmatprep.subr.bf16.mxu0 %v16348_v20  ;;  %v6092_v50 = vadd.f32 %v19124_v29, %v6082_v25  ;;  %v5811_v30 = vadd.f32 %v19108_v5, %v19091_v46  ;;  %v16364_v40 = vld [vmem:[%s21473_s11 + $0x360] ss:$8 sps:$4 sm:$0xff]   ;;  %v16372_v25 = vld [vmem:[%s21473_s11 + $0x354] ss:$8 sps:$4 sm:$0xff]  }
 0x546   :  { %v15163_v52 = vpop.f32.mrf.mxu1  ;;  %v16375_v34 = vld [vmem:[%s21473_s11 + $0x394] ss:$8 sps:$4 sm:$0xff]  }
 0x547   :  { %v6083_v42 = vmul.f32 %v19117_v1, %v6073_v58  ;;  %v6102_v48 = vmax.f32 %v6092_v50, 0.0  ;;  %v16373_v50 = vld [vmem:[%s21473_s11 + $0x390] ss:$8 sps:$4 sm:$0xff]  }
 0x548   :  { %6277 = vmatpush1.bf16.msra.mxu0 %v16346_v63  ;;  %v6053_v35 = vpop.f32.mrf.mxu1 }
 0x549   :  { %v6093_v16 = vadd.f32 %v19124_v29, %v6083_v42  ;;  %v6074_v41 = vadd.f32 %v6053_v35, %v5941_v56  ;;  %6278 = vmatprep.subr.bf16.mxu0 %v16354_v14 }
 0x54a   :  { %v15166_v37 = vpop.f32.mrf.mxu1 }
 0x54b   :  { %v6103_v61 = vmax.f32 %v6093_v16, 0.0  ;;  %v6084_v39 = vmul.f32 %v19117_v1, %v6074_v41  ;;  %v16379_v37 = vld [vmem:[%s21473_s11 + $0x380] ss:$8 sps:$4 sm:$0xff]  }
 0x54c   :  { %6279 = vmatpush1.bf16.msra.mxu0 %v16352_v55  ;;  %v6056_v43 = vpop.f32.mrf.mxu1  ;;  %v16381_v55 = vld [vmem:[%s21473_s11 + $0x384] ss:$8 sps:$4 sm:$0xff]  }
 0x54d   :  { %v6110_v51 = vpack.c.bf16 %v6103_v61, %v6102_v48  ;;  %v6075_v4 = vadd.f32 %v6056_v43, %v5942_v31  ;;  %6470 = vmatprep.subr.bf16.mxu0 %v16360_v13  ;;  %v6094_v22 = vadd.f32 %v19124_v29, %v6084_v39  ;;  %v16789_v43 = vld [vmem:[%s21465_s5 + $0x10] sm:$0xff]  }
 0x54e   :  { %v15167_v20 = vpop.f32.mrf.mxu1 }
 0x54f   :  { %v6085_v12 = vmul.f32 %v19117_v1, %v6075_v4  ;;  %13096 = vmatmul.mubr.msk.bf16.vlgmr.msra.gmra.mxu0 %vm3265_vm7, %v6109_v28  ;;  %13113 = vmatmul.mubr.msk.bf16.vlgmr.msra.gmra.mxu1 %vm3265_vm7, %v6110_v51  ;;  %v5944_v28 = vadd.f32 %v19110_v62, %v5811_v30  ;;  %v6104_v58 = vmax.f32 %v6094_v22, 0.0  ;;  %v16378_v62 = vld [vmem:[%s21473_s11 + $0x344] ss:$8 sps:$4 sm:$0xff]   ;;  %v16804_v30 = vld [vmem:[%s21465_s5 + $0x50] sm:$0xff]  }
 0x550   :  { %6471 = vmatpush1.bf16.msra.mxu0 %v16358_v45  ;;  %v6061_v53 = vpop.f32.mrf.mxu1  ;;  %6570 = vmatpush1.bf16.msra.mxu1 %v16361_v57  ;;  %v16790_v45 = vld [vmem:[%s21465_s5] sm:$0xff]   ;;  %v16791_v57 = vld [vmem:[#allocation2 + $0xa8] sm:$0xff]  }
 0x551   :  { %v6095_v46 = vadd.f32 %v19124_v29, %v6085_v12  ;;  %v6076_v5 = vadd.f32 %v6061_v53, %v5943_v6  ;;  %6472 = vmatprep.subr.bf16.mxu0 %v16366_v3  ;;  %6571 = vmatprep.subr.bf16.mxu1 %v16369_v17  ;;  %v16792_v51 = vld [vmem:[%s21465_s5 + $0x28] sm:$0xff]   ;;  %v16794_v4 = vld [vmem:[%s21465_s5 + $0x20] sm:$0xff]   ;;  %v16795_v3 = vld [vmem:[%s21465_s5 + $0x30] sm:$0xff]  }
 0x552   :  { %v15170_v63 = vpop.f32.mrf.mxu1  ;;  %6494 = vmatprep.mubr.bf16.mxu0 %v21495_v44  ;;  %6593 = vmatprep.mubr.bf16.mxu1 %v21495_v44  ;;  %v16796_v17 = vld [vmem:[#allocation2 + $0xb0] sm:$0xff]   ;;  %v16797_v6 = vld [vmem:[#allocation2 + $0xb8] sm:$0xff]   ;;  %v16801_v20 = vld [vmem:[%s21465_s5 + $0x48] sm:$0xff]  }
 0x553   :  { %v6105_v14 = vmax.f32 %v6095_v46, 0.0  ;;  %v6086_v52 = vmul.f32 %v19117_v1, %v6076_v5  ;;  %v16805_v22 = vld [vmem:[#allocation2 + $0xc0] sm:$0xff]   ;;  %v16806_v12 = vld [vmem:[#allocation2 + $0xc8] sm:$0xff]   ;;  %v16808_v53 = vld [vmem:[#allocation2 + $0xd8] sm:$0xff]  }
 0x554   :  { %6473 = vmatpush1.bf16.msra.mxu0 %v16364_v40  ;;  %v6064_v56 = vpop.f32.mrf.mxu1  ;;  %6572 = vmatpush1.bf16.msra.mxu1 %v16367_v9  ;;  %v16813_v40 = vld [vmem:[%s21465_s5 + $0x70] sm:$0xff]   ;;  %v19393_v46 = vld [vmem:[#allocation2 + $0xf8] sm:$0xff]   ;;  %v16383_v5 = vld [vmem:[#allocation2 + $0x120] sm:$0xff]  }
 0x555   :  { %v6111_v42 = vpack.c.bf16 %v6105_v14, %v6104_v58  ;;  %v6077_v35 = vadd.f32 %v6064_v56, %v5944_v28  ;;  %6474 = vmatprep.subr.bf16.mxu0 %v16372_v25  ;;  %6573 = vmatprep.subr.bf16.mxu1 %v16375_v34  ;;  %v6096_v41 = vadd.f32 %v19124_v29, %v6086_v52  ;;  %v19383_v9 = vld [vmem:[#allocation2 + $0xf0] sm:$0xff]   ;;  %v16818_v25 = vld [vmem:[%s21465_s5 + $0x88] sm:$0xff]   ;;  %v19439_v34 = vld [vmem:[#allocation2 + $0x120] sm:$0xff]  }
 0x556   :  { %v15171_v16 = vpop.f32.mrf.mxu1  ;;  %v16385_v63 = vld [vmem:[#allocation2 + $0x128] sm:$0xff]   ;;  %v16387_v58 = vld [vmem:[#allocation2 + $0x130] sm:$0xff]   ;;  %v16389_v52 = vld [vmem:[#allocation2 + $0x138] sm:$0xff]  }
 0x557   :  { %v6087_v13 = vmul.f32 %v19117_v1, %v6077_v35  ;;  %v6106_v48 = vmax.f32 %v6096_v41, 0.0  ;;  %v16787_v1 = vld [vmem:[%s21465_s5 + $0x18] sm:$0xff]   ;;  %v19448_v28 = vld [vmem:[#allocation2 + $0x128] sm:$0xff]   ;;  %v19457_v14 = vld [vmem:[#allocation2 + $0x130] sm:$0xff]  }
 0x558   :  { %6475 = vmatpush1.bf16.msra.mxu0 %v16370_v11  ;;  %6574 = vmatpush1.bf16.msra.mxu1 %v16373_v50  ;;  %v19466_v56 = vld [vmem:[#allocation2 + $0x138] sm:$0xff]   ;;  %v16391_v11 = vld [vmem:[#allocation2 + $0x140] sm:$0xff]   ;;  %v19477_v41 = vld [vmem:[#allocation2 + $0x128] sm:$0xff]  }
 0x559   :  { %v6097_v31 = vadd.f32 %v19124_v29, %v6087_v13  ;;  %6476 = vmatprep.subr.bf16.mxu0 %v16378_v62  ;;  %6575 = vmatprep.subr.bf16.mxu1 %v16381_v55  ;;  %v16788_v29 = vld [vmem:[%s21465_s5 + $0x8] sm:$0xff]   ;;  %v19485_v13 = vld [vmem:[#allocation2 + $0x130] sm:$0xff]  }
 0x55b   :  { %v6107_v61 = vmax.f32 %v6097_v31, 0.0 }
 0x55c   :  { %6477 = vmatpush1.bf16.msra.mxu0 %v16376_v26  ;;  %6576 = vmatpush1.bf16.msra.mxu1 %v16379_v37 }
 0x55d   :  { %v6112_v39 = vpack.c.bf16 %v6107_v61, %v6106_v48  ;;  %15172 = vmatprep.subr.bf16.mxu0 %v21496_v38  ;;  %15196 = vmatprep.subr.bf16.mxu1 %v21496_v38 }
 0x55f   :  { %13130 = vmatmul.mubr.msk.bf16.vlgmr.msra.gmra.mxu0 %vm3265_vm7, %v6111_v42  ;;  %13147 = vmatmul.mubr.msk.bf16.vlgmr.msra.gmra.mxu1 %vm3265_vm7, %v6112_v39 }
 0x560   :  { %15173 = vmatpush3.bf16.msra.mxu0 %v16787_v1  ;;  %15197 = vmatpush3.bf16.msra.mxu1 %v16788_v29 }
 0x561   :  { %15174 = vmatprep.subr.bf16.mxu0 %v21496_v38  ;;  %15198 = vmatprep.subr.bf16.mxu1 %v21496_v38 }
 0x562   :  { %15176 = vmatprep.mubr.msk.bf16.mxu0 %vm16928_vm1, %v21496_v38  ;;  %15200 = vmatprep.mubr.msk.bf16.mxu1 %vm16928_vm1, %v21496_v38 }
 0x564   :  { %15175 = vmatpush3.bf16.msra.mxu0 %v16789_v43  ;;  %15199 = vmatpush3.bf16.msra.mxu1 %v16790_v45  ;;  %v19491_v45 = vld [vmem:[#allocation2 + $0x138] sm:$0xff]  }
 0x565   :  { %15220 = vmatprep.subr.bf16.mxu0 %v21496_v38  ;;  %15244 = vmatprep.subr.bf16.mxu1 %v21496_v38 }
 0x567   :  { %15177 = vmatmul.mubr.msk.bf16.vlgmr.msra.gmra.mxu0 %vm1936_vm6, %v18813_v0  ;;  %15201 = vmatmul.mubr.msk.bf16.vlgmr.msra.gmra.mxu1 %vm1936_vm6, %v16791_v57  ;;  %v16793_v0 = vld [vmem:[%s21465_s5 + $0x38] sm:$0xff]  }
 0x568   :  { %15221 = vmatpush3.bf16.msra.mxu0 %v16792_v51  ;;  %15180 = vmatprep.mubr.msk.bf16.mxu0 %vm16928_vm1, %v21496_v38 }
 0x569   :  { %15204 = vmatprep.mubr.msk.bf16.mxu1 %vm16928_vm1, %v21496_v38  ;;  %15222 = vmatprep.subr.bf16.mxu0 %v21496_v38 }
 0x56a   :  { %15245 = vmatpush3.bf16.msra.mxu1 %v16793_v0 }
 0x56b   :  { %15246 = vmatprep.subr.bf16.mxu1 %v21496_v38 }
 0x56c   :  { %15223 = vmatpush3.bf16.msra.mxu0 %v16794_v4  ;;  %v19501_v4 = vld [vmem:[#allocation2 + $0x140] sm:$0xff]  }
 0x56d   :  { %15268 = vmatprep.subr.bf16.mxu0 %v21496_v38 }
 0x56e   :  { %15247 = vmatpush3.bf16.msra.mxu1 %v16795_v3 }
 0x56f   :  { %15181 = vmatmul.mubr.msk.bf16.gmra.mxu0 %vm1936_vm6, %v18838_v27  ;;  %15205 = vmatmul.mubr.msk.bf16.gmra.mxu1 %vm1936_vm6, %v16796_v17  ;;  %v16798_v27 = vld [vmem:[#allocation2 + $0xc0] sm:$0xff]  }
 0x570   :  { %15184 = vmatprep.mubr.msk.bf16.mxu0 %vm16928_vm1, %v21496_v38  ;;  %15208 = vmatprep.mubr.msk.bf16.mxu1 %vm16928_vm1, %v21496_v38 }
 0x571   :  { %15292 = vmatprep.subr.bf16.mxu1 %v21496_v38 }
 0x577   :  { %15185 = vmatmul.mubr.msk.bf16.gmra.mxu0 %vm1936_vm6, %v18848_v54  ;;  %15209 = vmatmul.mubr.msk.bf16.gmra.mxu1 %vm1936_vm6, %v16797_v6  ;;  %v16799_v54 = vld [vmem:[#allocation2 + $0xc8] sm:$0xff]  }
 0x578   :  { %15188 = vmatprep.mubr.msk.bf16.mxu0 %vm16928_vm1, %v21496_v38  ;;  %15212 = vmatprep.mubr.msk.bf16.mxu1 %vm16928_vm1, %v21496_v38 }
 0x57f   :  { %15189 = vmatmul.mubr.msk.bf16.gmra.mxu0 %vm1936_vm6, %v18858_v33  ;;  %15213 = vmatmul.mubr.msk.bf16.gmra.mxu1 %vm1936_vm6, %v16798_v27  ;;  %v16800_v33 = vld [vmem:[#allocation2 + $0xb8] sm:$0xff]  }
 0x580   :  { %15192 = vmatprep.mubr.msk.bf16.mxu0 %vm16928_vm1, %v21496_v38  ;;  %15216 = vmatprep.mubr.msk.bf16.mxu1 %vm16928_vm1, %v21496_v38 }
 0x587   :  { %15193 = vmatmul.mubr.msk.bf16.gmra.mxu0 %vm1936_vm6, %v18868_v8  ;;  %15217 = vmatmul.mubr.msk.bf16.gmra.mxu1 %vm1936_vm6, %v16799_v54  ;;  %v16802_v8 = vld [vmem:[%s21465_s5 + $0x58] sm:$0xff]  }
 0x588   :  { %15224 = vmatprep.mubr.msk.bf16.mxu0 %vm16928_vm1, %v21496_v38  ;;  %15248 = vmatprep.mubr.msk.bf16.mxu1 %vm16928_vm1, %v21496_v38 }
 0x58f   :  { %15225 = vmatmul.mubr.msk.bf16.vlgmr.msra.gmra.mxu0 %vm1936_vm6, %v16800_v33  ;;  %15249 = vmatmul.mubr.msk.bf16.vlgmr.msra.gmra.mxu1 %vm1936_vm6, %v18878_v23  ;;  %v16803_v23 = vld [vmem:[%s21465_s5 + $0x40] sm:$0xff]  }
 0x590   :  { %15269 = vmatpush3.bf16.msra.mxu0 %v16801_v20  ;;  %15228 = vmatprep.mubr.msk.bf16.mxu0 %vm16928_vm1, %v21496_v38 }
 0x591   :  { %15252 = vmatprep.mubr.msk.bf16.mxu1 %vm16928_vm1, %v21496_v38  ;;  %15270 = vmatprep.subr.bf16.mxu0 %v21496_v38 }
 0x592   :  { %15293 = vmatpush3.bf16.msra.mxu1 %v16802_v8 }
 0x593   :  { %15294 = vmatprep.subr.bf16.mxu1 %v21496_v38 }
 0x594   :  { %15271 = vmatpush3.bf16.msra.mxu0 %v16803_v23 }
 0x595   :  { %15316 = vmatprep.subr.bf16.mxu0 %v21496_v38 }
 0x596   :  { %15295 = vmatpush3.bf16.msra.mxu1 %v16804_v30  ;;  %v19509_v30 = vld [vmem:[#allocation2 + $0x148] sm:$0xff]  }
 0x597   :  { %15229 = vmatmul.mubr.msk.bf16.gmra.mxu0 %vm1936_vm6, %v16805_v22  ;;  %15253 = vmatmul.mubr.msk.bf16.gmra.mxu1 %vm1936_vm6, %v18894_v21  ;;  %v16807_v21 = vld [vmem:[#allocation2 + $0xd0] sm:$0xff]  }
 0x598   :  { %15232 = vmatprep.mubr.msk.bf16.mxu0 %vm16928_vm1, %v21496_v38  ;;  %15256 = vmatprep.mubr.msk.bf16.mxu1 %vm16928_vm1, %v21496_v38 }
 0x599   :  { %15340 = vmatprep.subr.bf16.mxu1 %v21496_v38 }
 0x59f   :  { %15233 = vmatmul.mubr.msk.bf16.gmra.mxu0 %vm1936_vm6, %v16806_v12  ;;  %15257 = vmatmul.mubr.msk.bf16.gmra.mxu1 %vm1936_vm6, %v18903_v24  ;;  %v19358_v24 = vld [vmem:[#allocation2 + $0xe8] sm:$0xff]  }
 0x5a0   :  { %15236 = vmatprep.mubr.msk.bf16.mxu0 %vm16928_vm1, %v21496_v38  ;;  %15260 = vmatprep.mubr.msk.bf16.mxu1 %vm16928_vm1, %v21496_v38 }
 0x5a7   :  { %15237 = vmatmul.mubr.msk.bf16.gmra.mxu0 %vm1936_vm6, %v16807_v21  ;;  %15261 = vmatmul.mubr.msk.bf16.gmra.mxu1 %vm1936_vm6, %v18912_v60  ;;  %v16810_v60 = vld [vmem:[%s21465_s5 + $0x68] sm:$0xff]  }
 0x5a8   :  { %15240 = vmatprep.mubr.msk.bf16.mxu0 %vm16928_vm1, %v21496_v38  ;;  %15264 = vmatprep.mubr.msk.bf16.mxu1 %vm16928_vm1, %v21496_v38 }
 0x5af   :  { %15241 = vmatmul.mubr.msk.bf16.gmra.mxu0 %vm1936_vm6, %v16808_v53  ;;  %15265 = vmatmul.mubr.msk.bf16.gmra.mxu1 %vm1936_vm6, %v18921_v19  ;;  %v16811_v19 = vld [vmem:[%s21465_s5 + $0x78] sm:$0xff]  }
 0x5b0   :  { %15272 = vmatprep.mubr.msk.bf16.mxu0 %vm16928_vm1, %v21496_v38  ;;  %15296 = vmatprep.mubr.msk.bf16.mxu1 %vm16928_vm1, %v21496_v38 }
 0x5b7   :  { %15273 = vmatmul.mubr.msk.bf16.vlgmr.msra.gmra.mxu0 %vm1936_vm6, %v19358_v24  ;;  %15297 = vmatmul.mubr.msk.bf16.vlgmr.msra.gmra.mxu1 %vm1936_vm6, %v18932_v47  ;;  %v16812_v47 = vld [vmem:[%s21465_s5 + $0x60] sm:$0xff]  }
 0x5b8   :  { %15317 = vmatpush3.bf16.msra.mxu0 %v16810_v60  ;;  %15276 = vmatprep.mubr.msk.bf16.mxu0 %vm16928_vm1, %v21496_v38 }
 0x5b9   :  { %15300 = vmatprep.mubr.msk.bf16.mxu1 %vm16928_vm1, %v21496_v38  ;;  %15318 = vmatprep.subr.bf16.mxu0 %v21496_v38 }
 0x5ba   :  { %15341 = vmatpush3.bf16.msra.mxu1 %v16811_v19 }
 0x5bb   :  { %15342 = vmatprep.subr.bf16.mxu1 %v21496_v38 }
 0x5bc   :  { %15319 = vmatpush3.bf16.msra.mxu0 %v16812_v47 }
 0x5bd   :  { %15364 = vmatprep.subr.bf16.mxu0 %v21496_v38 }
 0x5be   :  { %15343 = vmatpush3.bf16.msra.mxu1 %v16813_v40 }
 0x5bf   :  { %15277 = vmatmul.mubr.msk.bf16.gmra.mxu0 %vm1936_vm6, %v19383_v9  ;;  %15301 = vmatmul.mubr.msk.bf16.gmra.mxu1 %vm1936_vm6, %v18940_v18  ;;  %v19403_v18 = vld [vmem:[#allocation2 + $0x100] sm:$0xff]  }
 0x5c0   :  { %15280 = vmatprep.mubr.msk.bf16.mxu0 %vm16928_vm1, %v21496_v38  ;;  %15304 = vmatprep.mubr.msk.bf16.mxu1 %vm16928_vm1, %v21496_v38 }
 0x5c7   :  { %15281 = vmatmul.mubr.msk.bf16.gmra.mxu0 %vm1936_vm6, %v19393_v46  ;;  %15305 = vmatmul.mubr.msk.bf16.gmra.mxu1 %vm1936_vm6, %v18946_v59  ;;  %v19413_v59 = vld [vmem:[#allocation2 + $0x108] sm:$0xff]  }
 0x5c8   :  { %15284 = vmatprep.mubr.msk.bf16.mxu0 %vm16928_vm1, %v21496_v38  ;;  %15308 = vmatprep.mubr.msk.bf16.mxu1 %vm16928_vm1, %v21496_v38 }
 0x5cf   :  { %15285 = vmatmul.mubr.msk.bf16.gmra.mxu0 %vm1936_vm6, %v19403_v18  ;;  %15309 = vmatmul.mubr.msk.bf16.gmra.mxu1 %vm1936_vm6, %v18956_v7  ;;  %v19423_v7 = vld [vmem:[#allocation2 + $0x118] sm:$0xff]  }
 0x5d0   :  { %15288 = vmatprep.mubr.msk.bf16.mxu0 %vm16928_vm1, %v21496_v38  ;;  %15312 = vmatprep.mubr.msk.bf16.mxu1 %vm16928_vm1, %v21496_v38 }
 0x5d7   :  { %15289 = vmatmul.mubr.msk.bf16.gmra.mxu0 %vm1936_vm6, %v19413_v59  ;;  %15313 = vmatmul.mubr.msk.bf16.gmra.mxu1 %vm1936_vm6, %v18964_v10  ;;  %v16819_v10 = vld [vmem:[%s21465_s5 + $0x80] sm:$0xff]  }
 0x5d8   :  { %15320 = vmatprep.mubr.msk.bf16.mxu0 %vm16928_vm1, %v21496_v38  ;;  %15344 = vmatprep.mubr.msk.bf16.mxu1 %vm16928_vm1, %v21496_v38 }
 0x5df   :  { %15321 = vmatmul.mubr.msk.bf16.vlgmr.msra.gmra.mxu0 %vm1936_vm6, %v19423_v7  ;;  %15345 = vmatmul.mubr.msk.bf16.vlgmr.msra.gmra.mxu1 %vm1936_vm6, %v16383_v5 }
 0x5e0   :  { %15365 = vmatpush3.bf16.msra.mxu0 %v16818_v25  ;;  %15324 = vmatprep.mubr.msk.bf16.mxu0 %vm16928_vm1, %v21496_v38 }
 0x5e1   :  { %15348 = vmatprep.mubr.msk.bf16.mxu1 %vm16928_vm1, %v21496_v38  ;;  %15366 = vmatprep.subr.bf16.mxu0 %v21496_v38 }
 0x5e4   :  { %15367 = vmatpush3.bf16.msra.mxu0 %v16819_v10 }
 0x5e7   :  { %15325 = vmatmul.mubr.msk.bf16.gmra.mxu0 %vm1936_vm6, %v19439_v34  ;;  %15349 = vmatmul.mubr.msk.bf16.gmra.mxu1 %vm1936_vm6, %v16385_v63 }
 0x5e8   :  { %15328 = vmatprep.mubr.msk.bf16.mxu0 %vm16928_vm1, %v21496_v38  ;;  %15352 = vmatprep.mubr.msk.bf16.mxu1 %vm16928_vm1, %v21496_v38 }
 0x5ef   :  { %15329 = vmatmul.mubr.msk.bf16.gmra.mxu0 %vm1936_vm6, %v19448_v28  ;;  %15353 = vmatmul.mubr.msk.bf16.gmra.mxu1 %vm1936_vm6, %v16387_v58 }
 0x5f0   :  { %15332 = vmatprep.mubr.msk.bf16.mxu0 %vm16928_vm1, %v21496_v38  ;;  %15356 = vmatprep.mubr.msk.bf16.mxu1 %vm16928_vm1, %v21496_v38 }
 0x5f7   :  { %15333 = vmatmul.mubr.msk.bf16.gmra.mxu0 %vm1936_vm6, %v19457_v14  ;;  %15357 = vmatmul.mubr.msk.bf16.gmra.mxu1 %vm1936_vm6, %v16389_v52 }
 0x5f8   :  { %15336 = vmatprep.mubr.msk.bf16.mxu0 %vm16928_vm1, %v21496_v38  ;;  %15360 = vmatprep.mubr.msk.bf16.mxu1 %vm16928_vm1, %v21496_v38 }
 0x5ff   :  { %15337 = vmatmul.mubr.msk.bf16.gmra.mxu0 %vm1936_vm6, %v19466_v56  ;;  %v6199_v50 = vpop.f32.mrf.mxu0  ;;  %15361 = vmatmul.mubr.msk.bf16.gmra.mxu1 %vm1936_vm6, %v16391_v11 }
 0x600   :  { %v6208_v42 = vadd.f32 %v6199_v50, %v18962_v49  ;;  %15368 = vmatprep.mubr.msk.bf16.mxu0 %vm16928_vm1, %v21496_v38  ;;  %7604 = vmatprep.mubr.bf16.mxu1 %v21495_v44  ;;  %v16397_v50 = vld [vmem:[%s21473_s11 + $0x3f0] ss:$8 sps:$4 sm:$0xff]  }
 0x601   :  { %v6201_v35 = vpop.f32.mrf.mxu0 }
 0x602   :  { %v6209_v62 = vadd.f32 %v6201_v35, %v18966_v36 }
 0x603   :  { %v6203_v55 = vpop.f32.mrf.mxu0 }
 0x604   :  { %v6210_v16 = vadd.f32 %v6203_v55, %v18972_v15 }
 0x605   :  { %v19483_v49 = vpop.f32.mrf.mxu0 }
 0x606   :  { %21502 = vst [vmem:[#allocation12_spill] sm:$0xff] %v19483_v49 }
 0x607   :  { %15369 = vmatmul.mubr.msk.bf16.vlgmr.msra.gmra.mxu0 %vm1936_vm6, %v19477_v41 }
 0x608   :  { %15372 = vmatprep.mubr.msk.bf16.mxu0 %vm16928_vm1, %v21496_v38 }
 0x60f   :  { %v6298_v26 = vpop.f32.mrf.mxu0  ;;  %15373 = vmatmul.mubr.msk.bf16.gmra.mxu0 %vm1936_vm6, %v19485_v13  ;;  %v6397_v36 = vpop.f32.mrf.mxu1 }
 0x610   :  { %v6307_v37 = vadd.f32 %v6298_v26, %v6208_v42  ;;  %15376 = vmatprep.mubr.msk.bf16.mxu0 %vm16928_vm1, %v21496_v38  ;;  %v16399_v42 = vld [vmem:[%s21473_s11 + $0x3f4] ss:$8 sps:$4 sm:$0xff]  }
 0x611   :  { %v6300_v15 = vpop.f32.mrf.mxu0  ;;  %v6399_v31 = vpop.f32.mrf.mxu1  ;;  %7580 = vmatprep.subr.bf16.mxu1 %v16399_v42 }
 0x612   :  { %v6406_v48 = vadd.f32 %v6397_v36, %v6307_v37  ;;  %v6308_v61 = vadd.f32 %v6300_v15, %v6209_v62  ;;  %7581 = vmatpush1.bf16.msra.mxu1 %v16397_v50 }
 0x613   :  { %v6302_v39 = vpop.f32.mrf.mxu0  ;;  %v6401_v1 = vpop.f32.mrf.mxu1 }
 0x614   :  { %v6407_v29 = vadd.f32 %v6399_v31, %v6308_v61  ;;  %v6309_v43 = vadd.f32 %v6302_v39, %v6210_v16 }
 0x615   :  { %v19497_v51 = vpop.f32.mrf.mxu0  ;;  %v19499_v0 = vpop.f32.mrf.mxu1 }
 0x616   :  { %v6408_v57 = vadd.f32 %v6401_v1, %v6309_v43  ;;  %21503 = vst [vmem:[#allocation13_spill] sm:$0xff] %v19497_v51  ;;  %21504 = vst [vmem:[#allocation14_spill] sm:$0xff] %v19499_v0 }
 0x617   :  { %15377 = vmatmul.mubr.msk.bf16.gmra.mxu0 %vm1936_vm6, %v19491_v45 }
 0x618   :  { %15380 = vmatprep.mubr.msk.bf16.mxu0 %vm16928_vm1, %v21496_v38 }
 0x61f   :  { %v6496_v3 = vpop.f32.mrf.mxu0  ;;  %15381 = vmatmul.mubr.msk.bf16.gmra.mxu0 %vm1936_vm6, %v19501_v4  ;;  %v6595_v17 = vpop.f32.mrf.mxu1 }
 0x620   :  { %v6505_v6 = vadd.f32 %v6496_v3, %v6406_v48  ;;  %15384 = vmatprep.mubr.msk.bf16.mxu0 %vm16928_vm1, %v21496_v38  ;;  %v16402_v3 = vld [vmem:[%s21473_s11 + $0x3e4] ss:$8 sps:$4 sm:$0xff]  }
 0x621   :  { %v6498_v27 = vpop.f32.mrf.mxu0  ;;  %v6597_v54 = vpop.f32.mrf.mxu1  ;;  %7582 = vmatprep.subr.bf16.mxu1 %v16402_v3  ;;  %v16406_v3 = vld [vmem:[%s21473_s11 + $0x3c0] ss:$8 sps:$4 sm:$0xff]  }
 0x622   :  { %v19507_v33 = vadd.f32 %v6595_v17, %v6505_v6  ;;  %v6506_v20 = vadd.f32 %v6498_v27, %v6407_v29 }
 0x623   :  { %v6500_v8 = vpop.f32.mrf.mxu0  ;;  %v6599_v23 = vpop.f32.mrf.mxu1 }
 0x624   :  { %v19511_v22 = vadd.f32 %v6597_v54, %v6506_v20  ;;  %v6507_v12 = vadd.f32 %v6500_v8, %v6408_v57  ;;  %v16400_v57 = vld [vmem:[%s21473_s11 + $0x3e0] ss:$8 sps:$4 sm:$0xff]  }
 0x625   :  { %v19513_v21 = vpop.f32.mrf.mxu0  ;;  %v19515_v53 = vpop.f32.mrf.mxu1  ;;  %7583 = vmatpush1.bf16.msra.mxu1 %v16400_v57 }
 0x626   :  { %21505 = vst [vmem:[#allocation15_spill] sm:$0xff] %v19513_v21  ;;  %21506 = vst [vmem:[#allocation16_spill] sm:$0xff] %v19515_v53  ;;  %v19517_v60 = vadd.f32 %v6599_v23, %v6507_v12 }
 0x627   :  { %v6642_v19 = vpop.f32.mrf.mxu0  ;;  %15385 = vmatmul.mubr.msk.bf16.gmra.mxu0 %vm1936_vm6, %v19509_v30  ;;  %v6715_v47 = vpop.f32.mrf.mxu1 }
 0x628   :  { %v19521_v40 = vadd.f32 %v6715_v47, %v6642_v19  ;;  %7802 = vmatprep.mubr.bf16.mxu0 %v21495_v44 }
 0x629   :  { %v15178_v5 = vpop.f32.mrf.mxu0  ;;  %v15202_v25 = vpop.f32.mrf.mxu1 }
 0x62a   :  { %v16403_v5 = vld [vmem:[%s21473_s11 + $0x3d0] ss:$8 sps:$4 sm:$0xff]   ;;  %v16405_v25 = vld [vmem:[%s21473_s11 + $0x3d4] ss:$8 sps:$4 sm:$0xff]  }
 0x62b   :  { %v6645_v10 = vpop.f32.mrf.mxu0  ;;  %v6718_v63 = vpop.f32.mrf.mxu1  ;;  %7584 = vmatprep.subr.bf16.mxu1 %v16405_v25 }
 0x62c   :  { %v19524_v58 = vadd.f32 %v6718_v63, %v6645_v10  ;;  %7585 = vmatpush1.bf16.msra.mxu1 %v16403_v5  ;;  %v16414_v5 = vld [vmem:[%s21473_s11 + $0x474] ss:$8 sps:$4 sm:$0xff]  }
 0x62d   :  { %v15179_v52 = vpop.f32.mrf.mxu0  ;;  %v15203_v11 = vpop.f32.mrf.mxu1  ;;  %7778 = vmatprep.subr.bf16.mxu0 %v16414_v5 }
 0x62f   :  { %v6650_v35 = vpop.f32.mrf.mxu0  ;;  %v6723_v62 = vpop.f32.mrf.mxu1 }
 0x630   :  { %v19532_v55 = vadd.f32 %v6723_v62, %v6650_v35 }
 0x631   :  { %v15182_v16 = vpop.f32.mrf.mxu0  ;;  %v15206_v26 = vpop.f32.mrf.mxu1 }
 0x633   :  { %v6653_v36 = vpop.f32.mrf.mxu0  ;;  %v6726_v37 = vpop.f32.mrf.mxu1 }
 0x634   :  { %v19534_v15 = vadd.f32 %v6726_v37, %v6653_v36 }
 0x635   :  { %v15183_v31 = vpop.f32.mrf.mxu0  ;;  %v15207_v48 = vpop.f32.mrf.mxu1 }
 0x637   :  { %v6658_v61 = vpop.f32.mrf.mxu0  ;;  %v6731_v39 = vpop.f32.mrf.mxu1 }
 0x638   :  { %v19536_v1 = vadd.f32 %v6731_v39, %v6658_v61 }
 0x639   :  { %v15186_v29 = vpop.f32.mrf.mxu0  ;;  %v15210_v43 = vpop.f32.mrf.mxu1 }
 0x63a   :  { %v16408_v43 = vld [vmem:[%s21473_s11 + $0x3c4] ss:$8 sps:$4 sm:$0xff]  }
 0x63b   :  { %v6661_v17 = vpop.f32.mrf.mxu0  ;;  %v6734_v6 = vpop.f32.mrf.mxu1  ;;  %7586 = vmatprep.subr.bf16.mxu1 %v16408_v43  ;;  %v16424_v43 = vld [vmem:[%s21473_s11 + $0x450] ss:$8 sps:$4 sm:$0xff]  }
 0x63c   :  { %v19544_v27 = vadd.f32 %v6734_v6, %v6661_v17  ;;  %7587 = vmatpush1.bf16.msra.mxu1 %v16406_v3 }
 0x63d   :  { %v15187_v54 = vpop.f32.mrf.mxu0  ;;  %v15211_v20 = vpop.f32.mrf.mxu1 }
 0x63f   :  { %v6666_v8 = vpop.f32.mrf.mxu0  ;;  %v6739_v23 = vpop.f32.mrf.mxu1 }
 0x640   :  { %v19546_v12 = vadd.f32 %v6739_v23, %v6666_v8  ;;  %v16411_v23 = vld [vmem:[%s21473_s11 + $0x434] ss:$8 sps:$4 sm:$0xff]  }
 0x641   :  { %v15190_v19 = vpop.f32.mrf.mxu0  ;;  %v15214_v47 = vpop.f32.mrf.mxu1  ;;  %7679 = vmatprep.subr.bf16.mxu1 %v16411_v23  ;;  %v16430_v23 = vld [vmem:[%s21473_s11 + $0x440] ss:$8 sps:$4 sm:$0xff]  }
 0x643   :  { %v6669_v10 = vpop.f32.mrf.mxu0  ;;  %v6742_v63 = vpop.f32.mrf.mxu1 }
 0x644   :  { %v19554_v52 = vadd.f32 %v6742_v63, %v6669_v10  ;;  %v16412_v10 = vld [vmem:[%s21473_s11 + $0x470] ss:$8 sps:$4 sm:$0xff]  }
 0x645   :  { %v15191_v11 = vpop.f32.mrf.mxu0  ;;  %v15215_v50 = vpop.f32.mrf.mxu1  ;;  %7779 = vmatpush1.bf16.msra.mxu0 %v16412_v10  ;;  %v16438_v10 = vld [vmem:[%s21473_s11 + $0x4f4] ss:$8 sps:$4 sm:$0xff]  }
 0x647   :  { %v6674_v42 = vpop.f32.mrf.mxu0  ;;  %v6747_v35 = vpop.f32.mrf.mxu1 }
 0x648   :  { %v19556_v62 = vadd.f32 %v6747_v35, %v6674_v42  ;;  %v16420_v35 = vld [vmem:[%s21473_s11 + $0x464] ss:$8 sps:$4 sm:$0xff]  }
 0x649   :  { %v15194_v16 = vpop.f32.mrf.mxu0  ;;  %v15218_v26 = vpop.f32.mrf.mxu1  ;;  %7780 = vmatprep.subr.bf16.mxu0 %v16420_v35 }
 0x64a   :  { %v16418_v26 = vld [vmem:[%s21473_s11 + $0x460] ss:$8 sps:$4 sm:$0xff]  }
 0x64b   :  { %v6677_v36 = vpop.f32.mrf.mxu0  ;;  %v6750_v37 = vpop.f32.mrf.mxu1  ;;  %7781 = vmatpush1.bf16.msra.mxu0 %v16418_v26 }
 0x64c   :  { %v19558_v31 = vadd.f32 %v6750_v37, %v6677_v36 }
 0x64d   :  { %v15195_v48 = vpop.f32.mrf.mxu0  ;;  %v15219_v61 = vpop.f32.mrf.mxu1 }
 0x64f   :  { %v6788_v39 = vpop.f32.mrf.mxu0  ;;  %v6871_v29 = vpop.f32.mrf.mxu1 }
 0x650   :  { %v6827_v57 = vadd.f32 %v6788_v39, %v19521_v40  ;;  %v16426_v39 = vld [vmem:[%s21473_s11 + $0x454] ss:$8 sps:$4 sm:$0xff]  }
 0x651   :  { %v15226_v17 = vpop.f32.mrf.mxu0  ;;  %v15250_v6 = vpop.f32.mrf.mxu1  ;;  %7782 = vmatprep.subr.bf16.mxu0 %v16426_v39 }
 0x652   :  { %v19567_v54 = vadd.f32 %v6871_v29, %v6827_v57  ;;  %7783 = vmatpush1.bf16.msra.mxu0 %v16424_v43 }
 0x653   :  { %v6791_v20 = vpop.f32.mrf.mxu0  ;;  %v6874_v8 = vpop.f32.mrf.mxu1 }
 0x654   :  { %v6828_v19 = vadd.f32 %v6791_v20, %v19524_v58  ;;  %v16432_v20 = vld [vmem:[%s21473_s11 + $0x444] ss:$8 sps:$4 sm:$0xff]  }
 0x655   :  { %v15227_v47 = vpop.f32.mrf.mxu0  ;;  %v15251_v40 = vpop.f32.mrf.mxu1  ;;  %7784 = vmatprep.subr.bf16.mxu0 %v16432_v20 }
 0x656   :  { %v19576_v25 = vadd.f32 %v6874_v8, %v6828_v19  ;;  %7785 = vmatpush1.bf16.msra.mxu0 %v16430_v23 }
 0x657   :  { %v6796_v63 = vpop.f32.mrf.mxu0  ;;  %v6879_v11 = vpop.f32.mrf.mxu1  ;;  %7976 = vmatprep.subr.bf16.mxu0 %v16438_v10 }
 0x658   :  { %v6829_v50 = vadd.f32 %v6796_v63, %v19532_v55 }
 0x659   :  { %v15230_v58 = vpop.f32.mrf.mxu0  ;;  %v15254_v42 = vpop.f32.mrf.mxu1 }
 0x65a   :  { %v19585_v16 = vadd.f32 %v6879_v11, %v6829_v50 }
 0x65b   :  { %v6799_v36 = vpop.f32.mrf.mxu0  ;;  %v6882_v37 = vpop.f32.mrf.mxu1 }
 0x65c   :  { %v6830_v48 = vadd.f32 %v6799_v36, %v19534_v15 }
 0x65d   :  { %v15231_v55 = vpop.f32.mrf.mxu0  ;;  %v15255_v61 = vpop.f32.mrf.mxu1 }
 0x65e   :  { %v19594_v29 = vadd.f32 %v6882_v37, %v6830_v48 }
 0x65f   :  { %v6804_v57 = vpop.f32.mrf.mxu0  ;;  %v6887_v3 = vpop.f32.mrf.mxu1 }
 0x660   :  { %v6831_v17 = vadd.f32 %v6804_v57, %v19536_v1 }
 0x661   :  { %v15234_v15 = vpop.f32.mrf.mxu0  ;;  %v15258_v6 = vpop.f32.mrf.mxu1 }
 0x662   :  { %v6914_v8 = vadd.f32 %v6887_v3, %v6831_v17 }
 0x663   :  { %v6807_v19 = vpop.f32.mrf.mxu0  ;;  %v6890_v47 = vpop.f32.mrf.mxu1 }
 0x664   :  { %v6832_v40 = vadd.f32 %v6807_v19, %v19544_v27 }
 0x665   :  { %v15235_v5 = vpop.f32.mrf.mxu0  ;;  %v15259_v1 = vpop.f32.mrf.mxu1 }
 0x666   :  { %v6915_v63 = vadd.f32 %v6890_v47, %v6832_v40 }
 0x667   :  { %v6812_v11 = vpop.f32.mrf.mxu0  ;;  %v6895_v50 = vpop.f32.mrf.mxu1 }
 0x668   :  { %v6833_v58 = vadd.f32 %v6812_v11, %v19546_v12 }
 0x669   :  { %v15238_v42 = vpop.f32.mrf.mxu0  ;;  %v15262_v35 = vpop.f32.mrf.mxu1 }
 0x66a   :  { %v6916_v26 = vadd.f32 %v6895_v50, %v6833_v58 }
 0x66b   :  { %v6815_v36 = vpop.f32.mrf.mxu0  ;;  %v6898_v37 = vpop.f32.mrf.mxu1 }
 0x66c   :  { %v6834_v27 = vadd.f32 %v6815_v36, %v19554_v52 }
 0x66d   :  { %v15239_v48 = vpop.f32.mrf.mxu0  ;;  %v15263_v55 = vpop.f32.mrf.mxu1 }
 0x66e   :  { %v6917_v61 = vadd.f32 %v6898_v37, %v6834_v27 }
 0x66f   :  { %v6820_v39 = vpop.f32.mrf.mxu0  ;;  %v6903_v43 = vpop.f32.mrf.mxu1 }
 0x670   :  { %v6835_v57 = vadd.f32 %v6820_v39, %v19556_v62 }
 0x671   :  { %v15242_v3 = vpop.f32.mrf.mxu0  ;;  %v15266_v17 = vpop.f32.mrf.mxu1 }
 0x672   :  { %v6918_v15 = vadd.f32 %v6903_v43, %v6835_v57 }
 0x673   :  { %v6823_v6 = vpop.f32.mrf.mxu0  ;;  %v6906_v20 = vpop.f32.mrf.mxu1 }
 0x674   :  { %v6836_v12 = vadd.f32 %v6823_v6, %v19558_v31 }
 0x675   :  { %v15243_v23 = vpop.f32.mrf.mxu0  ;;  %v15267_v19 = vpop.f32.mrf.mxu1 }
 0x676   :  { %v6919_v47 = vadd.f32 %v6906_v20, %v6836_v12 }
 0x677   :  { %v6954_v40 = vpop.f32.mrf.mxu0  ;;  %v7037_v5 = vpop.f32.mrf.mxu1 }
 0x678   :  { %v6993_v52 = vadd.f32 %v6954_v40, %v19567_v54 }
 0x679   :  { %v15274_v1 = vpop.f32.mrf.mxu0  ;;  %v15298_v10 = vpop.f32.mrf.mxu1 }
 0x67a   :  { %v19615_v11 = vadd.f32 %v7037_v5, %v6993_v52 }
 0x67b   :  { %v6957_v50 = vpop.f32.mrf.mxu0  ;;  %v7040_v62 = vpop.f32.mrf.mxu1 }
 0x67c   :  { %v6994_v58 = vadd.f32 %v6957_v50, %v19576_v25 }
 0x67d   :  { %v15275_v42 = vpop.f32.mrf.mxu0  ;;  %v15299_v35 = vpop.f32.mrf.mxu1 }
 0x67e   :  { %v19618_v36 = vadd.f32 %v7040_v62, %v6994_v58 }
 0x67f   :  { %v6962_v31 = vpop.f32.mrf.mxu0  ;;  %v7045_v37 = vpop.f32.mrf.mxu1 }
 0x680   :  { %v6995_v27 = vadd.f32 %v6962_v31, %v19585_v16 }
 0x681   :  { %v15278_v48 = vpop.f32.mrf.mxu0  ;;  %v15302_v55 = vpop.f32.mrf.mxu1 }
 0x682   :  { %v19621_v39 = vadd.f32 %v7045_v37, %v6995_v27 }
 0x683   :  { %v6965_v54 = vpop.f32.mrf.mxu0  ;;  %v7048_v43 = vpop.f32.mrf.mxu1 }
 0x684   :  { %v6996_v57 = vadd.f32 %v6965_v54, %v19594_v29 }
 0x685   :  { %v15279_v3 = vpop.f32.mrf.mxu0  ;;  %v15303_v17 = vpop.f32.mrf.mxu1 }
 0x686   :  { %v19624_v6 = vadd.f32 %v7048_v43, %v6996_v57 }
 0x687   :  { %v6970_v25 = vpop.f32.mrf.mxu0  ;;  %v7053_v20 = vpop.f32.mrf.mxu1 }
 0x688   :  { %v6997_v12 = vadd.f32 %v6970_v25, %v6914_v8 }
 0x689   :  { %v15282_v23 = vpop.f32.mrf.mxu0  ;;  %v15306_v19 = vpop.f32.mrf.mxu1 }
 0x68a   :  { %v19626_v40 = vadd.f32 %v7053_v20, %v6997_v12 }
 0x68b   :  { %v6973_v16 = vpop.f32.mrf.mxu0  ;;  %v7056_v5 = vpop.f32.mrf.mxu1 }
 0x68c   :  { %v6998_v52 = vadd.f32 %v6973_v16, %v6915_v63 }
 0x68d   :  { %v15283_v1 = vpop.f32.mrf.mxu0  ;;  %v15307_v10 = vpop.f32.mrf.mxu1 }
 0x68e   :  { %v19628_v50 = vadd.f32 %v7056_v5, %v6998_v52 }
 0x68f   :  { %v6978_v62 = vpop.f32.mrf.mxu0  ;;  %v7061_v29 = vpop.f32.mrf.mxu1 }
 0x690   :  { %v6999_v58 = vadd.f32 %v6978_v62, %v6916_v26 }
 0x691   :  { %v15286_v42 = vpop.f32.mrf.mxu0  ;;  %v15310_v35 = vpop.f32.mrf.mxu1 }
 0x692   :  { %v19630_v31 = vadd.f32 %v7061_v29, %v6999_v58 }
 0x693   :  { %v6981_v37 = vpop.f32.mrf.mxu0  ;;  %v7064_v8 = vpop.f32.mrf.mxu1 }
 0x694   :  { %v7000_v27 = vadd.f32 %v6981_v37, %v6917_v61 }
 0x695   :  { %v15287_v48 = vpop.f32.mrf.mxu0  ;;  %v15311_v55 = vpop.f32.mrf.mxu1 }
 0x696   :  { %v19632_v54 = vadd.f32 %v7064_v8, %v7000_v27 }
 0x697   :  { %v6986_v43 = vpop.f32.mrf.mxu0  ;;  %v7069_v63 = vpop.f32.mrf.mxu1 }
 0x698   :  { %v7001_v57 = vadd.f32 %v6986_v43, %v6918_v15 }
 0x699   :  { %v15290_v3 = vpop.f32.mrf.mxu0  ;;  %v15314_v17 = vpop.f32.mrf.mxu1 }
 0x69a   :  { %v19634_v25 = vadd.f32 %v7069_v63, %v7001_v57 }
 0x69b   :  { %v6989_v20 = vpop.f32.mrf.mxu0  ;;  %v7072_v26 = vpop.f32.mrf.mxu1 }
 0x69c   :  { %v7002_v12 = vadd.f32 %v6989_v20, %v6919_v47 }
 0x69d   :  { %v15291_v23 = vpop.f32.mrf.mxu0  ;;  %v15315_v19 = vpop.f32.mrf.mxu1 }
 0x69e   :  { %v19636_v16 = vadd.f32 %v7072_v26, %v7002_v12 }
 0x69f   :  { %v7170_v5 = vpop.f32.mrf.mxu0  ;;  %v7303_v61 = vpop.f32.mrf.mxu1 }
 0x6a1   :  { %v15322_v52 = vpop.f32.mrf.mxu0  ;;  %v15346_v1 = vpop.f32.mrf.mxu1 }
 0x6a3   :  { %v7173_v10 = vpop.f32.mrf.mxu0  ;;  %v7306_v62 = vpop.f32.mrf.mxu1 }
 0x6a4   :  { %v7210_v21 = vadd.f32 %v7173_v10, %v19618_v36 }
 0x6a5   :  { %v15323_v29 = vpop.f32.mrf.mxu0  ;;  %v15347_v58 = vpop.f32.mrf.mxu1 }
 0x6a6   :  { %v7343_v51 = vadd.f32 %v7306_v62, %v7210_v21 }
 0x6a7   :  { %v7178_v15 = vpop.f32.mrf.mxu0  ;;  %v7311_v42 = vpop.f32.mrf.mxu1 }
 0x6a8   :  { %v7211_v49 = vadd.f32 %v7178_v15, %v19621_v39 }
 0x6a9   :  { %v15326_v35 = vpop.f32.mrf.mxu0  ;;  %v15350_v37 = vpop.f32.mrf.mxu1 }
 0x6ab   :  { %v7181_v8 = vpop.f32.mrf.mxu0  ;;  %v7314_v27 = vpop.f32.mrf.mxu1 }
 0x6ad   :  { %v15327_v48 = vpop.f32.mrf.mxu0  ;;  %v15351_v47 = vpop.f32.mrf.mxu1 }
 0x6af   :  { %v7186_v55 = vpop.f32.mrf.mxu0  ;;  %v7319_v43 = vpop.f32.mrf.mxu1 }
 0x6b1   :  { %v15330_v63 = vpop.f32.mrf.mxu0  ;;  %v15354_v57 = vpop.f32.mrf.mxu1 }
 0x6b2   :  { %v7209_v57 = vadd.f32 %v7170_v5, %v19615_v11 }
 0x6b3   :  { %v7189_v3 = vpop.f32.mrf.mxu0  ;;  %v19638_v17 = vpop.f32.mrf.mxu1 }
 0x6b4   :  { %v7342_v53 = vadd.f32 %v7303_v61, %v7209_v57  ;;  %v7344_v57 = vadd.f32 %v7311_v42, %v7211_v49 }
 0x6b5   :  { %v15331_v20 = vpop.f32.mrf.mxu0  ;;  %v15355_v26 = vpop.f32.mrf.mxu1 }
 0x6b7   :  { %v19640_v12 = vpop.f32.mrf.mxu0  ;;  %v19642_v23 = vpop.f32.mrf.mxu1 }
 0x6b9   :  { %v15334_v19 = vpop.f32.mrf.mxu0  ;;  %v15358_v52 = vpop.f32.mrf.mxu1 }
 0x6bb   :  { %v19644_v1 = vpop.f32.mrf.mxu0  ;;  %v19646_v29 = vpop.f32.mrf.mxu1 }
 0x6bd   :  { %v15335_v58 = vpop.f32.mrf.mxu0  ;;  %v15359_v35 = vpop.f32.mrf.mxu1 }
 0x6bf   :  { %v19648_v37 = vpop.f32.mrf.mxu0  ;;  %v19650_v48 = vpop.f32.mrf.mxu1 }
 0x6c1   :  { %v15338_v47 = vpop.f32.mrf.mxu0  ;;  %v15362_v63 = vpop.f32.mrf.mxu1 }
 0x6c2   :  { %v19662_v47 = vld [vmem:[%s21474_s6] ss:$0 sm:$0xff] }
 0x6c3   :  { %v19653_v20 = vpop.f32.mrf.mxu0  ;;  %v19655_v26 = vpop.f32.mrf.mxu1 }
 0x6c5   :  { %v15339_v19 = vpop.f32.mrf.mxu0  ;;  %v15363_v52 = vpop.f32.mrf.mxu1 }
 0x6c6   :  { %v7212_v19 = vadd.f32 %v7181_v8, %v19624_v6  ;;  %v16409_v52 = vld [vmem:[%s21473_s11 + $0x430] ss:$8 sps:$4 sm:$0xff]  }
 0x6c7   :  { %v7436_v0 = vpop.f32.mrf.mxu0 }
 0x6c8   :  { %v7475_v58 = vadd.f32 %v7436_v0, %v7342_v53  ;;  %v19669_v0 = vld [vmem:[%s21475_s7] ss:$0 sm:$0xff]  ;;  %v7345_v62 = vadd.f32 %v7314_v27, %v7212_v19  ;;  %v7214_v27 = vadd.f32 %v7189_v3, %v19628_v50  ;;  %v16423_v50 = vld [vmem:[%s21473_s11 + $0x414] ss:$8 sps:$4 sm:$0xff]  }
 0x6c9   :  { %v15370_v35 = vpop.f32.mrf.mxu0 }
 0x6ca   :  { %v7485_v11 = vmul.f32 %v19662_v47, %v7475_v58 }
 0x6cb   :  { %v7439_v5 = vpop.f32.mrf.mxu0 }
 0x6cc   :  { %v7476_v63 = vadd.f32 %v7439_v5, %v7343_v51  ;;  %v7495_v21 = vadd.f32 %v19669_v0, %v7485_v11  ;;  %v7213_v51 = vadd.f32 %v7186_v55, %v19626_v40  ;;  %v16417_v11 = vld [vmem:[%s21473_s11 + $0x424] ss:$8 sps:$4 sm:$0xff]  }
 0x6cd   :  { %v15371_v61 = vpop.f32.mrf.mxu0 }
 0x6ce   :  { %v7486_v53 = vmul.f32 %v19662_v47, %v7476_v63  ;;  %v7505_v6 = vmax.f32 %v7495_v21, 0.0  ;;  %v7346_v63 = vadd.f32 %v7319_v43, %v7213_v51  ;;  %v16415_v61 = vld [vmem:[%s21473_s11 + $0x420] ss:$8 sps:$4 sm:$0xff]   ;;  %v7347_v43 = vadd.f32 %v19638_v17, %v7214_v27  ;;  %v16429_v17 = vld [vmem:[%s21473_s11 + $0x404] ss:$8 sps:$4 sm:$0xff]  }
 0x6cf   :  { %v7444_v36 = vpop.f32.mrf.mxu0 }
 0x6d0   :  { %v7496_v39 = vadd.f32 %v19669_v0, %v7486_v53  ;;  %v7477_v10 = vadd.f32 %v7444_v36, %v7344_v57  ;;  %v7215_v53 = vadd.f32 %v19640_v12, %v19630_v31  ;;  %v7216_v12 = vadd.f32 %v19644_v1, %v19632_v54 }
 0x6d1   :  { %v15374_v15 = vpop.f32.mrf.mxu0  ;;  %v7217_v54 = vadd.f32 %v19648_v37, %v19634_v25  ;;  %v16441_v25 = vld [vmem:[%s21473_s11 + $0x4a4] ss:$8 sps:$4 sm:$0xff]  }
 0x6d2   :  { %v7506_v8 = vmax.f32 %v7496_v39, 0.0  ;;  %v7487_v49 = vmul.f32 %v19662_v47, %v7477_v10  ;;  %v16421_v15 = vld [vmem:[%s21473_s11 + $0x410] ss:$8 sps:$4 sm:$0xff]   ;;  %v7348_v31 = vadd.f32 %v19642_v23, %v7215_v53  ;;  %v16435_v23 = vld [vmem:[%s21473_s11 + $0x4b4] ss:$8 sps:$4 sm:$0xff]   ;;  %v7349_v27 = vadd.f32 %v19646_v29, %v7216_v12 }
 0x6d3   :  { %v7447_v42 = vpop.f32.mrf.mxu0  ;;  %v16444_v29 = vld [vmem:[%s21473_s11 + $0x4e4] ss:$8 sps:$4 sm:$0xff]   ;;  %v7350_v37 = vadd.f32 %v19650_v48, %v7217_v54  ;;  %v16442_v48 = vld [vmem:[%s21473_s11 + $0x4e0] ss:$8 sps:$4 sm:$0xff]   ;;  %v16445_v12 = vld [vmem:[%s21473_s11 + $0x490] ss:$8 sps:$4 sm:$0xff]  }
 0x6d4   :  { %v7515_v58 = vpack.c.bf16 %v7506_v8, %v7505_v6  ;;  %v7478_v35 = vadd.f32 %v7447_v42, %v7345_v62  ;;  %v7497_v40 = vadd.f32 %v19669_v0, %v7487_v49  ;;  %v16451_v54 = vld [vmem:[%s21473_s11 + $0x480] ss:$8 sps:$4 sm:$0xff]  }
 0x6d5   :  { %v15375_v5 = vpop.f32.mrf.mxu0 }
 0x6d6   :  { %v7488_v55 = vmul.f32 %v19662_v47, %v7478_v35  ;;  %13224 = vmatmul.mubr.msk.bf16.vlgmr.msra.gmra.mxu1 %vm3265_vm7, %v7515_v58  ;;  %v7507_v36 = vmax.f32 %v7497_v40, 0.0  ;;  %v16427_v58 = vld [vmem:[%s21473_s11 + $0x400] ss:$8 sps:$4 sm:$0xff]  }
 0x6d7   :  { %7680 = vmatpush1.bf16.msra.mxu1 %v16409_v52  ;;  %v7452_v19 = vpop.f32.mrf.mxu0  ;;  %7703 = vmatprep.mubr.bf16.mxu1 %v21495_v44 }
 0x6d8   :  { %v7498_v57 = vadd.f32 %v19669_v0, %v7488_v55  ;;  %v7479_v21 = vadd.f32 %v7452_v19, %v7346_v63  ;;  %7681 = vmatprep.subr.bf16.mxu1 %v16417_v11  ;;  %v16433_v19 = vld [vmem:[%s21473_s11 + $0x4b0] ss:$8 sps:$4 sm:$0xff]  }
 0x6d9   :  { %v15378_v3 = vpop.f32.mrf.mxu0 }
 0x6da   :  { %v7508_v39 = vmax.f32 %v7498_v57, 0.0  ;;  %v7489_v10 = vmul.f32 %v19662_v47, %v7479_v21 }
 0x6db   :  { %7682 = vmatpush1.bf16.msra.mxu1 %v16415_v61  ;;  %v7455_v62 = vpop.f32.mrf.mxu0  ;;  %v16436_v61 = vld [vmem:[%s21473_s11 + $0x4f0] ss:$8 sps:$4 sm:$0xff]  }
 0x6dc   :  { %v7516_v51 = vpack.c.bf16 %v7508_v39, %v7507_v36  ;;  %v7480_v6 = vadd.f32 %v7455_v62, %v7347_v43  ;;  %7683 = vmatprep.subr.bf16.mxu1 %v16423_v50  ;;  %v7499_v49 = vadd.f32 %v19669_v0, %v7489_v10  ;;  %v7218_v43 = vadd.f32 %v19653_v20, %v19636_v16  ;;  %v16439_v39 = vld [vmem:[%s21473_s11 + $0x4a0] ss:$8 sps:$4 sm:$0xff]   ;;  %v16447_v10 = vld [vmem:[%s21473_s11 + $0x494] ss:$8 sps:$4 sm:$0xff]  }
 0x6dd   :  { %v15379_v8 = vpop.f32.mrf.mxu0  ;;  %v16450_v62 = vld [vmem:[%s21473_s11 + $0x4d4] ss:$8 sps:$4 sm:$0xff]  }
 0x6de   :  { %v7490_v42 = vmul.f32 %v19662_v47, %v7480_v6  ;;  %v7509_v5 = vmax.f32 %v7499_v49, 0.0  ;;  %v16448_v49 = vld [vmem:[%s21473_s11 + $0x4d0] ss:$8 sps:$4 sm:$0xff]  }
 0x6df   :  { %7684 = vmatpush1.bf16.msra.mxu1 %v16421_v15  ;;  %v7460_v52 = vpop.f32.mrf.mxu0 }
 0x6e0   :  { %v7500_v35 = vadd.f32 %v19669_v0, %v7490_v42  ;;  %v7481_v11 = vadd.f32 %v7460_v52, %v7348_v31  ;;  %7685 = vmatprep.subr.bf16.mxu1 %v16429_v17 }
 0x6e1   :  { %v15382_v1 = vpop.f32.mrf.mxu0 }
 0x6e2   :  { %v7510_v63 = vmax.f32 %v7500_v35, 0.0  ;;  %v7491_v40 = vmul.f32 %v19662_v47, %v7481_v11  ;;  %v16454_v1 = vld [vmem:[%s21473_s11 + $0x4c0] ss:$8 sps:$4 sm:$0xff]  }
 0x6e3   :  { %7686 = vmatpush1.bf16.msra.mxu1 %v16427_v58  ;;  %v7463_v55 = vpop.f32.mrf.mxu0  ;;  %v16456_v58 = vld [vmem:[%s21473_s11 + $0x4c4] ss:$8 sps:$4 sm:$0xff]  }
 0x6e4   :  { %v7517_v57 = vpack.c.bf16 %v7510_v63, %v7509_v5  ;;  %v7482_v21 = vadd.f32 %v7463_v55, %v7349_v27  ;;  %7877 = vmatprep.subr.bf16.mxu1 %v16435_v23  ;;  %v7501_v3 = vadd.f32 %v19669_v0, %v7491_v40  ;;  %v16824_v55 = vld [vmem:[%s21465_s5 + $0x10] sm:$0xff]  }
 0x6e5   :  { %v15383_v50 = vpop.f32.mrf.mxu0 }
 0x6e6   :  { %v7492_v53 = vmul.f32 %v19662_v47, %v7482_v21  ;;  %13241 = vmatmul.mubr.msk.bf16.vlgmr.msra.gmra.mxu1 %vm3265_vm7, %v7516_v51  ;;  %13258 = vmatmul.mubr.msk.bf16.vlgmr.msra.gmra.mxu0 %vm3265_vm7, %v7517_v57  ;;  %v7351_v51 = vadd.f32 %v19655_v26, %v7218_v43  ;;  %v7511_v6 = vmax.f32 %v7501_v3, 0.0  ;;  %v16453_v26 = vld [vmem:[%s21473_s11 + $0x484] ss:$8 sps:$4 sm:$0xff]   ;;  %v16839_v43 = vld [vmem:[%s21465_s5 + $0x50] sm:$0xff]   ;;  %v16840_v3 = vld [vmem:[#allocation2 + $0xf8] sm:$0xff]  }
 0x6e7   :  { %7878 = vmatpush1.bf16.msra.mxu1 %v16433_v19  ;;  %v7468_v36 = vpop.f32.mrf.mxu0  ;;  %7977 = vmatpush1.bf16.msra.mxu0 %v16436_v61  ;;  %v16825_v19 = vld [vmem:[%s21465_s5] sm:$0xff]   ;;  %v16827_v57 = vld [vmem:[%s21465_s5 + $0x28] sm:$0xff]  }
 0x6e8   :  { %v7502_v16 = vadd.f32 %v19669_v0, %v7492_v53  ;;  %v7483_v20 = vadd.f32 %v7468_v36, %v7350_v37  ;;  %7879 = vmatprep.subr.bf16.mxu1 %v16441_v25  ;;  %7978 = vmatprep.subr.bf16.mxu0 %v16444_v29  ;;  %v16826_v61 = vld [vmem:[#allocation2 + $0xe0] sm:$0xff]   ;;  %v16830_v25 = vld [vmem:[%s21465_s5 + $0x30] sm:$0xff]   ;;  %v16831_v29 = vld [vmem:[#allocation2 + $0xe8] sm:$0xff]  }
 0x6e9   :  { %v15386_v15 = vpop.f32.mrf.mxu0  ;;  %7901 = vmatprep.mubr.bf16.mxu1 %v21495_v44  ;;  %8000 = vmatprep.mubr.bf16.mxu0 %v21495_v44  ;;  %v16829_v21 = vld [vmem:[%s21465_s5 + $0x20] sm:$0xff]   ;;  %v16832_v37 = vld [vmem:[#allocation2 + $0xf0] sm:$0xff]   ;;  %v16836_v50 = vld [vmem:[%s21465_s5 + $0x48] sm:$0xff]  }
 0x6ea   :  { %v7512_v17 = vmax.f32 %v7502_v16, 0.0  ;;  %v7493_v8 = vmul.f32 %v19662_v47, %v7483_v20  ;;  %v16841_v53 = vld [vmem:[#allocation2 + $0x100] sm:$0xff]   ;;  %v16843_v36 = vld [vmem:[#allocation2 + $0x110] sm:$0xff]   ;;  %v16458_v20 = vld [vmem:[#allocation2 + $0x158] sm:$0xff]  }
 0x6eb   :  { %7880 = vmatpush1.bf16.msra.mxu1 %v16439_v39  ;;  %v7471_v31 = vpop.f32.mrf.mxu0  ;;  %7979 = vmatpush1.bf16.msra.mxu0 %v16442_v48  ;;  %v16848_v39 = vld [vmem:[%s21465_s5 + $0x70] sm:$0xff]   ;;  %v19928_v48 = vld [vmem:[#allocation2 + $0x128] sm:$0xff]   ;;  %v16460_v15 = vld [vmem:[#allocation2 + $0x160] sm:$0xff]  }
 0x6ec   :  { %v7518_v42 = vpack.c.bf16 %v7512_v17, %v7511_v6  ;;  %v7484_v52 = vadd.f32 %v7471_v31, %v7351_v51  ;;  %7881 = vmatprep.subr.bf16.mxu1 %v16447_v10  ;;  %7980 = vmatprep.subr.bf16.mxu0 %v16450_v62  ;;  %v7503_v11 = vadd.f32 %v19669_v0, %v7493_v8  ;;  %v19938_v16 = vld [vmem:[#allocation2 + $0x130] sm:$0xff]   ;;  %v16853_v10 = vld [vmem:[%s21465_s5 + $0x88] sm:$0xff]   ;;  %v19984_v62 = vld [vmem:[#allocation2 + $0x158] sm:$0xff]  }
 0x6ed   :  { %v15387_v35 = vpop.f32.mrf.mxu0  ;;  %v19993_v51 = vld [vmem:[#allocation2 + $0x160] sm:$0xff]   ;;  %v16462_v6 = vld [vmem:[#allocation2 + $0x168] sm:$0xff]   ;;  %v16464_v8 = vld [vmem:[#allocation2 + $0x170] sm:$0xff]  }
 0x6ee   :  { %v7494_v23 = vmul.f32 %v19662_v47, %v7484_v52  ;;  %v7513_v5 = vmax.f32 %v7503_v11, 0.0  ;;  %v16822_v47 = vld [vmem:[%s21465_s5 + $0x18] sm:$0xff]   ;;  %v20002_v17 = vld [vmem:[#allocation2 + $0x168] sm:$0xff]   ;;  %v20011_v31 = vld [vmem:[#allocation2 + $0x170] sm:$0xff]  }
 0x6ef   :  { %7882 = vmatpush1.bf16.msra.mxu1 %v16445_v12  ;;  %7981 = vmatpush1.bf16.msra.mxu0 %v16448_v49  ;;  %v16466_v12 = vld [vmem:[#allocation2 + $0x178] sm:$0xff]   ;;  %v20022_v11 = vld [vmem:[#allocation2 + $0x160] sm:$0xff]  }
 0x6f0   :  { %v7504_v27 = vadd.f32 %v19669_v0, %v7494_v23  ;;  %7883 = vmatprep.subr.bf16.mxu1 %v16453_v26  ;;  %7982 = vmatprep.subr.bf16.mxu0 %v16456_v58  ;;  %v16823_v0 = vld [vmem:[%s21465_s5 + $0x8] sm:$0xff]  }
 0x6f1   :  { %v20030_v23 = vld [vmem:[#allocation2 + $0x168] sm:$0xff]  }
 0x6f2   :  { %v7514_v63 = vmax.f32 %v7504_v27, 0.0 }
 0x6f3   :  { %7884 = vmatpush1.bf16.msra.mxu1 %v16451_v54  ;;  %7983 = vmatpush1.bf16.msra.mxu0 %v16454_v1 }
 0x6f4   :  { %v7519_v40 = vpack.c.bf16 %v7514_v63, %v7513_v5  ;;  %15388 = vmatprep.subr.bf16.mxu1 %v21496_v38  ;;  %15412 = vmatprep.subr.bf16.mxu0 %v21496_v38 }
 0x6f6   :  { %13275 = vmatmul.mubr.msk.bf16.vlgmr.msra.gmra.mxu1 %vm3265_vm7, %v7518_v42  ;;  %13292 = vmatmul.mubr.msk.bf16.vlgmr.msra.gmra.mxu0 %vm3265_vm7, %v7519_v40 }
 0x6f7   :  { %15389 = vmatpush3.bf16.msra.mxu1 %v16822_v47  ;;  %15413 = vmatpush3.bf16.msra.mxu0 %v16823_v0 }
 0x6f8   :  { %15390 = vmatprep.subr.bf16.mxu1 %v21496_v38  ;;  %15414 = vmatprep.subr.bf16.mxu0 %v21496_v38 }
 0x6f9   :  { %15392 = vmatprep.mubr.msk.bf16.mxu1 %vm16928_vm1, %v21496_v38  ;;  %15416 = vmatprep.mubr.msk.bf16.mxu0 %vm16928_vm1, %v21496_v38 }
 0x6fb   :  { %15391 = vmatpush3.bf16.msra.mxu1 %v16824_v55  ;;  %15415 = vmatpush3.bf16.msra.mxu0 %v16825_v19  ;;  %v20036_v19 = vld [vmem:[#allocation2 + $0x170] sm:$0xff]  }
 0x6fc   :  { %15436 = vmatprep.subr.bf16.mxu1 %v21496_v38  ;;  %15460 = vmatprep.subr.bf16.mxu0 %v21496_v38 }
 0x6fe   :  { %15393 = vmatmul.mubr.msk.bf16.vlgmr.msra.gmra.mxu1 %vm1936_vm6, %v19358_v24  ;;  %15417 = vmatmul.mubr.msk.bf16.vlgmr.msra.gmra.mxu0 %vm1936_vm6, %v16826_v61  ;;  %v16828_v24 = vld [vmem:[%s21465_s5 + $0x38] sm:$0xff]  }
 0x6ff   :  { %15437 = vmatpush3.bf16.msra.mxu1 %v16827_v57  ;;  %15396 = vmatprep.mubr.msk.bf16.mxu1 %vm16928_vm1, %v21496_v38 }
 0x700   :  { %15420 = vmatprep.mubr.msk.bf16.mxu0 %vm16928_vm1, %v21496_v38  ;;  %15438 = vmatprep.subr.bf16.mxu1 %v21496_v38 }
 0x701   :  { %15461 = vmatpush3.bf16.msra.mxu0 %v16828_v24 }
 0x702   :  { %15462 = vmatprep.subr.bf16.mxu0 %v21496_v38 }
 0x703   :  { %15439 = vmatpush3.bf16.msra.mxu1 %v16829_v21  ;;  %v20046_v21 = vld [vmem:[#allocation2 + $0x178] sm:$0xff]  }
 0x704   :  { %15484 = vmatprep.subr.bf16.mxu1 %v21496_v38 }
 0x705   :  { %15463 = vmatpush3.bf16.msra.mxu0 %v16830_v25 }
 0x706   :  { %15397 = vmatmul.mubr.msk.bf16.gmra.mxu1 %vm1936_vm6, %v19383_v9  ;;  %15421 = vmatmul.mubr.msk.bf16.gmra.mxu0 %vm1936_vm6, %v16831_v29  ;;  %v16833_v9 = vld [vmem:[#allocation2 + $0xf8] sm:$0xff]  }
 0x707   :  { %15400 = vmatprep.mubr.msk.bf16.mxu1 %vm16928_vm1, %v21496_v38  ;;  %15424 = vmatprep.mubr.msk.bf16.mxu0 %vm16928_vm1, %v21496_v38 }
 0x708   :  { %15508 = vmatprep.subr.bf16.mxu0 %v21496_v38 }
 0x70e   :  { %15401 = vmatmul.mubr.msk.bf16.gmra.mxu1 %vm1936_vm6, %v19393_v46  ;;  %15425 = vmatmul.mubr.msk.bf16.gmra.mxu0 %vm1936_vm6, %v16832_v37  ;;  %v16834_v46 = vld [vmem:[#allocation2 + $0x100] sm:$0xff]  }
 0x70f   :  { %15404 = vmatprep.mubr.msk.bf16.mxu1 %vm16928_vm1, %v21496_v38  ;;  %15428 = vmatprep.mubr.msk.bf16.mxu0 %vm16928_vm1, %v21496_v38 }
 0x716   :  { %15405 = vmatmul.mubr.msk.bf16.gmra.mxu1 %vm1936_vm6, %v19403_v18  ;;  %15429 = vmatmul.mubr.msk.bf16.gmra.mxu0 %vm1936_vm6, %v16833_v9  ;;  %v16835_v18 = vld [vmem:[#allocation2 + $0xf0] sm:$0xff]  }
 0x717   :  { %15408 = vmatprep.mubr.msk.bf16.mxu1 %vm16928_vm1, %v21496_v38  ;;  %15432 = vmatprep.mubr.msk.bf16.mxu0 %vm16928_vm1, %v21496_v38 }
 0x71e   :  { %15409 = vmatmul.mubr.msk.bf16.gmra.mxu1 %vm1936_vm6, %v19413_v59  ;;  %15433 = vmatmul.mubr.msk.bf16.gmra.mxu0 %vm1936_vm6, %v16834_v46  ;;  %v16837_v59 = vld [vmem:[%s21465_s5 + $0x58] sm:$0xff]  }
 0x71f   :  { %15440 = vmatprep.mubr.msk.bf16.mxu1 %vm16928_vm1, %v21496_v38  ;;  %15464 = vmatprep.mubr.msk.bf16.mxu0 %vm16928_vm1, %v21496_v38 }
 0x726   :  { %15441 = vmatmul.mubr.msk.bf16.vlgmr.msra.gmra.mxu1 %vm1936_vm6, %v16835_v18  ;;  %15465 = vmatmul.mubr.msk.bf16.vlgmr.msra.gmra.mxu0 %vm1936_vm6, %v19423_v7  ;;  %v16838_v7 = vld [vmem:[%s21465_s5 + $0x40] sm:$0xff]  }
 0x727   :  { %15485 = vmatpush3.bf16.msra.mxu1 %v16836_v50  ;;  %15444 = vmatprep.mubr.msk.bf16.mxu1 %vm16928_vm1, %v21496_v38 }
 0x728   :  { %15468 = vmatprep.mubr.msk.bf16.mxu0 %vm16928_vm1, %v21496_v38  ;;  %15486 = vmatprep.subr.bf16.mxu1 %v21496_v38 }
 0x729   :  { %15509 = vmatpush3.bf16.msra.mxu0 %v16837_v59 }
 0x72a   :  { %15510 = vmatprep.subr.bf16.mxu0 %v21496_v38 }
 0x72b   :  { %15487 = vmatpush3.bf16.msra.mxu1 %v16838_v7 }
 0x72c   :  { %15532 = vmatprep.subr.bf16.mxu1 %v21496_v38 }
 0x72d   :  { %15511 = vmatpush3.bf16.msra.mxu0 %v16839_v43  ;;  %v20054_v43 = vld [vmem:[#allocation2 + $0x180] sm:$0xff]  }
 0x72e   :  { %15445 = vmatmul.mubr.msk.bf16.gmra.mxu1 %vm1936_vm6, %v16840_v3  ;;  %15469 = vmatmul.mubr.msk.bf16.gmra.mxu0 %vm1936_vm6, %v19439_v34  ;;  %v16842_v34 = vld [vmem:[#allocation2 + $0x108] sm:$0xff]  }
 0x72f   :  { %15448 = vmatprep.mubr.msk.bf16.mxu1 %vm16928_vm1, %v21496_v38  ;;  %15472 = vmatprep.mubr.msk.bf16.mxu0 %vm16928_vm1, %v21496_v38 }
 0x730   :  { %15556 = vmatprep.subr.bf16.mxu0 %v21496_v38 }
 0x736   :  { %15449 = vmatmul.mubr.msk.bf16.gmra.mxu1 %vm1936_vm6, %v16841_v53  ;;  %15473 = vmatmul.mubr.msk.bf16.gmra.mxu0 %vm1936_vm6, %v19448_v28  ;;  %v19903_v28 = vld [vmem:[#allocation2 + $0x120] sm:$0xff]  }
 0x737   :  { %15452 = vmatprep.mubr.msk.bf16.mxu1 %vm16928_vm1, %v21496_v38  ;;  %15476 = vmatprep.mubr.msk.bf16.mxu0 %vm16928_vm1, %v21496_v38 }
 0x73e   :  { %15453 = vmatmul.mubr.msk.bf16.gmra.mxu1 %vm1936_vm6, %v16842_v34  ;;  %15477 = vmatmul.mubr.msk.bf16.gmra.mxu0 %vm1936_vm6, %v19457_v14  ;;  %v16845_v14 = vld [vmem:[%s21465_s5 + $0x68] sm:$0xff]  }
 0x73f   :  { %15456 = vmatprep.mubr.msk.bf16.mxu1 %vm16928_vm1, %v21496_v38  ;;  %15480 = vmatprep.mubr.msk.bf16.mxu0 %vm16928_vm1, %v21496_v38 }
 0x746   :  { %15457 = vmatmul.mubr.msk.bf16.gmra.mxu1 %vm1936_vm6, %v16843_v36  ;;  %15481 = vmatmul.mubr.msk.bf16.gmra.mxu0 %vm1936_vm6, %v19466_v56  ;;  %v16846_v56 = vld [vmem:[%s21465_s5 + $0x78] sm:$0xff]  }
 0x747   :  { %15488 = vmatprep.mubr.msk.bf16.mxu1 %vm16928_vm1, %v21496_v38  ;;  %15512 = vmatprep.mubr.msk.bf16.mxu0 %vm16928_vm1, %v21496_v38 }
 0x74e   :  { %15489 = vmatmul.mubr.msk.bf16.vlgmr.msra.gmra.mxu1 %vm1936_vm6, %v19903_v28  ;;  %15513 = vmatmul.mubr.msk.bf16.vlgmr.msra.gmra.mxu0 %vm1936_vm6, %v19477_v41  ;;  %v16847_v41 = vld [vmem:[%s21465_s5 + $0x60] sm:$0xff]  }
 0x74f   :  { %15533 = vmatpush3.bf16.msra.mxu1 %v16845_v14  ;;  %15492 = vmatprep.mubr.msk.bf16.mxu1 %vm16928_vm1, %v21496_v38 }
 0x750   :  { %15516 = vmatprep.mubr.msk.bf16.mxu0 %vm16928_vm1, %v21496_v38  ;;  %15534 = vmatprep.subr.bf16.mxu1 %v21496_v38 }
 0x751   :  { %15557 = vmatpush3.bf16.msra.mxu0 %v16846_v56 }
 0x752   :  { %15558 = vmatprep.subr.bf16.mxu0 %v21496_v38 }
 0x753   :  { %15535 = vmatpush3.bf16.msra.mxu1 %v16847_v41 }
 0x754   :  { %15580 = vmatprep.subr.bf16.mxu1 %v21496_v38 }
 0x755   :  { %15559 = vmatpush3.bf16.msra.mxu0 %v16848_v39 }
 0x756   :  { %15493 = vmatmul.mubr.msk.bf16.gmra.mxu1 %vm1936_vm6, %v19928_v48  ;;  %15517 = vmatmul.mubr.msk.bf16.gmra.mxu0 %vm1936_vm6, %v19485_v13  ;;  %v19948_v13 = vld [vmem:[#allocation2 + $0x138] sm:$0xff]  }
 0x757   :  { %15496 = vmatprep.mubr.msk.bf16.mxu1 %vm16928_vm1, %v21496_v38  ;;  %15520 = vmatprep.mubr.msk.bf16.mxu0 %vm16928_vm1, %v21496_v38 }
 0x75e   :  { %15497 = vmatmul.mubr.msk.bf16.gmra.mxu1 %vm1936_vm6, %v19938_v16  ;;  %15521 = vmatmul.mubr.msk.bf16.gmra.mxu0 %vm1936_vm6, %v19491_v45  ;;  %v19958_v45 = vld [vmem:[#allocation2 + $0x140] sm:$0xff]  }
 0x75f   :  { %15500 = vmatprep.mubr.msk.bf16.mxu1 %vm16928_vm1, %v21496_v38  ;;  %15524 = vmatprep.mubr.msk.bf16.mxu0 %vm16928_vm1, %v21496_v38 }
 0x766   :  { %15501 = vmatmul.mubr.msk.bf16.gmra.mxu1 %vm1936_vm6, %v19948_v13  ;;  %15525 = vmatmul.mubr.msk.bf16.gmra.mxu0 %vm1936_vm6, %v19501_v4  ;;  %v19968_v4 = vld [vmem:[#allocation2 + $0x150] sm:$0xff]  }
 0x767   :  { %15504 = vmatprep.mubr.msk.bf16.mxu1 %vm16928_vm1, %v21496_v38  ;;  %15528 = vmatprep.mubr.msk.bf16.mxu0 %vm16928_vm1, %v21496_v38 }
 0x76e   :  { %15505 = vmatmul.mubr.msk.bf16.gmra.mxu1 %vm1936_vm6, %v19958_v45  ;;  %15529 = vmatmul.mubr.msk.bf16.gmra.mxu0 %vm1936_vm6, %v19509_v30  ;;  %v16854_v30 = vld [vmem:[%s21465_s5 + $0x80] sm:$0xff]  }
 0x76f   :  { %15536 = vmatprep.mubr.msk.bf16.mxu1 %vm16928_vm1, %v21496_v38  ;;  %15560 = vmatprep.mubr.msk.bf16.mxu0 %vm16928_vm1, %v21496_v38 }
 0x776   :  { %15537 = vmatmul.mubr.msk.bf16.vlgmr.msra.gmra.mxu1 %vm1936_vm6, %v19968_v4  ;;  %15561 = vmatmul.mubr.msk.bf16.vlgmr.msra.gmra.mxu0 %vm1936_vm6, %v16458_v20 }
 0x777   :  { %15581 = vmatpush3.bf16.msra.mxu1 %v16853_v10  ;;  %15540 = vmatprep.mubr.msk.bf16.mxu1 %vm16928_vm1, %v21496_v38 }
 0x778   :  { %15564 = vmatprep.mubr.msk.bf16.mxu0 %vm16928_vm1, %v21496_v38  ;;  %15582 = vmatprep.subr.bf16.mxu1 %v21496_v38 }
 0x77b   :  { %15583 = vmatpush3.bf16.msra.mxu1 %v16854_v30 }
 0x77e   :  { %15541 = vmatmul.mubr.msk.bf16.gmra.mxu1 %vm1936_vm6, %v19984_v62  ;;  %15565 = vmatmul.mubr.msk.bf16.gmra.mxu0 %vm1936_vm6, %v16460_v15 }
 0x77f   :  { %15544 = vmatprep.mubr.msk.bf16.mxu1 %vm16928_vm1, %v21496_v38  ;;  %15568 = vmatprep.mubr.msk.bf16.mxu0 %vm16928_vm1, %v21496_v38 }
 0x786   :  { %15545 = vmatmul.mubr.msk.bf16.gmra.mxu1 %vm1936_vm6, %v19993_v51  ;;  %15569 = vmatmul.mubr.msk.bf16.gmra.mxu0 %vm1936_vm6, %v16462_v6 }
 0x787   :  { %15548 = vmatprep.mubr.msk.bf16.mxu1 %vm16928_vm1, %v21496_v38  ;;  %15572 = vmatprep.mubr.msk.bf16.mxu0 %vm16928_vm1, %v21496_v38 }
 0x78e   :  { %15549 = vmatmul.mubr.msk.bf16.gmra.mxu1 %vm1936_vm6, %v20002_v17  ;;  %15573 = vmatmul.mubr.msk.bf16.gmra.mxu0 %vm1936_vm6, %v16464_v8 }
 0x78f   :  { %15552 = vmatprep.mubr.msk.bf16.mxu1 %vm16928_vm1, %v21496_v38  ;;  %15576 = vmatprep.mubr.msk.bf16.mxu0 %vm16928_vm1, %v21496_v38 }
 0x796   :  { %15553 = vmatmul.mubr.msk.bf16.gmra.mxu1 %vm1936_vm6, %v20011_v31  ;;  %v7606_v49 = vpop.f32.mrf.mxu1  ;;  %15577 = vmatmul.mubr.msk.bf16.gmra.mxu0 %vm1936_vm6, %v16466_v12 }
 0x797   :  { %v7615_v42 = vadd.f32 %v7606_v49, %v19507_v33  ;;  %15584 = vmatprep.mubr.msk.bf16.mxu1 %vm16928_vm1, %v21496_v38  ;;  %9011 = vmatprep.mubr.bf16.mxu0 %v21495_v44  ;;  %v16472_v49 = vld [vmem:[%s21473_s11 + $0x530] ss:$8 sps:$4 sm:$0xff]  }
 0x798   :  { %v7608_v52 = vpop.f32.mrf.mxu1 }
 0x799   :  { %v7616_v26 = vadd.f32 %v7608_v52, %v19511_v22 }
 0x79a   :  { %v7610_v58 = vpop.f32.mrf.mxu1 }
 0x79b   :  { %v7617_v35 = vadd.f32 %v7610_v58, %v19517_v60 }
 0x79c   :  { %v20028_v33 = vpop.f32.mrf.mxu1 }
 0x79d   :  { %21507 = vst [vmem:[#allocation17_spill] sm:$0xff] %v20028_v33 }
 0x79e   :  { %15585 = vmatmul.mubr.msk.bf16.vlgmr.msra.gmra.mxu1 %vm1936_vm6, %v20022_v11 }
 0x79f   :  { %15588 = vmatprep.mubr.msk.bf16.mxu1 %vm16928_vm1, %v21496_v38 }
 0x7a6   :  { %v7705_v54 = vpop.f32.mrf.mxu1  ;;  %15589 = vmatmul.mubr.msk.bf16.gmra.mxu1 %vm1936_vm6, %v20030_v23  ;;  %v7804_v22 = vpop.f32.mrf.mxu0 }
 0x7a7   :  { %v7714_v1 = vadd.f32 %v7705_v54, %v7615_v42  ;;  %15592 = vmatprep.mubr.msk.bf16.mxu1 %vm16928_vm1, %v21496_v38  ;;  %v16474_v42 = vld [vmem:[%s21473_s11 + $0x534] ss:$8 sps:$4 sm:$0xff]  }
 0x7a8   :  { %v7707_v60 = vpop.f32.mrf.mxu1  ;;  %v7806_v27 = vpop.f32.mrf.mxu0  ;;  %8987 = vmatprep.subr.bf16.mxu0 %v16474_v42 }
 0x7a9   :  { %v7813_v5 = vadd.f32 %v7804_v22, %v7714_v1  ;;  %v7715_v63 = vadd.f32 %v7707_v60, %v7616_v26  ;;  %8988 = vmatpush1.bf16.msra.mxu0 %v16472_v49 }
 0x7aa   :  { %v7709_v40 = vpop.f32.mrf.mxu1  ;;  %v7808_v47 = vpop.f32.mrf.mxu0 }
 0x7ab   :  { %v7814_v0 = vadd.f32 %v7806_v27, %v7715_v63  ;;  %v7716_v55 = vadd.f32 %v7709_v40, %v7617_v35 }
 0x7ac   :  { %v20042_v57 = vpop.f32.mrf.mxu1  ;;  %v20044_v24 = vpop.f32.mrf.mxu0 }
 0x7ad   :  { %v7815_v61 = vadd.f32 %v7808_v47, %v7716_v55  ;;  %21508 = vst [vmem:[#allocation18_spill] sm:$0xff] %v20042_v57  ;;  %21509 = vst [vmem:[#allocation19_spill] sm:$0xff] %v20044_v24 }
 0x7ae   :  { %15593 = vmatmul.mubr.msk.bf16.gmra.mxu1 %vm1936_vm6, %v20036_v19 }
 0x7af   :  { %15596 = vmatprep.mubr.msk.bf16.mxu1 %vm16928_vm1, %v21496_v38 }
 0x7b6   :  { %v7903_v25 = vpop.f32.mrf.mxu1  ;;  %15597 = vmatmul.mubr.msk.bf16.gmra.mxu1 %vm1936_vm6, %v20046_v21  ;;  %v8002_v29 = vpop.f32.mrf.mxu0 }
 0x7b7   :  { %v7912_v37 = vadd.f32 %v7903_v25, %v7813_v5  ;;  %15600 = vmatprep.mubr.msk.bf16.mxu1 %vm16928_vm1, %v21496_v38  ;;  %v16477_v25 = vld [vmem:[%s21473_s11 + $0x524] ss:$8 sps:$4 sm:$0xff]  }
 0x7b8   :  { %v7905_v9 = vpop.f32.mrf.mxu1  ;;  %v8004_v46 = vpop.f32.mrf.mxu0  ;;  %8989 = vmatprep.subr.bf16.mxu0 %v16477_v25  ;;  %v16481_v25 = vld [vmem:[%s21473_s11 + $0x500] ss:$8 sps:$4 sm:$0xff]  }
 0x7b9   :  { %v20052_v18 = vadd.f32 %v8002_v29, %v7912_v37  ;;  %v7913_v50 = vadd.f32 %v7905_v9, %v7814_v0 }
 0x7ba   :  { %v7907_v59 = vpop.f32.mrf.mxu1  ;;  %v8006_v7 = vpop.f32.mrf.mxu0 }
 0x7bb   :  { %v20056_v3 = vadd.f32 %v8004_v46, %v7913_v50  ;;  %v7914_v53 = vadd.f32 %v7907_v59, %v7815_v61  ;;  %v16475_v61 = vld [vmem:[%s21473_s11 + $0x520] ss:$8 sps:$4 sm:$0xff]  }
 0x7bc   :  { %v20058_v34 = vpop.f32.mrf.mxu1  ;;  %v20060_v36 = vpop.f32.mrf.mxu0  ;;  %8990 = vmatpush1.bf16.msra.mxu0 %v16475_v61 }
 0x7bd   :  { %21510 = vst [vmem:[#allocation20_spill] sm:$0xff] %v20058_v34  ;;  %21511 = vst [vmem:[#allocation21_spill] sm:$0xff] %v20060_v36  ;;  %v20062_v14 = vadd.f32 %v8006_v7, %v7914_v53 }
 0x7be   :  { %v8049_v56 = vpop.f32.mrf.mxu1  ;;  %15601 = vmatmul.mubr.msk.bf16.gmra.mxu1 %vm1936_vm6, %v20054_v43  ;;  %v8122_v41 = vpop.f32.mrf.mxu0 }
 0x7bf   :  { %v20066_v39 = vadd.f32 %v8122_v41, %v8049_v56  ;;  %9209 = vmatprep.mubr.bf16.mxu1 %v21495_v44 }
 0x7c0   :  { %v15394_v20 = vpop.f32.mrf.mxu1  ;;  %v15418_v10 = vpop.f32.mrf.mxu0 }
 0x7c1   :  { %v16478_v20 = vld [vmem:[%s21473_s11 + $0x510] ss:$8 sps:$4 sm:$0xff]   ;;  %v16480_v10 = vld [vmem:[%s21473_s11 + $0x514] ss:$8 sps:$4 sm:$0xff]  }
 0x7c2   :  { %v8052_v30 = vpop.f32.mrf.mxu1  ;;  %v8125_v15 = vpop.f32.mrf.mxu0  ;;  %8991 = vmatprep.subr.bf16.mxu0 %v16480_v10 }
 0x7c3   :  { %v20069_v6 = vadd.f32 %v8125_v15, %v8052_v30  ;;  %8992 = vmatpush1.bf16.msra.mxu0 %v16478_v20  ;;  %v16489_v20 = vld [vmem:[%s21473_s11 + $0x5b4] ss:$8 sps:$4 sm:$0xff]  }
 0x7c4   :  { %v15395_v8 = vpop.f32.mrf.mxu1  ;;  %v15419_v12 = vpop.f32.mrf.mxu0  ;;  %9185 = vmatprep.subr.bf16.mxu1 %v16489_v20 }
 0x7c6   :  { %v8057_v52 = vpop.f32.mrf.mxu1  ;;  %v8130_v26 = vpop.f32.mrf.mxu0 }
 0x7c7   :  { %v20077_v58 = vadd.f32 %v8130_v26, %v8057_v52 }
 0x7c8   :  { %v15398_v35 = vpop.f32.mrf.mxu1  ;;  %v15422_v54 = vpop.f32.mrf.mxu0 }
 0x7ca   :  { %v8060_v22 = vpop.f32.mrf.mxu1  ;;  %v8133_v1 = vpop.f32.mrf.mxu0 }
 0x7cb   :  { %v20079_v60 = vadd.f32 %v8133_v1, %v8060_v22 }
 0x7cc   :  { %v15399_v27 = vpop.f32.mrf.mxu1  ;;  %v15423_v5 = vpop.f32.mrf.mxu0 }
 0x7ce   :  { %v8065_v63 = vpop.f32.mrf.mxu1  ;;  %v8138_v40 = vpop.f32.mrf.mxu0 }
 0x7cf   :  { %v20081_v47 = vadd.f32 %v8138_v40, %v8065_v63 }
 0x7d0   :  { %v15402_v0 = vpop.f32.mrf.mxu1  ;;  %v15426_v55 = vpop.f32.mrf.mxu0 }
 0x7d1   :  { %v16483_v55 = vld [vmem:[%s21473_s11 + $0x504] ss:$8 sps:$4 sm:$0xff]  }
 0x7d2   :  { %v8068_v29 = vpop.f32.mrf.mxu1  ;;  %v8141_v37 = vpop.f32.mrf.mxu0  ;;  %8993 = vmatprep.subr.bf16.mxu0 %v16483_v55  ;;  %v16499_v55 = vld [vmem:[%s21473_s11 + $0x590] ss:$8 sps:$4 sm:$0xff]  }
 0x7d3   :  { %v20089_v9 = vadd.f32 %v8141_v37, %v8068_v29  ;;  %8994 = vmatpush1.bf16.msra.mxu0 %v16481_v25 }
 0x7d4   :  { %v15403_v46 = vpop.f32.mrf.mxu1  ;;  %v15427_v50 = vpop.f32.mrf.mxu0 }
 0x7d6   :  { %v8073_v59 = vpop.f32.mrf.mxu1  ;;  %v8146_v7 = vpop.f32.mrf.mxu0 }
 0x7d7   :  { %v20091_v53 = vadd.f32 %v8146_v7, %v8073_v59  ;;  %v16486_v7 = vld [vmem:[%s21473_s11 + $0x574] ss:$8 sps:$4 sm:$0xff]  }
 0x7d8   :  { %v15406_v56 = vpop.f32.mrf.mxu1  ;;  %v15430_v41 = vpop.f32.mrf.mxu0  ;;  %9086 = vmatprep.subr.bf16.mxu0 %v16486_v7  ;;  %v16505_v7 = vld [vmem:[%s21473_s11 + $0x580] ss:$8 sps:$4 sm:$0xff]  }
 0x7da   :  { %v8076_v30 = vpop.f32.mrf.mxu1  ;;  %v8149_v15 = vpop.f32.mrf.mxu0 }
 0x7db   :  { %v20099_v8 = vadd.f32 %v8149_v15, %v8076_v30  ;;  %v16487_v30 = vld [vmem:[%s21473_s11 + $0x5b0] ss:$8 sps:$4 sm:$0xff]  }
 0x7dc   :  { %v15407_v12 = vpop.f32.mrf.mxu1  ;;  %v15431_v49 = vpop.f32.mrf.mxu0  ;;  %9186 = vmatpush1.bf16.msra.mxu1 %v16487_v30  ;;  %v16513_v30 = vld [vmem:[%s21473_s11 + $0x634] ss:$8 sps:$4 sm:$0xff]  }
 0x7de   :  { %v8081_v42 = vpop.f32.mrf.mxu1  ;;  %v8154_v52 = vpop.f32.mrf.mxu0 }
 0x7df   :  { %v20101_v26 = vadd.f32 %v8154_v52, %v8081_v42  ;;  %v16495_v52 = vld [vmem:[%s21473_s11 + $0x5a4] ss:$8 sps:$4 sm:$0xff]  }
 0x7e0   :  { %v15410_v35 = vpop.f32.mrf.mxu1  ;;  %v15434_v54 = vpop.f32.mrf.mxu0  ;;  %9187 = vmatprep.subr.bf16.mxu1 %v16495_v52 }
 0x7e1   :  { %v16493_v54 = vld [vmem:[%s21473_s11 + $0x5a0] ss:$8 sps:$4 sm:$0xff]  }
 0x7e2   :  { %v8084_v22 = vpop.f32.mrf.mxu1  ;;  %v8157_v1 = vpop.f32.mrf.mxu0  ;;  %9188 = vmatpush1.bf16.msra.mxu1 %v16493_v54 }
 0x7e3   :  { %v20103_v27 = vadd.f32 %v8157_v1, %v8084_v22 }
 0x7e4   :  { %v15411_v5 = vpop.f32.mrf.mxu1  ;;  %v15435_v63 = vpop.f32.mrf.mxu0 }
 0x7e6   :  { %v8195_v40 = vpop.f32.mrf.mxu1  ;;  %v8278_v0 = vpop.f32.mrf.mxu0 }
 0x7e7   :  { %v8234_v61 = vadd.f32 %v8195_v40, %v20066_v39  ;;  %v16501_v40 = vld [vmem:[%s21473_s11 + $0x594] ss:$8 sps:$4 sm:$0xff]  }
 0x7e8   :  { %v15442_v29 = vpop.f32.mrf.mxu1  ;;  %v15466_v37 = vpop.f32.mrf.mxu0  ;;  %9189 = vmatprep.subr.bf16.mxu1 %v16501_v40 }
 0x7e9   :  { %v20112_v46 = vadd.f32 %v8278_v0, %v8234_v61  ;;  %9190 = vmatpush1.bf16.msra.mxu1 %v16499_v55 }
 0x7ea   :  { %v8198_v50 = vpop.f32.mrf.mxu1  ;;  %v8281_v59 = vpop.f32.mrf.mxu0 }
 0x7eb   :  { %v8235_v56 = vadd.f32 %v8198_v50, %v20069_v6  ;;  %v16507_v50 = vld [vmem:[%s21473_s11 + $0x584] ss:$8 sps:$4 sm:$0xff]  }
 0x7ec   :  { %v15443_v41 = vpop.f32.mrf.mxu1  ;;  %v15467_v39 = vpop.f32.mrf.mxu0  ;;  %9191 = vmatprep.subr.bf16.mxu1 %v16507_v50 }
 0x7ed   :  { %v20121_v10 = vadd.f32 %v8281_v59, %v8235_v56  ;;  %9192 = vmatpush1.bf16.msra.mxu1 %v16505_v7 }
 0x7ee   :  { %v8203_v15 = vpop.f32.mrf.mxu1  ;;  %v8286_v12 = vpop.f32.mrf.mxu0  ;;  %9383 = vmatprep.subr.bf16.mxu1 %v16513_v30 }
 0x7ef   :  { %v8236_v49 = vadd.f32 %v8203_v15, %v20077_v58 }
 0x7f0   :  { %v15446_v6 = vpop.f32.mrf.mxu1  ;;  %v15470_v42 = vpop.f32.mrf.mxu0 }
 0x7f1   :  { %v20130_v35 = vadd.f32 %v8286_v12, %v8236_v49 }
 0x7f2   :  { %v8206_v22 = vpop.f32.mrf.mxu1  ;;  %v8289_v1 = vpop.f32.mrf.mxu0 }
 0x7f3   :  { %v8237_v5 = vadd.f32 %v8206_v22, %v20079_v60 }
 0x7f4   :  { %v15447_v58 = vpop.f32.mrf.mxu1  ;;  %v15471_v63 = vpop.f32.mrf.mxu0 }
 0x7f5   :  { %v20139_v0 = vadd.f32 %v8289_v1, %v8237_v5 }
 0x7f6   :  { %v8211_v61 = vpop.f32.mrf.mxu1  ;;  %v8294_v25 = vpop.f32.mrf.mxu0 }
 0x7f7   :  { %v8238_v29 = vadd.f32 %v8211_v61, %v20081_v47 }
 0x7f8   :  { %v15450_v60 = vpop.f32.mrf.mxu1  ;;  %v15474_v37 = vpop.f32.mrf.mxu0 }
 0x7f9   :  { %v8321_v59 = vadd.f32 %v8294_v25, %v8238_v29 }
 0x7fa   :  { %v8214_v56 = vpop.f32.mrf.mxu1  ;;  %v8297_v41 = vpop.f32.mrf.mxu0 }
 0x7fb   :  { %v8239_v39 = vadd.f32 %v8214_v56, %v20089_v9 }
 0x7fc   :  { %v15451_v20 = vpop.f32.mrf.mxu1  ;;  %v15475_v47 = vpop.f32.mrf.mxu0 }
 0x7fd   :  { %v8322_v15 = vadd.f32 %v8297_v41, %v8239_v39 }
 0x7fe   :  { %v8219_v12 = vpop.f32.mrf.mxu1  ;;  %v8302_v49 = vpop.f32.mrf.mxu0 }
 0x7ff   :  { %v8240_v6 = vadd.f32 %v8219_v12, %v20091_v53 }
 0x800   :  { %v15454_v42 = vpop.f32.mrf.mxu1  ;;  %v15478_v52 = vpop.f32.mrf.mxu0 }
 0x801   :  { %v8323_v54 = vadd.f32 %v8302_v49, %v8240_v6 }
 0x802   :  { %v8222_v22 = vpop.f32.mrf.mxu1  ;;  %v8305_v1 = vpop.f32.mrf.mxu0 }
 0x803   :  { %v8241_v9 = vadd.f32 %v8222_v22, %v20099_v8 }
 0x804   :  { %v15455_v5 = vpop.f32.mrf.mxu1  ;;  %v15479_v58 = vpop.f32.mrf.mxu0 }
 0x805   :  { %v8324_v63 = vadd.f32 %v8305_v1, %v8241_v9 }
 0x806   :  { %v8227_v40 = vpop.f32.mrf.mxu1  ;;  %v8310_v55 = vpop.f32.mrf.mxu0 }
 0x807   :  { %v8242_v61 = vadd.f32 %v8227_v40, %v20101_v26 }
 0x808   :  { %v15458_v25 = vpop.f32.mrf.mxu1  ;;  %v15482_v29 = vpop.f32.mrf.mxu0 }
 0x809   :  { %v8325_v60 = vadd.f32 %v8310_v55, %v8242_v61 }
 0x80a   :  { %v8230_v37 = vpop.f32.mrf.mxu1  ;;  %v8313_v50 = vpop.f32.mrf.mxu0 }
 0x80b   :  { %v8243_v53 = vadd.f32 %v8230_v37, %v20103_v27 }
 0x80c   :  { %v15459_v7 = vpop.f32.mrf.mxu1  ;;  %v15483_v56 = vpop.f32.mrf.mxu0 }
 0x80d   :  { %v8326_v41 = vadd.f32 %v8313_v50, %v8243_v53 }
 0x80e   :  { %v8361_v39 = vpop.f32.mrf.mxu1  ;;  %v8444_v20 = vpop.f32.mrf.mxu0 }
 0x80f   :  { %v8400_v8 = vadd.f32 %v8361_v39, %v20112_v46 }
 0x810   :  { %v15490_v47 = vpop.f32.mrf.mxu1  ;;  %v15514_v30 = vpop.f32.mrf.mxu0 }
 0x811   :  { %v20160_v12 = vadd.f32 %v8444_v20, %v8400_v8 }
 0x812   :  { %v8364_v49 = vpop.f32.mrf.mxu1  ;;  %v8447_v26 = vpop.f32.mrf.mxu0 }
 0x813   :  { %v8401_v6 = vadd.f32 %v8364_v49, %v20121_v10 }
 0x814   :  { %v15491_v42 = vpop.f32.mrf.mxu1  ;;  %v15515_v52 = vpop.f32.mrf.mxu0 }
 0x815   :  { %v20163_v22 = vadd.f32 %v8447_v26, %v8401_v6 }
 0x816   :  { %v8369_v27 = vpop.f32.mrf.mxu1  ;;  %v8452_v1 = vpop.f32.mrf.mxu0 }
 0x817   :  { %v8402_v9 = vadd.f32 %v8369_v27, %v20130_v35 }
 0x818   :  { %v15494_v5 = vpop.f32.mrf.mxu1  ;;  %v15518_v58 = vpop.f32.mrf.mxu0 }
 0x819   :  { %v20166_v40 = vadd.f32 %v8452_v1, %v8402_v9 }
 0x81a   :  { %v8372_v46 = vpop.f32.mrf.mxu1  ;;  %v8455_v55 = vpop.f32.mrf.mxu0 }
 0x81b   :  { %v8403_v61 = vadd.f32 %v8372_v46, %v20139_v0 }
 0x81c   :  { %v15495_v25 = vpop.f32.mrf.mxu1  ;;  %v15519_v29 = vpop.f32.mrf.mxu0 }
 0x81d   :  { %v20169_v37 = vadd.f32 %v8455_v55, %v8403_v61 }
 0x81e   :  { %v8377_v10 = vpop.f32.mrf.mxu1  ;;  %v8460_v50 = vpop.f32.mrf.mxu0 }
 0x81f   :  { %v8404_v53 = vadd.f32 %v8377_v10, %v8321_v59 }
 0x820   :  { %v15498_v7 = vpop.f32.mrf.mxu1  ;;  %v15522_v56 = vpop.f32.mrf.mxu0 }
 0x821   :  { %v20171_v39 = vadd.f32 %v8460_v50, %v8404_v53 }
 0x822   :  { %v8380_v35 = vpop.f32.mrf.mxu1  ;;  %v8463_v20 = vpop.f32.mrf.mxu0 }
 0x823   :  { %v8405_v8 = vadd.f32 %v8380_v35, %v8322_v15 }
 0x824   :  { %v15499_v47 = vpop.f32.mrf.mxu1  ;;  %v15523_v30 = vpop.f32.mrf.mxu0 }
 0x825   :  { %v20173_v49 = vadd.f32 %v8463_v20, %v8405_v8 }
 0x826   :  { %v8385_v26 = vpop.f32.mrf.mxu1  ;;  %v8468_v0 = vpop.f32.mrf.mxu0 }
 0x827   :  { %v8406_v6 = vadd.f32 %v8385_v26, %v8323_v54 }
 0x828   :  { %v15502_v42 = vpop.f32.mrf.mxu1  ;;  %v15526_v52 = vpop.f32.mrf.mxu0 }
 0x829   :  { %v20175_v27 = vadd.f32 %v8468_v0, %v8406_v6 }
 0x82a   :  { %v8388_v1 = vpop.f32.mrf.mxu1  ;;  %v8471_v59 = vpop.f32.mrf.mxu0 }
 0x82b   :  { %v8407_v9 = vadd.f32 %v8388_v1, %v8324_v63 }
 0x82c   :  { %v15503_v5 = vpop.f32.mrf.mxu1  ;;  %v15527_v58 = vpop.f32.mrf.mxu0 }
 0x82d   :  { %v20177_v46 = vadd.f32 %v8471_v59, %v8407_v9 }
 0x82e   :  { %v8393_v55 = vpop.f32.mrf.mxu1  ;;  %v8476_v15 = vpop.f32.mrf.mxu0 }
 0x82f   :  { %v8408_v61 = vadd.f32 %v8393_v55, %v8325_v60 }
 0x830   :  { %v15506_v25 = vpop.f32.mrf.mxu1  ;;  %v15530_v29 = vpop.f32.mrf.mxu0 }
 0x831   :  { %v20179_v10 = vadd.f32 %v8476_v15, %v8408_v61 }
 0x832   :  { %v8396_v50 = vpop.f32.mrf.mxu1  ;;  %v8479_v54 = vpop.f32.mrf.mxu0 }
 0x833   :  { %v8409_v53 = vadd.f32 %v8396_v50, %v8326_v41 }
 0x834   :  { %v15507_v7 = vpop.f32.mrf.mxu1  ;;  %v15531_v56 = vpop.f32.mrf.mxu0 }
 0x835   :  { %v20181_v35 = vadd.f32 %v8479_v54, %v8409_v53 }
 0x836   :  { %v8577_v20 = vpop.f32.mrf.mxu1  ;;  %v8710_v63 = vpop.f32.mrf.mxu0 }
 0x838   :  { %v15538_v8 = vpop.f32.mrf.mxu1  ;;  %v15562_v47 = vpop.f32.mrf.mxu0 }
 0x83a   :  { %v8580_v30 = vpop.f32.mrf.mxu1  ;;  %v8713_v26 = vpop.f32.mrf.mxu0 }
 0x83b   :  { %v8617_v34 = vadd.f32 %v8580_v30, %v20163_v22 }
 0x83c   :  { %v15539_v0 = vpop.f32.mrf.mxu1  ;;  %v15563_v6 = vpop.f32.mrf.mxu0 }
 0x83d   :  { %v8750_v57 = vadd.f32 %v8713_v26, %v8617_v34 }
 0x83e   :  { %v8585_v60 = vpop.f32.mrf.mxu1  ;;  %v8718_v42 = vpop.f32.mrf.mxu0 }
 0x83f   :  { %v8618_v33 = vadd.f32 %v8585_v60, %v20166_v40 }
 0x840   :  { %v15542_v52 = vpop.f32.mrf.mxu1  ;;  %v15566_v1 = vpop.f32.mrf.mxu0 }
 0x842   :  { %v8588_v59 = vpop.f32.mrf.mxu1  ;;  %v8721_v9 = vpop.f32.mrf.mxu0 }
 0x844   :  { %v15543_v5 = vpop.f32.mrf.mxu1  ;;  %v15567_v41 = vpop.f32.mrf.mxu0 }
 0x846   :  { %v8593_v58 = vpop.f32.mrf.mxu1  ;;  %v8726_v55 = vpop.f32.mrf.mxu0 }
 0x848   :  { %v15546_v15 = vpop.f32.mrf.mxu1  ;;  %v15570_v61 = vpop.f32.mrf.mxu0 }
 0x849   :  { %v8616_v61 = vadd.f32 %v8577_v20, %v20160_v12 }
 0x84a   :  { %v8596_v25 = vpop.f32.mrf.mxu1  ;;  %v20183_v29 = vpop.f32.mrf.mxu0 }
 0x84b   :  { %v8749_v36 = vadd.f32 %v8710_v63, %v8616_v61  ;;  %v8751_v61 = vadd.f32 %v8718_v42, %v8618_v33 }
 0x84c   :  { %v15547_v50 = vpop.f32.mrf.mxu1  ;;  %v15571_v54 = vpop.f32.mrf.mxu0 }
 0x84e   :  { %v20185_v53 = vpop.f32.mrf.mxu1  ;;  %v20187_v7 = vpop.f32.mrf.mxu0 }
 0x850   :  { %v15550_v56 = vpop.f32.mrf.mxu1  ;;  %v15574_v8 = vpop.f32.mrf.mxu0 }
 0x852   :  { %v20189_v47 = vpop.f32.mrf.mxu1  ;;  %v20191_v0 = vpop.f32.mrf.mxu0 }
 0x854   :  { %v15551_v6 = vpop.f32.mrf.mxu1  ;;  %v15575_v52 = vpop.f32.mrf.mxu0 }
 0x856   :  { %v20193_v1 = vpop.f32.mrf.mxu1  ;;  %v20195_v5 = vpop.f32.mrf.mxu0 }
 0x858   :  { %v15554_v41 = vpop.f32.mrf.mxu1  ;;  %v15578_v15 = vpop.f32.mrf.mxu0 }
 0x859   :  { %v20207_v41 = vld [vmem:[%s21474_s6] ss:$0 sm:$0xff] }
 0x85a   :  { %v20198_v50 = vpop.f32.mrf.mxu1  ;;  %v20200_v54 = vpop.f32.mrf.mxu0 }
 0x85c   :  { %v15555_v56 = vpop.f32.mrf.mxu1  ;;  %v15579_v8 = vpop.f32.mrf.mxu0 }
 0x85d   :  { %v8619_v56 = vadd.f32 %v8588_v59, %v20169_v37  ;;  %v16484_v8 = vld [vmem:[%s21473_s11 + $0x570] ss:$8 sps:$4 sm:$0xff]  }
 0x85e   :  { %v8843_v24 = vpop.f32.mrf.mxu1 }
 0x85f   :  { %v8882_v6 = vadd.f32 %v8843_v24, %v8749_v36  ;;  %v20214_v24 = vld [vmem:[%s21475_s7] ss:$0 sm:$0xff]  ;;  %v8752_v26 = vadd.f32 %v8721_v9, %v8619_v56  ;;  %v8621_v9 = vadd.f32 %v8596_v25, %v20173_v49  ;;  %v16498_v49 = vld [vmem:[%s21473_s11 + $0x554] ss:$8 sps:$4 sm:$0xff]  }
 0x860   :  { %v15586_v52 = vpop.f32.mrf.mxu1 }
 0x861   :  { %v8892_v12 = vmul.f32 %v20207_v41, %v8882_v6 }
 0x862   :  { %v8846_v20 = vpop.f32.mrf.mxu1 }
 0x863   :  { %v8883_v15 = vadd.f32 %v8846_v20, %v8750_v57  ;;  %v8902_v34 = vadd.f32 %v20214_v24, %v8892_v12  ;;  %v8620_v57 = vadd.f32 %v8593_v58, %v20171_v39  ;;  %v16492_v12 = vld [vmem:[%s21473_s11 + $0x564] ss:$8 sps:$4 sm:$0xff]  }
 0x864   :  { %v15587_v63 = vpop.f32.mrf.mxu1 }
 0x865   :  { %v8893_v36 = vmul.f32 %v20207_v41, %v8883_v15  ;;  %v8912_v37 = vmax.f32 %v8902_v34, 0.0  ;;  %v8753_v15 = vadd.f32 %v8726_v55, %v8620_v57  ;;  %v16490_v63 = vld [vmem:[%s21473_s11 + $0x560] ss:$8 sps:$4 sm:$0xff]   ;;  %v8754_v55 = vadd.f32 %v20183_v29, %v8621_v9  ;;  %v16504_v29 = vld [vmem:[%s21473_s11 + $0x544] ss:$8 sps:$4 sm:$0xff]  }
 0x866   :  { %v8851_v22 = vpop.f32.mrf.mxu1 }
 0x867   :  { %v8903_v40 = vadd.f32 %v20214_v24, %v8893_v36  ;;  %v8884_v30 = vadd.f32 %v8851_v22, %v8751_v61  ;;  %v8622_v36 = vadd.f32 %v20185_v53, %v20175_v27  ;;  %v8623_v53 = vadd.f32 %v20189_v47, %v20177_v46 }
 0x868   :  { %v15590_v60 = vpop.f32.mrf.mxu1  ;;  %v8624_v46 = vadd.f32 %v20193_v1, %v20179_v10  ;;  %v16516_v10 = vld [vmem:[%s21473_s11 + $0x5e4] ss:$8 sps:$4 sm:$0xff]  }
 0x869   :  { %v8913_v59 = vmax.f32 %v8903_v40, 0.0  ;;  %v8894_v33 = vmul.f32 %v20207_v41, %v8884_v30  ;;  %v16496_v60 = vld [vmem:[%s21473_s11 + $0x550] ss:$8 sps:$4 sm:$0xff]   ;;  %v8755_v27 = vadd.f32 %v20187_v7, %v8622_v36  ;;  %v16510_v7 = vld [vmem:[%s21473_s11 + $0x5f4] ss:$8 sps:$4 sm:$0xff]   ;;  %v8756_v9 = vadd.f32 %v20191_v0, %v8623_v53 }
 0x86a   :  { %v8854_v42 = vpop.f32.mrf.mxu1  ;;  %v16519_v0 = vld [vmem:[%s21473_s11 + $0x624] ss:$8 sps:$4 sm:$0xff]   ;;  %v8757_v1 = vadd.f32 %v20195_v5, %v8624_v46  ;;  %v16517_v5 = vld [vmem:[%s21473_s11 + $0x620] ss:$8 sps:$4 sm:$0xff]   ;;  %v16520_v53 = vld [vmem:[%s21473_s11 + $0x5d0] ss:$8 sps:$4 sm:$0xff]  }
 0x86b   :  { %v8922_v6 = vpack.c.bf16 %v8913_v59, %v8912_v37  ;;  %v8885_v52 = vadd.f32 %v8854_v42, %v8752_v26  ;;  %v8904_v39 = vadd.f32 %v20214_v24, %v8894_v33  ;;  %v16526_v46 = vld [vmem:[%s21473_s11 + $0x5c0] ss:$8 sps:$4 sm:$0xff]  }
 0x86c   :  { %v15591_v20 = vpop.f32.mrf.mxu1 }
 0x86d   :  { %v8895_v58 = vmul.f32 %v20207_v41, %v8885_v52  ;;  %13369 = vmatmul.mubr.msk.bf16.vlgmr.msra.gmra.mxu0 %vm3265_vm7, %v8922_v6  ;;  %v8914_v22 = vmax.f32 %v8904_v39, 0.0  ;;  %v16502_v6 = vld [vmem:[%s21473_s11 + $0x540] ss:$8 sps:$4 sm:$0xff]  }
 0x86e   :  { %9087 = vmatpush1.bf16.msra.mxu0 %v16484_v8  ;;  %v8859_v56 = vpop.f32.mrf.mxu1  ;;  %9110 = vmatprep.mubr.bf16.mxu0 %v21495_v44 }
 0x86f   :  { %v8905_v61 = vadd.f32 %v20214_v24, %v8895_v58  ;;  %v8886_v34 = vadd.f32 %v8859_v56, %v8753_v15  ;;  %9088 = vmatprep.subr.bf16.mxu0 %v16492_v12  ;;  %v16508_v56 = vld [vmem:[%s21473_s11 + $0x5f0] ss:$8 sps:$4 sm:$0xff]  }
 0x870   :  { %v15594_v25 = vpop.f32.mrf.mxu1 }
 0x871   :  { %v8915_v40 = vmax.f32 %v8905_v61, 0.0  ;;  %v8896_v30 = vmul.f32 %v20207_v41, %v8886_v34 }
 0x872   :  { %9089 = vmatpush1.bf16.msra.mxu0 %v16490_v63  ;;  %v8862_v26 = vpop.f32.mrf.mxu1  ;;  %v16511_v63 = vld [vmem:[%s21473_s11 + $0x630] ss:$8 sps:$4 sm:$0xff]  }
 0x873   :  { %v8923_v57 = vpack.c.bf16 %v8915_v40, %v8914_v22  ;;  %v8887_v37 = vadd.f32 %v8862_v26, %v8754_v55  ;;  %9090 = vmatprep.subr.bf16.mxu0 %v16498_v49  ;;  %v8906_v33 = vadd.f32 %v20214_v24, %v8896_v30  ;;  %v8625_v55 = vadd.f32 %v20198_v50, %v20181_v35  ;;  %v16514_v40 = vld [vmem:[%s21473_s11 + $0x5e0] ss:$8 sps:$4 sm:$0xff]   ;;  %v16522_v30 = vld [vmem:[%s21473_s11 + $0x5d4] ss:$8 sps:$4 sm:$0xff]  }
 0x874   :  { %v15595_v59 = vpop.f32.mrf.mxu1  ;;  %v16525_v26 = vld [vmem:[%s21473_s11 + $0x614] ss:$8 sps:$4 sm:$0xff]  }
 0x875   :  { %v8897_v42 = vmul.f32 %v20207_v41, %v8887_v37  ;;  %v8916_v20 = vmax.f32 %v8906_v33, 0.0  ;;  %v16523_v33 = vld [vmem:[%s21473_s11 + $0x610] ss:$8 sps:$4 sm:$0xff]  }
 0x876   :  { %9091 = vmatpush1.bf16.msra.mxu0 %v16496_v60  ;;  %v8867_v8 = vpop.f32.mrf.mxu1 }
 0x877   :  { %v8907_v52 = vadd.f32 %v20214_v24, %v8897_v42  ;;  %v8888_v12 = vadd.f32 %v8867_v8, %v8755_v27  ;;  %9092 = vmatprep.subr.bf16.mxu0 %v16504_v29 }
 0x878   :  { %v15598_v47 = vpop.f32.mrf.mxu1 }
 0x879   :  { %v8917_v15 = vmax.f32 %v8907_v52, 0.0  ;;  %v8898_v39 = vmul.f32 %v20207_v41, %v8888_v12  ;;  %v16529_v47 = vld [vmem:[%s21473_s11 + $0x600] ss:$8 sps:$4 sm:$0xff]  }
 0x87a   :  { %9093 = vmatpush1.bf16.msra.mxu0 %v16502_v6  ;;  %v8870_v58 = vpop.f32.mrf.mxu1  ;;  %v16531_v6 = vld [vmem:[%s21473_s11 + $0x604] ss:$8 sps:$4 sm:$0xff]  }
 0x87b   :  { %v8924_v61 = vpack.c.bf16 %v8917_v15, %v8916_v20  ;;  %v8889_v34 = vadd.f32 %v8870_v58, %v8756_v9  ;;  %9284 = vmatprep.subr.bf16.mxu0 %v16510_v7  ;;  %v8908_v25 = vadd.f32 %v20214_v24, %v8898_v39  ;;  %v16859_v58 = vld [vmem:[%s21465_s5 + $0x10] sm:$0xff]  }
 0x87c   :  { %v15599_v49 = vpop.f32.mrf.mxu1 }
 0x87d   :  { %v8899_v36 = vmul.f32 %v20207_v41, %v8889_v34  ;;  %13386 = vmatmul.mubr.msk.bf16.vlgmr.msra.gmra.mxu0 %vm3265_vm7, %v8923_v57  ;;  %13403 = vmatmul.mubr.msk.bf16.vlgmr.msra.gmra.mxu1 %vm3265_vm7, %v8924_v61  ;;  %v8758_v57 = vadd.f32 %v20200_v54, %v8625_v55  ;;  %v8918_v37 = vmax.f32 %v8908_v25, 0.0  ;;  %v16528_v54 = vld [vmem:[%s21473_s11 + $0x5c4] ss:$8 sps:$4 sm:$0xff]   ;;  %v16874_v55 = vld [vmem:[%s21465_s5 + $0x50] sm:$0xff]  }
 0x87e   :  { %9285 = vmatpush1.bf16.msra.mxu0 %v16508_v56  ;;  %v8875_v22 = vpop.f32.mrf.mxu1  ;;  %9384 = vmatpush1.bf16.msra.mxu1 %v16511_v63  ;;  %v16860_v56 = vld [vmem:[%s21465_s5] sm:$0xff]   ;;  %v16861_v63 = vld [vmem:[#allocation2 + $0x118] sm:$0xff]   ;;  %v16862_v61 = vld [vmem:[%s21465_s5 + $0x28] sm:$0xff]  }
 0x87f   :  { %v8909_v35 = vadd.f32 %v20214_v24, %v8899_v36  ;;  %v8890_v50 = vadd.f32 %v8875_v22, %v8757_v1  ;;  %9286 = vmatprep.subr.bf16.mxu0 %v16516_v10  ;;  %9385 = vmatprep.subr.bf16.mxu1 %v16519_v0  ;;  %v16864_v34 = vld [vmem:[%s21465_s5 + $0x20] sm:$0xff]   ;;  %v16865_v10 = vld [vmem:[%s21465_s5 + $0x30] sm:$0xff]   ;;  %v16867_v1 = vld [vmem:[#allocation2 + $0x128] sm:$0xff]  }
 0x880   :  { %v15602_v60 = vpop.f32.mrf.mxu1  ;;  %9308 = vmatprep.mubr.bf16.mxu0 %v21495_v44  ;;  %9407 = vmatprep.mubr.bf16.mxu1 %v21495_v44  ;;  %v16866_v0 = vld [vmem:[#allocation2 + $0x120] sm:$0xff]   ;;  %v16871_v49 = vld [vmem:[%s21465_s5 + $0x48] sm:$0xff]   ;;  %v16875_v25 = vld [vmem:[#allocation2 + $0x130] sm:$0xff]  }
 0x881   :  { %v8919_v29 = vmax.f32 %v8909_v35, 0.0  ;;  %v8900_v59 = vmul.f32 %v20207_v41, %v8890_v50  ;;  %v16876_v36 = vld [vmem:[#allocation2 + $0x138] sm:$0xff]   ;;  %v16878_v22 = vld [vmem:[#allocation2 + $0x148] sm:$0xff]   ;;  %v16533_v50 = vld [vmem:[#allocation2 + $0x190] sm:$0xff]  }
 0x882   :  { %9287 = vmatpush1.bf16.msra.mxu0 %v16514_v40  ;;  %v8878_v27 = vpop.f32.mrf.mxu1  ;;  %9386 = vmatpush1.bf16.msra.mxu1 %v16517_v5  ;;  %v16883_v40 = vld [vmem:[%s21465_s5 + $0x70] sm:$0xff]   ;;  %v20473_v5 = vld [vmem:[#allocation2 + $0x160] sm:$0xff]   ;;  %v20483_v35 = vld [vmem:[#allocation2 + $0x168] sm:$0xff]  }
 0x883   :  { %v8925_v42 = vpack.c.bf16 %v8919_v29, %v8918_v37  ;;  %v8891_v8 = vadd.f32 %v8878_v27, %v8758_v57  ;;  %9288 = vmatprep.subr.bf16.mxu0 %v16522_v30  ;;  %9387 = vmatprep.subr.bf16.mxu1 %v16525_v26  ;;  %v8910_v12 = vadd.f32 %v20214_v24, %v8900_v59  ;;  %v16888_v30 = vld [vmem:[%s21465_s5 + $0x88] sm:$0xff]   ;;  %v20529_v26 = vld [vmem:[#allocation2 + $0x190] sm:$0xff]   ;;  %v16535_v60 = vld [vmem:[#allocation2 + $0x198] sm:$0xff]  }
 0x884   :  { %v15603_v52 = vpop.f32.mrf.mxu1  ;;  %v20538_v57 = vld [vmem:[#allocation2 + $0x198] sm:$0xff]   ;;  %v16537_v37 = vld [vmem:[#allocation2 + $0x1a0] sm:$0xff]   ;;  %v16539_v59 = vld [vmem:[#allocation2 + $0x1a8] sm:$0xff]  }
 0x885   :  { %v8901_v7 = vmul.f32 %v20207_v41, %v8891_v8  ;;  %v8920_v20 = vmax.f32 %v8910_v12, 0.0  ;;  %v16857_v41 = vld [vmem:[%s21465_s5 + $0x18] sm:$0xff]   ;;  %v20547_v29 = vld [vmem:[#allocation2 + $0x1a0] sm:$0xff]   ;;  %v20556_v27 = vld [vmem:[#allocation2 + $0x1a8] sm:$0xff]  }
 0x886   :  { %9289 = vmatpush1.bf16.msra.mxu0 %v16520_v53  ;;  %9388 = vmatpush1.bf16.msra.mxu1 %v16523_v33  ;;  %v16541_v53 = vld [vmem:[#allocation2 + $0x1b0] sm:$0xff]   ;;  %v20567_v12 = vld [vmem:[#allocation2 + $0x198] sm:$0xff]  }
 0x887   :  { %v8911_v9 = vadd.f32 %v20214_v24, %v8901_v7  ;;  %9290 = vmatprep.subr.bf16.mxu0 %v16528_v54  ;;  %9389 = vmatprep.subr.bf16.mxu1 %v16531_v6  ;;  %v16858_v24 = vld [vmem:[%s21465_s5 + $0x8] sm:$0xff]   ;;  %v20575_v7 = vld [vmem:[#allocation2 + $0x1a0] sm:$0xff]  }
 0x889   :  { %v8921_v15 = vmax.f32 %v8911_v9, 0.0 }
 0x88a   :  { %9291 = vmatpush1.bf16.msra.mxu0 %v16526_v46  ;;  %9390 = vmatpush1.bf16.msra.mxu1 %v16529_v47 }
 0x88b   :  { %v8926_v39 = vpack.c.bf16 %v8921_v15, %v8920_v20  ;;  %15604 = vmatprep.subr.bf16.mxu0 %v21496_v38  ;;  %15628 = vmatprep.subr.bf16.mxu1 %v21496_v38 }
 0x88d   :  { %13420 = vmatmul.mubr.msk.bf16.vlgmr.msra.gmra.mxu0 %vm3265_vm7, %v8925_v42  ;;  %13437 = vmatmul.mubr.msk.bf16.vlgmr.msra.gmra.mxu1 %vm3265_vm7, %v8926_v39 }
 0x88e   :  { %15605 = vmatpush3.bf16.msra.mxu0 %v16857_v41  ;;  %15629 = vmatpush3.bf16.msra.mxu1 %v16858_v24 }
 0x88f   :  { %15606 = vmatprep.subr.bf16.mxu0 %v21496_v38  ;;  %15630 = vmatprep.subr.bf16.mxu1 %v21496_v38 }
 0x890   :  { %15608 = vmatprep.mubr.msk.bf16.mxu0 %vm16928_vm1, %v21496_v38  ;;  %15632 = vmatprep.mubr.msk.bf16.mxu1 %vm16928_vm1, %v21496_v38 }
 0x892   :  { %15607 = vmatpush3.bf16.msra.mxu0 %v16859_v58  ;;  %15631 = vmatpush3.bf16.msra.mxu1 %v16860_v56  ;;  %v20581_v56 = vld [vmem:[#allocation2 + $0x1a8] sm:$0xff]  }
 0x893   :  { %15652 = vmatprep.subr.bf16.mxu0 %v21496_v38  ;;  %15676 = vmatprep.subr.bf16.mxu1 %v21496_v38 }
 0x895   :  { %15609 = vmatmul.mubr.msk.bf16.vlgmr.msra.gmra.mxu0 %vm1936_vm6, %v19903_v28  ;;  %15633 = vmatmul.mubr.msk.bf16.vlgmr.msra.gmra.mxu1 %vm1936_vm6, %v16861_v63  ;;  %v16863_v28 = vld [vmem:[%s21465_s5 + $0x38] sm:$0xff]  }
 0x896   :  { %15653 = vmatpush3.bf16.msra.mxu0 %v16862_v61  ;;  %15612 = vmatprep.mubr.msk.bf16.mxu0 %vm16928_vm1, %v21496_v38 }
 0x897   :  { %15636 = vmatprep.mubr.msk.bf16.mxu1 %vm16928_vm1, %v21496_v38  ;;  %15654 = vmatprep.subr.bf16.mxu0 %v21496_v38 }
 0x898   :  { %15677 = vmatpush3.bf16.msra.mxu1 %v16863_v28 }
 0x899   :  { %15678 = vmatprep.subr.bf16.mxu1 %v21496_v38 }
 0x89a   :  { %15655 = vmatpush3.bf16.msra.mxu0 %v16864_v34  ;;  %v20591_v34 = vld [vmem:[#allocation2 + $0x1b0] sm:$0xff]  }
 0x89b   :  { %15700 = vmatprep.subr.bf16.mxu0 %v21496_v38 }
 0x89c   :  { %15679 = vmatpush3.bf16.msra.mxu1 %v16865_v10 }
 0x89d   :  { %15613 = vmatmul.mubr.msk.bf16.gmra.mxu0 %vm1936_vm6, %v19928_v48  ;;  %15637 = vmatmul.mubr.msk.bf16.gmra.mxu1 %vm1936_vm6, %v16866_v0  ;;  %v16868_v48 = vld [vmem:[#allocation2 + $0x130] sm:$0xff]  }
 0x89e   :  { %15616 = vmatprep.mubr.msk.bf16.mxu0 %vm16928_vm1, %v21496_v38  ;;  %15640 = vmatprep.mubr.msk.bf16.mxu1 %vm16928_vm1, %v21496_v38 }
 0x89f   :  { %15724 = vmatprep.subr.bf16.mxu1 %v21496_v38 }
 0x8a5   :  { %15617 = vmatmul.mubr.msk.bf16.gmra.mxu0 %vm1936_vm6, %v19938_v16  ;;  %15641 = vmatmul.mubr.msk.bf16.gmra.mxu1 %vm1936_vm6, %v16867_v1  ;;  %v16869_v16 = vld [vmem:[#allocation2 + $0x138] sm:$0xff]  }
 0x8a6   :  { %15620 = vmatprep.mubr.msk.bf16.mxu0 %vm16928_vm1, %v21496_v38  ;;  %15644 = vmatprep.mubr.msk.bf16.mxu1 %vm16928_vm1, %v21496_v38 }
 0x8ad   :  { %15621 = vmatmul.mubr.msk.bf16.gmra.mxu0 %vm1936_vm6, %v19948_v13  ;;  %15645 = vmatmul.mubr.msk.bf16.gmra.mxu1 %vm1936_vm6, %v16868_v48  ;;  %v16870_v13 = vld [vmem:[#allocation2 + $0x128] sm:$0xff]  }
 0x8ae   :  { %15624 = vmatprep.mubr.msk.bf16.mxu0 %vm16928_vm1, %v21496_v38  ;;  %15648 = vmatprep.mubr.msk.bf16.mxu1 %vm16928_vm1, %v21496_v38 }
 0x8b5   :  { %15625 = vmatmul.mubr.msk.bf16.gmra.mxu0 %vm1936_vm6, %v19958_v45  ;;  %15649 = vmatmul.mubr.msk.bf16.gmra.mxu1 %vm1936_vm6, %v16869_v16  ;;  %v16872_v45 = vld [vmem:[%s21465_s5 + $0x58] sm:$0xff]  }
 0x8b6   :  { %15656 = vmatprep.mubr.msk.bf16.mxu0 %vm16928_vm1, %v21496_v38  ;;  %15680 = vmatprep.mubr.msk.bf16.mxu1 %vm16928_vm1, %v21496_v38 }
 0x8bd   :  { %15657 = vmatmul.mubr.msk.bf16.vlgmr.msra.gmra.mxu0 %vm1936_vm6, %v16870_v13  ;;  %15681 = vmatmul.mubr.msk.bf16.vlgmr.msra.gmra.mxu1 %vm1936_vm6, %v19968_v4  ;;  %v16873_v4 = vld [vmem:[%s21465_s5 + $0x40] sm:$0xff]  }
 0x8be   :  { %15701 = vmatpush3.bf16.msra.mxu0 %v16871_v49  ;;  %15660 = vmatprep.mubr.msk.bf16.mxu0 %vm16928_vm1, %v21496_v38 }
 0x8bf   :  { %15684 = vmatprep.mubr.msk.bf16.mxu1 %vm16928_vm1, %v21496_v38  ;;  %15702 = vmatprep.subr.bf16.mxu0 %v21496_v38 }
 0x8c0   :  { %15725 = vmatpush3.bf16.msra.mxu1 %v16872_v45 }
 0x8c1   :  { %15726 = vmatprep.subr.bf16.mxu1 %v21496_v38 }
 0x8c2   :  { %15703 = vmatpush3.bf16.msra.mxu0 %v16873_v4 }
 0x8c3   :  { %15748 = vmatprep.subr.bf16.mxu0 %v21496_v38 }
 0x8c4   :  { %15727 = vmatpush3.bf16.msra.mxu1 %v16874_v55  ;;  %v20599_v55 = vld [vmem:[#allocation2 + $0x1b8] sm:$0xff]  }
 0x8c5   :  { %15661 = vmatmul.mubr.msk.bf16.gmra.mxu0 %vm1936_vm6, %v16875_v25  ;;  %15685 = vmatmul.mubr.msk.bf16.gmra.mxu1 %vm1936_vm6, %v19984_v62  ;;  %v16877_v62 = vld [vmem:[#allocation2 + $0x140] sm:$0xff]  }
 0x8c6   :  { %15664 = vmatprep.mubr.msk.bf16.mxu0 %vm16928_vm1, %v21496_v38  ;;  %15688 = vmatprep.mubr.msk.bf16.mxu1 %vm16928_vm1, %v21496_v38 }
 0x8c7   :  { %15772 = vmatprep.subr.bf16.mxu1 %v21496_v38 }
 0x8cd   :  { %15665 = vmatmul.mubr.msk.bf16.gmra.mxu0 %vm1936_vm6, %v16876_v36  ;;  %15689 = vmatmul.mubr.msk.bf16.gmra.mxu1 %vm1936_vm6, %v19993_v51  ;;  %v20448_v51 = vld [vmem:[#allocation2 + $0x158] sm:$0xff]  }
 0x8ce   :  { %15668 = vmatprep.mubr.msk.bf16.mxu0 %vm16928_vm1, %v21496_v38  ;;  %15692 = vmatprep.mubr.msk.bf16.mxu1 %vm16928_vm1, %v21496_v38 }
 0x8d5   :  { %15669 = vmatmul.mubr.msk.bf16.gmra.mxu0 %vm1936_vm6, %v16877_v62  ;;  %15693 = vmatmul.mubr.msk.bf16.gmra.mxu1 %vm1936_vm6, %v20002_v17  ;;  %v16880_v17 = vld [vmem:[%s21465_s5 + $0x68] sm:$0xff]  }
 0x8d6   :  { %15672 = vmatprep.mubr.msk.bf16.mxu0 %vm16928_vm1, %v21496_v38  ;;  %15696 = vmatprep.mubr.msk.bf16.mxu1 %vm16928_vm1, %v21496_v38 }
 0x8dd   :  { %15673 = vmatmul.mubr.msk.bf16.gmra.mxu0 %vm1936_vm6, %v16878_v22  ;;  %15697 = vmatmul.mubr.msk.bf16.gmra.mxu1 %vm1936_vm6, %v20011_v31  ;;  %v16881_v31 = vld [vmem:[%s21465_s5 + $0x78] sm:$0xff]  }
 0x8de   :  { %15704 = vmatprep.mubr.msk.bf16.mxu0 %vm16928_vm1, %v21496_v38  ;;  %15728 = vmatprep.mubr.msk.bf16.mxu1 %vm16928_vm1, %v21496_v38 }
 0x8e5   :  { %15705 = vmatmul.mubr.msk.bf16.vlgmr.msra.gmra.mxu0 %vm1936_vm6, %v20448_v51  ;;  %15729 = vmatmul.mubr.msk.bf16.vlgmr.msra.gmra.mxu1 %vm1936_vm6, %v20022_v11  ;;  %v16882_v11 = vld [vmem:[%s21465_s5 + $0x60] sm:$0xff]  }
 0x8e6   :  { %15749 = vmatpush3.bf16.msra.mxu0 %v16880_v17  ;;  %15708 = vmatprep.mubr.msk.bf16.mxu0 %vm16928_vm1, %v21496_v38 }
 0x8e7   :  { %15732 = vmatprep.mubr.msk.bf16.mxu1 %vm16928_vm1, %v21496_v38  ;;  %15750 = vmatprep.subr.bf16.mxu0 %v21496_v38 }
 0x8e8   :  { %15773 = vmatpush3.bf16.msra.mxu1 %v16881_v31 }
 0x8e9   :  { %15774 = vmatprep.subr.bf16.mxu1 %v21496_v38 }
 0x8ea   :  { %15751 = vmatpush3.bf16.msra.mxu0 %v16882_v11 }
 0x8eb   :  { %15796 = vmatprep.subr.bf16.mxu0 %v21496_v38 }
 0x8ec   :  { %15775 = vmatpush3.bf16.msra.mxu1 %v16883_v40 }
 0x8ed   :  { %15709 = vmatmul.mubr.msk.bf16.gmra.mxu0 %vm1936_vm6, %v20473_v5  ;;  %15733 = vmatmul.mubr.msk.bf16.gmra.mxu1 %vm1936_vm6, %v20030_v23  ;;  %v20493_v23 = vld [vmem:[#allocation2 + $0x170] sm:$0xff]  }
 0x8ee   :  { %15712 = vmatprep.mubr.msk.bf16.mxu0 %vm16928_vm1, %v21496_v38  ;;  %15736 = vmatprep.mubr.msk.bf16.mxu1 %vm16928_vm1, %v21496_v38 }
 0x8f5   :  { %15713 = vmatmul.mubr.msk.bf16.gmra.mxu0 %vm1936_vm6, %v20483_v35  ;;  %15737 = vmatmul.mubr.msk.bf16.gmra.mxu1 %vm1936_vm6, %v20036_v19  ;;  %v20503_v19 = vld [vmem:[#allocation2 + $0x178] sm:$0xff]  }
 0x8f6   :  { %15716 = vmatprep.mubr.msk.bf16.mxu0 %vm16928_vm1, %v21496_v38  ;;  %15740 = vmatprep.mubr.msk.bf16.mxu1 %vm16928_vm1, %v21496_v38 }
 0x8fd   :  { %15717 = vmatmul.mubr.msk.bf16.gmra.mxu0 %vm1936_vm6, %v20493_v23  ;;  %15741 = vmatmul.mubr.msk.bf16.gmra.mxu1 %vm1936_vm6, %v20046_v21  ;;  %v20513_v21 = vld [vmem:[#allocation2 + $0x188] sm:$0xff]  }
 0x8fe   :  { %15720 = vmatprep.mubr.msk.bf16.mxu0 %vm16928_vm1, %v21496_v38  ;;  %15744 = vmatprep.mubr.msk.bf16.mxu1 %vm16928_vm1, %v21496_v38 }
 0x905   :  { %15721 = vmatmul.mubr.msk.bf16.gmra.mxu0 %vm1936_vm6, %v20503_v19  ;;  %15745 = vmatmul.mubr.msk.bf16.gmra.mxu1 %vm1936_vm6, %v20054_v43  ;;  %v16889_v43 = vld [vmem:[%s21465_s5 + $0x80] sm:$0xff]  }
 0x906   :  { %15752 = vmatprep.mubr.msk.bf16.mxu0 %vm16928_vm1, %v21496_v38  ;;  %15776 = vmatprep.mubr.msk.bf16.mxu1 %vm16928_vm1, %v21496_v38 }
 0x90d   :  { %15753 = vmatmul.mubr.msk.bf16.vlgmr.msra.gmra.mxu0 %vm1936_vm6, %v20513_v21  ;;  %15777 = vmatmul.mubr.msk.bf16.vlgmr.msra.gmra.mxu1 %vm1936_vm6, %v16533_v50 }
 0x90e   :  { %15797 = vmatpush3.bf16.msra.mxu0 %v16888_v30  ;;  %15756 = vmatprep.mubr.msk.bf16.mxu0 %vm16928_vm1, %v21496_v38 }
 0x90f   :  { %15780 = vmatprep.mubr.msk.bf16.mxu1 %vm16928_vm1, %v21496_v38  ;;  %15798 = vmatprep.subr.bf16.mxu0 %v21496_v38 }
 0x912   :  { %15799 = vmatpush3.bf16.msra.mxu0 %v16889_v43 }
 0x915   :  { %15757 = vmatmul.mubr.msk.bf16.gmra.mxu0 %vm1936_vm6, %v20529_v26  ;;  %15781 = vmatmul.mubr.msk.bf16.gmra.mxu1 %vm1936_vm6, %v16535_v60 }
 0x916   :  { %15760 = vmatprep.mubr.msk.bf16.mxu0 %vm16928_vm1, %v21496_v38  ;;  %15784 = vmatprep.mubr.msk.bf16.mxu1 %vm16928_vm1, %v21496_v38 }
 0x91d   :  { %15761 = vmatmul.mubr.msk.bf16.gmra.mxu0 %vm1936_vm6, %v20538_v57  ;;  %15785 = vmatmul.mubr.msk.bf16.gmra.mxu1 %vm1936_vm6, %v16537_v37 }
 0x91e   :  { %15764 = vmatprep.mubr.msk.bf16.mxu0 %vm16928_vm1, %v21496_v38  ;;  %15788 = vmatprep.mubr.msk.bf16.mxu1 %vm16928_vm1, %v21496_v38 }
 0x925   :  { %15765 = vmatmul.mubr.msk.bf16.gmra.mxu0 %vm1936_vm6, %v20547_v29  ;;  %15789 = vmatmul.mubr.msk.bf16.gmra.mxu1 %vm1936_vm6, %v16539_v59 }
 0x926   :  { %15768 = vmatprep.mubr.msk.bf16.mxu0 %vm16928_vm1, %v21496_v38  ;;  %15792 = vmatprep.mubr.msk.bf16.mxu1 %vm16928_vm1, %v21496_v38 }
 0x92d   :  { %15769 = vmatmul.mubr.msk.bf16.gmra.mxu0 %vm1936_vm6, %v20556_v27  ;;  %v9013_v33 = vpop.f32.mrf.mxu0  ;;  %15793 = vmatmul.mubr.msk.bf16.gmra.mxu1 %vm1936_vm6, %v16541_v53 }
 0x92e   :  { %v9022_v42 = vadd.f32 %v9013_v33, %v20052_v18  ;;  %15800 = vmatprep.mubr.msk.bf16.mxu0 %vm16928_vm1, %v21496_v38  ;;  %10418 = vmatprep.mubr.bf16.mxu1 %v21495_v44  ;;  %v16547_v33 = vld [vmem:[%s21473_s11 + $0x670] ss:$8 sps:$4 sm:$0xff]  }
 0x92f   :  { %v9015_v8 = vpop.f32.mrf.mxu0 }
 0x930   :  { %v9023_v54 = vadd.f32 %v9015_v8, %v20056_v3 }
 0x931   :  { %v9017_v6 = vpop.f32.mrf.mxu0 }
 0x932   :  { %v9024_v52 = vadd.f32 %v9017_v6, %v20062_v14 }
 0x933   :  { %v20573_v18 = vpop.f32.mrf.mxu0 }
 0x934   :  { %21512 = vst [vmem:[#allocation22_spill] sm:$0xff] %v20573_v18 }
 0x935   :  { %15801 = vmatmul.mubr.msk.bf16.vlgmr.msra.gmra.mxu0 %vm1936_vm6, %v20567_v12 }
 0x936   :  { %15804 = vmatprep.mubr.msk.bf16.mxu0 %vm16928_vm1, %v21496_v38 }
 0x93d   :  { %v9112_v46 = vpop.f32.mrf.mxu0  ;;  %15805 = vmatmul.mubr.msk.bf16.gmra.mxu0 %vm1936_vm6, %v20575_v7  ;;  %v9211_v3 = vpop.f32.mrf.mxu1 }
 0x93e   :  { %v9121_v47 = vadd.f32 %v9112_v46, %v9022_v42  ;;  %15808 = vmatprep.mubr.msk.bf16.mxu0 %vm16928_vm1, %v21496_v38  ;;  %v16549_v42 = vld [vmem:[%s21473_s11 + $0x674] ss:$8 sps:$4 sm:$0xff]  }
 0x93f   :  { %v9114_v14 = vpop.f32.mrf.mxu0  ;;  %v9213_v9 = vpop.f32.mrf.mxu1  ;;  %10394 = vmatprep.subr.bf16.mxu1 %v16549_v42 }
 0x940   :  { %v9220_v20 = vadd.f32 %v9211_v3, %v9121_v47  ;;  %v9122_v15 = vadd.f32 %v9114_v14, %v9023_v54  ;;  %10395 = vmatpush1.bf16.msra.mxu1 %v16547_v33 }
 0x941   :  { %v9116_v39 = vpop.f32.mrf.mxu0  ;;  %v9215_v41 = vpop.f32.mrf.mxu1 }
 0x942   :  { %v9221_v24 = vadd.f32 %v9213_v9, %v9122_v15  ;;  %v9123_v58 = vadd.f32 %v9116_v39, %v9024_v52 }
 0x943   :  { %v20587_v61 = vpop.f32.mrf.mxu0  ;;  %v20589_v28 = vpop.f32.mrf.mxu1 }
 0x944   :  { %v9222_v63 = vadd.f32 %v9215_v41, %v9123_v58  ;;  %21513 = vst [vmem:[#allocation23_spill] sm:$0xff] %v20587_v61  ;;  %21514 = vst [vmem:[#allocation24_spill] sm:$0xff] %v20589_v28 }
 0x945   :  { %15809 = vmatmul.mubr.msk.bf16.gmra.mxu0 %vm1936_vm6, %v20581_v56 }
 0x946   :  { %15812 = vmatprep.mubr.msk.bf16.mxu0 %vm16928_vm1, %v21496_v38 }
 0x94d   :  { %v9310_v10 = vpop.f32.mrf.mxu0  ;;  %15813 = vmatmul.mubr.msk.bf16.gmra.mxu0 %vm1936_vm6, %v20591_v34  ;;  %v9409_v0 = vpop.f32.mrf.mxu1 }
 0x94e   :  { %v9319_v1 = vadd.f32 %v9310_v10, %v9220_v20  ;;  %15816 = vmatprep.mubr.msk.bf16.mxu0 %vm16928_vm1, %v21496_v38  ;;  %v16552_v10 = vld [vmem:[%s21473_s11 + $0x664] ss:$8 sps:$4 sm:$0xff]  }
 0x94f   :  { %v9312_v48 = vpop.f32.mrf.mxu0  ;;  %v9411_v16 = vpop.f32.mrf.mxu1  ;;  %10396 = vmatprep.subr.bf16.mxu1 %v16552_v10 }
 0x950   :  { %v20597_v13 = vadd.f32 %v9409_v0, %v9319_v1  ;;  %v9320_v49 = vadd.f32 %v9312_v48, %v9221_v24 }
 0x951   :  { %v9314_v45 = vpop.f32.mrf.mxu0  ;;  %v9413_v4 = vpop.f32.mrf.mxu1 }
 0x952   :  { %v20601_v25 = vadd.f32 %v9411_v16, %v9320_v49  ;;  %v9321_v36 = vadd.f32 %v9314_v45, %v9222_v63  ;;  %v16550_v63 = vld [vmem:[%s21473_s11 + $0x660] ss:$8 sps:$4 sm:$0xff]  }
 0x953   :  { %v20603_v62 = vpop.f32.mrf.mxu0  ;;  %v20605_v22 = vpop.f32.mrf.mxu1  ;;  %10397 = vmatpush1.bf16.msra.mxu1 %v16550_v63 }
 0x954   :  { %21515 = vst [vmem:[#allocation25_spill] sm:$0xff] %v20603_v62  ;;  %21516 = vst [vmem:[#allocation26_spill] sm:$0xff] %v20605_v22  ;;  %v20607_v17 = vadd.f32 %v9413_v4, %v9321_v36 }
 0x955   :  { %v9456_v31 = vpop.f32.mrf.mxu0  ;;  %15817 = vmatmul.mubr.msk.bf16.gmra.mxu0 %vm1936_vm6, %v20599_v55  ;;  %v9529_v11 = vpop.f32.mrf.mxu1 }
 0x956   :  { %v20611_v40 = vadd.f32 %v9529_v11, %v9456_v31  ;;  %10616 = vmatprep.mubr.bf16.mxu0 %v21495_v44 }
 0x957   :  { %v15610_v50 = vpop.f32.mrf.mxu0  ;;  %v15634_v30 = vpop.f32.mrf.mxu1 }
 0x958   :  { %v16553_v50 = vld [vmem:[%s21473_s11 + $0x650] ss:$8 sps:$4 sm:$0xff]   ;;  %v16555_v30 = vld [vmem:[%s21473_s11 + $0x654] ss:$8 sps:$4 sm:$0xff]  }
 0x959   :  { %v9459_v43 = vpop.f32.mrf.mxu0  ;;  %v9532_v60 = vpop.f32.mrf.mxu1  ;;  %10398 = vmatprep.subr.bf16.mxu1 %v16555_v30 }
 0x95a   :  { %v20614_v37 = vadd.f32 %v9532_v60, %v9459_v43  ;;  %10399 = vmatpush1.bf16.msra.mxu1 %v16553_v50 }
 0x95b   :  { %v15611_v59 = vpop.f32.mrf.mxu0  ;;  %v15635_v53 = vpop.f32.mrf.mxu1 }
 0x95d   :  { %v9464_v8 = vpop.f32.mrf.mxu0  ;;  %v9537_v54 = vpop.f32.mrf.mxu1 }
 0x95e   :  { %v20622_v6 = vadd.f32 %v9537_v54, %v9464_v8 }
 0x95f   :  { %v15614_v52 = vpop.f32.mrf.mxu0  ;;  %v15638_v46 = vpop.f32.mrf.mxu1 }
 0x961   :  { %v9467_v3 = vpop.f32.mrf.mxu0  ;;  %v9540_v47 = vpop.f32.mrf.mxu1 }
 0x962   :  { %v20624_v14 = vadd.f32 %v9540_v47, %v9467_v3 }
 0x963   :  { %v15615_v9 = vpop.f32.mrf.mxu0  ;;  %v15639_v20 = vpop.f32.mrf.mxu1 }
 0x965   :  { %v9472_v15 = vpop.f32.mrf.mxu0  ;;  %v9545_v39 = vpop.f32.mrf.mxu1 }
 0x966   :  { %v20626_v41 = vadd.f32 %v9545_v39, %v9472_v15 }
 0x967   :  { %v15618_v24 = vpop.f32.mrf.mxu0  ;;  %v15642_v58 = vpop.f32.mrf.mxu1 }
 0x969   :  { %v9475_v0 = vpop.f32.mrf.mxu0  ;;  %v9548_v1 = vpop.f32.mrf.mxu1 }
 0x96a   :  { %v20634_v48 = vadd.f32 %v9548_v1, %v9475_v0 }
 0x96b   :  { %v15619_v16 = vpop.f32.mrf.mxu0  ;;  %v15643_v49 = vpop.f32.mrf.mxu1 }
 0x96d   :  { %v9480_v45 = vpop.f32.mrf.mxu0  ;;  %v9553_v4 = vpop.f32.mrf.mxu1 }
 0x96e   :  { %v20636_v36 = vadd.f32 %v9553_v4, %v9480_v45  ;;  %v16556_v45 = vld [vmem:[%s21473_s11 + $0x640] ss:$8 sps:$4 sm:$0xff]   ;;  %v16558_v4 = vld [vmem:[%s21473_s11 + $0x644] ss:$8 sps:$4 sm:$0xff]  }
 0x96f   :  { %v15622_v31 = vpop.f32.mrf.mxu0  ;;  %v15646_v11 = vpop.f32.mrf.mxu1  ;;  %10400 = vmatprep.subr.bf16.mxu1 %v16558_v4  ;;  %v16574_v4 = vld [vmem:[%s21473_s11 + $0x6d0] ss:$8 sps:$4 sm:$0xff]  }
 0x970   :  { %10401 = vmatpush1.bf16.msra.mxu1 %v16556_v45 }
 0x971   :  { %v9483_v43 = vpop.f32.mrf.mxu0  ;;  %v9556_v60 = vpop.f32.mrf.mxu1 }
 0x972   :  { %v20644_v59 = vadd.f32 %v9556_v60, %v9483_v43 }
 0x973   :  { %v15623_v53 = vpop.f32.mrf.mxu0  ;;  %v15647_v33 = vpop.f32.mrf.mxu1 }
 0x975   :  { %v9488_v42 = vpop.f32.mrf.mxu0  ;;  %v9561_v8 = vpop.f32.mrf.mxu1 }
 0x976   :  { %v20646_v54 = vadd.f32 %v9561_v8, %v9488_v42 }
 0x977   :  { %v15626_v52 = vpop.f32.mrf.mxu0  ;;  %v15650_v46 = vpop.f32.mrf.mxu1 }
 0x978   :  { %v16561_v52 = vld [vmem:[%s21473_s11 + $0x6b4] ss:$8 sps:$4 sm:$0xff]   ;;  %v16562_v46 = vld [vmem:[%s21473_s11 + $0x6f0] ss:$8 sps:$4 sm:$0xff]  }
 0x979   :  { %v9491_v3 = vpop.f32.mrf.mxu0  ;;  %v9564_v47 = vpop.f32.mrf.mxu1  ;;  %10493 = vmatprep.subr.bf16.mxu1 %v16561_v52 }
 0x97a   :  { %v20648_v9 = vadd.f32 %v9564_v47, %v9491_v3 }
 0x97b   :  { %v15627_v20 = vpop.f32.mrf.mxu0  ;;  %v15651_v15 = vpop.f32.mrf.mxu1 }
 0x97d   :  { %v9602_v39 = vpop.f32.mrf.mxu0  ;;  %v9685_v24 = vpop.f32.mrf.mxu1 }
 0x97e   :  { %v9641_v58 = vadd.f32 %v9602_v39, %v20611_v40 }
 0x97f   :  { %v15658_v63 = vpop.f32.mrf.mxu0  ;;  %v15682_v10 = vpop.f32.mrf.mxu1 }
 0x980   :  { %v20651_v0 = vadd.f32 %v9685_v24, %v9641_v58  ;;  %v16568_v58 = vld [vmem:[%s21473_s11 + $0x6e0] ss:$8 sps:$4 sm:$0xff]  }
 0x981   :  { %v9605_v1 = vpop.f32.mrf.mxu0  ;;  %v9688_v16 = vpop.f32.mrf.mxu1 }
 0x982   :  { %v9642_v49 = vadd.f32 %v9605_v1, %v20614_v37 }
 0x983   :  { %v15659_v31 = vpop.f32.mrf.mxu0  ;;  %v15683_v11 = vpop.f32.mrf.mxu1 }
 0x984   :  { %v20660_v50 = vadd.f32 %v9688_v16, %v9642_v49  ;;  %v16576_v11 = vld [vmem:[%s21473_s11 + $0x6d4] ss:$8 sps:$4 sm:$0xff]  }
 0x985   :  { %v9610_v40 = vpop.f32.mrf.mxu0  ;;  %v9693_v30 = vpop.f32.mrf.mxu1 }
 0x986   :  { %v9643_v43 = vadd.f32 %v9610_v40, %v20622_v6  ;;  %v16564_v6 = vld [vmem:[%s21473_s11 + $0x6f4] ss:$8 sps:$4 sm:$0xff]  }
 0x987   :  { %v15662_v60 = vpop.f32.mrf.mxu0  ;;  %v15686_v37 = vpop.f32.mrf.mxu1  ;;  %10592 = vmatprep.subr.bf16.mxu0 %v16564_v6 }
 0x988   :  { %v20663_v53 = vadd.f32 %v9693_v30, %v9643_v43  ;;  %10593 = vmatpush1.bf16.msra.mxu0 %v16562_v46  ;;  %v16580_v37 = vld [vmem:[%s21473_s11 + $0x6c0] ss:$8 sps:$4 sm:$0xff]  }
 0x989   :  { %v9613_v33 = vpop.f32.mrf.mxu0  ;;  %v9696_v42 = vpop.f32.mrf.mxu1 }
 0x98a   :  { %v9644_v8 = vadd.f32 %v9613_v33, %v20624_v14  ;;  %v16570_v14 = vld [vmem:[%s21473_s11 + $0x6e4] ss:$8 sps:$4 sm:$0xff]  }
 0x98b   :  { %v15663_v3 = vpop.f32.mrf.mxu0  ;;  %v15687_v47 = vpop.f32.mrf.mxu1  ;;  %10594 = vmatprep.subr.bf16.mxu0 %v16570_v14 }
 0x98c   :  { %v20675_v20 = vadd.f32 %v9696_v42, %v9644_v8  ;;  %10595 = vmatpush1.bf16.msra.mxu0 %v16568_v58 }
 0x98d   :  { %v9618_v15 = vpop.f32.mrf.mxu0  ;;  %v9701_v39 = vpop.f32.mrf.mxu1  ;;  %10596 = vmatprep.subr.bf16.mxu0 %v16576_v11 }
 0x98e   :  { %v9645_v24 = vadd.f32 %v9618_v15, %v20626_v41 }
 0x98f   :  { %v15666_v63 = vpop.f32.mrf.mxu0  ;;  %v15690_v10 = vpop.f32.mrf.mxu1 }
 0x990   :  { %v20684_v1 = vadd.f32 %v9701_v39, %v9645_v24  ;;  %10597 = vmatpush1.bf16.msra.mxu0 %v16574_v4 }
 0x991   :  { %v9621_v16 = vpop.f32.mrf.mxu0  ;;  %v9704_v49 = vpop.f32.mrf.mxu1 }
 0x992   :  { %v9646_v45 = vadd.f32 %v9621_v16, %v20634_v48  ;;  %v16582_v48 = vld [vmem:[%s21473_s11 + $0x6c4] ss:$8 sps:$4 sm:$0xff]  }
 0x993   :  { %v15667_v41 = vpop.f32.mrf.mxu0  ;;  %v15691_v31 = vpop.f32.mrf.mxu1  ;;  %10598 = vmatprep.subr.bf16.mxu0 %v16582_v48 }
 0x994   :  { %v20693_v40 = vadd.f32 %v9704_v49, %v9646_v45  ;;  %10599 = vmatpush1.bf16.msra.mxu0 %v16580_v37 }
 0x995   :  { %v9626_v30 = vpop.f32.mrf.mxu0  ;;  %v9709_v43 = vpop.f32.mrf.mxu1 }
 0x996   :  { %v9647_v60 = vadd.f32 %v9626_v30, %v20636_v36  ;;  %v16588_v36 = vld [vmem:[%s21473_s11 + $0x774] ss:$8 sps:$4 sm:$0xff]  }
 0x997   :  { %v15670_v33 = vpop.f32.mrf.mxu0  ;;  %v15694_v42 = vpop.f32.mrf.mxu1  ;;  %10790 = vmatprep.subr.bf16.mxu0 %v16588_v36 }
 0x998   :  { %v9730_v8 = vadd.f32 %v9709_v43, %v9647_v60 }
 0x999   :  { %v9629_v52 = vpop.f32.mrf.mxu0  ;;  %v9712_v46 = vpop.f32.mrf.mxu1 }
 0x99a   :  { %v9648_v3 = vadd.f32 %v9629_v52, %v20644_v59 }
 0x99b   :  { %v15671_v47 = vpop.f32.mrf.mxu0  ;;  %v15695_v6 = vpop.f32.mrf.mxu1 }
 0x99c   :  { %v9731_v15 = vadd.f32 %v9712_v46, %v9648_v3 }
 0x99d   :  { %v9634_v39 = vpop.f32.mrf.mxu0  ;;  %v9717_v14 = vpop.f32.mrf.mxu1 }
 0x99e   :  { %v9649_v24 = vadd.f32 %v9634_v39, %v20646_v54 }
 0x99f   :  { %v15674_v58 = vpop.f32.mrf.mxu0  ;;  %v15698_v63 = vpop.f32.mrf.mxu1 }
 0x9a0   :  { %v9732_v10 = vadd.f32 %v9717_v14, %v9649_v24 }
 0x9a1   :  { %v9637_v16 = vpop.f32.mrf.mxu0  ;;  %v9720_v49 = vpop.f32.mrf.mxu1 }
 0x9a2   :  { %v9650_v59 = vadd.f32 %v9637_v16, %v20648_v9 }
 0x9a3   :  { %v15675_v45 = vpop.f32.mrf.mxu0  ;;  %v15699_v4 = vpop.f32.mrf.mxu1 }
 0x9a4   :  { %v9733_v41 = vadd.f32 %v9720_v49, %v9650_v59 }
 0x9a5   :  { %v9768_v31 = vpop.f32.mrf.mxu0  ;;  %v9851_v11 = vpop.f32.mrf.mxu1 }
 0x9a6   :  { %v9807_v30 = vadd.f32 %v9768_v31, %v20651_v0 }
 0x9a7   :  { %v15706_v43 = vpop.f32.mrf.mxu0  ;;  %v15730_v48 = vpop.f32.mrf.mxu1 }
 0x9a8   :  { %v20709_v60 = vadd.f32 %v9851_v11, %v9807_v30 }
 0x9a9   :  { %v9771_v37 = vpop.f32.mrf.mxu0  ;;  %v9854_v54 = vpop.f32.mrf.mxu1 }
 0x9aa   :  { %v9808_v33 = vadd.f32 %v9771_v37, %v20660_v50 }
 0x9ab   :  { %v15707_v42 = vpop.f32.mrf.mxu0  ;;  %v15731_v52 = vpop.f32.mrf.mxu1 }
 0x9ac   :  { %v20712_v46 = vadd.f32 %v9854_v54, %v9808_v33 }
 0x9ad   :  { %v9776_v9 = vpop.f32.mrf.mxu0  ;;  %v9859_v3 = vpop.f32.mrf.mxu1 }
 0x9ae   :  { %v9809_v47 = vadd.f32 %v9776_v9, %v20663_v53 }
 0x9af   :  { %v15710_v6 = vpop.f32.mrf.mxu0  ;;  %v15734_v36 = vpop.f32.mrf.mxu1 }
 0x9b0   :  { %v20715_v39 = vadd.f32 %v9859_v3, %v9809_v47 }
 0x9b1   :  { %v9779_v0 = vpop.f32.mrf.mxu0  ;;  %v9862_v14 = vpop.f32.mrf.mxu1 }
 0x9b2   :  { %v9810_v24 = vadd.f32 %v9779_v0, %v20675_v20 }
 0x9b3   :  { %v15711_v58 = vpop.f32.mrf.mxu0  ;;  %v15735_v63 = vpop.f32.mrf.mxu1 }
 0x9b4   :  { %v20718_v16 = vadd.f32 %v9862_v14, %v9810_v24 }
 0x9b5   :  { %v9784_v50 = vpop.f32.mrf.mxu0  ;;  %v9867_v49 = vpop.f32.mrf.mxu1 }
 0x9b6   :  { %v9811_v59 = vadd.f32 %v9784_v50, %v20684_v1 }
 0x9b7   :  { %v15714_v45 = vpop.f32.mrf.mxu0  ;;  %v15738_v4 = vpop.f32.mrf.mxu1 }
 0x9b8   :  { %v20721_v31 = vadd.f32 %v9867_v49, %v9811_v59 }
 0x9b9   :  { %v9787_v53 = vpop.f32.mrf.mxu0  ;;  %v9870_v11 = vpop.f32.mrf.mxu1 }
 0x9ba   :  { %v9812_v30 = vadd.f32 %v9787_v53, %v20693_v40 }
 0x9bb   :  { %v15715_v43 = vpop.f32.mrf.mxu0  ;;  %v15739_v48 = vpop.f32.mrf.mxu1 }
 0x9bc   :  { %v20724_v37 = vadd.f32 %v9870_v11, %v9812_v30 }
 0x9bd   :  { %v9792_v20 = vpop.f32.mrf.mxu0  ;;  %v9875_v54 = vpop.f32.mrf.mxu1 }
 0x9be   :  { %v9813_v33 = vadd.f32 %v9792_v20, %v9730_v8 }
 0x9bf   :  { %v15718_v42 = vpop.f32.mrf.mxu0  ;;  %v15742_v52 = vpop.f32.mrf.mxu1 }
 0x9c0   :  { %v20726_v9 = vadd.f32 %v9875_v54, %v9813_v33 }
 0x9c1   :  { %v9795_v1 = vpop.f32.mrf.mxu0  ;;  %v9878_v3 = vpop.f32.mrf.mxu1 }
 0x9c2   :  { %v9814_v47 = vadd.f32 %v9795_v1, %v9731_v15 }
 0x9c3   :  { %v15719_v6 = vpop.f32.mrf.mxu0  ;;  %v15743_v36 = vpop.f32.mrf.mxu1 }
 0x9c4   :  { %v20728_v0 = vadd.f32 %v9878_v3, %v9814_v47 }
 0x9c5   :  { %v9800_v14 = vpop.f32.mrf.mxu0  ;;  %v9883_v40 = vpop.f32.mrf.mxu1 }
 0x9c6   :  { %v9815_v24 = vadd.f32 %v9800_v14, %v9732_v10 }
 0x9c7   :  { %v15722_v58 = vpop.f32.mrf.mxu0  ;;  %v15746_v63 = vpop.f32.mrf.mxu1 }
 0x9c8   :  { %v20730_v50 = vadd.f32 %v9883_v40, %v9815_v24 }
 0x9c9   :  { %v9803_v49 = vpop.f32.mrf.mxu0  ;;  %v9886_v8 = vpop.f32.mrf.mxu1 }
 0x9ca   :  { %v9816_v59 = vadd.f32 %v9803_v49, %v9733_v41 }
 0x9cb   :  { %v15723_v45 = vpop.f32.mrf.mxu0  ;;  %v15747_v4 = vpop.f32.mrf.mxu1 }
 0x9cc   :  { %v20732_v53 = vadd.f32 %v9886_v8, %v9816_v59 }
 0x9cd   :  { %v9984_v11 = vpop.f32.mrf.mxu0  ;;  %v10117_v15 = vpop.f32.mrf.mxu1 }
 0x9cf   :  { %v15754_v30 = vpop.f32.mrf.mxu0  ;;  %v15778_v43 = vpop.f32.mrf.mxu1 }
 0x9d1   :  { %v9987_v48 = vpop.f32.mrf.mxu0  ;;  %v10120_v20 = vpop.f32.mrf.mxu1 }
 0x9d2   :  { %v10024_v62 = vadd.f32 %v9987_v48, %v20712_v46 }
 0x9d3   :  { %v15755_v54 = vpop.f32.mrf.mxu0  ;;  %v15779_v33 = vpop.f32.mrf.mxu1 }
 0x9d4   :  { %v10157_v61 = vadd.f32 %v10120_v20, %v10024_v62 }
 0x9d5   :  { %v9992_v10 = vpop.f32.mrf.mxu0  ;;  %v10125_v42 = vpop.f32.mrf.mxu1 }
 0x9d6   :  { %v10025_v18 = vadd.f32 %v9992_v10, %v20715_v39 }
 0x9d7   :  { %v15758_v52 = vpop.f32.mrf.mxu0  ;;  %v15782_v1 = vpop.f32.mrf.mxu1 }
 0x9d9   :  { %v9995_v3 = vpop.f32.mrf.mxu0  ;;  %v10128_v47 = vpop.f32.mrf.mxu1 }
 0x9db   :  { %v15759_v6 = vpop.f32.mrf.mxu0  ;;  %v15783_v41 = vpop.f32.mrf.mxu1 }
 0x9dd   :  { %v10000_v36 = vpop.f32.mrf.mxu0  ;;  %v10133_v14 = vpop.f32.mrf.mxu1 }
 0x9df   :  { %v15762_v40 = vpop.f32.mrf.mxu0  ;;  %v15786_v24 = vpop.f32.mrf.mxu1 }
 0x9e0   :  { %v10023_v24 = vadd.f32 %v9984_v11, %v20709_v60 }
 0x9e1   :  { %v10003_v58 = vpop.f32.mrf.mxu0  ;;  %v20734_v63 = vpop.f32.mrf.mxu1 }
 0x9e2   :  { %v10156_v22 = vadd.f32 %v10117_v15, %v10023_v24  ;;  %v10158_v24 = vadd.f32 %v10125_v42, %v10025_v18 }
 0x9e3   :  { %v15763_v49 = vpop.f32.mrf.mxu0  ;;  %v15787_v8 = vpop.f32.mrf.mxu1 }
 0x9e5   :  { %v20736_v59 = vpop.f32.mrf.mxu0  ;;  %v20738_v45 = vpop.f32.mrf.mxu1 }
 0x9e7   :  { %v15766_v4 = vpop.f32.mrf.mxu0  ;;  %v15790_v30 = vpop.f32.mrf.mxu1 }
 0x9e9   :  { %v20740_v43 = vpop.f32.mrf.mxu0  ;;  %v20742_v54 = vpop.f32.mrf.mxu1 }
 0x9eb   :  { %v15767_v33 = vpop.f32.mrf.mxu0  ;;  %v15791_v52 = vpop.f32.mrf.mxu1 }
 0x9ed   :  { %v20744_v1 = vpop.f32.mrf.mxu0  ;;  %v20746_v6 = vpop.f32.mrf.mxu1 }
 0x9ef   :  { %v15770_v41 = vpop.f32.mrf.mxu0  ;;  %v15794_v40 = vpop.f32.mrf.mxu1 }
 0x9f0   :  { %v20758_v41 = vld [vmem:[%s21474_s6] ss:$0 sm:$0xff] }
 0x9f1   :  { %v20749_v49 = vpop.f32.mrf.mxu0  ;;  %v20751_v8 = vpop.f32.mrf.mxu1 }
 0x9f3   :  { %v15771_v4 = vpop.f32.mrf.mxu0  ;;  %v15795_v30 = vpop.f32.mrf.mxu1 }
 0x9f4   :  { %v10026_v4 = vadd.f32 %v9995_v3, %v20718_v16  ;;  %v16559_v30 = vld [vmem:[%s21473_s11 + $0x6b0] ss:$8 sps:$4 sm:$0xff]  }
 0x9f5   :  { %v10250_v28 = vpop.f32.mrf.mxu0 }
 0x9f6   :  { %v10289_v33 = vadd.f32 %v10250_v28, %v10156_v22  ;;  %v20765_v28 = vld [vmem:[%s21475_s7] ss:$0 sm:$0xff]  ;;  %v10159_v20 = vadd.f32 %v10128_v47, %v10026_v4  ;;  %v10028_v47 = vadd.f32 %v10003_v58, %v20724_v37  ;;  %v16573_v37 = vld [vmem:[%s21473_s11 + $0x694] ss:$8 sps:$4 sm:$0xff]  }
 0x9f7   :  { %v15802_v52 = vpop.f32.mrf.mxu0 }
 0x9f8   :  { %v10299_v60 = vmul.f32 %v20758_v41, %v10289_v33 }
 0x9f9   :  { %v10253_v11 = vpop.f32.mrf.mxu0 }
 0x9fa   :  { %v10290_v40 = vadd.f32 %v10253_v11, %v10157_v61  ;;  %v10309_v62 = vadd.f32 %v20765_v28, %v10299_v60  ;;  %v10027_v61 = vadd.f32 %v10000_v36, %v20721_v31  ;;  %v16567_v60 = vld [vmem:[%s21473_s11 + $0x6a4] ss:$8 sps:$4 sm:$0xff]  }
 0x9fb   :  { %v15803_v15 = vpop.f32.mrf.mxu0 }
 0x9fc   :  { %v10300_v22 = vmul.f32 %v20758_v41, %v10290_v40  ;;  %v10319_v16 = vmax.f32 %v10309_v62, 0.0  ;;  %v10160_v40 = vadd.f32 %v10133_v14, %v10027_v61  ;;  %v16565_v15 = vld [vmem:[%s21473_s11 + $0x6a0] ss:$8 sps:$4 sm:$0xff]   ;;  %v10161_v14 = vadd.f32 %v20734_v63, %v10028_v47  ;;  %v16579_v63 = vld [vmem:[%s21473_s11 + $0x684] ss:$8 sps:$4 sm:$0xff]  }
 0x9fd   :  { %v10258_v46 = vpop.f32.mrf.mxu0 }
 0x9fe   :  { %v10310_v39 = vadd.f32 %v20765_v28, %v10300_v22  ;;  %v10291_v48 = vadd.f32 %v10258_v46, %v10158_v24  ;;  %v10029_v22 = vadd.f32 %v20736_v59, %v20726_v9  ;;  %v10030_v59 = vadd.f32 %v20740_v43, %v20728_v0 }
 0x9ff   :  { %v15806_v10 = vpop.f32.mrf.mxu0  ;;  %v10031_v0 = vadd.f32 %v20744_v1, %v20730_v50  ;;  %v16591_v50 = vld [vmem:[%s21473_s11 + $0x724] ss:$8 sps:$4 sm:$0xff]  }
 0xa00   :  { %v10320_v3 = vmax.f32 %v10310_v39, 0.0  ;;  %v10301_v18 = vmul.f32 %v20758_v41, %v10291_v48  ;;  %v16571_v10 = vld [vmem:[%s21473_s11 + $0x690] ss:$8 sps:$4 sm:$0xff]   ;;  %v10162_v9 = vadd.f32 %v20738_v45, %v10029_v22  ;;  %v16585_v45 = vld [vmem:[%s21473_s11 + $0x734] ss:$8 sps:$4 sm:$0xff]   ;;  %v10163_v47 = vadd.f32 %v20742_v54, %v10030_v59 }
 0xa01   :  { %v10261_v42 = vpop.f32.mrf.mxu0  ;;  %v16594_v54 = vld [vmem:[%s21473_s11 + $0x764] ss:$8 sps:$4 sm:$0xff]   ;;  %v10164_v1 = vadd.f32 %v20746_v6, %v10031_v0  ;;  %v16592_v6 = vld [vmem:[%s21473_s11 + $0x760] ss:$8 sps:$4 sm:$0xff]   ;;  %v16595_v59 = vld [vmem:[%s21473_s11 + $0x710] ss:$8 sps:$4 sm:$0xff]  }
 0xa02   :  { %v10329_v33 = vpack.c.bf16 %v10320_v3, %v10319_v16  ;;  %v10292_v52 = vadd.f32 %v10261_v42, %v10159_v20  ;;  %v10311_v31 = vadd.f32 %v20765_v28, %v10301_v18  ;;  %v16601_v0 = vld [vmem:[%s21473_s11 + $0x700] ss:$8 sps:$4 sm:$0xff]  }
 0xa03   :  { %v15807_v11 = vpop.f32.mrf.mxu0 }
 0xa04   :  { %v10302_v36 = vmul.f32 %v20758_v41, %v10292_v52  ;;  %13514 = vmatmul.mubr.msk.bf16.vlgmr.msra.gmra.mxu1 %vm3265_vm7, %v10329_v33  ;;  %v10321_v46 = vmax.f32 %v10311_v31, 0.0  ;;  %v16577_v33 = vld [vmem:[%s21473_s11 + $0x680] ss:$8 sps:$4 sm:$0xff]  }
 0xa05   :  { %10494 = vmatpush1.bf16.msra.mxu1 %v16559_v30  ;;  %v10266_v4 = vpop.f32.mrf.mxu0  ;;  %10517 = vmatprep.mubr.bf16.mxu1 %v21495_v44 }
 0xa06   :  { %v10312_v24 = vadd.f32 %v20765_v28, %v10302_v36  ;;  %v10293_v62 = vadd.f32 %v10266_v4, %v10160_v40  ;;  %10495 = vmatprep.subr.bf16.mxu1 %v16567_v60  ;;  %v16583_v4 = vld [vmem:[%s21473_s11 + $0x730] ss:$8 sps:$4 sm:$0xff]  }
 0xa07   :  { %v15810_v58 = vpop.f32.mrf.mxu0 }
 0xa08   :  { %v10322_v39 = vmax.f32 %v10312_v24, 0.0  ;;  %v10303_v48 = vmul.f32 %v20758_v41, %v10293_v62 }
 0xa09   :  { %10496 = vmatpush1.bf16.msra.mxu1 %v16565_v15  ;;  %v10269_v20 = vpop.f32.mrf.mxu0  ;;  %v16586_v15 = vld [vmem:[%s21473_s11 + $0x770] ss:$8 sps:$4 sm:$0xff]  }
 0xa0a   :  { %v10330_v61 = vpack.c.bf16 %v10322_v39, %v10321_v46  ;;  %v10294_v16 = vadd.f32 %v10269_v20, %v10161_v14  ;;  %10497 = vmatprep.subr.bf16.mxu1 %v16573_v37  ;;  %v10313_v18 = vadd.f32 %v20765_v28, %v10303_v48  ;;  %v10032_v14 = vadd.f32 %v20749_v49, %v20732_v53  ;;  %v16589_v39 = vld [vmem:[%s21473_s11 + $0x720] ss:$8 sps:$4 sm:$0xff]   ;;  %v16597_v48 = vld [vmem:[%s21473_s11 + $0x714] ss:$8 sps:$4 sm:$0xff]  }
 0xa0b   :  { %v15811_v3 = vpop.f32.mrf.mxu0  ;;  %v16600_v20 = vld [vmem:[%s21473_s11 + $0x754] ss:$8 sps:$4 sm:$0xff]  }
 0xa0c   :  { %v10304_v42 = vmul.f32 %v20758_v41, %v10294_v16  ;;  %v10323_v11 = vmax.f32 %v10313_v18, 0.0  ;;  %v16598_v18 = vld [vmem:[%s21473_s11 + $0x750] ss:$8 sps:$4 sm:$0xff]  }
 0xa0d   :  { %10498 = vmatpush1.bf16.msra.mxu1 %v16571_v10  ;;  %v10274_v30 = vpop.f32.mrf.mxu0 }
 0xa0e   :  { %v10314_v52 = vadd.f32 %v20765_v28, %v10304_v42  ;;  %v10295_v60 = vadd.f32 %v10274_v30, %v10162_v9  ;;  %10499 = vmatprep.subr.bf16.mxu1 %v16579_v63 }
 0xa0f   :  { %v15814_v43 = vpop.f32.mrf.mxu0 }
 0xa10   :  { %v10324_v40 = vmax.f32 %v10314_v52, 0.0  ;;  %v10305_v31 = vmul.f32 %v20758_v41, %v10295_v60  ;;  %v16604_v43 = vld [vmem:[%s21473_s11 + $0x740] ss:$8 sps:$4 sm:$0xff]  }
 0xa11   :  { %10500 = vmatpush1.bf16.msra.mxu1 %v16577_v33  ;;  %v10277_v36 = vpop.f32.mrf.mxu0  ;;  %v16606_v33 = vld [vmem:[%s21473_s11 + $0x744] ss:$8 sps:$4 sm:$0xff]  }
 0xa12   :  { %v10331_v24 = vpack.c.bf16 %v10324_v40, %v10323_v11  ;;  %v10296_v62 = vadd.f32 %v10277_v36, %v10163_v47  ;;  %10691 = vmatprep.subr.bf16.mxu1 %v16585_v45  ;;  %v10315_v58 = vadd.f32 %v20765_v28, %v10305_v31  ;;  %v16894_v36 = vld [vmem:[%s21465_s5 + $0x10] sm:$0xff]  }
 0xa13   :  { %v15815_v37 = vpop.f32.mrf.mxu0 }
 0xa14   :  { %v10306_v22 = vmul.f32 %v20758_v41, %v10296_v62  ;;  %13531 = vmatmul.mubr.msk.bf16.vlgmr.msra.gmra.mxu1 %vm3265_vm7, %v10330_v61  ;;  %13548 = vmatmul.mubr.msk.bf16.vlgmr.msra.gmra.mxu0 %vm3265_vm7, %v10331_v24  ;;  %v10165_v61 = vadd.f32 %v20751_v8, %v10032_v14  ;;  %v10325_v16 = vmax.f32 %v10315_v58, 0.0  ;;  %v16603_v8 = vld [vmem:[%s21473_s11 + $0x704] ss:$8 sps:$4 sm:$0xff]   ;;  %v16909_v14 = vld [vmem:[%s21465_s5 + $0x50] sm:$0xff]  }
 0xa15   :  { %10692 = vmatpush1.bf16.msra.mxu1 %v16583_v4  ;;  %v10282_v46 = vpop.f32.mrf.mxu0  ;;  %10791 = vmatpush1.bf16.msra.mxu0 %v16586_v15  ;;  %v16895_v4 = vld [vmem:[%s21465_s5] sm:$0xff]   ;;  %v16896_v15 = vld [vmem:[#allocation2 + $0x150] sm:$0xff]   ;;  %v16897_v24 = vld [vmem:[%s21465_s5 + $0x28] sm:$0xff]  }
 0xa16   :  { %v10316_v53 = vadd.f32 %v20765_v28, %v10306_v22  ;;  %v10297_v49 = vadd.f32 %v10282_v46, %v10164_v1  ;;  %10693 = vmatprep.subr.bf16.mxu1 %v16591_v50  ;;  %10792 = vmatprep.subr.bf16.mxu0 %v16594_v54  ;;  %v16899_v62 = vld [vmem:[%s21465_s5 + $0x20] sm:$0xff]   ;;  %v16900_v50 = vld [vmem:[%s21465_s5 + $0x30] sm:$0xff]   ;;  %v16901_v54 = vld [vmem:[#allocation2 + $0x158] sm:$0xff]  }
 0xa17   :  { %v15818_v10 = vpop.f32.mrf.mxu0  ;;  %10715 = vmatprep.mubr.bf16.mxu1 %v21495_v44  ;;  %10814 = vmatprep.mubr.bf16.mxu0 %v21495_v44  ;;  %v16902_v1 = vld [vmem:[#allocation2 + $0x160] sm:$0xff]   ;;  %v16906_v37 = vld [vmem:[%s21465_s5 + $0x48] sm:$0xff]   ;;  %v16911_v22 = vld [vmem:[#allocation2 + $0x170] sm:$0xff]  }
 0xa18   :  { %v10326_v63 = vmax.f32 %v10316_v53, 0.0  ;;  %v10307_v3 = vmul.f32 %v20758_v41, %v10297_v49  ;;  %v16910_v58 = vld [vmem:[#allocation2 + $0x168] sm:$0xff]   ;;  %v16913_v46 = vld [vmem:[#allocation2 + $0x180] sm:$0xff]  }
 0xa19   :  { %10694 = vmatpush1.bf16.msra.mxu1 %v16589_v39  ;;  %v10285_v9 = vpop.f32.mrf.mxu0  ;;  %10793 = vmatpush1.bf16.msra.mxu0 %v16592_v6  ;;  %v16918_v39 = vld [vmem:[%s21465_s5 + $0x70] sm:$0xff]   ;;  %v16919_v6 = vld [vmem:[#allocation2 + $0x198] sm:$0xff]   ;;  %v16920_v53 = vld [vmem:[#allocation2 + $0x1a0] sm:$0xff]  }
 0xa1a   :  { %v10332_v42 = vpack.c.bf16 %v10326_v63, %v10325_v16  ;;  %v10298_v30 = vadd.f32 %v10285_v9, %v10165_v61  ;;  %10695 = vmatprep.subr.bf16.mxu1 %v16597_v48  ;;  %10794 = vmatprep.subr.bf16.mxu0 %v16600_v20  ;;  %v10317_v60 = vadd.f32 %v20765_v28, %v10307_v3  ;;  %v16921_v49 = vld [vmem:[#allocation2 + $0x1a8] sm:$0xff]   ;;  %v16607_v20 = vld [vmem:[#allocation2 + $0x1c0] sm:$0xff]   ;;  %v16610_v3 = vld [vmem:[#allocation2 + $0x1d0] sm:$0xff]  }
 0xa1b   :  { %v15819_v52 = vpop.f32.mrf.mxu0  ;;  %v16608_v10 = vld [vmem:[#allocation2 + $0x1c8] sm:$0xff]   ;;  %v21518_v61 = vld [vmem:[#allocation4_spill] sm:$0xff]  ;;  %v21520_v9 = vld [vmem:[#allocation6_spill] sm:$0xff] }
 0xa1c   :  { %v10308_v45 = vmul.f32 %v20758_v41, %v10298_v30  ;;  %v10327_v11 = vmax.f32 %v10317_v60, 0.0  ;;  %v16892_v41 = vld [vmem:[%s21465_s5 + $0x18] sm:$0xff]   ;;  %v16611_v52 = vld [vmem:[#allocation2 + $0x1d0] sm:$0xff]  }
 0xa1d   :  { %10696 = vmatpush1.bf16.msra.mxu1 %v16595_v59  ;;  %10795 = vmatpush1.bf16.msra.mxu0 %v16598_v18  ;;  %v16924_v18 = vld [vmem:[%s21465_s5 + $0x80] sm:$0xff]   ;;  %v16612_v60 = vld [vmem:[#allocation2 + $0x1d8] sm:$0xff]  }
 0xa1e   :  { %v10318_v47 = vadd.f32 %v20765_v28, %v10308_v45  ;;  %10697 = vmatprep.subr.bf16.mxu1 %v16603_v8  ;;  %10796 = vmatprep.subr.bf16.mxu0 %v16606_v33  ;;  %v16893_v28 = vld [vmem:[%s21465_s5 + $0x8] sm:$0xff]   ;;  %v21522_v8 = vld [vmem:[#allocation8_spill] sm:$0xff] }
 0xa1f   :  { %v21523_v45 = vld [vmem:[#allocation9_spill] sm:$0xff] }
 0xa20   :  { %v10328_v40 = vmax.f32 %v10318_v47, 0.0 }
 0xa21   :  { %10698 = vmatpush1.bf16.msra.mxu1 %v16601_v0  ;;  %10797 = vmatpush1.bf16.msra.mxu0 %v16604_v43  ;;  %v21524_v43 = vld [vmem:[#allocation10_spill] sm:$0xff] }
 0xa22   :  { %v10333_v31 = vpack.c.bf16 %v10328_v40, %v10327_v11  ;;  %15820 = vmatprep.subr.bf16.mxu1 %v21496_v38  ;;  %15844 = vmatprep.subr.bf16.mxu0 %v21496_v38  ;;  %v21525_v11 = vld [vmem:[#allocation11_spill] sm:$0xff] }
 0xa24   :  { %13565 = vmatmul.mubr.msk.bf16.vlgmr.msra.gmra.mxu1 %vm3265_vm7, %v10332_v42  ;;  %13582 = vmatmul.mubr.msk.bf16.vlgmr.msra.gmra.mxu0 %vm3265_vm7, %v10333_v31  ;;  %v21521_v42 = vld [vmem:[#allocation7_spill] sm:$0xff] }
 0xa25   :  { %15821 = vmatpush3.bf16.msra.mxu1 %v16892_v41  ;;  %15845 = vmatpush3.bf16.msra.mxu0 %v16893_v28  ;;  %v16613_v31 = vld [vmem:[#allocation2 + $0x1d8] sm:$0xff]   ;;  %v16614_v41 = vld [vmem:[#allocation2 + $0x1e0] sm:$0xff]  }
 0xa26   :  { %15822 = vmatprep.subr.bf16.mxu1 %v21496_v38  ;;  %15846 = vmatprep.subr.bf16.mxu0 %v21496_v38  ;;  %v21526_v28 = vld [vmem:[#allocation12_spill] sm:$0xff] }
 0xa27   :  { %15824 = vmatprep.mubr.msk.bf16.mxu1 %vm16928_vm1, %v21496_v38  ;;  %15848 = vmatprep.mubr.msk.bf16.mxu0 %vm16928_vm1, %v21496_v38 }
 0xa29   :  { %15823 = vmatpush3.bf16.msra.mxu1 %v16894_v36  ;;  %15847 = vmatpush3.bf16.msra.mxu0 %v16895_v4  ;;  %v21527_v4 = vld [vmem:[#allocation13_spill] sm:$0xff] }
 0xa2a   :  { %15868 = vmatprep.subr.bf16.mxu1 %v21496_v38  ;;  %15892 = vmatprep.subr.bf16.mxu0 %v21496_v38 }
 0xa2c   :  { %15825 = vmatmul.mubr.msk.bf16.vlgmr.msra.gmra.mxu1 %vm1936_vm6, %v20448_v51  ;;  %15849 = vmatmul.mubr.msk.bf16.vlgmr.msra.gmra.mxu0 %vm1936_vm6, %v16896_v15  ;;  %v16898_v51 = vld [vmem:[%s21465_s5 + $0x38] sm:$0xff]  }
 0xa2d   :  { %15869 = vmatpush3.bf16.msra.mxu1 %v16897_v24  ;;  %15828 = vmatprep.mubr.msk.bf16.mxu1 %vm16928_vm1, %v21496_v38  ;;  %v21528_v24 = vld [vmem:[#allocation14_spill] sm:$0xff] }
 0xa2e   :  { %15852 = vmatprep.mubr.msk.bf16.mxu0 %vm16928_vm1, %v21496_v38  ;;  %15870 = vmatprep.subr.bf16.mxu1 %v21496_v38 }
 0xa2f   :  { %15893 = vmatpush3.bf16.msra.mxu0 %v16898_v51 }
 0xa30   :  { %15894 = vmatprep.subr.bf16.mxu0 %v21496_v38 }
 0xa31   :  { %15871 = vmatpush3.bf16.msra.mxu1 %v16899_v62  ;;  %v16615_v62 = vld [vmem:[#allocation2 + $0x1e0] sm:$0xff]  }
 0xa32   :  { %15916 = vmatprep.subr.bf16.mxu1 %v21496_v38 }
 0xa33   :  { %15895 = vmatpush3.bf16.msra.mxu0 %v16900_v50  ;;  %v16616_v50 = vld [vmem:[#allocation2 + $0x1e8] sm:$0xff]  }
 0xa34   :  { %15829 = vmatmul.mubr.msk.bf16.gmra.mxu1 %vm1936_vm6, %v20473_v5  ;;  %15853 = vmatmul.mubr.msk.bf16.gmra.mxu0 %vm1936_vm6, %v16901_v54  ;;  %v16903_v5 = vld [vmem:[#allocation2 + $0x168] sm:$0xff]   ;;  %v21529_v54 = vld [vmem:[#allocation15_spill] sm:$0xff] }
 0xa35   :  { %15832 = vmatprep.mubr.msk.bf16.mxu1 %vm16928_vm1, %v21496_v38  ;;  %15856 = vmatprep.mubr.msk.bf16.mxu0 %vm16928_vm1, %v21496_v38 }
 0xa36   :  { %15940 = vmatprep.subr.bf16.mxu0 %v21496_v38 }
 0xa3c   :  { %15833 = vmatmul.mubr.msk.bf16.gmra.mxu1 %vm1936_vm6, %v20483_v35  ;;  %15857 = vmatmul.mubr.msk.bf16.gmra.mxu0 %vm1936_vm6, %v16902_v1  ;;  %v16904_v35 = vld [vmem:[#allocation2 + $0x170] sm:$0xff]  }
 0xa3d   :  { %15836 = vmatprep.mubr.msk.bf16.mxu1 %vm16928_vm1, %v21496_v38  ;;  %15860 = vmatprep.mubr.msk.bf16.mxu0 %vm16928_vm1, %v21496_v38 }
 0xa44   :  { %15837 = vmatmul.mubr.msk.bf16.gmra.mxu1 %vm1936_vm6, %v20493_v23  ;;  %15861 = vmatmul.mubr.msk.bf16.gmra.mxu0 %vm1936_vm6, %v16903_v5  ;;  %v16905_v23 = vld [vmem:[#allocation2 + $0x160] sm:$0xff]  }
 0xa45   :  { %15840 = vmatprep.mubr.msk.bf16.mxu1 %vm16928_vm1, %v21496_v38  ;;  %15864 = vmatprep.mubr.msk.bf16.mxu0 %vm16928_vm1, %v21496_v38 }
 0xa4c   :  { %15841 = vmatmul.mubr.msk.bf16.gmra.mxu1 %vm1936_vm6, %v20503_v19  ;;  %15865 = vmatmul.mubr.msk.bf16.gmra.mxu0 %vm1936_vm6, %v16904_v35  ;;  %v16907_v19 = vld [vmem:[%s21465_s5 + $0x58] sm:$0xff]   ;;  %v21530_v35 = vld [vmem:[#allocation16_spill] sm:$0xff] }
 0xa4d   :  { %15872 = vmatprep.mubr.msk.bf16.mxu1 %vm16928_vm1, %v21496_v38  ;;  %15896 = vmatprep.mubr.msk.bf16.mxu0 %vm16928_vm1, %v21496_v38 }
 0xa54   :  { %15873 = vmatmul.mubr.msk.bf16.vlgmr.msra.gmra.mxu1 %vm1936_vm6, %v16905_v23  ;;  %15897 = vmatmul.mubr.msk.bf16.vlgmr.msra.gmra.mxu0 %vm1936_vm6, %v20513_v21  ;;  %v16908_v21 = vld [vmem:[%s21465_s5 + $0x40] sm:$0xff]  }
 0xa55   :  { %15917 = vmatpush3.bf16.msra.mxu1 %v16906_v37  ;;  %15876 = vmatprep.mubr.msk.bf16.mxu1 %vm16928_vm1, %v21496_v38 }
 0xa56   :  { %15900 = vmatprep.mubr.msk.bf16.mxu0 %vm16928_vm1, %v21496_v38  ;;  %15918 = vmatprep.subr.bf16.mxu1 %v21496_v38 }
 0xa57   :  { %15941 = vmatpush3.bf16.msra.mxu0 %v16907_v19 }
 0xa58   :  { %15942 = vmatprep.subr.bf16.mxu0 %v21496_v38 }
 0xa59   :  { %15919 = vmatpush3.bf16.msra.mxu1 %v16908_v21  ;;  %v21531_v21 = vld [vmem:[#allocation17_spill] sm:$0xff] }
 0xa5a   :  { %15964 = vmatprep.subr.bf16.mxu1 %v21496_v38 }
 0xa5b   :  { %15943 = vmatpush3.bf16.msra.mxu0 %v16909_v14 }
 0xa5c   :  { %15877 = vmatmul.mubr.msk.bf16.gmra.mxu1 %vm1936_vm6, %v16910_v58  ;;  %15901 = vmatmul.mubr.msk.bf16.gmra.mxu0 %vm1936_vm6, %v20529_v26  ;;  %v16912_v26 = vld [vmem:[#allocation2 + $0x178] sm:$0xff]  }
 0xa5d   :  { %15880 = vmatprep.mubr.msk.bf16.mxu1 %vm16928_vm1, %v21496_v38  ;;  %15904 = vmatprep.mubr.msk.bf16.mxu0 %vm16928_vm1, %v21496_v38 }
 0xa5e   :  { %15988 = vmatprep.subr.bf16.mxu0 %v21496_v38 }
 0xa64   :  { %15881 = vmatmul.mubr.msk.bf16.gmra.mxu1 %vm1936_vm6, %v16911_v22  ;;  %15905 = vmatmul.mubr.msk.bf16.gmra.mxu0 %vm1936_vm6, %v20538_v57  ;;  %v16914_v57 = vld [vmem:[#allocation2 + $0x190] sm:$0xff]  }
 0xa65   :  { %15884 = vmatprep.mubr.msk.bf16.mxu1 %vm16928_vm1, %v21496_v38  ;;  %15908 = vmatprep.mubr.msk.bf16.mxu0 %vm16928_vm1, %v21496_v38 }
 0xa6c   :  { %15885 = vmatmul.mubr.msk.bf16.gmra.mxu1 %vm1936_vm6, %v16912_v26  ;;  %15909 = vmatmul.mubr.msk.bf16.gmra.mxu0 %vm1936_vm6, %v20547_v29  ;;  %v16915_v29 = vld [vmem:[%s21465_s5 + $0x68] sm:$0xff]   ;;  %v16617_v26 = vld [vmem:[#allocation2 + $0x1d0] sm:$0xff]  }
 0xa6d   :  { %15888 = vmatprep.mubr.msk.bf16.mxu1 %vm16928_vm1, %v21496_v38  ;;  %15912 = vmatprep.mubr.msk.bf16.mxu0 %vm16928_vm1, %v21496_v38 }
 0xa74   :  { %15889 = vmatmul.mubr.msk.bf16.gmra.mxu1 %vm1936_vm6, %v16913_v46  ;;  %15913 = vmatmul.mubr.msk.bf16.gmra.mxu0 %vm1936_vm6, %v20556_v27  ;;  %v16916_v27 = vld [vmem:[%s21465_s5 + $0x78] sm:$0xff]   ;;  %v21532_v46 = vld [vmem:[#allocation18_spill] sm:$0xff] }
 0xa75   :  { %15920 = vmatprep.mubr.msk.bf16.mxu1 %vm16928_vm1, %v21496_v38  ;;  %15944 = vmatprep.mubr.msk.bf16.mxu0 %vm16928_vm1, %v21496_v38 }
 0xa7c   :  { %15921 = vmatmul.mubr.msk.bf16.vlgmr.msra.gmra.mxu1 %vm1936_vm6, %v16914_v57  ;;  %15945 = vmatmul.mubr.msk.bf16.vlgmr.msra.gmra.mxu0 %vm1936_vm6, %v20567_v12  ;;  %v16917_v12 = vld [vmem:[%s21465_s5 + $0x60] sm:$0xff]  }
 0xa7d   :  { %15965 = vmatpush3.bf16.msra.mxu1 %v16915_v29  ;;  %15924 = vmatprep.mubr.msk.bf16.mxu1 %vm16928_vm1, %v21496_v38 }
 0xa7e   :  { %15948 = vmatprep.mubr.msk.bf16.mxu0 %vm16928_vm1, %v21496_v38  ;;  %15966 = vmatprep.subr.bf16.mxu1 %v21496_v38 }
 0xa7f   :  { %15989 = vmatpush3.bf16.msra.mxu0 %v16916_v27  ;;  %v21533_v27 = vld [vmem:[#allocation19_spill] sm:$0xff] }
 0xa80   :  { %15990 = vmatprep.subr.bf16.mxu0 %v21496_v38 }
 0xa81   :  { %15967 = vmatpush3.bf16.msra.mxu1 %v16917_v12  ;;  %v21534_v12 = vld [vmem:[#allocation20_spill] sm:$0xff] }
 0xa82   :  { %16012 = vmatprep.subr.bf16.mxu1 %v21496_v38 }
 0xa83   :  { %15991 = vmatpush3.bf16.msra.mxu0 %v16918_v39 }
 0xa84   :  { %15925 = vmatmul.mubr.msk.bf16.gmra.mxu1 %vm1936_vm6, %v16919_v6  ;;  %15949 = vmatmul.mubr.msk.bf16.gmra.mxu0 %vm1936_vm6, %v20575_v7  ;;  %v16922_v7 = vld [vmem:[#allocation2 + $0x1b0] sm:$0xff]   ;;  %v16618_v6 = vld [vmem:[#allocation2 + $0x1d8] sm:$0xff]  }
 0xa85   :  { %15928 = vmatprep.mubr.msk.bf16.mxu1 %vm16928_vm1, %v21496_v38  ;;  %15952 = vmatprep.mubr.msk.bf16.mxu0 %vm16928_vm1, %v21496_v38 }
 0xa8c   :  { %15929 = vmatmul.mubr.msk.bf16.gmra.mxu1 %vm1936_vm6, %v16920_v53  ;;  %15953 = vmatmul.mubr.msk.bf16.gmra.mxu0 %vm1936_vm6, %v20581_v56  ;;  %v3396_v56 = vadd.f32 %v18393_v32, %v18395_v2  ;;  %v16923_v32 = vld [vmem:[%s21465_s5 + $0x88] sm:$0xff]  }
 0xa8d   :  { %15932 = vmatprep.mubr.msk.bf16.mxu1 %vm16928_vm1, %v21496_v38  ;;  %15956 = vmatprep.mubr.msk.bf16.mxu0 %vm16928_vm1, %v21496_v38  ;;  %v16609_v2 = vld [vmem:[#allocation2 + $0x1c8] sm:$0xff]  }
 0xa94   :  { %15933 = vmatmul.mubr.msk.bf16.gmra.mxu1 %vm1936_vm6, %v16921_v49  ;;  %15957 = vmatmul.mubr.msk.bf16.gmra.mxu0 %vm1936_vm6, %v20591_v34  ;;  %v21517_v34 = vld [vmem:[#allocation3_spill] sm:$0xff]  ;;  %v21535_v49 = vld [vmem:[#allocation21_spill] sm:$0xff] }
 0xa95   :  { %15936 = vmatprep.mubr.msk.bf16.mxu1 %vm16928_vm1, %v21496_v38  ;;  %15960 = vmatprep.mubr.msk.bf16.mxu0 %vm16928_vm1, %v21496_v38  ;;  %v3496_v48 = vadd.f32 %v21517_v34, %v3396_v56  ;;  %v21536_v34 = vld [vmem:[#allocation22_spill] sm:$0xff] }
 0xa97   :  { %v3595_v16 = vadd.f32 %v21518_v61, %v3496_v48  ;;  %v21537_v61 = vld [vmem:[#allocation23_spill] sm:$0xff] }
 0xa9c   :  { %15937 = vmatmul.mubr.msk.bf16.gmra.mxu1 %vm1936_vm6, %v16922_v7  ;;  %15961 = vmatmul.mubr.msk.bf16.gmra.mxu0 %vm1936_vm6, %v20599_v55  ;;  %v21519_v55 = vld [vmem:[#allocation5_spill] sm:$0xff] }
 0xa9d   :  { %15968 = vmatprep.mubr.msk.bf16.mxu1 %vm16928_vm1, %v21496_v38  ;;  %15992 = vmatprep.mubr.msk.bf16.mxu0 %vm16928_vm1, %v21496_v38  ;;  %v3694_v63 = vadd.f32 %v21519_v55, %v3595_v16 }
 0xa9f   :  { %v3793_v59 = vadd.f32 %v21520_v9, %v3694_v63 }
 0xaa1   :  { %v4804_v30 = vadd.f32 %v21521_v42, %v3793_v59 }
 0xaa3   :  { %v4903_v33 = vadd.f32 %v21522_v8, %v4804_v30  ;;  %v21539_v8 = vld [vmem:[#allocation25_spill] sm:$0xff] }
 0xaa4   :  { %15969 = vmatmul.mubr.msk.bf16.vlgmr.msra.gmra.mxu1 %vm1936_vm6, %v16607_v20  ;;  %15993 = vmatmul.mubr.msk.bf16.vlgmr.msra.gmra.mxu0 %vm1936_vm6, %v16608_v10 }
 0xaa5   :  { %16013 = vmatpush3.bf16.msra.mxu1 %v16923_v32  ;;  %15972 = vmatprep.mubr.msk.bf16.mxu1 %vm16928_vm1, %v21496_v38  ;;  %v5002_v0 = vadd.f32 %v21523_v45, %v4903_v33 }
 0xaa6   :  { %15996 = vmatprep.mubr.msk.bf16.mxu0 %vm16928_vm1, %v21496_v38  ;;  %16014 = vmatprep.subr.bf16.mxu1 %v21496_v38 }
 0xaa7   :  { %v5101_v47 = vadd.f32 %v21524_v43, %v5002_v0 }
 0xaa9   :  { %16015 = vmatpush3.bf16.msra.mxu1 %v16924_v18  ;;  %v5200_v40 = vadd.f32 %v21525_v11, %v5101_v47  ;;  %v21538_v18 = vld [vmem:[#allocation24_spill] sm:$0xff] }
 0xaab   :  { %v6211_v36 = vadd.f32 %v21526_v28, %v5200_v40 }
 0xaac   :  { %15973 = vmatmul.mubr.msk.bf16.gmra.mxu1 %vm1936_vm6, %v16609_v2  ;;  %15997 = vmatmul.mubr.msk.bf16.gmra.mxu0 %vm1936_vm6, %v16610_v3  ;;  %v16619_v3 = vld [vmem:[#allocation2 + $0x1e0] sm:$0xff]  }
 0xaad   :  { %15976 = vmatprep.mubr.msk.bf16.mxu1 %vm16928_vm1, %v21496_v38  ;;  %16000 = vmatprep.mubr.msk.bf16.mxu0 %vm16928_vm1, %v21496_v38  ;;  %v6310_v15 = vadd.f32 %v21527_v4, %v6211_v36 }
 0xaaf   :  { %v6409_v51 = vadd.f32 %v21528_v24, %v6310_v15 }
 0xab1   :  { %v6508_v1 = vadd.f32 %v21529_v54, %v6409_v51 }
 0xab3   :  { %v6607_v23 = vadd.f32 %v21530_v35, %v6508_v1 }
 0xab4   :  { %15977 = vmatmul.mubr.msk.bf16.gmra.mxu1 %vm1936_vm6, %v16611_v52  ;;  %16001 = vmatmul.mubr.msk.bf16.gmra.mxu0 %vm1936_vm6, %v16612_v60  ;;  %v16620_v52 = vld [vmem:[#allocation2 + $0x1e8] sm:$0xff]   ;;  %v21540_v60 = vld [vmem:[#allocation26_spill] sm:$0xff] }
 0xab5   :  { %15980 = vmatprep.mubr.msk.bf16.mxu1 %vm16928_vm1, %v21496_v38  ;;  %16004 = vmatprep.mubr.msk.bf16.mxu0 %vm16928_vm1, %v21496_v38  ;;  %v7618_v14 = vadd.f32 %v21531_v21, %v6607_v23 }
 0xab7   :  { %v7717_v57 = vadd.f32 %v21532_v46, %v7618_v14 }
 0xabc   :  { %15981 = vmatmul.mubr.msk.bf16.gmra.mxu1 %vm1936_vm6, %v16613_v31  ;;  %16005 = vmatmul.mubr.msk.bf16.gmra.mxu0 %vm1936_vm6, %v16614_v41 }
 0xabd   :  { %15984 = vmatprep.mubr.msk.bf16.mxu1 %vm16928_vm1, %v21496_v38  ;;  %16008 = vmatprep.mubr.msk.bf16.mxu0 %vm16928_vm1, %v21496_v38 }
 0xac4   :  { %15985 = vmatmul.mubr.msk.bf16.gmra.mxu1 %vm1936_vm6, %v16615_v62  ;;  %v10420_v5 = vpop.f32.mrf.mxu1  ;;  %16009 = vmatmul.mubr.msk.bf16.gmra.mxu0 %vm1936_vm6, %v16616_v50  ;;  %v16621_v62 = vld [vmem:[#allocation2 + $0x1f0] sm:$0xff]  }
 0xac5   :  { %v10429_v37 = vadd.f32 %v10420_v5, %v20597_v13  ;;  %16016 = vmatprep.mubr.msk.bf16.mxu1 %vm16928_vm1, %v21496_v38  ;;  %11825 = vmatprep.mubr.bf16.mxu0 %v21495_v44  ;;  %v7816_v13 = vadd.f32 %v21533_v27, %v7717_v57 }
 0xac6   :  { %v10422_v19 = vpop.f32.mrf.mxu1 }
 0xac7   :  { %v10430_v58 = vadd.f32 %v10422_v19, %v20601_v25  ;;  %v7915_v39 = vadd.f32 %v21534_v12, %v7816_v13  ;;  %v16622_v13 = vld [vmem:[%s21473_s11 + $0x7b0] ss:$8 sps:$4 sm:$0xff]   ;;  %v16624_v12 = vld [vmem:[%s21473_s11 + $0x7b4] ss:$8 sps:$4 sm:$0xff]  }
 0xac8   :  { %v10424_v22 = vpop.f32.mrf.mxu1  ;;  %11801 = vmatprep.subr.bf16.mxu0 %v16624_v12 }
 0xac9   :  { %v10431_v29 = vadd.f32 %v10424_v22, %v20607_v17  ;;  %v8014_v7 = vadd.f32 %v21535_v49, %v7915_v39  ;;  %11802 = vmatpush1.bf16.msra.mxu0 %v16622_v13 }
 0xaca   :  { %v10426_v53 = vpop.f32.mrf.mxu1 }
 0xacb   :  { %v9025_v48 = vadd.f32 %v21536_v34, %v8014_v7 }
 0xacc   :  { %16017 = vmatmul.mubr.msk.bf16.vlgmr.msra.gmra.mxu1 %vm1936_vm6, %v16617_v26 }
 0xacd   :  { %16020 = vmatprep.mubr.msk.bf16.mxu1 %vm16928_vm1, %v21496_v38  ;;  %v9124_v16 = vadd.f32 %v21537_v61, %v9025_v48 }
 0xacf   :  { %v9223_v42 = vadd.f32 %v21538_v18, %v9124_v16  ;;  %v16625_v16 = vld [vmem:[%s21473_s11 + $0x7a0] ss:$8 sps:$4 sm:$0xff]  }
 0xad1   :  { %v9322_v33 = vadd.f32 %v21539_v8, %v9223_v42 }
 0xad3   :  { %v9421_v45 = vadd.f32 %v21540_v60, %v9322_v33  ;;  %v16628_v33 = vld [vmem:[%s21473_s11 + $0x830] ss:$8 sps:$4 sm:$0xff]  }
 0xad4   :  { %v10519_v25 = vpop.f32.mrf.mxu1  ;;  %16021 = vmatmul.mubr.msk.bf16.gmra.mxu1 %vm1936_vm6, %v16618_v6  ;;  %v10618_v56 = vpop.f32.mrf.mxu0 }
 0xad5   :  { %v10528_v17 = vadd.f32 %v10519_v25, %v10429_v37  ;;  %16024 = vmatprep.mubr.msk.bf16.mxu1 %vm16928_vm1, %v21496_v38  ;;  %v10432_v47 = vadd.f32 %v10426_v53, %v9421_v45 }
 0xad6   :  { %v10521_v20 = vpop.f32.mrf.mxu1  ;;  %v10620_v10 = vpop.f32.mrf.mxu0 }
 0xad7   :  { %v10627_v55 = vadd.f32 %v10618_v56, %v10528_v17  ;;  %v10529_v63 = vadd.f32 %v10521_v20, %v10430_v58 }
 0xad8   :  { %v10523_v32 = vpop.f32.mrf.mxu1  ;;  %v10622_v2 = vpop.f32.mrf.mxu0 }
 0xad9   :  { %v10628_v9 = vadd.f32 %v10620_v10, %v10529_v63  ;;  %v10530_v59 = vadd.f32 %v10523_v32, %v10431_v29 }
 0xada   :  { %v10525_v0 = vpop.f32.mrf.mxu1  ;;  %v10624_v43 = vpop.f32.mrf.mxu0 }
 0xadb   :  { %v10629_v30 = vadd.f32 %v10622_v2, %v10530_v59  ;;  %v10531_v31 = vadd.f32 %v10525_v0, %v10432_v47  ;;  %v16631_v0 = vld [vmem:[%s21473_s11 + $0x790] ss:$8 sps:$4 sm:$0xff]  }
 0xadc   :  { %16025 = vmatmul.mubr.msk.bf16.gmra.mxu1 %vm1936_vm6, %v16619_v3 }
 0xadd   :  { %16028 = vmatprep.mubr.msk.bf16.mxu1 %vm16928_vm1, %v21496_v38  ;;  %v10630_v50 = vadd.f32 %v10624_v43, %v10531_v31  ;;  %v16633_v43 = vld [vmem:[%s21473_s11 + $0x794] ss:$8 sps:$4 sm:$0xff]  }
 0xae4   :  { %v10717_v11 = vpop.f32.mrf.mxu1  ;;  %16029 = vmatmul.mubr.msk.bf16.gmra.mxu1 %vm1936_vm6, %v16620_v52  ;;  %v10816_v40 = vpop.f32.mrf.mxu0  ;;  %v16630_v52 = vld [vmem:[%s21473_s11 + $0x834] ss:$8 sps:$4 sm:$0xff]  }
 0xae5   :  { %v10726_v41 = vadd.f32 %v10717_v11, %v10627_v55  ;;  %16032 = vmatprep.mubr.msk.bf16.mxu1 %vm16928_vm1, %v21496_v38  ;;  %v16627_v55 = vld [vmem:[%s21473_s11 + $0x7a4] ss:$8 sps:$4 sm:$0xff]   ;;  %11999 = vmatprep.subr.bf16.mxu1 %v16630_v52 }
 0xae6   :  { %v10719_v28 = vpop.f32.mrf.mxu1  ;;  %v10818_v36 = vpop.f32.mrf.mxu0  ;;  %11803 = vmatprep.subr.bf16.mxu0 %v16627_v55  ;;  %12000 = vmatpush1.bf16.msra.mxu1 %v16628_v33 }
 0xae7   :  { %v21126_v4 = vadd.f32 %v10816_v40, %v10726_v41  ;;  %v10727_v15 = vadd.f32 %v10719_v28, %v10628_v9  ;;  %11804 = vmatpush1.bf16.msra.mxu0 %v16625_v16 }
 0xae8   :  { %v10721_v24 = vpop.f32.mrf.mxu1  ;;  %v10820_v51 = vpop.f32.mrf.mxu0  ;;  %11805 = vmatprep.subr.bf16.mxu0 %v16633_v43  ;;  %v16652_v43 = vld [vmem:[%s21473_s11 + $0x800] ss:$8 sps:$4 sm:$0xff]  }
 0xae9   :  { %v21128_v54 = vadd.f32 %v10818_v36, %v10727_v15  ;;  %v10728_v1 = vadd.f32 %v10721_v24, %v10629_v30 }
 0xaea   :  { %v10723_v5 = vpop.f32.mrf.mxu1  ;;  %v10822_v35 = vpop.f32.mrf.mxu0 }
 0xaeb   :  { %v21130_v23 = vadd.f32 %v10820_v51, %v10728_v1  ;;  %v10729_v37 = vadd.f32 %v10723_v5, %v10630_v50  ;;  %11806 = vmatpush1.bf16.msra.mxu0 %v16631_v0 }
 0xaec   :  { %v10863_v19 = vpop.f32.mrf.mxu1  ;;  %16033 = vmatmul.mubr.msk.bf16.gmra.mxu1 %vm1936_vm6, %v16621_v62  ;;  %v10936_v38 = vpop.f32.mrf.mxu0 }
 0xaed   :  { %v21133_v21 = vadd.f32 %v10822_v35, %v10729_v37  ;;  %v21135_v14 = vadd.f32 %v10936_v38, %v10863_v19  ;;  %12023 = vmatprep.mubr.bf16.mxu1 %v21495_v44  ;;  %v16634_v37 = vld [vmem:[%s21473_s11 + $0x820] ss:$8 sps:$4 sm:$0xff]   ;;  %v16636_v19 = vld [vmem:[%s21473_s11 + $0x824] ss:$8 sps:$4 sm:$0xff]  }
 0xaee   :  { %v15826_v58 = vpop.f32.mrf.mxu1  ;;  %v15850_v22 = vpop.f32.mrf.mxu0  ;;  %12001 = vmatprep.subr.bf16.mxu1 %v16636_v19  ;;  %v16663_v19 = vld [vmem:[%s21473_s11 + $0x8b4] ss:$8 sps:$4 sm:$0xff]  }
 0xaef   :  { %12002 = vmatpush1.bf16.msra.mxu1 %v16634_v37 }
 0xaf0   :  { %v10866_v26 = vpop.f32.mrf.mxu1  ;;  %v10939_v46 = vpop.f32.mrf.mxu0 }
 0xaf1   :  { %v21138_v57 = vadd.f32 %v10939_v46, %v10866_v26 }
 0xaf2   :  { %v15827_v29 = vpop.f32.mrf.mxu1  ;;  %v15851_v27 = vpop.f32.mrf.mxu0 }
 0xaf4   :  { %v10871_v39 = vpop.f32.mrf.mxu1  ;;  %v10944_v6 = vpop.f32.mrf.mxu0 }
 0xaf5   :  { %v21146_v53 = vadd.f32 %v10944_v6, %v10871_v39  ;;  %v16637_v39 = vld [vmem:[%s21473_s11 + $0x780] ss:$8 sps:$4 sm:$0xff]   ;;  %v16639_v6 = vld [vmem:[%s21473_s11 + $0x784] ss:$8 sps:$4 sm:$0xff]  }
 0xaf6   :  { %v15830_v49 = vpop.f32.mrf.mxu1  ;;  %v15854_v7 = vpop.f32.mrf.mxu0  ;;  %11807 = vmatprep.subr.bf16.mxu0 %v16639_v6 }
 0xaf7   :  { %11808 = vmatpush1.bf16.msra.mxu0 %v16637_v39 }
 0xaf8   :  { %v10874_v25 = vpop.f32.mrf.mxu1  ;;  %v10947_v56 = vpop.f32.mrf.mxu0 }
 0xaf9   :  { %v21148_v34 = vadd.f32 %v10947_v56, %v10874_v25 }
 0xafa   :  { %v15831_v48 = vpop.f32.mrf.mxu1  ;;  %v15855_v17 = vpop.f32.mrf.mxu0 }
 0xafc   :  { %v10879_v20 = vpop.f32.mrf.mxu1  ;;  %v10952_v10 = vpop.f32.mrf.mxu0 }
 0xafd   :  { %v21150_v61 = vadd.f32 %v10952_v10, %v10879_v20 }
 0xafe   :  { %v15834_v63 = vpop.f32.mrf.mxu1  ;;  %v15858_v32 = vpop.f32.mrf.mxu0 }
 0xaff   :  { %v16640_v63 = vld [vmem:[%s21473_s11 + $0x810] ss:$8 sps:$4 sm:$0xff]   ;;  %v16642_v32 = vld [vmem:[%s21473_s11 + $0x814] ss:$8 sps:$4 sm:$0xff]  }
 0xb00   :  { %v10882_v2 = vpop.f32.mrf.mxu1  ;;  %v10955_v3 = vpop.f32.mrf.mxu0  ;;  %12003 = vmatprep.subr.bf16.mxu1 %v16642_v32 }
 0xb01   :  { %v21158_v9 = vadd.f32 %v10955_v3, %v10882_v2  ;;  %12004 = vmatpush1.bf16.msra.mxu1 %v16640_v63 }
 0xb02   :  { %v15835_v59 = vpop.f32.mrf.mxu1  ;;  %v15859_v18 = vpop.f32.mrf.mxu0 }
 0xb04   :  { %v10887_v42 = vpop.f32.mrf.mxu1  ;;  %v10960_v30 = vpop.f32.mrf.mxu0 }
 0xb05   :  { %v21160_v8 = vadd.f32 %v10960_v30, %v10887_v42 }
 0xb06   :  { %v15838_v60 = vpop.f32.mrf.mxu1  ;;  %v15862_v45 = vpop.f32.mrf.mxu0 }
 0xb08   :  { %v10890_v47 = vpop.f32.mrf.mxu1  ;;  %v10963_v11 = vpop.f32.mrf.mxu0 }
 0xb09   :  { %v21174_v40 = vadd.f32 %v10963_v11, %v10890_v47 }
 0xb0a   :  { %v15839_v31 = vpop.f32.mrf.mxu1  ;;  %v15863_v41 = vpop.f32.mrf.mxu0 }
 0xb0b   :  { %v16654_v31 = vld [vmem:[%s21473_s11 + $0x804] ss:$8 sps:$4 sm:$0xff]  }
 0xb0c   :  { %v10895_v28 = vpop.f32.mrf.mxu1  ;;  %v10968_v36 = vpop.f32.mrf.mxu0  ;;  %12005 = vmatprep.subr.bf16.mxu1 %v16654_v31 }
 0xb0d   :  { %v21176_v15 = vadd.f32 %v10968_v36, %v10895_v28  ;;  %12006 = vmatpush1.bf16.msra.mxu1 %v16652_v43 }
 0xb0e   :  { %v15842_v24 = vpop.f32.mrf.mxu1  ;;  %v15866_v51 = vpop.f32.mrf.mxu0  ;;  %12197 = vmatprep.subr.bf16.mxu1 %v16663_v19 }
 0xb10   :  { %v10898_v62 = vpop.f32.mrf.mxu1  ;;  %v10971_v50 = vpop.f32.mrf.mxu0 }
 0xb11   :  { %v21178_v1 = vadd.f32 %v10971_v50, %v10898_v62 }
 0xb12   :  { %v15843_v5 = vpop.f32.mrf.mxu1  ;;  %v15867_v35 = vpop.f32.mrf.mxu0 }
 0xb14   :  { %v11009_v38 = vpop.f32.mrf.mxu1  ;;  %v11092_v58 = vpop.f32.mrf.mxu0 }
 0xb15   :  { %v11048_v22 = vadd.f32 %v11009_v38, %v21135_v14 }
 0xb16   :  { %v15874_v26 = vpop.f32.mrf.mxu1  ;;  %v15898_v46 = vpop.f32.mrf.mxu0 }
 0xb17   :  { %v21187_v29 = vadd.f32 %v11092_v58, %v11048_v22 }
 0xb18   :  { %v11012_v27 = vpop.f32.mrf.mxu1  ;;  %v11095_v13 = vpop.f32.mrf.mxu0 }
 0xb19   :  { %v11049_v12 = vadd.f32 %v11012_v27, %v21138_v57 }
 0xb1a   :  { %v15875_v49 = vpop.f32.mrf.mxu1  ;;  %v15899_v14 = vpop.f32.mrf.mxu0 }
 0xb1b   :  { %v21196_v7 = vadd.f32 %v11095_v13, %v11049_v12 }
 0xb1c   :  { %v11017_v25 = vpop.f32.mrf.mxu1  ;;  %v11100_v56 = vpop.f32.mrf.mxu0 }
 0xb1d   :  { %v11050_v48 = vadd.f32 %v11017_v25, %v21146_v53  ;;  %v16645_v53 = vld [vmem:[%s21473_s11 + $0x7f4] ss:$8 sps:$4 sm:$0xff]  }
 0xb1e   :  { %v15878_v17 = vpop.f32.mrf.mxu1  ;;  %v15902_v57 = vpop.f32.mrf.mxu0  ;;  %11900 = vmatprep.subr.bf16.mxu0 %v16645_v53 }
 0xb1f   :  { %v21199_v20 = vadd.f32 %v11100_v56, %v11050_v48 }
 0xb20   :  { %v11020_v10 = vpop.f32.mrf.mxu1  ;;  %v11103_v16 = vpop.f32.mrf.mxu0 }
 0xb21   :  { %v11051_v55 = vadd.f32 %v11020_v10, %v21148_v34 }
 0xb22   :  { %v15879_v2 = vpop.f32.mrf.mxu1  ;;  %v15903_v3 = vpop.f32.mrf.mxu0 }
 0xb23   :  { %v21211_v59 = vadd.f32 %v11103_v16, %v11051_v55 }
 0xb24   :  { %v11025_v18 = vpop.f32.mrf.mxu1  ;;  %v11108_v42 = vpop.f32.mrf.mxu0 }
 0xb25   :  { %v11052_v34 = vadd.f32 %v11025_v18, %v21150_v61 }
 0xb26   :  { %v15882_v30 = vpop.f32.mrf.mxu1  ;;  %v15906_v33 = vpop.f32.mrf.mxu0 }
 0xb27   :  { %v21214_v52 = vadd.f32 %v11108_v42, %v11052_v34 }
 0xb28   :  { %v11028_v60 = vpop.f32.mrf.mxu1  ;;  %v11111_v45 = vpop.f32.mrf.mxu0 }
 0xb29   :  { %v11053_v0 = vadd.f32 %v11028_v60, %v21158_v9 }
 0xb2a   :  { %v15883_v47 = vpop.f32.mrf.mxu1  ;;  %v15907_v11 = vpop.f32.mrf.mxu0 }
 0xb2b   :  { %v11136_v41 = vadd.f32 %v11111_v45, %v11053_v0 }
 0xb2c   :  { %v11033_v61 = vpop.f32.mrf.mxu1  ;;  %v11116_v28 = vpop.f32.mrf.mxu0 }
 0xb2d   :  { %v11054_v36 = vadd.f32 %v11033_v61, %v21160_v8 }
 0xb2e   :  { %v15886_v24 = vpop.f32.mrf.mxu1  ;;  %v15910_v51 = vpop.f32.mrf.mxu0 }
 0xb2f   :  { %v11137_v9 = vadd.f32 %v11116_v28, %v11054_v36 }
 0xb30   :  { %v11036_v62 = vpop.f32.mrf.mxu1  ;;  %v11119_v50 = vpop.f32.mrf.mxu0 }
 0xb31   :  { %v11055_v5 = vadd.f32 %v11036_v62, %v21174_v40 }
 0xb32   :  { %v15887_v35 = vpop.f32.mrf.mxu1  ;;  %v15911_v37 = vpop.f32.mrf.mxu0 }
 0xb33   :  { %v11138_v38 = vadd.f32 %v11119_v50, %v11055_v5 }
 0xb34   :  { %v11041_v58 = vpop.f32.mrf.mxu1  ;;  %v11124_v22 = vpop.f32.mrf.mxu0 }
 0xb35   :  { %v11056_v8 = vadd.f32 %v11041_v58, %v21176_v15 }
 0xb36   :  { %v15890_v26 = vpop.f32.mrf.mxu1  ;;  %v15914_v46 = vpop.f32.mrf.mxu0 }
 0xb37   :  { %v11139_v27 = vadd.f32 %v11124_v22, %v11056_v8 }
 0xb38   :  { %v11044_v13 = vpop.f32.mrf.mxu1  ;;  %v11127_v12 = vpop.f32.mrf.mxu0 }
 0xb39   :  { %v11057_v39 = vadd.f32 %v11044_v13, %v21178_v1 }
 0xb3a   :  { %v15891_v40 = vpop.f32.mrf.mxu1  ;;  %v15915_v6 = vpop.f32.mrf.mxu0 }
 0xb3b   :  { %v11140_v49 = vadd.f32 %v11127_v12, %v11057_v39 }
 0xb3c   :  { %v11175_v14 = vpop.f32.mrf.mxu1  ;;  %v11258_v25 = vpop.f32.mrf.mxu0 }
 0xb3d   :  { %v11214_v56 = vadd.f32 %v11175_v14, %v21187_v29 }
 0xb3e   :  { %v15922_v48 = vpop.f32.mrf.mxu1  ;;  %v15946_v17 = vpop.f32.mrf.mxu0 }
 0xb3f   :  { %v21231_v57 = vadd.f32 %v11258_v25, %v11214_v56 }
 0xb40   :  { %v11178_v10 = vpop.f32.mrf.mxu1  ;;  %v11261_v15 = vpop.f32.mrf.mxu0 }
 0xb41   :  { %v11215_v16 = vadd.f32 %v11178_v10, %v21196_v7 }
 0xb42   :  { %v15923_v55 = vpop.f32.mrf.mxu1  ;;  %v15947_v63 = vpop.f32.mrf.mxu0 }
 0xb43   :  { %v21234_v32 = vadd.f32 %v11261_v15, %v11215_v16 }
 0xb44   :  { %v11183_v1 = vpop.f32.mrf.mxu1  ;;  %v11266_v2 = vpop.f32.mrf.mxu0 }
 0xb45   :  { %v11216_v3 = vadd.f32 %v11183_v1, %v21199_v20 }
 0xb46   :  { %v15926_v53 = vpop.f32.mrf.mxu1  ;;  %v15950_v18 = vpop.f32.mrf.mxu0 }
 0xb47   :  { %v21237_v42 = vadd.f32 %v11266_v2, %v11216_v3 }
 0xb48   :  { %v11186_v29 = vpop.f32.mrf.mxu1  ;;  %v11269_v34 = vpop.f32.mrf.mxu0 }
 0xb49   :  { %v11217_v30 = vadd.f32 %v11186_v29, %v21211_v59 }
 0xb4a   :  { %v15927_v33 = vpop.f32.mrf.mxu1  ;;  %v15951_v60 = vpop.f32.mrf.mxu0 }
 0xb4b   :  { %v21240_v45 = vadd.f32 %v11269_v34, %v11217_v30 }
 0xb4c   :  { %v11191_v7 = vpop.f32.mrf.mxu1  ;;  %v11274_v0 = vpop.f32.mrf.mxu0 }
 0xb4d   :  { %v11218_v43 = vadd.f32 %v11191_v7, %v21214_v52 }
 0xb4e   :  { %v15930_v47 = vpop.f32.mrf.mxu1  ;;  %v15954_v11 = vpop.f32.mrf.mxu0 }
 0xb4f   :  { %v21243_v31 = vadd.f32 %v11274_v0, %v11218_v43 }
 0xb50   :  { %v11194_v20 = vpop.f32.mrf.mxu1  ;;  %v11277_v61 = vpop.f32.mrf.mxu0 }
 0xb51   :  { %v11219_v28 = vadd.f32 %v11194_v20, %v11136_v41 }
 0xb52   :  { %v15931_v36 = vpop.f32.mrf.mxu1  ;;  %v15955_v24 = vpop.f32.mrf.mxu0 }
 0xb53   :  { %v21245_v51 = vadd.f32 %v11277_v61, %v11219_v28 }
 0xb54   :  { %v11199_v59 = vpop.f32.mrf.mxu1  ;;  %v11282_v62 = vpop.f32.mrf.mxu0 }
 0xb55   :  { %v11220_v50 = vadd.f32 %v11199_v59, %v11137_v9 }
 0xb56   :  { %v15934_v5 = vpop.f32.mrf.mxu1  ;;  %v15958_v35 = vpop.f32.mrf.mxu0 }
 0xb57   :  { %v21247_v37 = vadd.f32 %v11282_v62, %v11220_v50 }
 0xb58   :  { %v11202_v19 = vpop.f32.mrf.mxu1  ;;  %v11285_v52 = vpop.f32.mrf.mxu0 }
 0xb59   :  { %v11221_v58 = vadd.f32 %v11202_v19, %v11138_v38 }
 0xb5a   :  { %v15935_v22 = vpop.f32.mrf.mxu1  ;;  %v15959_v8 = vpop.f32.mrf.mxu0 }
 0xb5b   :  { %v21249_v26 = vadd.f32 %v11285_v52, %v11221_v58 }
 0xb5c   :  { %v11207_v46 = vpop.f32.mrf.mxu1  ;;  %v11290_v41 = vpop.f32.mrf.mxu0 }
 0xb5d   :  { %v11222_v13 = vadd.f32 %v11207_v46, %v11139_v27 }
 0xb5e   :  { %v15938_v12 = vpop.f32.mrf.mxu1  ;;  %v15962_v39 = vpop.f32.mrf.mxu0 }
 0xb5f   :  { %v21251_v40 = vadd.f32 %v11290_v41, %v11222_v13 }
 0xb60   :  { %v11210_v6 = vpop.f32.mrf.mxu1  ;;  %v11293_v9 = vpop.f32.mrf.mxu0 }
 0xb61   :  { %v11223_v14 = vadd.f32 %v11210_v6, %v11140_v49 }
 0xb62   :  { %v15939_v25 = vpop.f32.mrf.mxu1  ;;  %v15963_v56 = vpop.f32.mrf.mxu0 }
 0xb63   :  { %v21253_v48 = vadd.f32 %v11293_v9, %v11223_v14  ;;  %v21279_v56 = vld [vmem:[%s21474_s6] ss:$0 sm:$0xff] }
 0xb64   :  { %v11391_v17 = vpop.f32.mrf.mxu1  ;;  %v11524_v38 = vpop.f32.mrf.mxu0 }
 0xb65   :  { %v11430_v58 = vadd.f32 %v11391_v17, %v21231_v57 }
 0xb66   :  { %v15970_v10 = vpop.f32.mrf.mxu1  ;;  %v15994_v15 = vpop.f32.mrf.mxu0 }
 0xb67   :  { %v11563_v13 = vadd.f32 %v11524_v38, %v11430_v58 }
 0xb68   :  { %v11394_v16 = vpop.f32.mrf.mxu1  ;;  %v11527_v55 = vpop.f32.mrf.mxu0 }
 0xb69   :  { %v11431_v12 = vadd.f32 %v11394_v16, %v21234_v32  ;;  %v21286_v32 = vld [vmem:[%s21475_s7] ss:$0 sm:$0xff] }
 0xb6a   :  { %v15971_v63 = vpop.f32.mrf.mxu1  ;;  %v15995_v1 = vpop.f32.mrf.mxu0 }
 0xb6b   :  { %v11564_v14 = vadd.f32 %v11527_v55, %v11431_v12 }
 0xb6c   :  { %v11399_v27 = vpop.f32.mrf.mxu1  ;;  %v11532_v2 = vpop.f32.mrf.mxu0 }
 0xb6d   :  { %v11432_v25 = vadd.f32 %v11399_v27, %v21237_v42 }
 0xb6e   :  { %v15974_v3 = vpop.f32.mrf.mxu1  ;;  %v15998_v53 = vpop.f32.mrf.mxu0 }
 0xb6f   :  { %v11565_v63 = vadd.f32 %v11532_v2, %v11432_v25 }
 0xb70   :  { %v11402_v18 = vpop.f32.mrf.mxu1  ;;  %v11535_v29 = vpop.f32.mrf.mxu0 }
 0xb71   :  { %v11433_v15 = vadd.f32 %v11402_v18, %v21240_v45 }
 0xb72   :  { %v15975_v34 = vpop.f32.mrf.mxu1  ;;  %v15999_v49 = vpop.f32.mrf.mxu0 }
 0xb73   :  { %v11566_v3 = vadd.f32 %v11535_v29, %v11433_v15 }
 0xb74   :  { %v11407_v30 = vpop.f32.mrf.mxu1  ;;  %v11540_v33 = vpop.f32.mrf.mxu0 }
 0xb75   :  { %v11434_v34 = vadd.f32 %v11407_v30, %v21243_v31 }
 0xb76   :  { %v15978_v60 = vpop.f32.mrf.mxu1  ;;  %v16002_v7 = vpop.f32.mrf.mxu0 }
 0xb77   :  { %v16643_v60 = vld [vmem:[%s21473_s11 + $0x7f0] ss:$8 sps:$4 sm:$0xff]  }
 0xb78   :  { %v11410_v0 = vpop.f32.mrf.mxu1  ;;  %v21255_v43 = vpop.f32.mrf.mxu0 }
 0xb79   :  { %v11435_v29 = vadd.f32 %v11410_v0, %v21245_v51  ;;  %v16651_v51 = vld [vmem:[%s21473_s11 + $0x7d4] ss:$8 sps:$4 sm:$0xff]  }
 0xb7a   :  { %v15979_v47 = vpop.f32.mrf.mxu1  ;;  %v16003_v11 = vpop.f32.mrf.mxu0 }
 0xb7b   :  { %v16648_v11 = vld [vmem:[%s21473_s11 + $0x7e4] ss:$8 sps:$4 sm:$0xff]  }
 0xb7c   :  { %v21257_v20 = vpop.f32.mrf.mxu1  ;;  %v21259_v61 = vpop.f32.mrf.mxu0 }
 0xb7d   :  { %v11436_v58 = vadd.f32 %v21257_v20, %v21247_v37 }
 0xb7e   :  { %v15982_v28 = vpop.f32.mrf.mxu1  ;;  %v16006_v36 = vpop.f32.mrf.mxu0 }
 0xb7f   :  { %v11567_v36 = vadd.f32 %v11540_v33, %v11434_v34  ;;  %v11568_v33 = vadd.f32 %v21255_v43, %v11435_v29  ;;  %v16657_v43 = vld [vmem:[%s21473_s11 + $0x7c4] ss:$8 sps:$4 sm:$0xff]   ;;  %v11569_v37 = vadd.f32 %v21259_v61, %v11436_v58  ;;  %v16660_v61 = vld [vmem:[%s21473_s11 + $0x874] ss:$8 sps:$4 sm:$0xff]  }
 0xb80   :  { %v21261_v24 = vpop.f32.mrf.mxu1  ;;  %v21263_v59 = vpop.f32.mrf.mxu0 }
 0xb81   :  { %v11437_v20 = vadd.f32 %v21261_v24, %v21249_v26 }
 0xb82   :  { %v15983_v62 = vpop.f32.mrf.mxu1  ;;  %v16007_v50 = vpop.f32.mrf.mxu0 }
 0xb83   :  { %v16646_v50 = vld [vmem:[%s21473_s11 + $0x7e0] ss:$8 sps:$4 sm:$0xff]  }
 0xb84   :  { %v21265_v5 = vpop.f32.mrf.mxu1  ;;  %v21267_v35 = vpop.f32.mrf.mxu0 }
 0xb85   :  { %v11438_v26 = vadd.f32 %v21265_v5, %v21251_v40  ;;  %v16666_v40 = vld [vmem:[%s21473_s11 + $0x864] ss:$8 sps:$4 sm:$0xff]  }
 0xb86   :  { %v15986_v19 = vpop.f32.mrf.mxu1  ;;  %v16010_v52 = vpop.f32.mrf.mxu0 }
 0xb87   :  { %v11571_v5 = vadd.f32 %v21267_v35, %v11438_v26  ;;  %v16667_v35 = vld [vmem:[%s21473_s11 + $0x8a0] ss:$8 sps:$4 sm:$0xff]  }
 0xb88   :  { %v21270_v22 = vpop.f32.mrf.mxu1  ;;  %v21272_v8 = vpop.f32.mrf.mxu0  ;;  %v16696_v26 = vld [vmem:[%s21476_s15 + $0x40] sm:$0xff]  }
 0xb8a   :  { %v15987_v46 = vpop.f32.mrf.mxu1  ;;  %v16011_v41 = vpop.f32.mrf.mxu0 }
 0xb8c   :  { %v11657_v39 = vpop.f32.mrf.mxu1 }
 0xb8d   :  { %v11696_v6 = vadd.f32 %v11657_v39, %v11563_v13  ;;  %v16649_v39 = vld [vmem:[%s21473_s11 + $0x7d0] ss:$8 sps:$4 sm:$0xff]  }
 0xb8e   :  { %v16018_v9 = vpop.f32.mrf.mxu1 }
 0xb8f   :  { %v11706_v57 = vmul.f32 %v21279_v56, %v11696_v6 }
 0xb90   :  { %v11660_v17 = vpop.f32.mrf.mxu1 }
 0xb91   :  { %v11697_v10 = vadd.f32 %v11660_v17, %v11564_v14  ;;  %v11716_v42 = vadd.f32 %v21286_v32, %v11706_v57 }
 0xb92   :  { %v16019_v38 = vpop.f32.mrf.mxu1 }
 0xb93   :  { %v11707_v16 = vmul.f32 %v21279_v56, %v11697_v10  ;;  %v11726_v45 = vmax.f32 %v11716_v42, 0.0  ;;  %v16655_v10 = vld [vmem:[%s21473_s11 + $0x7c0] ss:$8 sps:$4 sm:$0xff]  }
 0xb94   :  { %v11665_v55 = vpop.f32.mrf.mxu1 }
 0xb95   :  { %v11717_v1 = vadd.f32 %v21286_v32, %v11707_v16  ;;  %v11698_v27 = vadd.f32 %v11665_v55, %v11565_v63  ;;  %v11570_v63 = vadd.f32 %v21263_v59, %v11437_v20  ;;  %v16669_v59 = vld [vmem:[%s21473_s11 + $0x8a4] ss:$8 sps:$4 sm:$0xff]  }
 0xb96   :  { %v16022_v53 = vpop.f32.mrf.mxu1  ;;  %v16688_v20 = vld [vmem:[%s21476_s15 + $0x60] sm:$0xff]  }
 0xb97   :  { %v11727_v18 = vmax.f32 %v11717_v1, 0.0  ;;  %v11708_v2 = vmul.f32 %v21279_v56, %v11698_v27  ;;  %v16658_v27 = vld [vmem:[%s21473_s11 + $0x870] ss:$8 sps:$4 sm:$0xff]  }
 0xb98   :  { %v11668_v49 = vpop.f32.mrf.mxu1 }
 0xb99   :  { %v11736_v7 = vpack.c.bf16 %v11727_v18, %v11726_v45  ;;  %v11699_v47 = vadd.f32 %v11668_v49, %v11566_v3  ;;  %v11718_v31 = vadd.f32 %v21286_v32, %v11708_v2  ;;  %v16661_v3 = vld [vmem:[%s21473_s11 + $0x8b0] ss:$8 sps:$4 sm:$0xff]   ;;  %v11439_v18 = vadd.f32 %v21270_v22, %v21253_v48 }
 0xb9a   :  { %v16023_v28 = vpop.f32.mrf.mxu1 }
 0xb9b   :  { %v11709_v30 = vmul.f32 %v21279_v56, %v11699_v47  ;;  %13659 = vmatmul.mubr.msk.bf16.vlgmr.msra.gmra.mxu0 %vm3265_vm7, %v11736_v7  ;;  %v11728_v46 = vmax.f32 %v11718_v31, 0.0  ;;  %v16664_v7 = vld [vmem:[%s21473_s11 + $0x860] ss:$8 sps:$4 sm:$0xff]   ;;  %v16672_v47 = vld [vmem:[%s21473_s11 + $0x854] ss:$8 sps:$4 sm:$0xff]   ;;  %v11572_v28 = vadd.f32 %v21272_v8, %v11439_v18 }
 0xb9c   :  { %11901 = vmatpush1.bf16.msra.mxu0 %v16643_v60  ;;  %v11673_v62 = vpop.f32.mrf.mxu1  ;;  %11924 = vmatprep.mubr.bf16.mxu0 %v21495_v44  ;;  %v16681_v8 = vld [vmem:[%s21473_s11 + $0x884] ss:$8 sps:$4 sm:$0xff]  }
 0xb9d   :  { %v11719_v19 = vadd.f32 %v21286_v32, %v11709_v30  ;;  %v11700_v52 = vadd.f32 %v11673_v62, %v11567_v36  ;;  %11902 = vmatprep.subr.bf16.mxu0 %v16648_v11  ;;  %v16675_v11 = vld [vmem:[%s21473_s11 + $0x894] ss:$8 sps:$4 sm:$0xff]  }
 0xb9e   :  { %v16026_v0 = vpop.f32.mrf.mxu1 }
 0xb9f   :  { %v11729_v41 = vmax.f32 %v11719_v19, 0.0  ;;  %v11710_v13 = vmul.f32 %v21279_v56, %v11700_v52  ;;  %v16673_v19 = vld [vmem:[%s21473_s11 + $0x890] ss:$8 sps:$4 sm:$0xff]  }
 0xba0   :  { %11903 = vmatpush1.bf16.msra.mxu0 %v16646_v50  ;;  %v11676_v12 = vpop.f32.mrf.mxu1  ;;  %v16670_v50 = vld [vmem:[%s21473_s11 + $0x850] ss:$8 sps:$4 sm:$0xff]  }
 0xba1   :  { %v11737_v6 = vpack.c.bf16 %v11729_v41, %v11728_v46  ;;  %v11701_v9 = vadd.f32 %v11676_v12, %v11568_v33  ;;  %11904 = vmatprep.subr.bf16.mxu0 %v16651_v51  ;;  %v11720_v25 = vadd.f32 %v21286_v32, %v11710_v13  ;;  %v16676_v46 = vld [vmem:[%s21473_s11 + $0x840] ss:$8 sps:$4 sm:$0xff]  }
 0xba2   :  { %v16027_v14 = vpop.f32.mrf.mxu1  ;;  %v16679_v41 = vld [vmem:[%s21473_s11 + $0x880] ss:$8 sps:$4 sm:$0xff]  }
 0xba3   :  { %v11711_v57 = vmul.f32 %v21279_v56, %v11701_v9  ;;  %v11730_v42 = vmax.f32 %v11720_v25, 0.0  ;;  %v16683_v9 = vld [vmem:[%s21476_s15 + $0x38] sm:$0xff]   ;;  %v16686_v14 = vld [vmem:[%s21476_s15 + $0x68] sm:$0xff]   ;;  %v16689_v25 = vld [vmem:[%s21476_s15 + $0x20] sm:$0xff]  }
 0xba4   :  { %11905 = vmatpush1.bf16.msra.mxu0 %v16649_v39  ;;  %v11681_v17 = vpop.f32.mrf.mxu1 }
 0xba5   :  { %v11721_v15 = vadd.f32 %v21286_v32, %v11711_v57  ;;  %v11702_v38 = vadd.f32 %v11681_v17, %v11569_v37  ;;  %11906 = vmatprep.subr.bf16.mxu0 %v16657_v43  ;;  %v16685_v43 = vld [vmem:[%s21476_s15 + $0x30] sm:$0xff]   ;;  %v16687_v37 = vld [vmem:[%s21476_s15 + $0x28] sm:$0xff]   ;;  %v16690_v57 = vld [vmem:[%s21476_s15 + $0x58] sm:$0xff]  }
 0xba6   :  { %v16030_v24 = vpop.f32.mrf.mxu1  ;;  %v16691_v17 = vld [vmem:[%s21476_s15 + $0x18] sm:$0xff]  }
 0xba7   :  { %v11731_v16 = vmax.f32 %v11721_v15, 0.0  ;;  %v11712_v55 = vmul.f32 %v21279_v56, %v11702_v38  ;;  %v16693_v15 = vld [vmem:[%s21476_s15 + $0x10] sm:$0xff]   ;;  %v16694_v38 = vld [vmem:[%s21476_s15 + $0x48] sm:$0xff]   ;;  %v16697_v24 = vld [vmem:[%s21476_s15] sm:$0xff]  }
 0xba8   :  { %11907 = vmatpush1.bf16.msra.mxu0 %v16655_v10  ;;  %v11684_v1 = vpop.f32.mrf.mxu1  ;;  %v16692_v10 = vld [vmem:[%s21476_s15 + $0x50] sm:$0xff]  }
 0xba9   :  { %v11738_v53 = vpack.c.bf16 %v11731_v16, %v11730_v42  ;;  %v11703_v34 = vadd.f32 %v11684_v1, %v11570_v63  ;;  %12098 = vmatprep.subr.bf16.mxu0 %v16660_v61  ;;  %v11722_v2 = vadd.f32 %v21286_v32, %v11712_v55  ;;  %v16695_v61 = vld [vmem:[%s21476_s15 + $0x8] sm:$0xff]  }
 0xbaa   :  { %v16031_v45 = vpop.f32.mrf.mxu1 }
 0xbab   :  { %v11713_v49 = vmul.f32 %v21279_v56, %v11703_v34  ;;  %13676 = vmatmul.mubr.msk.bf16.vlgmr.msra.gmra.mxu0 %vm3265_vm7, %v11737_v6  ;;  %13693 = vmatmul.mubr.msk.bf16.vlgmr.msra.gmra.mxu1 %vm3265_vm7, %v11738_v53  ;;  %v11732_v36 = vmax.f32 %v11722_v2, 0.0 }
 0xbac   :  { %12099 = vmatpush1.bf16.msra.mxu0 %v16658_v27  ;;  %v11689_v60 = vpop.f32.mrf.mxu1  ;;  %12198 = vmatpush1.bf16.msra.mxu1 %v16661_v3  ;;  %v12238_v3 = vlaneseq }
 0xbad   :  { %v11723_v48 = vadd.f32 %v21286_v32, %v11713_v49  ;;  %v11704_v22 = vadd.f32 %v11689_v60, %v11571_v5  ;;  %12100 = vmatprep.subr.bf16.mxu0 %v16666_v40  ;;  %12199 = vmatprep.subr.bf16.mxu1 %v16669_v59 }
 0xbae   :  { %v16034_v29 = vpop.f32.mrf.mxu1  ;;  %12122 = vmatprep.mubr.bf16.mxu0 %v21495_v44  ;;  %12221 = vmatprep.mubr.bf16.mxu1 %v21495_v44  ;;  %v16678_v44 = vld [vmem:[%s21473_s11 + $0x844] ss:$8 sps:$4 sm:$0xff]   ;;  %v12239_v59 = vshrl.u32 %v12238_v3, 7 }
 0xbaf   :  { %v11733_v31 = vmax.f32 %v11723_v48, 0.0  ;;  %v11714_v30 = vmul.f32 %v21279_v56, %v11704_v22  ;;  %v12236_v22 = vld [vmem:[%s21477_s13] sm:$0x3] }
 0xbb0   :  { %12101 = vmatpush1.bf16.msra.mxu0 %v16664_v7  ;;  %v11692_v62 = vpop.f32.mrf.mxu1  ;;  %12200 = vmatpush1.bf16.msra.mxu1 %v16667_v35  ;;  %v12240_v7 = vsub.s32 0, %v12239_v59  ;;  %v12244_v29 = vsub.s32 1, %v12239_v59 }
 0xbb1   :  { %v11739_v52 = vpack.c.bf16 %v11733_v31, %v11732_v36  ;;  %v11705_v51 = vadd.f32 %v11692_v62, %v11572_v28  ;;  %12102 = vmatprep.subr.bf16.mxu0 %v16672_v47  ;;  %12201 = vmatprep.subr.bf16.mxu1 %v16675_v11  ;;  %v11724_v0 = vadd.f32 %v21286_v32, %v11714_v30 }
 0xbb2   :  { %v16035_v33 = vpop.f32.mrf.mxu1  ;;  %v12241_v62 = vrot.slane %v12236_v22, %v12240_v7 }
 0xbb3   :  { %v11715_v58 = vmul.f32 %v21279_v56, %v11705_v51  ;;  %v11734_v12 = vmax.f32 %v11724_v0, 0.0  ;;  %v16682_v56 = vld [vmem:[%s21476_s15 + $0x78] sm:$0xff]  }
 0xbb4   :  { %12103 = vmatpush1.bf16.msra.mxu0 %v16670_v50  ;;  %12202 = vmatpush1.bf16.msra.mxu1 %v16673_v19 }
 0xbb5   :  { %v11725_v13 = vadd.f32 %v21286_v32, %v11715_v58  ;;  %12104 = vmatprep.subr.bf16.mxu0 %v16678_v44  ;;  %12203 = vmatprep.subr.bf16.mxu1 %v16681_v8  ;;  %v16684_v32 = vld [vmem:[%s21476_s15 + $0x70] sm:$0xff]   ;;  %v12245_v8 = vrot.slane %v12236_v22, %v12244_v29 }
 0xbb7   :  { %v11735_v39 = vmax.f32 %v11725_v13, 0.0 }
 0xbb8   :  { %12105 = vmatpush1.bf16.msra.mxu0 %v16676_v46  ;;  %12204 = vmatpush1.bf16.msra.mxu1 %v16679_v41 }
 0xbb9   :  { %v11740_v6 = vpack.c.bf16 %v11735_v39, %v11734_v12  ;;  %14314 = vmatprep.subr.bf16.mxu0 %v16682_v56 }
 0xbbb   :  { %13710 = vmatmul.mubr.msk.bf16.vlgmr.msra.gmra.mxu0 %vm3265_vm7, %v11739_v52  ;;  %13727 = vmatmul.mubr.msk.bf16.vlgmr.msra.gmra.mxu1 %vm3265_vm7, %v11740_v6 }
 0xbbc   :  { %14315 = vmatpush3.bf16.msra.mxu0 %v16683_v9 }
 0xbbd   :  { %14316 = vmatprep.subr.bf16.mxu0 %v16684_v32 }
 0xbc0   :  { %14317 = vmatpush3.bf16.msra.mxu0 %v16685_v43 }
 0xbc1   :  { %14318 = vmatprep.subr.bf16.mxu0 %v16686_v14 }
 0xbc4   :  { %14319 = vmatpush3.bf16.msra.mxu0 %v16687_v37 }
 0xbc5   :  { %14320 = vmatprep.subr.bf16.mxu0 %v16688_v20 }
 0xbc8   :  { %14321 = vmatpush3.bf16.msra.mxu0 %v16689_v25 }
 0xbc9   :  { %14322 = vmatprep.subr.bf16.mxu0 %v16690_v57 }
 0xbcc   :  { %14323 = vmatpush3.bf16.msra.mxu0 %v16691_v17 }
 0xbcd   :  { %14324 = vmatprep.subr.bf16.mxu0 %v16692_v10 }
 0xbd0   :  { %14325 = vmatpush3.bf16.msra.mxu0 %v16693_v15 }
 0xbd1   :  { %14326 = vmatprep.subr.bf16.mxu0 %v16694_v38 }
 0xbd4   :  { %14327 = vmatpush3.bf16.msra.mxu0 %v16695_v61 }
 0xbd5   :  { %14328 = vmatprep.subr.bf16.mxu0 %v16696_v26 }
 0xbd8   :  { %14329 = vmatpush3.bf16.msra.mxu0 %v16697_v24 }
 0xc5b   :  { %v11827_v63 = vpop.f32.mrf.mxu0 }
 0xc5c   :  { %v11836_v40 = vadd.f32 %v11827_v63, %v21126_v4 }
 0xc5d   :  { %v11829_v42 = vpop.f32.mrf.mxu0 }
 0xc5e   :  { %v11837_v18 = vadd.f32 %v11829_v42, %v21128_v54  ;;  %v13728_v42 = vld [vmem:[%s21479_s16] ss:$0 sm:$0xff] }
 0xc5f   :  { %v11831_v16 = vpop.f32.mrf.mxu0 }
 0xc60   :  { %v11838_v49 = vadd.f32 %v11831_v16, %v21130_v23  ;;  %v12252_v23 = vld [vmem:[%s21478_s14] sm:$0x3] }
 0xc61   :  { %v11833_v55 = vpop.f32.mrf.mxu0  ;;  %v12261_v56 = vrot.slane %v12252_v23, %v12244_v29 }
 0xc62   :  { %v11839_v47 = vadd.f32 %v11833_v55, %v21133_v21  ;;  %v12257_v21 = vrot.slane %v12252_v23, %v12240_v7 }
 0xc6b   :  { %v11926_v1 = vpop.f32.mrf.mxu0  ;;  %v12025_v27 = vpop.f32.mrf.mxu1 }
 0xc6c   :  { %v11935_v2 = vadd.f32 %v11926_v1, %v11836_v40 }
 0xc6d   :  { %v11928_v53 = vpop.f32.mrf.mxu0  ;;  %v12027_v34 = vpop.f32.mrf.mxu1 }
 0xc6e   :  { %v11936_v60 = vadd.f32 %v11928_v53, %v11837_v18  ;;  %v12034_v11 = vadd.f32 %v12025_v27, %v11935_v2 }
 0xc6f   :  { %v11930_v5 = vpop.f32.mrf.mxu0  ;;  %v12029_v45 = vpop.f32.mrf.mxu1 }
 0xc70   :  { %v11937_v4 = vadd.f32 %v11930_v5, %v11838_v49  ;;  %v12035_v31 = vadd.f32 %v12027_v34, %v11936_v60 }
 0xc71   :  { %v11932_v35 = vpop.f32.mrf.mxu0  ;;  %v12031_v48 = vpop.f32.mrf.mxu1 }
 0xc72   :  { %v11938_v54 = vadd.f32 %v11932_v35, %v11839_v47  ;;  %v12036_v52 = vadd.f32 %v12029_v45, %v11937_v4 }
 0xc74   :  { %v12037_v58 = vadd.f32 %v12031_v48, %v11938_v54 }
 0xc7b   :  { %v12124_v28 = vpop.f32.mrf.mxu0  ;;  %v12223_v36 = vpop.f32.mrf.mxu1 }
 0xc7c   :  { %v12133_v30 = vadd.f32 %v12124_v28, %v12034_v11 }
 0xc7d   :  { %v12126_v50 = vpop.f32.mrf.mxu0  ;;  %v12225_v19 = vpop.f32.mrf.mxu1 }
 0xc7e   :  { %v12232_v51 = vadd.f32 %v12223_v36, %v12133_v30  ;;  %v12134_v44 = vadd.f32 %v12126_v50, %v12035_v31 }
 0xc7f   :  { %v12128_v33 = vpop.f32.mrf.mxu0  ;;  %v12227_v0 = vpop.f32.mrf.mxu1 }
 0xc80   :  { %v12248_v46 = vmul.f32 %v12241_v62, %v12232_v51  ;;  %v12233_v41 = vadd.f32 %v12225_v19, %v12134_v44  ;;  %v12135_v13 = vadd.f32 %v12128_v33, %v12036_v52 }
 0xc81   :  { %v12130_v12 = vpop.f32.mrf.mxu0  ;;  %v12229_v39 = vpop.f32.mrf.mxu1 }
 0xc82   :  { %v12249_v6 = vmul.f32 %v12245_v8, %v12233_v41  ;;  %v12234_v9 = vadd.f32 %v12227_v0, %v12135_v13  ;;  %v12136_v32 = vadd.f32 %v12130_v12, %v12037_v58  ;;  %v12264_v43 = vadd.f32 %v12257_v21, %v12248_v46 }
 0xc84   :  { %v12250_v14 = vmul.f32 %v12241_v62, %v12234_v9  ;;  %v12235_v37 = vadd.f32 %v12229_v39, %v12136_v32  ;;  %v12265_v20 = vadd.f32 %v12261_v56, %v12249_v6  ;;  %v12268_v17 = vmax.f32 %v12264_v43, 0.0 }
 0xc86   :  { %v12266_v25 = vadd.f32 %v12257_v21, %v12250_v14  ;;  %v12251_v57 = vmul.f32 %v12245_v8, %v12235_v37  ;;  %v12269_v38 = vmax.f32 %v12265_v20, 0.0 }
 0xc88   :  { %v12270_v10 = vmax.f32 %v12266_v25, 0.0  ;;  %v12267_v15 = vadd.f32 %v12261_v56, %v12251_v57 }
 0xc8a   :  { %v12272_v61 = vpack.c.bf16 %v12270_v10, %v12268_v17  ;;  %v12271_v26 = vmax.f32 %v12267_v15, 0.0 }
 0xc8c   :  { %v12273_v24 = vpack.c.bf16 %v12271_v26, %v12269_v38 }
 0xc8e   :  { %12441 = vmatprep.mubr.bf16.mxu0 %v12273_v24 }
 0xc8f   :  { %12442 = vmatmul.mubr.bf16.vlgmr.msra.gmra.mxu0 %v12272_v61 }
 0xd4f   :  { %v14330_v63 = vpop.f32.mrf.mxu0 }
 0xd51   :  { %v14331_v16 = vpop.f32.mrf.mxu0 }
 0xd52   :  { %v14332_v55 = vadd.f32 %v14331_v16, %v14330_v63 }
 0xd53   :  { %v14333_v1 = vpop.f32.mrf.mxu0 }
 0xd54   :  { %v12444_v27 = vadd.f32 %v14332_v55, %v13728_v42 }
 0xd55   :  { %v14334_v3 = vpop.f32.mrf.mxu0 }
 0xd56   :  { %12450 = vst [vmem:[%s21480_s17] sm:$0xff] %v12444_v27  ;;  %v14335_v53 = vadd.f32 %v14334_v3, %v14333_v1 }
 0xd58   :  { %v12447_v34 = vadd.f32 %v14335_v53, %v13728_v42 }
 0xd5a   :  { %12451 = vst [vmem:[%s21480_s17 + $0x8] sm:$0xff] %v12447_v34 }

</bundles_post_ra>
